<compile_context>
chip_gen: v7x
topology: tpu7x:2x2x1
jax: 0.10.0
libtpu: 0.0.40
codegen_flags: <defaults>
</compile_context>

<pallas_src>
import functools

import jax
import jax.numpy as jnp
from jax import lax
from jax.experimental import pallas as pl
from jax.experimental.pallas import tpu as pltpu


def _round_up(x, m):
    return (x + m - 1) // m * m


def fused_regression_head_kernel(x_ref, w_ref, b_ref, o_ref, act_ref, *,
                                 H, W, cins, couts, koffs, cout_last):
    """Whole 5-layer head for one batch element, VMEM-resident.

    x_ref   : (1, H, W, Cin0)          input tile
    w_ref   : (K_total, Cpad)          packed im2col weights (per-layer K
                                       blocks start at 8-aligned offsets)
    b_ref   : (8, Cpad)                packed biases (row l = layer l)
    o_ref   : (1, Cout_last, H*W)      channels-major, lane-dense output
    act_ref : (H+2, W+2, Cmax)         zero-haloed activation buffer (reused
                                       by every layer)
    """
    f32 = jnp.float32
    M = H * W
    c_max = act_ref.shape[2]

    # --- zero ONLY the 1-pixel halo ring (interior is always overwritten) ---
    act_ref[pl.ds(0, 1), :, :] = jnp.zeros((1, W + 2, c_max), f32)
    act_ref[pl.ds(H + 1, 1), :, :] = jnp.zeros((1, W + 2, c_max), f32)
    act_ref[:, pl.ds(0, 1), :] = jnp.zeros((H + 2, 1, c_max), f32)
    act_ref[:, pl.ds(W + 1, 1), :] = jnp.zeros((H + 2, 1, c_max), f32)

    # --- input tile -> interior of the haloed buffer ---
    act_ref[pl.ds(1, H), pl.ds(1, W), pl.ds(0, cins[0])] = x_ref[0]

    for layer in range(5):
        cin = cins[layer]
        cout = couts[layer]
        koff = koffs[layer]

        # 3x3 conv = 9 accumulated MXU dots; taps are read directly from the
        # haloed buffer (no im2col scatter, no patch slab).
        acc = None
        for dh in range(3):
            for dw in range(3):
                j = dh * 3 + dw
                tap = act_ref[pl.ds(dh, H), pl.ds(dw, W), pl.ds(0, cin)]
                wt = w_ref[pl.ds(koff + j * cin, cin), :]        # (cin, Cpad)
                d = jnp.dot(tap.reshape(M, cin), wt,
                            preferred_element_type=f32)
                acc = d if acc is None else acc + d
        acc = acc + b_ref[pl.ds(layer, 1), :]                    # fused bias

        if layer < 4:
            acc = jnp.maximum(acc, 0.0)                          # ReLU
            act_ref[pl.ds(1, H), pl.ds(1, W), pl.ds(0, cout)] = (
                acc[:, 0:cout].reshape(H, W, cout))
        else:
            # One aligned (M, Cpad) -> (Cpad, M) XLU transpose, then store a
            # channels-major block whose last dim (H*W) is lane dense.  This
            # makes the PyTorch NCHW view(B, -1, 4) a pure reshape outside.
            acc_t = jnp.transpose(acc)                           # (Cpad, M)
            o_ref[...] = acc_t[0:cout_last, :].reshape(1, cout_last, M)


def regression_model_forward(x_nchw, params):
    """Forward matching RegressionModel.forward: NCHW in, (B, -1, 4) out."""
    B, c_in, H, W = x_nchw.shape
    M = H * W
    # TODO(synk): input NCHW->NHWC relayout has no in-kernel win at this size;
    # it is left to XLA (tiny tensor).
    x_nhwc = jnp.transpose(x_nchw, (0, 2, 3, 1))

    cins, couts = [], []
    for i in range(5):
        w = params[f"w{i}"]                      # (3, 3, Cin_i, Cout_i)
        cins.append(w.shape[2])
        couts.append(w.shape[3])
    cout_last = couts[-1]
    cout_pad = _round_up(max(couts), 128)        # shared padded matmul N
    c_max = max(cins)

    # Pack weights/biases: one (K_total, Cpad) weight slab (8-aligned layer
    # blocks, zero-padded), one (8, Cpad) bias slab.
    w_blocks, b_rows, koffs = [], [], []
    koff = 0
    for i in range(5):
        cin, cout = cins[i], couts[i]
        w = params[f"w{i}"].reshape(9 * cin, cout).astype(jnp.float32)
        kblk = _round_up(9 * cin, 8)
        w_blocks.append(jnp.pad(w, ((0, kblk - 9 * cin),
                                    (0, cout_pad - cout))))
        koffs.append(koff)
        koff += kblk
        b_rows.append(jnp.pad(params[f"b{i}"].astype(jnp.float32),
                              (0, cout_pad - cout)))
    k_total = koff
    w_slab = jnp.concatenate(w_blocks, axis=0)                    # (K, Cpad)
    b_slab = jnp.stack(
        b_rows + [jnp.zeros((cout_pad,), jnp.float32)] * 3)       # (8, Cpad)

    flops = 2 * B * M * sum(9 * cins[i] * couts[i] for i in range(5))
    bytes_accessed = 4 * (x_nhwc.size + B * cout_last * M
                          + w_slab.size + b_slab.size)
    cost = pl.CostEstimate(flops=flops, transcendentals=0,
                           bytes_accessed=bytes_accessed)

    kernel = functools.partial(
        fused_regression_head_kernel, H=H, W=W,
        cins=tuple(cins), couts=tuple(couts), koffs=tuple(koffs),
        cout_last=cout_last)

    out_cm = pl.pallas_call(
        kernel,
        out_shape=jax.ShapeDtypeStruct((B, cout_last, M), jnp.float32),
        grid=(B,),
        in_specs=[
            pl.BlockSpec((1, H, W, c_in), lambda b: (b, 0, 0, 0)),
            pl.BlockSpec((k_total, cout_pad), lambda b: (0, 0)),
            pl.BlockSpec((8, cout_pad), lambda b: (0, 0)),
        ],
        out_specs=pl.BlockSpec((1, cout_last, M), lambda b: (b, 0, 0)),
        scratch_shapes=[pltpu.VMEM((H + 2, W + 2, c_max), jnp.float32)],
        compiler_params=pltpu.CompilerParams(
            dimension_semantics=("parallel",)),
        cost_estimate=cost,
    )(x_nhwc, w_slab, b_slab)

    # out_cm[b, c, h*W + w] == conv_out_NCHW[b, c, h, w], so PyTorch's
    # out.contiguous().view(B, -1, 4) is a pure reshape (no transpose).
    return out_cm.reshape(B, -1, 4)


def init_params(key, num_features_in, num_anchors, feature_size):
    """Deterministic synthetic parameters, weights stored as (3,3,Cin,Cout)."""
    dims = [num_features_in] + [feature_size] * 4
    outs = [feature_size] * 4 + [num_anchors * 4]
    params = {}
    for i, (cin, cout) in enumerate(zip(dims, outs)):
        key, kw, kb = jax.random.split(key, 3)
        fan_in = cin * 9
        scale = 1.0 / jnp.sqrt(fan_in)
        params[f"w{i}"] = (jax.random.uniform(kw, (3, 3, cin, cout),
                                              jnp.float32, -1.0, 1.0) * scale)
        params[f"b{i}"] = (jax.random.uniform(kb, (cout,),
                                              jnp.float32, -1.0, 1.0) * scale)
    return params


def reference_forward(x_nchw, params):
    """Pure-JAX reference (lax conv, NCHW) for correctness check."""
    x = x_nchw
    for i in range(5):
        w = params[f"w{i}"]                      # (3,3,Cin,Cout)
        w_oihw = jnp.transpose(w, (3, 2, 0, 1))
        x = lax.conv_general_dilated(
            x, w_oihw, window_strides=(1, 1), padding=((1, 1), (1, 1)),
            dimension_numbers=("NCHW", "OIHW", "NCHW"))
        x = x + params[f"b{i}"].reshape(1, -1, 1, 1)
        if i < 4:
            x = jnp.maximum(x, 0.0)
    B = x.shape[0]
    return x.reshape(B, -1, 4)


if __name__ == "__main__":
    # Small shapes consistent with the module.
    B, C_IN, H, W = 2, 4, 16, 16
    NUM_ANCHORS = 9
    FEATURE_SIZE = 32

    key = jax.random.PRNGKey(0)
    key, kx = jax.random.split(key)
    x = jax.random.normal(kx, (B, C_IN, H, W), jnp.float32)
    params = init_params(key, C_IN, NUM_ANCHORS, FEATURE_SIZE)

    out = jax.jit(regression_model_forward)(x, params)
    out = jax.block_until_ready(out)

    expected_shape = (B, NUM_ANCHORS * H * W, 4)
    assert out.shape == expected_shape, (out.shape, expected_shape)

    ref = jax.block_until_ready(reference_forward(x, params))
    assert jnp.allclose(out, ref, rtol=1e-3, atol=1e-3), "mismatch vs reference"

    print("KERNEL_OK")
</pallas_src>

<mosaic_0001>
module attributes {stable_mosaic.version = 11 : i64} {
  func.func @fused_regression_head_kernel(%arg0: i32, %arg1: memref<1x16x16x4xf32, #tpu.memory_space<vmem>>, %arg2: memref<1192x128xf32, #tpu.memory_space<vmem>>, %arg3: memref<8x128xf32, #tpu.memory_space<vmem>>, %arg4: memref<1x36x256xf32, #tpu.memory_space<vmem>>, %arg5: memref<18x18x32xf32, #tpu.memory_space<vmem>>) attributes {dimension_semantics = [#tpu.dimension_semantics<parallel>], iteration_bounds = array<i64: 2>, scalar_prefetch = 0 : i64, scratch_operands = 1 : i64, tpu.core_type = #tpu.core_type<tc>, window_params = [{transform_indices = @transform_0, window_bounds = array<i64: 1, 16, 16, 4>}, {pipeline_mode = #tpu.pipeline_mode<synchronous>, transform_indices = @transform_1, window_bounds = array<i64: 1192, 128>}, {pipeline_mode = #tpu.pipeline_mode<synchronous>, transform_indices = @transform_2, window_bounds = array<i64: 8, 128>}, {transform_indices = @transform_3, window_bounds = array<i64: 1, 36, 256>}]} {
    %cst = arith.constant 0.000000e+00 : f32
    %0 = vector.broadcast %cst : f32 to vector<1x18x32xf32>
    %c0 = arith.constant 0 : index
    %c0_0 = arith.constant 0 : index
    %c0_1 = arith.constant 0 : index
    %1 = vector.load %arg5[%c0, %c0_0, %c0_1] : memref<18x18x32xf32, #tpu.memory_space<vmem>>, vector<1x18x32xf32>
    tpu.vector_store %arg5[%c0, %c0_0, %c0_1], %0 {strides = array<i32>} : memref<18x18x32xf32, #tpu.memory_space<vmem>>, vector<1x18x32xf32>,
    %cst_2 = arith.constant 0.000000e+00 : f32
    %2 = vector.broadcast %cst_2 : f32 to vector<1x18x32xf32>
    %c17 = arith.constant 17 : index
    %c0_3 = arith.constant 0 : index
    %c0_4 = arith.constant 0 : index
    %3 = vector.load %arg5[%c17, %c0_3, %c0_4] : memref<18x18x32xf32, #tpu.memory_space<vmem>>, vector<1x18x32xf32>
    tpu.vector_store %arg5[%c17, %c0_3, %c0_4], %2 {strides = array<i32>} : memref<18x18x32xf32, #tpu.memory_space<vmem>>, vector<1x18x32xf32>,
    %cst_5 = arith.constant 0.000000e+00 : f32
    %4 = vector.broadcast %cst_5 : f32 to vector<18x1x32xf32>
    %c0_6 = arith.constant 0 : index
    %c0_7 = arith.constant 0 : index
    %c0_8 = arith.constant 0 : index
    %5 = vector.load %arg5[%c0_6, %c0_7, %c0_8] : memref<18x18x32xf32, #tpu.memory_space<vmem>>, vector<18x1x32xf32>
    tpu.vector_store %arg5[%c0_6, %c0_7, %c0_8], %4 {strides = array<i32>} : memref<18x18x32xf32, #tpu.memory_space<vmem>>, vector<18x1x32xf32>,
    %cst_9 = arith.constant 0.000000e+00 : f32
    %6 = vector.broadcast %cst_9 : f32 to vector<18x1x32xf32>
    %c0_10 = arith.constant 0 : index
    %c17_11 = arith.constant 17 : index
    %c0_12 = arith.constant 0 : index
    %7 = vector.load %arg5[%c0_10, %c17_11, %c0_12] : memref<18x18x32xf32, #tpu.memory_space<vmem>>, vector<18x1x32xf32>
    tpu.vector_store %arg5[%c0_10, %c17_11, %c0_12], %6 {strides = array<i32>} : memref<18x18x32xf32, #tpu.memory_space<vmem>>, vector<18x1x32xf32>,
    %c0_13 = arith.constant 0 : index
    %c0_14 = arith.constant 0 : index
    %c0_15 = arith.constant 0 : index
    %c0_16 = arith.constant 0 : index
    %8 = vector.load %arg1[%c0_13, %c0_14, %c0_15, %c0_16] : memref<1x16x16x4xf32, #tpu.memory_space<vmem>>, vector<1x16x16x4xf32>
    %9 = vector.shape_cast %8 : vector<1x16x16x4xf32> to vector<16x16x4xf32>
    %c1 = arith.constant 1 : index
    %c1_17 = arith.constant 1 : index
    %c0_18 = arith.constant 0 : index
    %10 = vector.load %arg5[%c1, %c1_17, %c0_18] : memref<18x18x32xf32, #tpu.memory_space<vmem>>, vector<16x16x4xf32>
    tpu.vector_store %arg5[%c1, %c1_17, %c0_18], %9 {strides = array<i32>} : memref<18x18x32xf32, #tpu.memory_space<vmem>>, vector<16x16x4xf32>,
    %c0_19 = arith.constant 0 : index
    %c0_20 = arith.constant 0 : index
    %c0_21 = arith.constant 0 : index
    %11 = vector.load %arg5[%c0_19, %c0_20, %c0_21] : memref<18x18x32xf32, #tpu.memory_space<vmem>>, vector<16x16x4xf32>
    %c0_22 = arith.constant 0 : index
    %c0_23 = arith.constant 0 : index
    %12 = vector.load %arg2[%c0_22, %c0_23] : memref<1192x128xf32, #tpu.memory_space<vmem>>, vector<4x128xf32>
    %13 = vector.shape_cast %11 : vector<16x16x4xf32> to vector<256x4xf32>
    %cst_24 = arith.constant dense<0.000000e+00> : vector<256x128xf32>
    %14 = tpu.matmul %13, %12, %cst_24 {dimension_numbers = #tpu.dot_dimension_numbers<[1], [0], [0], [1], [0, 0, 1, 1], [], []>} : vector<256x4xf32>, vector<4x128xf32>, vector<256x128xf32> -> vector<256x128xf32>
    %c0_25 = arith.constant 0 : index
    %c1_26 = arith.constant 1 : index
    %c0_27 = arith.constant 0 : index
    %15 = vector.load %arg5[%c0_25, %c1_26, %c0_27] : memref<18x18x32xf32, #tpu.memory_space<vmem>>, vector<16x16x4xf32>
    %c4 = arith.constant 4 : index
    %c0_28 = arith.constant 0 : index
    %16 = vector.load %arg2[%c4, %c0_28] : memref<1192x128xf32, #tpu.memory_space<vmem>>, vector<4x128xf32>
    %17 = vector.shape_cast %15 : vector<16x16x4xf32> to vector<256x4xf32>
    %cst_29 = arith.constant dense<0.000000e+00> : vector<256x128xf32>
    %18 = tpu.matmul %17, %16, %cst_29 {dimension_numbers = #tpu.dot_dimension_numbers<[1], [0], [0], [1], [0, 0, 1, 1], [], []>} : vector<256x4xf32>, vector<4x128xf32>, vector<256x128xf32> -> vector<256x128xf32>
    %19 = arith.addf %14, %18 : vector<256x128xf32>
    %c0_30 = arith.constant 0 : index
    %c2 = arith.constant 2 : index
    %c0_31 = arith.constant 0 : index
    %20 = vector.load %arg5[%c0_30, %c2, %c0_31] : memref<18x18x32xf32, #tpu.memory_space<vmem>>, vector<16x16x4xf32>
    %c8 = arith.constant 8 : index
    %c0_32 = arith.constant 0 : index
    %21 = vector.load %arg2[%c8, %c0_32] : memref<1192x128xf32, #tpu.memory_space<vmem>>, vector<4x128xf32>
    %22 = vector.shape_cast %20 : vector<16x16x4xf32> to vector<256x4xf32>
    %cst_33 = arith.constant dense<0.000000e+00> : vector<256x128xf32>
    %23 = tpu.matmul %22, %21, %cst_33 {dimension_numbers = #tpu.dot_dimension_numbers<[1], [0], [0], [1], [0, 0, 1, 1], [], []>} : vector<256x4xf32>, vector<4x128xf32>, vector<256x128xf32> -> vector<256x128xf32>
    %24 = arith.addf %19, %23 : vector<256x128xf32>
    %c1_34 = arith.constant 1 : index
    %c0_35 = arith.constant 0 : index
    %c0_36 = arith.constant 0 : index
    %25 = vector.load %arg5[%c1_34, %c0_35, %c0_36] : memref<18x18x32xf32, #tpu.memory_space<vmem>>, vector<16x16x4xf32>
    %c12 = arith.constant 12 : index
    %c0_37 = arith.constant 0 : index
    %26 = vector.load %arg2[%c12, %c0_37] : memref<1192x128xf32, #tpu.memory_space<vmem>>, vector<4x128xf32>
    %27 = vector.shape_cast %25 : vector<16x16x4xf32> to vector<256x4xf32>
    %cst_38 = arith.constant dense<0.000000e+00> : vector<256x128xf32>
    %28 = tpu.matmul %27, %26, %cst_38 {dimension_numbers = #tpu.dot_dimension_numbers<[1], [0], [0], [1], [0, 0, 1, 1], [], []>} : vector<256x4xf32>, vector<4x128xf32>, vector<256x128xf32> -> vector<256x128xf32>
    %29 = arith.addf %24, %28 : vector<256x128xf32>
    %c1_39 = arith.constant 1 : index
    %c1_40 = arith.constant 1 : index
    %c0_41 = arith.constant 0 : index
    %30 = vector.load %arg5[%c1_39, %c1_40, %c0_41] : memref<18x18x32xf32, #tpu.memory_space<vmem>>, vector<16x16x4xf32>
    %c16 = arith.constant 16 : index
    %c0_42 = arith.constant 0 : index
    %31 = vector.load %arg2[%c16, %c0_42] : memref<1192x128xf32, #tpu.memory_space<vmem>>, vector<4x128xf32>
    %32 = vector.shape_cast %30 : vector<16x16x4xf32> to vector<256x4xf32>
    %cst_43 = arith.constant dense<0.000000e+00> : vector<256x128xf32>
    %33 = tpu.matmul %32, %31, %cst_43 {dimension_numbers = #tpu.dot_dimension_numbers<[1], [0], [0], [1], [0, 0, 1, 1], [], []>} : vector<256x4xf32>, vector<4x128xf32>, vector<256x128xf32> -> vector<256x128xf32>
    %34 = arith.addf %29, %33 : vector<256x128xf32>
    %c1_44 = arith.constant 1 : index
    %c2_45 = arith.constant 2 : index
    %c0_46 = arith.constant 0 : index
    %35 = vector.load %arg5[%c1_44, %c2_45, %c0_46] : memref<18x18x32xf32, #tpu.memory_space<vmem>>, vector<16x16x4xf32>
    %c20 = arith.constant 20 : index
    %c0_47 = arith.constant 0 : index
    %36 = vector.load %arg2[%c20, %c0_47] : memref<1192x128xf32, #tpu.memory_space<vmem>>, vector<4x128xf32>
    %37 = vector.shape_cast %35 : vector<16x16x4xf32> to vector<256x4xf32>
    %cst_48 = arith.constant dense<0.000000e+00> : vector<256x128xf32>
    %38 = tpu.matmul %37, %36, %cst_48 {dimension_numbers = #tpu.dot_dimension_numbers<[1], [0], [0], [1], [0, 0, 1, 1], [], []>} : vector<256x4xf32>, vector<4x128xf32>, vector<256x128xf32> -> vector<256x128xf32>
    %39 = arith.addf %34, %38 : vector<256x128xf32>
    %c2_49 = arith.constant 2 : index
    %c0_50 = arith.constant 0 : index
    %c0_51 = arith.constant 0 : index
    %40 = vector.load %arg5[%c2_49, %c0_50, %c0_51] : memref<18x18x32xf32, #tpu.memory_space<vmem>>, vector<16x16x4xf32>
    %c24 = arith.constant 24 : index
    %c0_52 = arith.constant 0 : index
    %41 = vector.load %arg2[%c24, %c0_52] : memref<1192x128xf32, #tpu.memory_space<vmem>>, vector<4x128xf32>
    %42 = vector.shape_cast %40 : vector<16x16x4xf32> to vector<256x4xf32>
    %cst_53 = arith.constant dense<0.000000e+00> : vector<256x128xf32>
    %43 = tpu.matmul %42, %41, %cst_53 {dimension_numbers = #tpu.dot_dimension_numbers<[1], [0], [0], [1], [0, 0, 1, 1], [], []>} : vector<256x4xf32>, vector<4x128xf32>, vector<256x128xf32> -> vector<256x128xf32>
    %44 = arith.addf %39, %43 : vector<256x128xf32>
    %c2_54 = arith.constant 2 : index
    %c1_55 = arith.constant 1 : index
    %c0_56 = arith.constant 0 : index
    %45 = vector.load %arg5[%c2_54, %c1_55, %c0_56] : memref<18x18x32xf32, #tpu.memory_space<vmem>>, vector<16x16x4xf32>
    %c28 = arith.constant 28 : index
    %c0_57 = arith.constant 0 : index
    %46 = vector.load %arg2[%c28, %c0_57] : memref<1192x128xf32, #tpu.memory_space<vmem>>, vector<4x128xf32>
    %47 = vector.shape_cast %45 : vector<16x16x4xf32> to vector<256x4xf32>
    %cst_58 = arith.constant dense<0.000000e+00> : vector<256x128xf32>
    %48 = tpu.matmul %47, %46, %cst_58 {dimension_numbers = #tpu.dot_dimension_numbers<[1], [0], [0], [1], [0, 0, 1, 1], [], []>} : vector<256x4xf32>, vector<4x128xf32>, vector<256x128xf32> -> vector<256x128xf32>
    %49 = arith.addf %44, %48 : vector<256x128xf32>
    %c2_59 = arith.constant 2 : index
    %c2_60 = arith.constant 2 : index
    %c0_61 = arith.constant 0 : index
    %50 = vector.load %arg5[%c2_59, %c2_60, %c0_61] : memref<18x18x32xf32, #tpu.memory_space<vmem>>, vector<16x16x4xf32>
    %c32 = arith.constant 32 : index
    %c0_62 = arith.constant 0 : index
    %51 = vector.load %arg2[%c32, %c0_62] : memref<1192x128xf32, #tpu.memory_space<vmem>>, vector<4x128xf32>
    %52 = vector.shape_cast %50 : vector<16x16x4xf32> to vector<256x4xf32>
    %cst_63 = arith.constant dense<0.000000e+00> : vector<256x128xf32>
    %53 = tpu.matmul %52, %51, %cst_63 {dimension_numbers = #tpu.dot_dimension_numbers<[1], [0], [0], [1], [0, 0, 1, 1], [], []>} : vector<256x4xf32>, vector<4x128xf32>, vector<256x128xf32> -> vector<256x128xf32>
    %54 = arith.addf %49, %53 : vector<256x128xf32>
    %c0_64 = arith.constant 0 : index
    %c0_65 = arith.constant 0 : index
    %55 = vector.load %arg3[%c0_64, %c0_65] : memref<8x128xf32, #tpu.memory_space<vmem>>, vector<1x128xf32>
    %56 = vector.broadcast %55 : vector<1x128xf32> to vector<256x128xf32>
    %57 = arith.addf %54, %56 : vector<256x128xf32>
    %cst_66 = arith.constant 0.000000e+00 : f32
    %58 = vector.broadcast %cst_66 : f32 to vector<256x128xf32>
    %59 = arith.maximumf %57, %58 : vector<256x128xf32>
    %60 = vector.extract_strided_slice %59 {offsets = [0, 0], sizes = [256, 32], strides = [1, 1]} : vector<256x128xf32> to vector<256x32xf32>
    %61 = vector.shape_cast %60 : vector<256x32xf32> to vector<16x16x32xf32>
    %c1_67 = arith.constant 1 : index
    %c1_68 = arith.constant 1 : index
    %c0_69 = arith.constant 0 : index
    %62 = vector.load %arg5[%c1_67, %c1_68, %c0_69] : memref<18x18x32xf32, #tpu.memory_space<vmem>>, vector<16x16x32xf32>
    tpu.vector_store %arg5[%c1_67, %c1_68, %c0_69], %61 {strides = array<i32>} : memref<18x18x32xf32, #tpu.memory_space<vmem>>, vector<16x16x32xf32>,
    %c0_70 = arith.constant 0 : index
    %c0_71 = arith.constant 0 : index
    %c0_72 = arith.constant 0 : index
    %63 = vector.load %arg5[%c0_70, %c0_71, %c0_72] : memref<18x18x32xf32, #tpu.memory_space<vmem>>, vector<16x16x32xf32>
    %c40 = arith.constant 40 : index
    %c0_73 = arith.constant 0 : index
    %64 = vector.load %arg2[%c40, %c0_73] : memref<1192x128xf32, #tpu.memory_space<vmem>>, vector<32x128xf32>
    %65 = vector.shape_cast %63 : vector<16x16x32xf32> to vector<256x32xf32>
    %cst_74 = arith.constant dense<0.000000e+00> : vector<256x128xf32>
    %66 = tpu.matmul %65, %64, %cst_74 {dimension_numbers = #tpu.dot_dimension_numbers<[1], [0], [0], [1], [0, 0, 1, 1], [], []>} : vector<256x32xf32>, vector<32x128xf32>, vector<256x128xf32> -> vector<256x128xf32>
    %c0_75 = arith.constant 0 : index
    %c1_76 = arith.constant 1 : index
    %c0_77 = arith.constant 0 : index
    %67 = vector.load %arg5[%c0_75, %c1_76, %c0_77] : memref<18x18x32xf32, #tpu.memory_space<vmem>>, vector<16x16x32xf32>
    %c72 = arith.constant 72 : index
    %c0_78 = arith.constant 0 : index
    %68 = vector.load %arg2[%c72, %c0_78] : memref<1192x128xf32, #tpu.memory_space<vmem>>, vector<32x128xf32>
    %69 = vector.shape_cast %67 : vector<16x16x32xf32> to vector<256x32xf32>
    %cst_79 = arith.constant dense<0.000000e+00> : vector<256x128xf32>
    %70 = tpu.matmul %69, %68, %cst_79 {dimension_numbers = #tpu.dot_dimension_numbers<[1], [0], [0], [1], [0, 0, 1, 1], [], []>} : vector<256x32xf32>, vector<32x128xf32>, vector<256x128xf32> -> vector<256x128xf32>
    %71 = arith.addf %66, %70 : vector<256x128xf32>
    %c0_80 = arith.constant 0 : index
    %c2_81 = arith.constant 2 : index
    %c0_82 = arith.constant 0 : index
    %72 = vector.load %arg5[%c0_80, %c2_81, %c0_82] : memref<18x18x32xf32, #tpu.memory_space<vmem>>, vector<16x16x32xf32>
    %c104 = arith.constant 104 : index
    %c0_83 = arith.constant 0 : index
    %73 = vector.load %arg2[%c104, %c0_83] : memref<1192x128xf32, #tpu.memory_space<vmem>>, vector<32x128xf32>
    %74 = vector.shape_cast %72 : vector<16x16x32xf32> to vector<256x32xf32>
    %cst_84 = arith.constant dense<0.000000e+00> : vector<256x128xf32>
    %75 = tpu.matmul %74, %73, %cst_84 {dimension_numbers = #tpu.dot_dimension_numbers<[1], [0], [0], [1], [0, 0, 1, 1], [], []>} : vector<256x32xf32>, vector<32x128xf32>, vector<256x128xf32> -> vector<256x128xf32>
    %76 = arith.addf %71, %75 : vector<256x128xf32>
    %c1_85 = arith.constant 1 : index
    %c0_86 = arith.constant 0 : index
    %c0_87 = arith.constant 0 : index
    %77 = vector.load %arg5[%c1_85, %c0_86, %c0_87] : memref<18x18x32xf32, #tpu.memory_space<vmem>>, vector<16x16x32xf32>
    %c136 = arith.constant 136 : index
    %c0_88 = arith.constant 0 : index
    %78 = vector.load %arg2[%c136, %c0_88] : memref<1192x128xf32, #tpu.memory_space<vmem>>, vector<32x128xf32>
    %79 = vector.shape_cast %77 : vector<16x16x32xf32> to vector<256x32xf32>
    %cst_89 = arith.constant dense<0.000000e+00> : vector<256x128xf32>
    %80 = tpu.matmul %79, %78, %cst_89 {dimension_numbers = #tpu.dot_dimension_numbers<[1], [0], [0], [1], [0, 0, 1, 1], [], []>} : vector<256x32xf32>, vector<32x128xf32>, vector<256x128xf32> -> vector<256x128xf32>
    %81 = arith.addf %76, %80 : vector<256x128xf32>
    %c1_90 = arith.constant 1 : index
    %c1_91 = arith.constant 1 : index
    %c0_92 = arith.constant 0 : index
    %82 = vector.load %arg5[%c1_90, %c1_91, %c0_92] : memref<18x18x32xf32, #tpu.memory_space<vmem>>, vector<16x16x32xf32>
    %c168 = arith.constant 168 : index
    %c0_93 = arith.constant 0 : index
    %83 = vector.load %arg2[%c168, %c0_93] : memref<1192x128xf32, #tpu.memory_space<vmem>>, vector<32x128xf32>
    %84 = vector.shape_cast %82 : vector<16x16x32xf32> to vector<256x32xf32>
    %cst_94 = arith.constant dense<0.000000e+00> : vector<256x128xf32>
    %85 = tpu.matmul %84, %83, %cst_94 {dimension_numbers = #tpu.dot_dimension_numbers<[1], [0], [0], [1], [0, 0, 1, 1], [], []>} : vector<256x32xf32>, vector<32x128xf32>, vector<256x128xf32> -> vector<256x128xf32>
    %86 = arith.addf %81, %85 : vector<256x128xf32>
    %c1_95 = arith.constant 1 : index
    %c2_96 = arith.constant 2 : index
    %c0_97 = arith.constant 0 : index
    %87 = vector.load %arg5[%c1_95, %c2_96, %c0_97] : memref<18x18x32xf32, #tpu.memory_space<vmem>>, vector<16x16x32xf32>
    %c200 = arith.constant 200 : index
    %c0_98 = arith.constant 0 : index
    %88 = vector.load %arg2[%c200, %c0_98] : memref<1192x128xf32, #tpu.memory_space<vmem>>, vector<32x128xf32>
    %89 = vector.shape_cast %87 : vector<16x16x32xf32> to vector<256x32xf32>
    %cst_99 = arith.constant dense<0.000000e+00> : vector<256x128xf32>
    %90 = tpu.matmul %89, %88, %cst_99 {dimension_numbers = #tpu.dot_dimension_numbers<[1], [0], [0], [1], [0, 0, 1, 1], [], []>} : vector<256x32xf32>, vector<32x128xf32>, vector<256x128xf32> -> vector<256x128xf32>
    %91 = arith.addf %86, %90 : vector<256x128xf32>
    %c2_100 = arith.constant 2 : index
    %c0_101 = arith.constant 0 : index
    %c0_102 = arith.constant 0 : index
    %92 = vector.load %arg5[%c2_100, %c0_101, %c0_102] : memref<18x18x32xf32, #tpu.memory_space<vmem>>, vector<16x16x32xf32>
    %c232 = arith.constant 232 : index
    %c0_103 = arith.constant 0 : index
    %93 = vector.load %arg2[%c232, %c0_103] : memref<1192x128xf32, #tpu.memory_space<vmem>>, vector<32x128xf32>
    %94 = vector.shape_cast %92 : vector<16x16x32xf32> to vector<256x32xf32>
    %cst_104 = arith.constant dense<0.000000e+00> : vector<256x128xf32>
    %95 = tpu.matmul %94, %93, %cst_104 {dimension_numbers = #tpu.dot_dimension_numbers<[1], [0], [0], [1], [0, 0, 1, 1], [], []>} : vector<256x32xf32>, vector<32x128xf32>, vector<256x128xf32> -> vector<256x128xf32>
    %96 = arith.addf %91, %95 : vector<256x128xf32>
    %c2_105 = arith.constant 2 : index
    %c1_106 = arith.constant 1 : index
    %c0_107 = arith.constant 0 : index
    %97 = vector.load %arg5[%c2_105, %c1_106, %c0_107] : memref<18x18x32xf32, #tpu.memory_space<vmem>>, vector<16x16x32xf32>
    %c264 = arith.constant 264 : index
    %c0_108 = arith.constant 0 : index
    %98 = vector.load %arg2[%c264, %c0_108] : memref<1192x128xf32, #tpu.memory_space<vmem>>, vector<32x128xf32>
    %99 = vector.shape_cast %97 : vector<16x16x32xf32> to vector<256x32xf32>
    %cst_109 = arith.constant dense<0.000000e+00> : vector<256x128xf32>
    %100 = tpu.matmul %99, %98, %cst_109 {dimension_numbers = #tpu.dot_dimension_numbers<[1], [0], [0], [1], [0, 0, 1, 1], [], []>} : vector<256x32xf32>, vector<32x128xf32>, vector<256x128xf32> -> vector<256x128xf32>
    %101 = arith.addf %96, %100 : vector<256x128xf32>
    %c2_110 = arith.constant 2 : index
    %c2_111 = arith.constant 2 : index
    %c0_112 = arith.constant 0 : index
    %102 = vector.load %arg5[%c2_110, %c2_111, %c0_112] : memref<18x18x32xf32, #tpu.memory_space<vmem>>, vector<16x16x32xf32>
    %c296 = arith.constant 296 : index
    %c0_113 = arith.constant 0 : index
    %103 = vector.load %arg2[%c296, %c0_113] : memref<1192x128xf32, #tpu.memory_space<vmem>>, vector<32x128xf32>
    %104 = vector.shape_cast %102 : vector<16x16x32xf32> to vector<256x32xf32>
    %cst_114 = arith.constant dense<0.000000e+00> : vector<256x128xf32>
    %105 = tpu.matmul %104, %103, %cst_114 {dimension_numbers = #tpu.dot_dimension_numbers<[1], [0], [0], [1], [0, 0, 1, 1], [], []>} : vector<256x32xf32>, vector<32x128xf32>, vector<256x128xf32> -> vector<256x128xf32>
    %106 = arith.addf %101, %105 : vector<256x128xf32>
    %c1_115 = arith.constant 1 : index
    %c0_116 = arith.constant 0 : index
    %107 = vector.load %arg3[%c1_115, %c0_116] : memref<8x128xf32, #tpu.memory_space<vmem>>, vector<1x128xf32>
    %108 = vector.broadcast %107 : vector<1x128xf32> to vector<256x128xf32>
    %109 = arith.addf %106, %108 : vector<256x128xf32>
    %cst_117 = arith.constant 0.000000e+00 : f32
    %110 = vector.broadcast %cst_117 : f32 to vector<256x128xf32>
    %111 = arith.maximumf %109, %110 : vector<256x128xf32>
    %112 = vector.extract_strided_slice %111 {offsets = [0, 0], sizes = [256, 32], strides = [1, 1]} : vector<256x128xf32> to vector<256x32xf32>
    %113 = vector.shape_cast %112 : vector<256x32xf32> to vector<16x16x32xf32>
    %c1_118 = arith.constant 1 : index
    %c1_119 = arith.constant 1 : index
    %c0_120 = arith.constant 0 : index
    %114 = vector.load %arg5[%c1_118, %c1_119, %c0_120] : memref<18x18x32xf32, #tpu.memory_space<vmem>>, vector<16x16x32xf32>
    tpu.vector_store %arg5[%c1_118, %c1_119, %c0_120], %113 {strides = array<i32>} : memref<18x18x32xf32, #tpu.memory_space<vmem>>, vector<16x16x32xf32>,
    %c0_121 = arith.constant 0 : index
    %c0_122 = arith.constant 0 : index
    %c0_123 = arith.constant 0 : index
    %115 = vector.load %arg5[%c0_121, %c0_122, %c0_123] : memref<18x18x32xf32, #tpu.memory_space<vmem>>, vector<16x16x32xf32>
    %c328 = arith.constant 328 : index
    %c0_124 = arith.constant 0 : index
    %116 = vector.load %arg2[%c328, %c0_124] : memref<1192x128xf32, #tpu.memory_space<vmem>>, vector<32x128xf32>
    %117 = vector.shape_cast %115 : vector<16x16x32xf32> to vector<256x32xf32>
    %cst_125 = arith.constant dense<0.000000e+00> : vector<256x128xf32>
    %118 = tpu.matmul %117, %116, %cst_125 {dimension_numbers = #tpu.dot_dimension_numbers<[1], [0], [0], [1], [0, 0, 1, 1], [], []>} : vector<256x32xf32>, vector<32x128xf32>, vector<256x128xf32> -> vector<256x128xf32>
    %c0_126 = arith.constant 0 : index
    %c1_127 = arith.constant 1 : index
    %c0_128 = arith.constant 0 : index
    %119 = vector.load %arg5[%c0_126, %c1_127, %c0_128] : memref<18x18x32xf32, #tpu.memory_space<vmem>>, vector<16x16x32xf32>
    %c360 = arith.constant 360 : index
    %c0_129 = arith.constant 0 : index
    %120 = vector.load %arg2[%c360, %c0_129] : memref<1192x128xf32, #tpu.memory_space<vmem>>, vector<32x128xf32>
    %121 = vector.shape_cast %119 : vector<16x16x32xf32> to vector<256x32xf32>
    %cst_130 = arith.constant dense<0.000000e+00> : vector<256x128xf32>
    %122 = tpu.matmul %121, %120, %cst_130 {dimension_numbers = #tpu.dot_dimension_numbers<[1], [0], [0], [1], [0, 0, 1, 1], [], []>} : vector<256x32xf32>, vector<32x128xf32>, vector<256x128xf32> -> vector<256x128xf32>
    %123 = arith.addf %118, %122 : vector<256x128xf32>
    %c0_131 = arith.constant 0 : index
    %c2_132 = arith.constant 2 : index
    %c0_133 = arith.constant 0 : index
    %124 = vector.load %arg5[%c0_131, %c2_132, %c0_133] : memref<18x18x32xf32, #tpu.memory_space<vmem>>, vector<16x16x32xf32>
    %c392 = arith.constant 392 : index
    %c0_134 = arith.constant 0 : index
    %125 = vector.load %arg2[%c392, %c0_134] : memref<1192x128xf32, #tpu.memory_space<vmem>>, vector<32x128xf32>
    %126 = vector.shape_cast %124 : vector<16x16x32xf32> to vector<256x32xf32>
    %cst_135 = arith.constant dense<0.000000e+00> : vector<256x128xf32>
    %127 = tpu.matmul %126, %125, %cst_135 {dimension_numbers = #tpu.dot_dimension_numbers<[1], [0], [0], [1], [0, 0, 1, 1], [], []>} : vector<256x32xf32>, vector<32x128xf32>, vector<256x128xf32> -> vector<256x128xf32>
    %128 = arith.addf %123, %127 : vector<256x128xf32>
    %c1_136 = arith.constant 1 : index
    %c0_137 = arith.constant 0 : index
    %c0_138 = arith.constant 0 : index
    %129 = vector.load %arg5[%c1_136, %c0_137, %c0_138] : memref<18x18x32xf32, #tpu.memory_space<vmem>>, vector<16x16x32xf32>
    %c424 = arith.constant 424 : index
    %c0_139 = arith.constant 0 : index
    %130 = vector.load %arg2[%c424, %c0_139] : memref<1192x128xf32, #tpu.memory_space<vmem>>, vector<32x128xf32>
    %131 = vector.shape_cast %129 : vector<16x16x32xf32> to vector<256x32xf32>
    %cst_140 = arith.constant dense<0.000000e+00> : vector<256x128xf32>
    %132 = tpu.matmul %131, %130, %cst_140 {dimension_numbers = #tpu.dot_dimension_numbers<[1], [0], [0], [1], [0, 0, 1, 1], [], []>} : vector<256x32xf32>, vector<32x128xf32>, vector<256x128xf32> -> vector<256x128xf32>
    %133 = arith.addf %128, %132 : vector<256x128xf32>
    %c1_141 = arith.constant 1 : index
    %c1_142 = arith.constant 1 : index
    %c0_143 = arith.constant 0 : index
    %134 = vector.load %arg5[%c1_141, %c1_142, %c0_143] : memref<18x18x32xf32, #tpu.memory_space<vmem>>, vector<16x16x32xf32>
    %c456 = arith.constant 456 : index
    %c0_144 = arith.constant 0 : index
    %135 = vector.load %arg2[%c456, %c0_144] : memref<1192x128xf32, #tpu.memory_space<vmem>>, vector<32x128xf32>
    %136 = vector.shape_cast %134 : vector<16x16x32xf32> to vector<256x32xf32>
    %cst_145 = arith.constant dense<0.000000e+00> : vector<256x128xf32>
    %137 = tpu.matmul %136, %135, %cst_145 {dimension_numbers = #tpu.dot_dimension_numbers<[1], [0], [0], [1], [0, 0, 1, 1], [], []>} : vector<256x32xf32>, vector<32x128xf32>, vector<256x128xf32> -> vector<256x128xf32>
    %138 = arith.addf %133, %137 : vector<256x128xf32>
    %c1_146 = arith.constant 1 : index
    %c2_147 = arith.constant 2 : index
    %c0_148 = arith.constant 0 : index
    %139 = vector.load %arg5[%c1_146, %c2_147, %c0_148] : memref<18x18x32xf32, #tpu.memory_space<vmem>>, vector<16x16x32xf32>
    %c488 = arith.constant 488 : index
    %c0_149 = arith.constant 0 : index
    %140 = vector.load %arg2[%c488, %c0_149] : memref<1192x128xf32, #tpu.memory_space<vmem>>, vector<32x128xf32>
    %141 = vector.shape_cast %139 : vector<16x16x32xf32> to vector<256x32xf32>
    %cst_150 = arith.constant dense<0.000000e+00> : vector<256x128xf32>
    %142 = tpu.matmul %141, %140, %cst_150 {dimension_numbers = #tpu.dot_dimension_numbers<[1], [0], [0], [1], [0, 0, 1, 1], [], []>} : vector<256x32xf32>, vector<32x128xf32>, vector<256x128xf32> -> vector<256x128xf32>
    %143 = arith.addf %138, %142 : vector<256x128xf32>
    %c2_151 = arith.constant 2 : index
    %c0_152 = arith.constant 0 : index
    %c0_153 = arith.constant 0 : index
    %144 = vector.load %arg5[%c2_151, %c0_152, %c0_153] : memref<18x18x32xf32, #tpu.memory_space<vmem>>, vector<16x16x32xf32>
    %c520 = arith.constant 520 : index
    %c0_154 = arith.constant 0 : index
    %145 = vector.load %arg2[%c520, %c0_154] : memref<1192x128xf32, #tpu.memory_space<vmem>>, vector<32x128xf32>
    %146 = vector.shape_cast %144 : vector<16x16x32xf32> to vector<256x32xf32>
    %cst_155 = arith.constant dense<0.000000e+00> : vector<256x128xf32>
    %147 = tpu.matmul %146, %145, %cst_155 {dimension_numbers = #tpu.dot_dimension_numbers<[1], [0], [0], [1], [0, 0, 1, 1], [], []>} : vector<256x32xf32>, vector<32x128xf32>, vector<256x128xf32> -> vector<256x128xf32>
    %148 = arith.addf %143, %147 : vector<256x128xf32>
    %c2_156 = arith.constant 2 : index
    %c1_157 = arith.constant 1 : index
    %c0_158 = arith.constant 0 : index
    %149 = vector.load %arg5[%c2_156, %c1_157, %c0_158] : memref<18x18x32xf32, #tpu.memory_space<vmem>>, vector<16x16x32xf32>
    %c552 = arith.constant 552 : index
    %c0_159 = arith.constant 0 : index
    %150 = vector.load %arg2[%c552, %c0_159] : memref<1192x128xf32, #tpu.memory_space<vmem>>, vector<32x128xf32>
    %151 = vector.shape_cast %149 : vector<16x16x32xf32> to vector<256x32xf32>
    %cst_160 = arith.constant dense<0.000000e+00> : vector<256x128xf32>
    %152 = tpu.matmul %151, %150, %cst_160 {dimension_numbers = #tpu.dot_dimension_numbers<[1], [0], [0], [1], [0, 0, 1, 1], [], []>} : vector<256x32xf32>, vector<32x128xf32>, vector<256x128xf32> -> vector<256x128xf32>
    %153 = arith.addf %148, %152 : vector<256x128xf32>
    %c2_161 = arith.constant 2 : index
    %c2_162 = arith.constant 2 : index
    %c0_163 = arith.constant 0 : index
    %154 = vector.load %arg5[%c2_161, %c2_162, %c0_163] : memref<18x18x32xf32, #tpu.memory_space<vmem>>, vector<16x16x32xf32>
    %c584 = arith.constant 584 : index
    %c0_164 = arith.constant 0 : index
    %155 = vector.load %arg2[%c584, %c0_164] : memref<1192x128xf32, #tpu.memory_space<vmem>>, vector<32x128xf32>
    %156 = vector.shape_cast %154 : vector<16x16x32xf32> to vector<256x32xf32>
    %cst_165 = arith.constant dense<0.000000e+00> : vector<256x128xf32>
    %157 = tpu.matmul %156, %155, %cst_165 {dimension_numbers = #tpu.dot_dimension_numbers<[1], [0], [0], [1], [0, 0, 1, 1], [], []>} : vector<256x32xf32>, vector<32x128xf32>, vector<256x128xf32> -> vector<256x128xf32>
    %158 = arith.addf %153, %157 : vector<256x128xf32>
    %c2_166 = arith.constant 2 : index
    %c0_167 = arith.constant 0 : index
    %159 = vector.load %arg3[%c2_166, %c0_167] : memref<8x128xf32, #tpu.memory_space<vmem>>, vector<1x128xf32>
    %160 = vector.broadcast %159 : vector<1x128xf32> to vector<256x128xf32>
    %161 = arith.addf %158, %160 : vector<256x128xf32>
    %cst_168 = arith.constant 0.000000e+00 : f32
    %162 = vector.broadcast %cst_168 : f32 to vector<256x128xf32>
    %163 = arith.maximumf %161, %162 : vector<256x128xf32>
    %164 = vector.extract_strided_slice %163 {offsets = [0, 0], sizes = [256, 32], strides = [1, 1]} : vector<256x128xf32> to vector<256x32xf32>
    %165 = vector.shape_cast %164 : vector<256x32xf32> to vector<16x16x32xf32>
    %c1_169 = arith.constant 1 : index
    %c1_170 = arith.constant 1 : index
    %c0_171 = arith.constant 0 : index
    %166 = vector.load %arg5[%c1_169, %c1_170, %c0_171] : memref<18x18x32xf32, #tpu.memory_space<vmem>>, vector<16x16x32xf32>
    tpu.vector_store %arg5[%c1_169, %c1_170, %c0_171], %165 {strides = array<i32>} : memref<18x18x32xf32, #tpu.memory_space<vmem>>, vector<16x16x32xf32>,
    %c0_172 = arith.constant 0 : index
    %c0_173 = arith.constant 0 : index
    %c0_174 = arith.constant 0 : index
    %167 = vector.load %arg5[%c0_172, %c0_173, %c0_174] : memref<18x18x32xf32, #tpu.memory_space<vmem>>, vector<16x16x32xf32>
    %c616 = arith.constant 616 : index
    %c0_175 = arith.constant 0 : index
    %168 = vector.load %arg2[%c616, %c0_175] : memref<1192x128xf32, #tpu.memory_space<vmem>>, vector<32x128xf32>
    %169 = vector.shape_cast %167 : vector<16x16x32xf32> to vector<256x32xf32>
    %cst_176 = arith.constant dense<0.000000e+00> : vector<256x128xf32>
    %170 = tpu.matmul %169, %168, %cst_176 {dimension_numbers = #tpu.dot_dimension_numbers<[1], [0], [0], [1], [0, 0, 1, 1], [], []>} : vector<256x32xf32>, vector<32x128xf32>, vector<256x128xf32> -> vector<256x128xf32>
    %c0_177 = arith.constant 0 : index
    %c1_178 = arith.constant 1 : index
    %c0_179 = arith.constant 0 : index
    %171 = vector.load %arg5[%c0_177, %c1_178, %c0_179] : memref<18x18x32xf32, #tpu.memory_space<vmem>>, vector<16x16x32xf32>
    %c648 = arith.constant 648 : index
    %c0_180 = arith.constant 0 : index
    %172 = vector.load %arg2[%c648, %c0_180] : memref<1192x128xf32, #tpu.memory_space<vmem>>, vector<32x128xf32>
    %173 = vector.shape_cast %171 : vector<16x16x32xf32> to vector<256x32xf32>
    %cst_181 = arith.constant dense<0.000000e+00> : vector<256x128xf32>
    %174 = tpu.matmul %173, %172, %cst_181 {dimension_numbers = #tpu.dot_dimension_numbers<[1], [0], [0], [1], [0, 0, 1, 1], [], []>} : vector<256x32xf32>, vector<32x128xf32>, vector<256x128xf32> -> vector<256x128xf32>
    %175 = arith.addf %170, %174 : vector<256x128xf32>
    %c0_182 = arith.constant 0 : index
    %c2_183 = arith.constant 2 : index
    %c0_184 = arith.constant 0 : index
    %176 = vector.load %arg5[%c0_182, %c2_183, %c0_184] : memref<18x18x32xf32, #tpu.memory_space<vmem>>, vector<16x16x32xf32>
    %c680 = arith.constant 680 : index
    %c0_185 = arith.constant 0 : index
    %177 = vector.load %arg2[%c680, %c0_185] : memref<1192x128xf32, #tpu.memory_space<vmem>>, vector<32x128xf32>
    %178 = vector.shape_cast %176 : vector<16x16x32xf32> to vector<256x32xf32>
    %cst_186 = arith.constant dense<0.000000e+00> : vector<256x128xf32>
    %179 = tpu.matmul %178, %177, %cst_186 {dimension_numbers = #tpu.dot_dimension_numbers<[1], [0], [0], [1], [0, 0, 1, 1], [], []>} : vector<256x32xf32>, vector<32x128xf32>, vector<256x128xf32> -> vector<256x128xf32>
    %180 = arith.addf %175, %179 : vector<256x128xf32>
    %c1_187 = arith.constant 1 : index
    %c0_188 = arith.constant 0 : index
    %c0_189 = arith.constant 0 : index
    %181 = vector.load %arg5[%c1_187, %c0_188, %c0_189] : memref<18x18x32xf32, #tpu.memory_space<vmem>>, vector<16x16x32xf32>
    %c712 = arith.constant 712 : index
    %c0_190 = arith.constant 0 : index
    %182 = vector.load %arg2[%c712, %c0_190] : memref<1192x128xf32, #tpu.memory_space<vmem>>, vector<32x128xf32>
    %183 = vector.shape_cast %181 : vector<16x16x32xf32> to vector<256x32xf32>
    %cst_191 = arith.constant dense<0.000000e+00> : vector<256x128xf32>
    %184 = tpu.matmul %183, %182, %cst_191 {dimension_numbers = #tpu.dot_dimension_numbers<[1], [0], [0], [1], [0, 0, 1, 1], [], []>} : vector<256x32xf32>, vector<32x128xf32>, vector<256x128xf32> -> vector<256x128xf32>
    %185 = arith.addf %180, %184 : vector<256x128xf32>
    %c1_192 = arith.constant 1 : index
    %c1_193 = arith.constant 1 : index
    %c0_194 = arith.constant 0 : index
    %186 = vector.load %arg5[%c1_192, %c1_193, %c0_194] : memref<18x18x32xf32, #tpu.memory_space<vmem>>, vector<16x16x32xf32>
    %c744 = arith.constant 744 : index
    %c0_195 = arith.constant 0 : index
    %187 = vector.load %arg2[%c744, %c0_195] : memref<1192x128xf32, #tpu.memory_space<vmem>>, vector<32x128xf32>
    %188 = vector.shape_cast %186 : vector<16x16x32xf32> to vector<256x32xf32>
    %cst_196 = arith.constant dense<0.000000e+00> : vector<256x128xf32>
    %189 = tpu.matmul %188, %187, %cst_196 {dimension_numbers = #tpu.dot_dimension_numbers<[1], [0], [0], [1], [0, 0, 1, 1], [], []>} : vector<256x32xf32>, vector<32x128xf32>, vector<256x128xf32> -> vector<256x128xf32>
    %190 = arith.addf %185, %189 : vector<256x128xf32>
    %c1_197 = arith.constant 1 : index
    %c2_198 = arith.constant 2 : index
    %c0_199 = arith.constant 0 : index
    %191 = vector.load %arg5[%c1_197, %c2_198, %c0_199] : memref<18x18x32xf32, #tpu.memory_space<vmem>>, vector<16x16x32xf32>
    %c776 = arith.constant 776 : index
    %c0_200 = arith.constant 0 : index
    %192 = vector.load %arg2[%c776, %c0_200] : memref<1192x128xf32, #tpu.memory_space<vmem>>, vector<32x128xf32>
    %193 = vector.shape_cast %191 : vector<16x16x32xf32> to vector<256x32xf32>
    %cst_201 = arith.constant dense<0.000000e+00> : vector<256x128xf32>
    %194 = tpu.matmul %193, %192, %cst_201 {dimension_numbers = #tpu.dot_dimension_numbers<[1], [0], [0], [1], [0, 0, 1, 1], [], []>} : vector<256x32xf32>, vector<32x128xf32>, vector<256x128xf32> -> vector<256x128xf32>
    %195 = arith.addf %190, %194 : vector<256x128xf32>
    %c2_202 = arith.constant 2 : index
    %c0_203 = arith.constant 0 : index
    %c0_204 = arith.constant 0 : index
    %196 = vector.load %arg5[%c2_202, %c0_203, %c0_204] : memref<18x18x32xf32, #tpu.memory_space<vmem>>, vector<16x16x32xf32>
    %c808 = arith.constant 808 : index
    %c0_205 = arith.constant 0 : index
    %197 = vector.load %arg2[%c808, %c0_205] : memref<1192x128xf32, #tpu.memory_space<vmem>>, vector<32x128xf32>
    %198 = vector.shape_cast %196 : vector<16x16x32xf32> to vector<256x32xf32>
    %cst_206 = arith.constant dense<0.000000e+00> : vector<256x128xf32>
    %199 = tpu.matmul %198, %197, %cst_206 {dimension_numbers = #tpu.dot_dimension_numbers<[1], [0], [0], [1], [0, 0, 1, 1], [], []>} : vector<256x32xf32>, vector<32x128xf32>, vector<256x128xf32> -> vector<256x128xf32>
    %200 = arith.addf %195, %199 : vector<256x128xf32>
    %c2_207 = arith.constant 2 : index
    %c1_208 = arith.constant 1 : index
    %c0_209 = arith.constant 0 : index
    %201 = vector.load %arg5[%c2_207, %c1_208, %c0_209] : memref<18x18x32xf32, #tpu.memory_space<vmem>>, vector<16x16x32xf32>
    %c840 = arith.constant 840 : index
    %c0_210 = arith.constant 0 : index
    %202 = vector.load %arg2[%c840, %c0_210] : memref<1192x128xf32, #tpu.memory_space<vmem>>, vector<32x128xf32>
    %203 = vector.shape_cast %201 : vector<16x16x32xf32> to vector<256x32xf32>
    %cst_211 = arith.constant dense<0.000000e+00> : vector<256x128xf32>
    %204 = tpu.matmul %203, %202, %cst_211 {dimension_numbers = #tpu.dot_dimension_numbers<[1], [0], [0], [1], [0, 0, 1, 1], [], []>} : vector<256x32xf32>, vector<32x128xf32>, vector<256x128xf32> -> vector<256x128xf32>
    %205 = arith.addf %200, %204 : vector<256x128xf32>
    %c2_212 = arith.constant 2 : index
    %c2_213 = arith.constant 2 : index
    %c0_214 = arith.constant 0 : index
    %206 = vector.load %arg5[%c2_212, %c2_213, %c0_214] : memref<18x18x32xf32, #tpu.memory_space<vmem>>, vector<16x16x32xf32>
    %c872 = arith.constant 872 : index
    %c0_215 = arith.constant 0 : index
    %207 = vector.load %arg2[%c872, %c0_215] : memref<1192x128xf32, #tpu.memory_space<vmem>>, vector<32x128xf32>
    %208 = vector.shape_cast %206 : vector<16x16x32xf32> to vector<256x32xf32>
    %cst_216 = arith.constant dense<0.000000e+00> : vector<256x128xf32>
    %209 = tpu.matmul %208, %207, %cst_216 {dimension_numbers = #tpu.dot_dimension_numbers<[1], [0], [0], [1], [0, 0, 1, 1], [], []>} : vector<256x32xf32>, vector<32x128xf32>, vector<256x128xf32> -> vector<256x128xf32>
    %210 = arith.addf %205, %209 : vector<256x128xf32>
    %c3 = arith.constant 3 : index
    %c0_217 = arith.constant 0 : index
    %211 = vector.load %arg3[%c3, %c0_217] : memref<8x128xf32, #tpu.memory_space<vmem>>, vector<1x128xf32>
    %212 = vector.broadcast %211 : vector<1x128xf32> to vector<256x128xf32>
    %213 = arith.addf %210, %212 : vector<256x128xf32>
    %cst_218 = arith.constant 0.000000e+00 : f32
    %214 = vector.broadcast %cst_218 : f32 to vector<256x128xf32>
    %215 = arith.maximumf %213, %214 : vector<256x128xf32>
    %216 = vector.extract_strided_slice %215 {offsets = [0, 0], sizes = [256, 32], strides = [1, 1]} : vector<256x128xf32> to vector<256x32xf32>
    %217 = vector.shape_cast %216 : vector<256x32xf32> to vector<16x16x32xf32>
    %c1_219 = arith.constant 1 : index
    %c1_220 = arith.constant 1 : index
    %c0_221 = arith.constant 0 : index
    %218 = vector.load %arg5[%c1_219, %c1_220, %c0_221] : memref<18x18x32xf32, #tpu.memory_space<vmem>>, vector<16x16x32xf32>
    tpu.vector_store %arg5[%c1_219, %c1_220, %c0_221], %217 {strides = array<i32>} : memref<18x18x32xf32, #tpu.memory_space<vmem>>, vector<16x16x32xf32>,
    %c0_222 = arith.constant 0 : index
    %c0_223 = arith.constant 0 : index
    %c0_224 = arith.constant 0 : index
    %219 = vector.load %arg5[%c0_222, %c0_223, %c0_224] : memref<18x18x32xf32, #tpu.memory_space<vmem>>, vector<16x16x32xf32>
    %c904 = arith.constant 904 : index
    %c0_225 = arith.constant 0 : index
    %220 = vector.load %arg2[%c904, %c0_225] : memref<1192x128xf32, #tpu.memory_space<vmem>>, vector<32x128xf32>
    %221 = vector.shape_cast %219 : vector<16x16x32xf32> to vector<256x32xf32>
    %cst_226 = arith.constant dense<0.000000e+00> : vector<256x128xf32>
    %222 = tpu.matmul %221, %220, %cst_226 {dimension_numbers = #tpu.dot_dimension_numbers<[1], [0], [0], [1], [0, 0, 1, 1], [], []>} : vector<256x32xf32>, vector<32x128xf32>, vector<256x128xf32> -> vector<256x128xf32>
    %c0_227 = arith.constant 0 : index
    %c1_228 = arith.constant 1 : index
    %c0_229 = arith.constant 0 : index
    %223 = vector.load %arg5[%c0_227, %c1_228, %c0_229] : memref<18x18x32xf32, #tpu.memory_space<vmem>>, vector<16x16x32xf32>
    %c936 = arith.constant 936 : index
    %c0_230 = arith.constant 0 : index
    %224 = vector.load %arg2[%c936, %c0_230] : memref<1192x128xf32, #tpu.memory_space<vmem>>, vector<32x128xf32>
    %225 = vector.shape_cast %223 : vector<16x16x32xf32> to vector<256x32xf32>
    %cst_231 = arith.constant dense<0.000000e+00> : vector<256x128xf32>
    %226 = tpu.matmul %225, %224, %cst_231 {dimension_numbers = #tpu.dot_dimension_numbers<[1], [0], [0], [1], [0, 0, 1, 1], [], []>} : vector<256x32xf32>, vector<32x128xf32>, vector<256x128xf32> -> vector<256x128xf32>
    %227 = arith.addf %222, %226 : vector<256x128xf32>
    %c0_232 = arith.constant 0 : index
    %c2_233 = arith.constant 2 : index
    %c0_234 = arith.constant 0 : index
    %228 = vector.load %arg5[%c0_232, %c2_233, %c0_234] : memref<18x18x32xf32, #tpu.memory_space<vmem>>, vector<16x16x32xf32>
    %c968 = arith.constant 968 : index
    %c0_235 = arith.constant 0 : index
    %229 = vector.load %arg2[%c968, %c0_235] : memref<1192x128xf32, #tpu.memory_space<vmem>>, vector<32x128xf32>
    %230 = vector.shape_cast %228 : vector<16x16x32xf32> to vector<256x32xf32>
    %cst_236 = arith.constant dense<0.000000e+00> : vector<256x128xf32>
    %231 = tpu.matmul %230, %229, %cst_236 {dimension_numbers = #tpu.dot_dimension_numbers<[1], [0], [0], [1], [0, 0, 1, 1], [], []>} : vector<256x32xf32>, vector<32x128xf32>, vector<256x128xf32> -> vector<256x128xf32>
    %232 = arith.addf %227, %231 : vector<256x128xf32>
    %c1_237 = arith.constant 1 : index
    %c0_238 = arith.constant 0 : index
    %c0_239 = arith.constant 0 : index
    %233 = vector.load %arg5[%c1_237, %c0_238, %c0_239] : memref<18x18x32xf32, #tpu.memory_space<vmem>>, vector<16x16x32xf32>
    %c1000 = arith.constant 1000 : index
    %c0_240 = arith.constant 0 : index
    %234 = vector.load %arg2[%c1000, %c0_240] : memref<1192x128xf32, #tpu.memory_space<vmem>>, vector<32x128xf32>
    %235 = vector.shape_cast %233 : vector<16x16x32xf32> to vector<256x32xf32>
    %cst_241 = arith.constant dense<0.000000e+00> : vector<256x128xf32>
    %236 = tpu.matmul %235, %234, %cst_241 {dimension_numbers = #tpu.dot_dimension_numbers<[1], [0], [0], [1], [0, 0, 1, 1], [], []>} : vector<256x32xf32>, vector<32x128xf32>, vector<256x128xf32> -> vector<256x128xf32>
    %237 = arith.addf %232, %236 : vector<256x128xf32>
    %c1_242 = arith.constant 1 : index
    %c1_243 = arith.constant 1 : index
    %c0_244 = arith.constant 0 : index
    %238 = vector.load %arg5[%c1_242, %c1_243, %c0_244] : memref<18x18x32xf32, #tpu.memory_space<vmem>>, vector<16x16x32xf32>
    %c1032 = arith.constant 1032 : index
    %c0_245 = arith.constant 0 : index
    %239 = vector.load %arg2[%c1032, %c0_245] : memref<1192x128xf32, #tpu.memory_space<vmem>>, vector<32x128xf32>
    %240 = vector.shape_cast %238 : vector<16x16x32xf32> to vector<256x32xf32>
    %cst_246 = arith.constant dense<0.000000e+00> : vector<256x128xf32>
    %241 = tpu.matmul %240, %239, %cst_246 {dimension_numbers = #tpu.dot_dimension_numbers<[1], [0], [0], [1], [0, 0, 1, 1], [], []>} : vector<256x32xf32>, vector<32x128xf32>, vector<256x128xf32> -> vector<256x128xf32>
    %242 = arith.addf %237, %241 : vector<256x128xf32>
    %c1_247 = arith.constant 1 : index
    %c2_248 = arith.constant 2 : index
    %c0_249 = arith.constant 0 : index
    %243 = vector.load %arg5[%c1_247, %c2_248, %c0_249] : memref<18x18x32xf32, #tpu.memory_space<vmem>>, vector<16x16x32xf32>
    %c1064 = arith.constant 1064 : index
    %c0_250 = arith.constant 0 : index
    %244 = vector.load %arg2[%c1064, %c0_250] : memref<1192x128xf32, #tpu.memory_space<vmem>>, vector<32x128xf32>
    %245 = vector.shape_cast %243 : vector<16x16x32xf32> to vector<256x32xf32>
    %cst_251 = arith.constant dense<0.000000e+00> : vector<256x128xf32>
    %246 = tpu.matmul %245, %244, %cst_251 {dimension_numbers = #tpu.dot_dimension_numbers<[1], [0], [0], [1], [0, 0, 1, 1], [], []>} : vector<256x32xf32>, vector<32x128xf32>, vector<256x128xf32> -> vector<256x128xf32>
    %247 = arith.addf %242, %246 : vector<256x128xf32>
    %c2_252 = arith.constant 2 : index
    %c0_253 = arith.constant 0 : index
    %c0_254 = arith.constant 0 : index
    %248 = vector.load %arg5[%c2_252, %c0_253, %c0_254] : memref<18x18x32xf32, #tpu.memory_space<vmem>>, vector<16x16x32xf32>
    %c1096 = arith.constant 1096 : index
    %c0_255 = arith.constant 0 : index
    %249 = vector.load %arg2[%c1096, %c0_255] : memref<1192x128xf32, #tpu.memory_space<vmem>>, vector<32x128xf32>
    %250 = vector.shape_cast %248 : vector<16x16x32xf32> to vector<256x32xf32>
    %cst_256 = arith.constant dense<0.000000e+00> : vector<256x128xf32>
    %251 = tpu.matmul %250, %249, %cst_256 {dimension_numbers = #tpu.dot_dimension_numbers<[1], [0], [0], [1], [0, 0, 1, 1], [], []>} : vector<256x32xf32>, vector<32x128xf32>, vector<256x128xf32> -> vector<256x128xf32>
    %252 = arith.addf %247, %251 : vector<256x128xf32>
    %c2_257 = arith.constant 2 : index
    %c1_258 = arith.constant 1 : index
    %c0_259 = arith.constant 0 : index
    %253 = vector.load %arg5[%c2_257, %c1_258, %c0_259] : memref<18x18x32xf32, #tpu.memory_space<vmem>>, vector<16x16x32xf32>
    %c1128 = arith.constant 1128 : index
    %c0_260 = arith.constant 0 : index
    %254 = vector.load %arg2[%c1128, %c0_260] : memref<1192x128xf32, #tpu.memory_space<vmem>>, vector<32x128xf32>
    %255 = vector.shape_cast %253 : vector<16x16x32xf32> to vector<256x32xf32>
    %cst_261 = arith.constant dense<0.000000e+00> : vector<256x128xf32>
    %256 = tpu.matmul %255, %254, %cst_261 {dimension_numbers = #tpu.dot_dimension_numbers<[1], [0], [0], [1], [0, 0, 1, 1], [], []>} : vector<256x32xf32>, vector<32x128xf32>, vector<256x128xf32> -> vector<256x128xf32>
    %257 = arith.addf %252, %256 : vector<256x128xf32>
    %c2_262 = arith.constant 2 : index
    %c2_263 = arith.constant 2 : index
    %c0_264 = arith.constant 0 : index
    %258 = vector.load %arg5[%c2_262, %c2_263, %c0_264] : memref<18x18x32xf32, #tpu.memory_space<vmem>>, vector<16x16x32xf32>
    %c1160 = arith.constant 1160 : index
    %c0_265 = arith.constant 0 : index
    %259 = vector.load %arg2[%c1160, %c0_265] : memref<1192x128xf32, #tpu.memory_space<vmem>>, vector<32x128xf32>
    %260 = vector.shape_cast %258 : vector<16x16x32xf32> to vector<256x32xf32>
    %cst_266 = arith.constant dense<0.000000e+00> : vector<256x128xf32>
    %261 = tpu.matmul %260, %259, %cst_266 {dimension_numbers = #tpu.dot_dimension_numbers<[1], [0], [0], [1], [0, 0, 1, 1], [], []>} : vector<256x32xf32>, vector<32x128xf32>, vector<256x128xf32> -> vector<256x128xf32>
    %262 = arith.addf %257, %261 : vector<256x128xf32>
    %c4_267 = arith.constant 4 : index
    %c0_268 = arith.constant 0 : index
    %263 = vector.load %arg3[%c4_267, %c0_268] : memref<8x128xf32, #tpu.memory_space<vmem>>, vector<1x128xf32>
    %264 = vector.broadcast %263 : vector<1x128xf32> to vector<256x128xf32>
    %265 = arith.addf %262, %264 : vector<256x128xf32>
    %266 = tpu.transpose %265, [1, 0] : vector<256x128xf32> -> vector<128x256xf32>
    %267 = vector.extract_strided_slice %266 {offsets = [0, 0], sizes = [36, 256], strides = [1, 1]} : vector<128x256xf32> to vector<36x256xf32>
    %268 = vector.shape_cast %267 : vector<36x256xf32> to vector<1x36x256xf32>
    %c0_269 = arith.constant 0 : index
    %c0_270 = arith.constant 0 : index
    %c0_271 = arith.constant 0 : index
    %269 = vector.load %arg4[%c0_269, %c0_270, %c0_271] : memref<1x36x256xf32, #tpu.memory_space<vmem>>, vector<1x36x256xf32>
    tpu.vector_store %arg4[%c0_269, %c0_270, %c0_271], %268 {strides = array<i32>} : memref<1x36x256xf32, #tpu.memory_space<vmem>>, vector<1x36x256xf32>,
    return
  }
  func.func @transform_0(%arg0: i32) -> (i32, i32, i32, i32) {
    %c0_i32 = arith.constant 0 : i32
    %c0_i32_0 = arith.constant 0 : i32
    %c0_i32_1 = arith.constant 0 : i32
    %c0_i32_2 = arith.constant 0 : i32
    return %arg0, %c0_i32, %c0_i32_0, %c0_i32_1 : i32, i32, i32, i32
  }
  func.func @transform_1(%arg0: i32) -> (i32, i32) {
    %c0_i32 = arith.constant 0 : i32
    %c0_i32_0 = arith.constant 0 : i32
    %c0_i32_1 = arith.constant 0 : i32
    return %c0_i32, %c0_i32_0 : i32, i32
  }
  func.func @transform_2(%arg0: i32) -> (i32, i32) {
    %c0_i32 = arith.constant 0 : i32
    %c0_i32_0 = arith.constant 0 : i32
    %c0_i32_1 = arith.constant 0 : i32
    return %c0_i32, %c0_i32_0 : i32, i32
  }
  func.func @transform_3(%arg0: i32) -> (i32, i32, i32) {
    %c0_i32 = arith.constant 0 : i32
    %c0_i32_0 = arith.constant 0 : i32
    %c0_i32_1 = arith.constant 0 : i32
    return %arg0, %c0_i32, %c0_i32_0 : i32, i32, i32
  }
}

</mosaic_0001>

<bundles_post_ra>
// kernel: regression_model_forward.1
= control target key start
LH: loop header
LB: loop body
LE: loop exit
PB: predicated region body
PF: predicated region fallthrough
CT: control target
= control target key end

     0   :  { %s25173_s12 = smov 0   ;;  %s29872_s0 = inlined_call_operand.vmem [shape: f32[2,16,16,4], index: 0, kind: input, shape index: {}]   ;;  %s29873_s1 = inlined_call_operand.vmem [shape: f32[1192,128], index: 1, kind: input, shape index: {}]   ;;  %s29874_s2 = inlined_call_operand.vmem [shape: f32[8,128], index: 2, kind: input, shape index: {}]   ;;  %s29875_s3 = inlined_call_operand.vmem [shape: f32[2,36,256], index: 3, kind: output, shape index: {}]  }
   0x1 LB: > { %s18040_s13 = sadd.s32 4294967295, %s25150_s12   ;;  %p18044_p0 = scmp.ge.s32.totalorder %s25150_s12, 1  ;;  %s25150_s12 = sphi %s25173_s12, %s13_s12  }
   0x2   : > { %p137_p1 = scmp.lt.s32.totalorder %s25150_s12, 3 }
   0x4   : > { %p138_p2 = pnand %p18044_p0, %p137_p1 }
   0x6   : > { %141 = sbr.rel (%p138_p2) target bundleno = 3599 (0xe0f), region = 32 }
   0xd   : > { %v348_v0 = vld [vmem:[%s29873_s1 + $0x4] sm:$0xf]  ;;  %vm445_vm0 = vcmask 1043456   ;;  %vm171_vm1 = vcmask 261120   ;;  %v25152_v1 = vmov 0.0   ;;  %vm174_vm2 = vcmask 254976  }
   0xe   : > { %21098 = vmatprep.subr.msk.mxu1 %vm445_vm0, %v348_v0  ;;  %172 = vst.msk [vmem:[#allocation2] sm:$0xff] %vm171_vm1, %v25152_v1  ;;  %173 = vst.msk [vmem:[#allocation2 + $0x8] sm:$0xff] %vm171_vm1, %v25152_v1  ;;  %v25192_v2 = vld [vmem:[%s29873_s1 + $0x10] sm:$0xf]  ;;  %p161_p3 = scmp.lt.s32.totalorder %s18040_s13, 1  ;;  %vm180_vm3 = vcmask 253952  }
   0xf   : > { %177 = vst.msk [vmem:[#allocation2 + $0x198] sm:$0xff] %vm171_vm1, %v25152_v1  ;;  %178 = vst.msk [vmem:[#allocation2 + $0x1a0] sm:$0xff] %vm171_vm1, %v25152_v1  ;;  %v25197_v3 = vld [vmem:[%s29873_s1] sm:$0xf]  ;;  %21099 = vmatpush3.msk.msra.mxu1 %vm445_vm0, %v348_v0  ;;  %21298 = vmatprep.subr.msk.mxu0 %vm445_vm0, %v25192_v2  ;;  %v25205_v4 = vld [vmem:[%s29873_s1 + $0x14] sm:$0xf] }
  0x10   : > { %175 = vst.msk [vmem:[#allocation2 + $0x10] sm:$0x3] %vm174_vm2, %v25152_v1  ;;  %179 = vst.msk [vmem:[#allocation2 + $0x1a8] sm:$0x3] %vm174_vm2, %v25152_v1  ;;  %21299 = vmatpush3.msk.msra.mxu0 %vm445_vm0, %v25192_v2  ;;  %s30572_s13 = smov (!%p161_p3, %s18040_s13), 1  ;;  %21148 = vmatprep.subr.msk.mxu1 %vm445_vm0, %v25197_v3  ;;  %vm250_vm4 = vcmask 31744  }
  0x11   : > { %200 = vst.msk [vmem:[#allocation2 + $0x29] sm:$0x1] %vm180_vm3, %v25152_v1  ;;  %181 = vst.msk [vmem:[#allocation2] sm:$0x1] %vm180_vm3, %v25152_v1  ;;  %21348 = vmatprep.subr.msk.mxu0 %vm445_vm0, %v25205_v4  ;;  %s19504_s22 = sshll.u32 %s30572_s13, 8  ;;  %s25134_s7 = smul.u32 80, %s30572_s13 }
  0x12   : > { %182 = vst.msk [vmem:[#allocation2 + $0x18] sm:$0x1] %vm180_vm3, %v25152_v1  ;;  %183 = vst.msk [vmem:[#allocation2 + $0x30] sm:$0x1] %vm180_vm3, %v25152_v1  ;;  %s25255_s25 = scalar_lea.vmem %s29872_s0, %s19504_s22  ;;  %v25263_v8 = vld [vmem:[%s29873_s1 + $0x8] sm:$0xf] }
  0x13   : > { %184 = vst.msk [vmem:[#allocation2 + $0x48] sm:$0x1] %vm180_vm3, %v25152_v1  ;;  %185 = vst.msk [vmem:[#allocation2 + $0x60] sm:$0x1] %vm180_vm3, %v25152_v1  ;;  %v217_v5 = vld [vmem:[%s25255_s25] sm:$0xff]  ;;  %v218_v6 = vld [vmem:[%s25255_s25 + $0x8] sm:$0xff]  ;;  %s170_s10 = scalar_lea.vmem %s29875_s3, %s25134_s7 }
  0x14   : > { %186 = vst.msk [vmem:[#allocation2 + $0x78] sm:$0x1] %vm180_vm3, %v25152_v1  ;;  %187 = vst.msk [vmem:[#allocation2 + $0x90] sm:$0x1] %vm180_vm3, %v25152_v1  ;;  %v219_v7 = vld [vmem:[%s25255_s25 + $0x10] sm:$0xff]  ;;  %v220_v10 = vld [vmem:[%s25255_s25 + $0x18] sm:$0xff] }
  0x15   : > { %188 = vst.msk [vmem:[#allocation2 + $0xa8] sm:$0x1] %vm180_vm3, %v25152_v1  ;;  %189 = vst.msk [vmem:[#allocation2 + $0xc0] sm:$0x1] %vm180_vm3, %v25152_v1  ;;  %v316_v9 = vld [vmem:[#allocation2 + $0x1] sm:$0xff]  ;;  %v223_v14 = vld [vmem:[%s25255_s25 + $0x30] sm:$0xff] }
  0x16   : > { %190 = vst.msk [vmem:[#allocation2 + $0xd8] sm:$0x1] %vm180_vm3, %v25152_v1  ;;  %191 = vst.msk [vmem:[#allocation2 + $0xf0] sm:$0x1] %vm180_vm3, %v25152_v1  ;;  %v221_v11 = vld [vmem:[%s25255_s25 + $0x20] sm:$0xff]  ;;  %21100 = vmatprep.mubr.msk.f32.mxu1 %vm250_vm4, %v316_v9  ;;  %v222_v13 = vld [vmem:[%s25255_s25 + $0x28] sm:$0xff] }
  0x17   : > { %192 = vst.msk [vmem:[#allocation2 + $0x108] sm:$0x1] %vm180_vm3, %v25152_v1  ;;  %193 = vst.msk [vmem:[#allocation2 + $0x120] sm:$0x1] %vm180_vm3, %v25152_v1  ;;  %v317_v12 = vld [vmem:[#allocation2 + $0x9] sm:$0xff]  ;;  %v224_v15 = vld [vmem:[%s25255_s25 + $0x38] sm:$0xff] }
  0x18   : > { %194 = vst.msk [vmem:[#allocation2 + $0x138] sm:$0x1] %vm180_vm3, %v25152_v1  ;;  %195 = vst.msk [vmem:[#allocation2 + $0x150] sm:$0x1] %vm180_vm3, %v25152_v1  ;;  %21101 = vmatmul.mubr.msk.f32.vlgmr.msra.gmra.mrb[0].mxu1 %vm250_vm4, %v317_v12  ;;  %v225_v16 = vld [vmem:[%s25255_s25 + $0x40] sm:$0xff]  ;;  %v226_v17 = vld [vmem:[%s25255_s25 + $0x48] sm:$0xff] }
  0x19   : > { %196 = vst.msk [vmem:[#allocation2 + $0x168] sm:$0x1] %vm180_vm3, %v25152_v1  ;;  %197 = vst.msk [vmem:[#allocation2 + $0x180] sm:$0x1] %vm180_vm3, %v25152_v1  ;;  %21149 = vmatpush3.msk.msra.mxu1 %vm445_vm0, %v25197_v3  ;;  %v227_v18 = vld [vmem:[%s25255_s25 + $0x50] sm:$0xff]  ;;  %v228_v19 = vld [vmem:[%s25255_s25 + $0x58] sm:$0xff] }
  0x1a   : > { %198 = vst.msk [vmem:[#allocation2 + $0x198] sm:$0x1] %vm180_vm3, %v25152_v1  ;;  %199 = vst.msk [vmem:[#allocation2 + $0x11] sm:$0x1] %vm180_vm3, %v25152_v1  ;;  %v229_v20 = vld [vmem:[%s25255_s25 + $0x60] sm:$0xff]  ;;  %v230_v21 = vld [vmem:[%s25255_s25 + $0x68] sm:$0xff]  ;;  %21198 = vmatprep.subr.msk.mxu1 %vm445_vm0, %v25263_v8 }
  0x1b   : > { %201 = vst.msk [vmem:[#allocation2 + $0x41] sm:$0x1] %vm180_vm3, %v25152_v1  ;;  %202 = vst.msk [vmem:[#allocation2 + $0x59] sm:$0x1] %vm180_vm3, %v25152_v1  ;;  %v231_v22 = vld [vmem:[%s25255_s25 + $0x70] sm:$0xff]  ;;  %v232_v23 = vld [vmem:[%s25255_s25 + $0x78] sm:$0xff] }
  0x1c   : > { %203 = vst.msk [vmem:[#allocation2 + $0x71] sm:$0x1] %vm180_vm3, %v25152_v1  ;;  %204 = vst.msk [vmem:[#allocation2 + $0x89] sm:$0x1] %vm180_vm3, %v25152_v1  ;;  %v233_v24 = vld [vmem:[%s25255_s25 + $0x80] sm:$0xff]  ;;  %v234_v25 = vld [vmem:[%s25255_s25 + $0x88] sm:$0xff] }
  0x1d   : > { %205 = vst.msk [vmem:[#allocation2 + $0xa1] sm:$0x1] %vm180_vm3, %v25152_v1  ;;  %206 = vst.msk [vmem:[#allocation2 + $0xb9] sm:$0x1] %vm180_vm3, %v25152_v1  ;;  %v235_v26 = vld [vmem:[%s25255_s25 + $0x90] sm:$0xff]  ;;  %v236_v27 = vld [vmem:[%s25255_s25 + $0x98] sm:$0xff] }
  0x1e   : > { %207 = vst.msk [vmem:[#allocation2 + $0xd1] sm:$0x1] %vm180_vm3, %v25152_v1  ;;  %208 = vst.msk [vmem:[#allocation2 + $0xe9] sm:$0x1] %vm180_vm3, %v25152_v1  ;;  %v237_v28 = vld [vmem:[%s25255_s25 + $0xa0] sm:$0xff]  ;;  %v238_v29 = vld [vmem:[%s25255_s25 + $0xa8] sm:$0xff] }
  0x1f   : > { %209 = vst.msk [vmem:[#allocation2 + $0x101] sm:$0x1] %vm180_vm3, %v25152_v1  ;;  %210 = vst.msk [vmem:[#allocation2 + $0x119] sm:$0x1] %vm180_vm3, %v25152_v1  ;;  %v25319_v33 = vld [vmem:[%s29873_s1 + $0x18] sm:$0xf] }
  0x20   : > { %211 = vst.msk [vmem:[#allocation2 + $0x131] sm:$0x1] %vm180_vm3, %v25152_v1  ;;  %212 = vst.msk [vmem:[#allocation2 + $0x149] sm:$0x1] %vm180_vm3, %v25152_v1  ;;  %v239_v38 = vld [vmem:[%s25255_s25 + $0xb0] sm:$0xff]  ;;  %v240_v39 = vld [vmem:[%s25255_s25 + $0xb8] sm:$0xff] }
  0x21   : > { %213 = vst.msk [vmem:[#allocation2 + $0x161] sm:$0x1] %vm180_vm3, %v25152_v1  ;;  %214 = vst.msk [vmem:[#allocation2 + $0x179] sm:$0x1] %vm180_vm3, %v25152_v1  ;;  %v241_v40 = vld [vmem:[%s25255_s25 + $0xc0] sm:$0xff]  ;;  %v242_v42 = vld [vmem:[%s25255_s25 + $0xc8] sm:$0xff] }
  0x22   : > { %215 = vst.msk [vmem:[#allocation2 + $0x191] sm:$0x1] %vm180_vm3, %v25152_v1  ;;  %216 = vst.msk [vmem:[#allocation2 + $0x1a9] sm:$0x1] %vm180_vm3, %v25152_v1  ;;  %v243_v44 = vld [vmem:[%s25255_s25 + $0xd0] sm:$0xff]  ;;  %v244_v45 = vld [vmem:[%s25255_s25 + $0xd8] sm:$0xff] }
  0x23   : > { %251 = vst.msk [vmem:[#allocation2 + $0x19] sm:$0xff] %vm250_vm4, %v217_v5  ;;  %252 = vst.msk [vmem:[#allocation2 + $0x21] sm:$0xff] %vm250_vm4, %v218_v6  ;;  %v245_v46 = vld [vmem:[%s25255_s25 + $0xe0] sm:$0xff]  ;;  %v246_v47 = vld [vmem:[%s25255_s25 + $0xe8] sm:$0xff] }
  0x24   : > { %253 = vst.msk [vmem:[#allocation2 + $0x31] sm:$0xff] %vm250_vm4, %v219_v7  ;;  %254 = vst.msk [vmem:[#allocation2 + $0x39] sm:$0xff] %vm250_vm4, %v220_v10  ;;  %v247_v57 = vld [vmem:[%s25255_s25 + $0xf0] sm:$0xff]  ;;  %v248_v58 = vld [vmem:[%s25255_s25 + $0xf8] sm:$0xff] }
  0x25   : > { %255 = vst.msk [vmem:[#allocation2 + $0x49] sm:$0xff] %vm250_vm4, %v221_v11  ;;  %256 = vst.msk [vmem:[#allocation2 + $0x51] sm:$0xff] %vm250_vm4, %v222_v13  ;;  %v25448_v63 = vld [vmem:[%s29873_s1 + $0x1c] sm:$0xf] }
  0x26   : > { %257 = vst.msk [vmem:[#allocation2 + $0x61] sm:$0xff] %vm250_vm4, %v223_v14  ;;  %258 = vst.msk [vmem:[#allocation2 + $0x69] sm:$0xff] %vm250_vm4, %v224_v15 }
  0x27   : > { %259 = vst.msk [vmem:[#allocation2 + $0x79] sm:$0xff] %vm250_vm4, %v225_v16  ;;  %260 = vst.msk [vmem:[#allocation2 + $0x81] sm:$0xff] %vm250_vm4, %v226_v17 }
  0x28   : > { %261 = vst.msk [vmem:[#allocation2 + $0x91] sm:$0xff] %vm250_vm4, %v227_v18  ;;  %262 = vst.msk [vmem:[#allocation2 + $0x99] sm:$0xff] %vm250_vm4, %v228_v19 }
  0x29   : > { %263 = vst.msk [vmem:[#allocation2 + $0xa9] sm:$0xff] %vm250_vm4, %v229_v20  ;;  %264 = vst.msk [vmem:[#allocation2 + $0xb1] sm:$0xff] %vm250_vm4, %v230_v21 }
  0x2a   : > { %265 = vst.msk [vmem:[#allocation2 + $0xc1] sm:$0xff] %vm250_vm4, %v231_v22  ;;  %266 = vst.msk [vmem:[#allocation2 + $0xc9] sm:$0xff] %vm250_vm4, %v232_v23  ;;  %v318_v30 = vld [vmem:[#allocation2 + $0x19] sm:$0xff]  ;;  %v319_v31 = vld [vmem:[#allocation2 + $0x21] sm:$0xff] }
  0x2b   : > { %267 = vst.msk [vmem:[#allocation2 + $0xd9] sm:$0xff] %vm250_vm4, %v233_v24  ;;  %268 = vst.msk [vmem:[#allocation2 + $0xe1] sm:$0xff] %vm250_vm4, %v234_v25  ;;  %v25309_v32 = vld [vmem:[#allocation2 + $0x31] sm:$0xff]  ;;  %21103 = vmatprep.mubr.msk.f32.mxu1 %vm250_vm4, %v318_v30  ;;  %21300 = vmatprep.mubr.msk.f32.mxu0 %vm250_vm4, %v318_v30  ;;  %v25327_v34 = vld [vmem:[#allocation2 + $0x39] sm:$0xff] }
  0x2c   : > { %269 = vst.msk [vmem:[#allocation2 + $0xf1] sm:$0xff] %vm250_vm4, %v235_v26  ;;  %270 = vst.msk [vmem:[#allocation2 + $0xf9] sm:$0xff] %vm250_vm4, %v236_v27  ;;  %21104 = vmatmul.mubr.msk.f32.gmra.mrb[2].mxu1 %vm250_vm4, %v319_v31  ;;  %21301 = vmatmul.mubr.msk.f32.vlgmr.msra.gmra.mrb[0].mxu0 %vm250_vm4, %v319_v31  ;;  %v25331_v35 = vld [vmem:[#allocation2 + $0x49] sm:$0xff]  ;;  %v25343_v36 = vld [vmem:[#allocation2 + $0x51] sm:$0xff] }
  0x2d   : > { %271 = vst.msk [vmem:[#allocation2 + $0x109] sm:$0xff] %vm250_vm4, %v237_v28  ;;  %272 = vst.msk [vmem:[#allocation2 + $0x111] sm:$0xff] %vm250_vm4, %v238_v29  ;;  %21349 = vmatpush3.msk.msra.mxu0 %vm445_vm0, %v25205_v4  ;;  %21106 = vmatprep.mubr.msk.f32.mxu1 %vm250_vm4, %v25309_v32  ;;  %v25345_v37 = vld [vmem:[#allocation2 + $0x61] sm:$0xff]  ;;  %v25359_v41 = vld [vmem:[#allocation2 + $0x69] sm:$0xff] }
  0x2e   : > { %21303 = vmatprep.mubr.msk.f32.mxu0 %vm250_vm4, %v25309_v32  ;;  %21398 = vmatprep.subr.msk.mxu0 %vm445_vm0, %v25319_v33  ;;  %273 = vst.msk [vmem:[#allocation2 + $0x121] sm:$0xff] %vm250_vm4, %v239_v38  ;;  %274 = vst.msk [vmem:[#allocation2 + $0x129] sm:$0xff] %vm250_vm4, %v240_v39  ;;  %v25364_v43 = vld [vmem:[#allocation2 + $0x79] sm:$0xff]  ;;  %v25382_v48 = vld [vmem:[#allocation2 + $0x81] sm:$0xff] }
  0x2f   : > { %275 = vst.msk [vmem:[#allocation2 + $0x139] sm:$0xff] %vm250_vm4, %v241_v40  ;;  %276 = vst.msk [vmem:[#allocation2 + $0x141] sm:$0xff] %vm250_vm4, %v242_v42  ;;  %v25385_v49 = vld [vmem:[#allocation2 + $0x91] sm:$0xff]  ;;  %v25395_v50 = vld [vmem:[#allocation2 + $0x99] sm:$0xff] }
  0x30   : > { %21107 = vmatmul.mubr.msk.f32.gmra.mrb[4].mxu1 %vm250_vm4, %v25327_v34  ;;  %21304 = vmatmul.mubr.msk.f32.gmra.mrb[2].mxu0 %vm250_vm4, %v25327_v34  ;;  %277 = vst.msk [vmem:[#allocation2 + $0x151] sm:$0xff] %vm250_vm4, %v243_v44  ;;  %278 = vst.msk [vmem:[#allocation2 + $0x159] sm:$0xff] %vm250_vm4, %v244_v45  ;;  %v25397_v51 = vld [vmem:[#allocation2 + $0xa9] sm:$0xff]  ;;  %v25407_v52 = vld [vmem:[#allocation2 + $0xb1] sm:$0xff] }
  0x31   : > { %21109 = vmatprep.mubr.msk.f32.mxu1 %vm250_vm4, %v25331_v35  ;;  %21306 = vmatprep.mubr.msk.f32.mxu0 %vm250_vm4, %v25331_v35  ;;  %279 = vst.msk [vmem:[#allocation2 + $0x169] sm:$0xff] %vm250_vm4, %v245_v46  ;;  %280 = vst.msk [vmem:[#allocation2 + $0x171] sm:$0xff] %vm250_vm4, %v246_v47  ;;  %v25409_v53 = vld [vmem:[#allocation2 + $0xc1] sm:$0xff]  ;;  %v25419_v54 = vld [vmem:[#allocation2 + $0xc9] sm:$0xff] }
  0x32   : > { %30192 = vst [vmem:[#allocation3_spill] sm:$0xff] %v25419_v54  ;;  %v25421_v55 = vld [vmem:[#allocation2 + $0x1a] sm:$0xff]  ;;  %281 = vst.msk [vmem:[#allocation2 + $0x181] sm:$0xff] %vm250_vm4, %v247_v57  ;;  %v25439_v60 = vld [vmem:[#allocation2 + $0x22] sm:$0xff] }
  0x33   : > { %v25423_v56 = vld [vmem:[#allocation2 + $0xd9] sm:$0xff]  ;;  %282 = vst.msk [vmem:[#allocation2 + $0x189] sm:$0xff] %vm250_vm4, %v248_v58  ;;  %v25437_v59 = vld [vmem:[#allocation2 + $0xe1] sm:$0xff]  ;;  %v25441_v61 = vld [vmem:[#allocation2 + $0xf1] sm:$0xff] }
  0x34   : > { %21110 = vmatmul.mubr.msk.f32.gmra.mrb[6].mxu1 %vm250_vm4, %v25343_v36  ;;  %21307 = vmatmul.mubr.msk.f32.gmra.mrb[4].mxu0 %vm250_vm4, %v25343_v36  ;;  %30193 = vst [vmem:[#allocation4_spill] sm:$0xff] %v25423_v56  ;;  %30194 = vst [vmem:[#allocation5_spill] sm:$0xff] %v25437_v59  ;;  %v25443_v62 = vld [vmem:[#allocation2 + $0x32] sm:$0xff]  ;;  %v25460_v1 = vld [vmem:[#allocation2 + $0x3a] sm:$0xff] }
  0x35   : > { %21112 = vmatprep.mubr.msk.f32.mxu1 %vm250_vm4, %v25345_v37  ;;  %21309 = vmatprep.mubr.msk.f32.mxu0 %vm250_vm4, %v25345_v37  ;;  %30195 = vst [vmem:[#allocation6_spill] sm:$0xff] %v25441_v61  ;;  %v25458_v0 = vld [vmem:[#allocation2 + $0xf9] sm:$0xff]  ;;  %v25464_v3 = vld [vmem:[#allocation2 + $0x109] sm:$0xff]  ;;  %v25478_v5 = vld [vmem:[#allocation2 + $0x111] sm:$0xff] }
  0x36   : > { %30196 = vst [vmem:[#allocation7_spill] sm:$0xff] %v25458_v0  ;;  %30197 = vst [vmem:[#allocation8_spill] sm:$0xff] %v25464_v3  ;;  %v25466_v4 = vld [vmem:[#allocation2 + $0x4a] sm:$0xff]  ;;  %v25480_v6 = vld [vmem:[#allocation2 + $0x52] sm:$0xff] }
  0x37   : > { %30198 = vst [vmem:[#allocation9_spill] sm:$0xff] %v25478_v5  ;;  %v25482_v7 = vld [vmem:[#allocation2 + $0x121] sm:$0xff]  ;;  %v25494_v10 = vld [vmem:[#allocation2 + $0x129] sm:$0xff]  ;;  %v25498_v12 = vld [vmem:[#allocation2 + $0x139] sm:$0xff] }
  0x38   : > { %21113 = vmatmul.mubr.msk.f32.gmra.mrb[8].mxu1 %vm250_vm4, %v25359_v41  ;;  %21310 = vmatmul.mubr.msk.f32.gmra.mrb[6].mxu0 %vm250_vm4, %v25359_v41  ;;  %30199 = vst [vmem:[#allocation10_spill] sm:$0xff] %v25482_v7  ;;  %v25484_v9 = vld [vmem:[#allocation2 + $0x62] sm:$0xff]  ;;  %30200 = vst [vmem:[#allocation11_spill] sm:$0xff] %v25494_v10  ;;  %v25496_v11 = vld [vmem:[#allocation2 + $0x6a] sm:$0xff] }
  0x39   : > { %21115 = vmatprep.mubr.msk.f32.mxu1 %vm250_vm4, %v25364_v43  ;;  %21312 = vmatprep.mubr.msk.f32.mxu0 %vm250_vm4, %v25364_v43  ;;  %30201 = vst [vmem:[#allocation12_spill] sm:$0xff] %v25498_v12  ;;  %v25500_v13 = vld [vmem:[#allocation2 + $0x7a] sm:$0xff]  ;;  %v25512_v15 = vld [vmem:[#allocation2 + $0x82] sm:$0xff]  ;;  %v25514_v16 = vld [vmem:[#allocation2 + $0x151] sm:$0xff] }
  0x3a   : > { %v25510_v14 = vld [vmem:[#allocation2 + $0x141] sm:$0xff]  ;;  %30203 = vst [vmem:[#allocation14_spill] sm:$0xff] %v25514_v16  ;;  %v25516_v17 = vld [vmem:[#allocation2 + $0x92] sm:$0xff]  ;;  %v25530_v20 = vld [vmem:[#allocation2 + $0x169] sm:$0xff] }
  0x3b   : > { %30202 = vst [vmem:[#allocation13_spill] sm:$0xff] %v25510_v14  ;;  %v25526_v18 = vld [vmem:[#allocation2 + $0x159] sm:$0xff]  ;;  %30205 = vst [vmem:[#allocation16_spill] sm:$0xff] %v25530_v20  ;;  %v25532_v21 = vld [vmem:[#allocation2 + $0xaa] sm:$0xff] }
  0x3c   : > { %21116 = vmatmul.mubr.msk.f32.gmra.mrb[10].mxu1 %vm250_vm4, %v25382_v48  ;;  %21313 = vmatmul.mubr.msk.f32.gmra.mrb[8].mxu0 %vm250_vm4, %v25382_v48  ;;  %30204 = vst [vmem:[#allocation15_spill] sm:$0xff] %v25526_v18  ;;  %v25528_v19 = vld [vmem:[#allocation2 + $0x9a] sm:$0xff]  ;;  %v25542_v22 = vld [vmem:[#allocation2 + $0x171] sm:$0xff]  ;;  %v25546_v25 = vld [vmem:[#allocation2 + $0xc2] sm:$0xff] }
  0x3d   : > { %21118 = vmatprep.mubr.msk.f32.mxu1 %vm250_vm4, %v25385_v49  ;;  %21315 = vmatprep.mubr.msk.f32.mxu0 %vm250_vm4, %v25385_v49  ;;  %30206 = vst [vmem:[#allocation17_spill] sm:$0xff] %v25542_v22  ;;  %v25544_v23 = vld [vmem:[#allocation2 + $0xb2] sm:$0xff]  ;;  %v283_v24 = vld [vmem:[#allocation2] sm:$0xff]  ;;  %v284_v26 = vld [vmem:[#allocation2 + $0x8] sm:$0xff] }
  0x3e   : > { %v25555_v27 = vld [vmem:[#allocation2 + $0xca] sm:$0xff]  ;;  %v25557_v28 = vld [vmem:[#allocation2 + $0x18] sm:$0xff]  ;;  %v25573_v31 = vld [vmem:[#allocation2 + $0x20] sm:$0xff] }
  0x3f   : > { %30207 = vst [vmem:[#allocation18_spill] sm:$0xff] %v25557_v28  ;;  %v25559_v29 = vld [vmem:[#allocation2 + $0xda] sm:$0xff]  ;;  %v25567_v30 = vld [vmem:[%s29873_s1 + $0xc] sm:$0xf]  ;;  %30208 = vst [vmem:[#allocation19_spill] sm:$0xff] %v25573_v31 }
  0x40   : > { %21119 = vmatmul.mubr.msk.f32.gmra.mrb[12].mxu1 %vm250_vm4, %v25395_v50  ;;  %21316 = vmatmul.mubr.msk.f32.gmra.mrb[10].mxu0 %vm250_vm4, %v25395_v50  ;;  %v25579_v38 = vld [vmem:[#allocation2 + $0x30] sm:$0xff]  ;;  %v25595_v40 = vld [vmem:[#allocation2 + $0xfa] sm:$0xff]  ;;  %v25597_v42 = vld [vmem:[#allocation2 + $0x48] sm:$0xff] }
  0x41   : > { %21121 = vmatprep.mubr.msk.f32.mxu1 %vm250_vm4, %v25397_v51  ;;  %21318 = vmatprep.mubr.msk.f32.mxu0 %vm250_vm4, %v25397_v51  ;;  %30209 = vst [vmem:[#allocation20_spill] sm:$0xff] %v25579_v38  ;;  %v25581_v39 = vld [vmem:[#allocation2 + $0xf2] sm:$0xff]  ;;  %30211 = vst [vmem:[#allocation22_spill] sm:$0xff] %v25597_v42  ;;  %v25599_v44 = vld [vmem:[#allocation2 + $0x10a] sm:$0xff] }
  0x42   : > { %v25609_v45 = vld [vmem:[#allocation2 + $0x50] sm:$0xff]  ;;  %v25613_v47 = vld [vmem:[#allocation2 + $0x60] sm:$0xff]  ;;  %v25625_v58 = vld [vmem:[#allocation2 + $0x68] sm:$0xff] }
  0x43   : > { %30212 = vst [vmem:[#allocation23_spill] sm:$0xff] %v25609_v45  ;;  %v25611_v46 = vld [vmem:[#allocation2 + $0x112] sm:$0xff]  ;;  %30213 = vst [vmem:[#allocation24_spill] sm:$0xff] %v25613_v47  ;;  %v25615_v57 = vld [vmem:[#allocation2 + $0x122] sm:$0xff] }
  0x44   : > { %21122 = vmatmul.mubr.msk.f32.gmra.mrb[14].mxu1 %vm250_vm4, %v25407_v52  ;;  %21319 = vmatmul.mubr.msk.f32.gmra.mrb[12].mxu0 %vm250_vm4, %v25407_v52  ;;  %30214 = vst [vmem:[#allocation25_spill] sm:$0xff] %v25625_v58 }
  0x45   : > { %21124 = vmatprep.mubr.msk.f32.mxu1 %vm250_vm4, %v25409_v53  ;;  %21321 = vmatprep.mubr.msk.f32.mxu0 %vm250_vm4, %v25409_v53 }
  0x48   : > { %21125 = vmatmul.mubr.msk.f32.gmra.mrb[16].mxu1 %vm250_vm4, %v25419_v54  ;;  %21322 = vmatmul.mubr.msk.f32.gmra.mrb[14].mxu0 %vm250_vm4, %v25419_v54  ;;  %v25703_v54 = vld [vmem:[#allocation2 + $0xe0] sm:$0xff] }
  0x49   : > { %21127 = vmatprep.mubr.msk.f32.mxu1 %vm250_vm4, %v25423_v56  ;;  %21350 = vmatprep.mubr.msk.f32.mxu0 %vm250_vm4, %v25421_v55  ;;  %v25691_v56 = vld [vmem:[#allocation2 + $0x18a] sm:$0xff] }
  0x4a   : > { %30222 = vst [vmem:[#allocation33_spill] sm:$0xff] %v25691_v56 }
  0x4c   : > { %21128 = vmatmul.mubr.msk.f32.gmra.mrb[18].mxu1 %vm250_vm4, %v25437_v59  ;;  %21351 = vmatmul.mubr.msk.f32.vlgmr.msra.gmra.mrb[0].mxu0 %vm250_vm4, %v25439_v60  ;;  %v25679_v59 = vld [vmem:[#allocation2 + $0x182] sm:$0xff] }
  0x4d   : > { %21399 = vmatpush3.msk.msra.mxu0 %vm445_vm0, %v25319_v33  ;;  %21130 = vmatprep.mubr.msk.f32.mxu1 %vm250_vm4, %v25441_v61  ;;  %v25575_v33 = vld [vmem:[#allocation2 + $0xe2] sm:$0xff]  ;;  %30221 = vst [vmem:[#allocation32_spill] sm:$0xff] %v25679_v59 }
  0x4e   : > { %21353 = vmatprep.mubr.msk.f32.mxu0 %vm250_vm4, %v25443_v62  ;;  %21448 = vmatprep.subr.msk.mxu0 %vm445_vm0, %v25448_v63  ;;  %v25677_v61 = vld [vmem:[#allocation2 + $0xc0] sm:$0xff] }
  0x50   : > { %21131 = vmatmul.mubr.msk.f32.gmra.mrb[20].mxu1 %vm250_vm4, %v25458_v0  ;;  %21354 = vmatmul.mubr.msk.f32.gmra.mrb[2].mxu0 %vm250_vm4, %v25460_v1  ;;  %v25675_v0 = vld [vmem:[#allocation2 + $0x172] sm:$0xff] }
  0x51   : > { %21133 = vmatprep.mubr.msk.f32.mxu1 %vm250_vm4, %v25464_v3  ;;  %21356 = vmatprep.mubr.msk.f32.mxu0 %vm250_vm4, %v25466_v4  ;;  %v25673_v3 = vld [vmem:[#allocation2 + $0xb0] sm:$0xff]  ;;  %30220 = vst [vmem:[#allocation31_spill] sm:$0xff] %v25675_v0 }
  0x52   : > { %30219 = vst [vmem:[#allocation30_spill] sm:$0xff] %v25673_v3 }
  0x54   : > { %21134 = vmatmul.mubr.msk.f32.gmra.mrb[22].mxu1 %vm250_vm4, %v25478_v5  ;;  %21357 = vmatmul.mubr.msk.f32.gmra.mrb[4].mxu0 %vm250_vm4, %v25480_v6  ;;  %v25663_v5 = vld [vmem:[#allocation2 + $0x16a] sm:$0xff] }
  0x55   : > { %21136 = vmatprep.mubr.msk.f32.mxu1 %vm250_vm4, %v25482_v7  ;;  %21359 = vmatprep.mubr.msk.f32.mxu0 %vm250_vm4, %v25484_v9  ;;  %v25661_v7 = vld [vmem:[#allocation2 + $0xa8] sm:$0xff] }
  0x58   : > { %21137 = vmatmul.mubr.msk.f32.gmra.mrb[24].mxu1 %vm250_vm4, %v25494_v10  ;;  %21360 = vmatmul.mubr.msk.f32.gmra.mrb[6].mxu0 %vm250_vm4, %v25496_v11  ;;  %v25659_v10 = vld [vmem:[#allocation2 + $0x15a] sm:$0xff] }
  0x59   : > { %21139 = vmatprep.mubr.msk.f32.mxu1 %vm250_vm4, %v25498_v12  ;;  %21362 = vmatprep.mubr.msk.f32.mxu0 %vm250_vm4, %v25500_v13  ;;  %v25657_v12 = vld [vmem:[#allocation2 + $0x98] sm:$0xff] }
  0x5a   : > { %30218 = vst [vmem:[#allocation29_spill] sm:$0xff] %v25657_v12 }
  0x5c   : > { %21140 = vmatmul.mubr.msk.f32.gmra.mrb[26].mxu1 %vm250_vm4, %v25510_v14  ;;  %21363 = vmatmul.mubr.msk.f32.gmra.mrb[8].mxu0 %vm250_vm4, %v25512_v15  ;;  %v25647_v14 = vld [vmem:[#allocation2 + $0x152] sm:$0xff] }
  0x5d   : > { %21142 = vmatprep.mubr.msk.f32.mxu1 %vm250_vm4, %v25514_v16  ;;  %21365 = vmatprep.mubr.msk.f32.mxu0 %vm250_vm4, %v25516_v17  ;;  %v25645_v16 = vld [vmem:[#allocation2 + $0x90] sm:$0xff] }
  0x5e   : > { %30217 = vst [vmem:[#allocation28_spill] sm:$0xff] %v25645_v16 }
  0x60   : > { %21143 = vmatmul.mubr.msk.f32.gmra.mrb[28].mxu1 %vm250_vm4, %v25526_v18  ;;  %21366 = vmatmul.mubr.msk.f32.gmra.mrb[10].mxu0 %vm250_vm4, %v25528_v19  ;;  %v25643_v18 = vld [vmem:[#allocation2 + $0x142] sm:$0xff] }
  0x61   : > { %21145 = vmatprep.mubr.msk.f32.mxu1 %vm250_vm4, %v25530_v20  ;;  %21368 = vmatprep.mubr.msk.f32.mxu0 %vm250_vm4, %v25532_v21  ;;  %v25641_v20 = vld [vmem:[#allocation2 + $0x80] sm:$0xff] }
  0x62   : > { %30216 = vst [vmem:[#allocation27_spill] sm:$0xff] %v25641_v20 }
  0x64   : > { %21146 = vmatmul.mubr.msk.f32.gmra.mrb[30].mxu1 %vm250_vm4, %v25542_v22  ;;  %21369 = vmatmul.mubr.msk.f32.gmra.mrb[12].mxu0 %vm250_vm4, %v25544_v23  ;;  %v25631_v22 = vld [vmem:[#allocation2 + $0x13a] sm:$0xff] }
  0x65   : > { %21150 = vmatprep.mubr.msk.f32.mxu1 %vm250_vm4, %v283_v24  ;;  %21371 = vmatprep.mubr.msk.f32.mxu0 %vm250_vm4, %v25546_v25  ;;  %v25627_v24 = vld [vmem:[#allocation2 + $0x12a] sm:$0xff] }
  0x68   : > { %21151 = vmatmul.mubr.msk.f32.vlgmr.msra.gmra.mrb[0].mxu1 %vm250_vm4, %v284_v26  ;;  %21372 = vmatmul.mubr.msk.f32.gmra.mrb[14].mxu0 %vm250_vm4, %v25555_v27  ;;  %v25629_v26 = vld [vmem:[#allocation2 + $0x78] sm:$0xff] }
  0x69   : > { %21153 = vmatprep.mubr.msk.f32.mxu1 %vm250_vm4, %v25557_v28  ;;  %21374 = vmatprep.mubr.msk.f32.mxu0 %vm250_vm4, %v25559_v29  ;;  %30215 = vst [vmem:[#allocation26_spill] sm:$0xff] %v25629_v26  ;;  %v25693_v28 = vld [vmem:[#allocation2 + $0xd8] sm:$0xff] }
  0x6a   : > { %21199 = vmatpush3.msk.msra.mxu1 %vm445_vm0, %v25263_v8  ;;  %v25593_v8 = vld [vmem:[#allocation2 + $0x38] sm:$0xff] }
  0x6b   : > { %21248 = vmatprep.subr.msk.mxu1 %vm445_vm0, %v25567_v30  ;;  %30210 = vst [vmem:[#allocation21_spill] sm:$0xff] %v25593_v8 }
  0x6c   : > { %21154 = vmatmul.mubr.msk.f32.gmra.mrb[2].mxu1 %vm250_vm4, %v25573_v31  ;;  %21375 = vmatmul.mubr.msk.f32.gmra.mrb[16].mxu0 %vm250_vm4, %v25575_v33  ;;  %v25689_v31 = vld [vmem:[#allocation2 + $0xc8] sm:$0xff] }
  0x6d   : > { %21156 = vmatprep.mubr.msk.f32.mxu1 %vm250_vm4, %v25579_v38  ;;  %21377 = vmatprep.mubr.msk.f32.mxu0 %vm250_vm4, %v25581_v39 }
  0x70   : > { %21157 = vmatmul.mubr.msk.f32.gmra.mrb[4].mxu1 %vm250_vm4, %v25593_v8  ;;  %21378 = vmatmul.mubr.msk.f32.gmra.mrb[18].mxu0 %vm250_vm4, %v25595_v40 }
  0x71   : > { %21159 = vmatprep.mubr.msk.f32.mxu1 %vm250_vm4, %v25597_v42  ;;  %21380 = vmatprep.mubr.msk.f32.mxu0 %vm250_vm4, %v25599_v44 }
  0x74   : > { %21160 = vmatmul.mubr.msk.f32.gmra.mrb[6].mxu1 %vm250_vm4, %v25609_v45  ;;  %21381 = vmatmul.mubr.msk.f32.gmra.mrb[20].mxu0 %vm250_vm4, %v25611_v46 }
  0x75   : > { %21162 = vmatprep.mubr.msk.f32.mxu1 %vm250_vm4, %v25613_v47  ;;  %21383 = vmatprep.mubr.msk.f32.mxu0 %vm250_vm4, %v25615_v57 }
  0x78   : > { %21163 = vmatmul.mubr.msk.f32.gmra.mrb[8].mxu1 %vm250_vm4, %v25625_v58  ;;  %21384 = vmatmul.mubr.msk.f32.gmra.mrb[22].mxu0 %vm250_vm4, %v25627_v24 }
  0x79   : > { %21165 = vmatprep.mubr.msk.f32.mxu1 %vm250_vm4, %v25629_v26  ;;  %21386 = vmatprep.mubr.msk.f32.mxu0 %vm250_vm4, %v25631_v22 }
  0x7c   : > { %21166 = vmatmul.mubr.msk.f32.gmra.mrb[10].mxu1 %vm250_vm4, %v25641_v20  ;;  %21387 = vmatmul.mubr.msk.f32.gmra.mrb[24].mxu0 %vm250_vm4, %v25643_v18 }
  0x7d   : > { %21168 = vmatprep.mubr.msk.f32.mxu1 %vm250_vm4, %v25645_v16  ;;  %21389 = vmatprep.mubr.msk.f32.mxu0 %vm250_vm4, %v25647_v14 }
  0x80   : > { %21169 = vmatmul.mubr.msk.f32.gmra.mrb[12].mxu1 %vm250_vm4, %v25657_v12  ;;  %21390 = vmatmul.mubr.msk.f32.gmra.mrb[26].mxu0 %vm250_vm4, %v25659_v10 }
  0x81   : > { %21171 = vmatprep.mubr.msk.f32.mxu1 %vm250_vm4, %v25661_v7  ;;  %21392 = vmatprep.mubr.msk.f32.mxu0 %vm250_vm4, %v25663_v5 }
  0x84   : > { %21172 = vmatmul.mubr.msk.f32.gmra.mrb[14].mxu1 %vm250_vm4, %v25673_v3  ;;  %21393 = vmatmul.mubr.msk.f32.gmra.mrb[28].mxu0 %vm250_vm4, %v25675_v0  ;;  %v25710_v0 = vld [vmem:[%s29873_s1 + $0x20] sm:$0xf] }
  0x85   : > { %21174 = vmatprep.mubr.msk.f32.mxu1 %vm250_vm4, %v25677_v61  ;;  %21395 = vmatprep.mubr.msk.f32.mxu0 %vm250_vm4, %v25679_v59  ;;  %v25705_v59 = vld [vmem:[#allocation2 + $0xf0] sm:$0xff] }
  0x88   : > { %21175 = vmatmul.mubr.msk.f32.gmra.mrb[16].mxu1 %vm250_vm4, %v25689_v31  ;;  %21396 = vmatmul.mubr.msk.f32.gmra.mrb[30].mxu0 %vm250_vm4, %v25691_v56  ;;  %v25720_v56 = vld [vmem:[#allocation2 + $0xf8] sm:$0xff] }
  0x89   : > { %21177 = vmatprep.mubr.msk.f32.mxu1 %vm250_vm4, %v25693_v28  ;;  %21400 = vmatprep.mubr.msk.f32.mxu0 %vm250_vm4, %v25579_v38  ;;  %v25724_v38 = vld [vmem:[#allocation2 + $0x108] sm:$0xff] }
  0x8c   : > { %21178 = vmatmul.mubr.msk.f32.gmra.mrb[18].mxu1 %vm250_vm4, %v25703_v54  ;;  %21401 = vmatmul.mubr.msk.f32.vlgmr.msra.gmra.mrb[0].mxu0 %vm250_vm4, %v25593_v8  ;;  %v25750_v8 = vld [vmem:[#allocation2 + $0x138] sm:$0xff] }
  0x8d   : > { %21449 = vmatpush3.msk.msra.mxu0 %vm445_vm0, %v25448_v63  ;;  %21180 = vmatprep.mubr.msk.f32.mxu1 %vm250_vm4, %v25705_v59  ;;  %v25736_v63 = vld [vmem:[#allocation2 + $0x110] sm:$0xff] }
  0x8e   : > { %21403 = vmatprep.mubr.msk.f32.mxu0 %vm250_vm4, %v25597_v42  ;;  %21498 = vmatprep.subr.msk.mxu0 %vm445_vm0, %v25710_v0  ;;  %v25738_v42 = vld [vmem:[#allocation2 + $0x120] sm:$0xff] }
  0x90   : > { %21181 = vmatmul.mubr.msk.f32.gmra.mrb[20].mxu1 %vm250_vm4, %v25720_v56  ;;  %21404 = vmatmul.mubr.msk.f32.gmra.mrb[2].mxu0 %vm250_vm4, %v25609_v45  ;;  %v25748_v45 = vld [vmem:[#allocation2 + $0x128] sm:$0xff] }
  0x91   : > { %21183 = vmatprep.mubr.msk.f32.mxu1 %vm250_vm4, %v25724_v38  ;;  %21406 = vmatprep.mubr.msk.f32.mxu0 %vm250_vm4, %v25613_v47  ;;  %v25762_v47 = vld [vmem:[#allocation2 + $0x150] sm:$0xff] }
  0x94   : > { %21184 = vmatmul.mubr.msk.f32.gmra.mrb[22].mxu1 %vm250_vm4, %v25736_v63  ;;  %21407 = vmatmul.mubr.msk.f32.gmra.mrb[4].mxu0 %vm250_vm4, %v25625_v58  ;;  %v25760_v58 = vld [vmem:[#allocation2 + $0x140] sm:$0xff] }
  0x95   : > { %21186 = vmatprep.mubr.msk.f32.mxu1 %vm250_vm4, %v25738_v42  ;;  %21409 = vmatprep.mubr.msk.f32.mxu0 %vm250_vm4, %v25629_v26  ;;  %v25774_v26 = vld [vmem:[#allocation2 + $0x168] sm:$0xff] }
  0x98   : > { %21187 = vmatmul.mubr.msk.f32.gmra.mrb[24].mxu1 %vm250_vm4, %v25748_v45  ;;  %21410 = vmatmul.mubr.msk.f32.gmra.mrb[6].mxu0 %vm250_vm4, %v25641_v20  ;;  %v25772_v20 = vld [vmem:[#allocation2 + $0x158] sm:$0xff] }
  0x99   : > { %21189 = vmatprep.mubr.msk.f32.mxu1 %vm250_vm4, %v25750_v8  ;;  %21412 = vmatprep.mubr.msk.f32.mxu0 %vm250_vm4, %v25645_v16  ;;  %v998_v16 = vld [vmem:[#allocation2 + $0x2] sm:$0xff] }
  0x9c   : > { %21190 = vmatmul.mubr.msk.f32.gmra.mrb[26].mxu1 %vm250_vm4, %v25760_v58  ;;  %21413 = vmatmul.mubr.msk.f32.gmra.mrb[8].mxu0 %vm250_vm4, %v25657_v12  ;;  %v25784_v12 = vld [vmem:[#allocation2 + $0x170] sm:$0xff] }
  0x9d   : > { %21192 = vmatprep.mubr.msk.f32.mxu1 %vm250_vm4, %v25762_v47  ;;  %21415 = vmatprep.mubr.msk.f32.mxu0 %vm250_vm4, %v25661_v7 }
  0xa0   : > { %21193 = vmatmul.mubr.msk.f32.gmra.mrb[28].mxu1 %vm250_vm4, %v25772_v20  ;;  %21416 = vmatmul.mubr.msk.f32.gmra.mrb[10].mxu0 %vm250_vm4, %v25673_v3  ;;  %v999_v3 = vld [vmem:[#allocation2 + $0xa] sm:$0xff] }
  0xa1   : > { %21195 = vmatprep.mubr.msk.f32.mxu1 %vm250_vm4, %v25774_v26  ;;  %21418 = vmatprep.mubr.msk.f32.mxu0 %vm250_vm4, %v25677_v61 }
  0xa4   : > { %21196 = vmatmul.mubr.msk.f32.gmra.mrb[30].mxu1 %vm250_vm4, %v25784_v12  ;;  %21419 = vmatmul.mubr.msk.f32.gmra.mrb[12].mxu0 %vm250_vm4, %v25689_v31 }
  0xa5   : > { %21200 = vmatprep.mubr.msk.f32.mxu1 %vm250_vm4, %v998_v16  ;;  %21421 = vmatprep.mubr.msk.f32.mxu0 %vm250_vm4, %v25693_v28  ;;  %v2586_v16 = vld [vmem:[#allocation2 + $0x1a0] sm:$0xff] }
  0xa8   : > { %21201 = vmatmul.mubr.msk.f32.vlgmr.msra.gmra.mrb[0].mxu1 %vm250_vm4, %v999_v3  ;;  %21422 = vmatmul.mubr.msk.f32.gmra.mrb[14].mxu0 %vm250_vm4, %v25703_v54  ;;  %v2585_v3 = vld [vmem:[#allocation2 + $0x198] sm:$0xff] }
  0xa9   : > { %21203 = vmatprep.mubr.msk.f32.mxu1 %vm250_vm4, %v25421_v55  ;;  %21424 = vmatprep.mubr.msk.f32.mxu0 %vm250_vm4, %v25705_v59  ;;  %v25844_v55 = vld [vmem:[#allocation2 + $0x180] sm:$0xff] }
  0xaa   : > { %21249 = vmatpush3.msk.msra.mxu1 %vm445_vm0, %v25567_v30  ;;  %v30237_v30 = vld [vmem:[#allocation24_spill] sm:$0xff] }
  0xab   : > { %23852 = vmatprep.subr.msk.mxu1 %vm445_vm0, %v25192_v2 }
  0xac   : > { %21204 = vmatmul.mubr.msk.f32.gmra.mrb[2].mxu1 %vm250_vm4, %v25439_v60  ;;  %21425 = vmatmul.mubr.msk.f32.gmra.mrb[16].mxu0 %vm250_vm4, %v25720_v56  ;;  %v25854_v60 = vld [vmem:[#allocation2 + $0x188] sm:$0xff] }
  0xad   : > { %21206 = vmatprep.mubr.msk.f32.mxu1 %vm250_vm4, %v25443_v62  ;;  %21427 = vmatprep.mubr.msk.f32.mxu0 %vm250_vm4, %v25724_v38 }
  0xb0   : > { %21207 = vmatmul.mubr.msk.f32.gmra.mrb[4].mxu1 %vm250_vm4, %v25460_v1  ;;  %21428 = vmatmul.mubr.msk.f32.gmra.mrb[18].mxu0 %vm250_vm4, %v25736_v63 }
  0xb1   : > { %21209 = vmatprep.mubr.msk.f32.mxu1 %vm250_vm4, %v25466_v4  ;;  %21430 = vmatprep.mubr.msk.f32.mxu0 %vm250_vm4, %v25738_v42 }
  0xb4   : > { %21210 = vmatmul.mubr.msk.f32.gmra.mrb[6].mxu1 %vm250_vm4, %v25480_v6  ;;  %21431 = vmatmul.mubr.msk.f32.gmra.mrb[20].mxu0 %vm250_vm4, %v25748_v45 }
  0xb5   : > { %21212 = vmatprep.mubr.msk.f32.mxu1 %vm250_vm4, %v25484_v9  ;;  %21433 = vmatprep.mubr.msk.f32.mxu0 %vm250_vm4, %v25750_v8 }
  0xb8   : > { %21213 = vmatmul.mubr.msk.f32.gmra.mrb[8].mxu1 %vm250_vm4, %v25496_v11  ;;  %21434 = vmatmul.mubr.msk.f32.gmra.mrb[22].mxu0 %vm250_vm4, %v25760_v58 }
  0xb9   : > { %21215 = vmatprep.mubr.msk.f32.mxu1 %vm250_vm4, %v25500_v13  ;;  %21436 = vmatprep.mubr.msk.f32.mxu0 %vm250_vm4, %v25762_v47 }
  0xbc   : > { %21216 = vmatmul.mubr.msk.f32.gmra.mrb[10].mxu1 %vm250_vm4, %v25512_v15  ;;  %21437 = vmatmul.mubr.msk.f32.gmra.mrb[24].mxu0 %vm250_vm4, %v25772_v20 }
  0xbd   : > { %21218 = vmatprep.mubr.msk.f32.mxu1 %vm250_vm4, %v25516_v17  ;;  %21439 = vmatprep.mubr.msk.f32.mxu0 %vm250_vm4, %v25774_v26 }
  0xc0   : > { %21219 = vmatmul.mubr.msk.f32.gmra.mrb[12].mxu1 %vm250_vm4, %v25528_v19  ;;  %21440 = vmatmul.mubr.msk.f32.gmra.mrb[26].mxu0 %vm250_vm4, %v25784_v12 }
  0xc1   : > { %21221 = vmatprep.mubr.msk.f32.mxu1 %vm250_vm4, %v25532_v21  ;;  %21442 = vmatprep.mubr.msk.f32.mxu0 %vm250_vm4, %v25844_v55 }
  0xc4   : > { %21222 = vmatmul.mubr.msk.f32.gmra.mrb[14].mxu1 %vm250_vm4, %v25544_v23  ;;  %21443 = vmatmul.mubr.msk.f32.gmra.mrb[28].mxu0 %vm250_vm4, %v25854_v60 }
  0xc5   : > { %21224 = vmatprep.mubr.msk.f32.mxu1 %vm250_vm4, %v25546_v25  ;;  %21445 = vmatprep.mubr.msk.f32.mxu0 %vm250_vm4, %v2585_v3  ;;  %v30239_v3 = vld [vmem:[#allocation25_spill] sm:$0xff] }
  0xc8   : > { %21225 = vmatmul.mubr.msk.f32.gmra.mrb[16].mxu1 %vm250_vm4, %v25555_v27  ;;  %21446 = vmatmul.mubr.msk.f32.gmra.mrb[30].mxu0 %vm250_vm4, %v2586_v16  ;;  %v30240_v16 = vld [vmem:[#allocation11_spill] sm:$0xff] }
  0xc9   : > { %21227 = vmatprep.mubr.msk.f32.mxu1 %vm250_vm4, %v25559_v29  ;;  %21450 = vmatprep.mubr.msk.f32.mxu0 %vm250_vm4, %v25309_v32  ;;  %v30223_v32 = vld [vmem:[#allocation31_spill] sm:$0xff] }
  0xcc   : > { %21228 = vmatmul.mubr.msk.f32.gmra.mrb[18].mxu1 %vm250_vm4, %v25575_v33  ;;  %21451 = vmatmul.mubr.msk.f32.vlgmr.msra.gmra.mrb[0].mxu0 %vm250_vm4, %v25327_v34  ;;  %v30224_v34 = vld [vmem:[#allocation3_spill] sm:$0xff] }
  0xcd   : > { %21499 = vmatpush3.msk.msra.mxu0 %vm445_vm0, %v25710_v0  ;;  %21230 = vmatprep.mubr.msk.f32.mxu1 %vm250_vm4, %v25581_v39  ;;  %v30236_v0 = vld [vmem:[#allocation9_spill] sm:$0xff] }
  0xce   : > { %21453 = vmatprep.mubr.msk.f32.mxu0 %vm250_vm4, %v25331_v35  ;;  %v30225_v35 = vld [vmem:[#allocation18_spill] sm:$0xff] }
  0xd0   : > { %21231 = vmatmul.mubr.msk.f32.gmra.mrb[20].mxu1 %vm250_vm4, %v25595_v40  ;;  %21454 = vmatmul.mubr.msk.f32.gmra.mrb[2].mxu0 %vm250_vm4, %v25343_v36  ;;  %v30226_v36 = vld [vmem:[#allocation4_spill] sm:$0xff] }
  0xd1   : > { %21233 = vmatprep.mubr.msk.f32.mxu1 %vm250_vm4, %v25599_v44  ;;  %21456 = vmatprep.mubr.msk.f32.mxu0 %vm250_vm4, %v25345_v37  ;;  %v30227_v37 = vld [vmem:[#allocation19_spill] sm:$0xff] }
  0xd4   : > { %21234 = vmatmul.mubr.msk.f32.gmra.mrb[22].mxu1 %vm250_vm4, %v25611_v46  ;;  %21457 = vmatmul.mubr.msk.f32.gmra.mrb[4].mxu0 %vm250_vm4, %v25359_v41  ;;  %v30228_v41 = vld [vmem:[#allocation5_spill] sm:$0xff] }
  0xd5   : > { %21236 = vmatprep.mubr.msk.f32.mxu1 %vm250_vm4, %v25615_v57  ;;  %21459 = vmatprep.mubr.msk.f32.mxu0 %vm250_vm4, %v25364_v43  ;;  %v30229_v43 = vld [vmem:[#allocation20_spill] sm:$0xff] }
  0xd8   : > { %21237 = vmatmul.mubr.msk.f32.gmra.mrb[24].mxu1 %vm250_vm4, %v25627_v24  ;;  %21460 = vmatmul.mubr.msk.f32.gmra.mrb[6].mxu0 %vm250_vm4, %v25382_v48  ;;  %v30230_v48 = vld [vmem:[#allocation6_spill] sm:$0xff] }
  0xd9   : > { %21239 = vmatprep.mubr.msk.f32.mxu1 %vm250_vm4, %v25631_v22  ;;  %21462 = vmatprep.mubr.msk.f32.mxu0 %vm250_vm4, %v25385_v49  ;;  %v30231_v49 = vld [vmem:[#allocation21_spill] sm:$0xff] }
  0xdc   : > { %21240 = vmatmul.mubr.msk.f32.gmra.mrb[26].mxu1 %vm250_vm4, %v25643_v18  ;;  %21463 = vmatmul.mubr.msk.f32.gmra.mrb[8].mxu0 %vm250_vm4, %v25395_v50  ;;  %v30232_v50 = vld [vmem:[#allocation7_spill] sm:$0xff] }
  0xdd   : > { %21242 = vmatprep.mubr.msk.f32.mxu1 %vm250_vm4, %v25647_v14  ;;  %21465 = vmatprep.mubr.msk.f32.mxu0 %vm250_vm4, %v25397_v51  ;;  %v30233_v51 = vld [vmem:[#allocation22_spill] sm:$0xff] }
  0xe0   : > { %21243 = vmatmul.mubr.msk.f32.gmra.mrb[28].mxu1 %vm250_vm4, %v25659_v10  ;;  %21466 = vmatmul.mubr.msk.f32.gmra.mrb[10].mxu0 %vm250_vm4, %v25407_v52  ;;  %v30234_v52 = vld [vmem:[#allocation8_spill] sm:$0xff] }
  0xe1   : > { %21245 = vmatprep.mubr.msk.f32.mxu1 %vm250_vm4, %v25663_v5  ;;  %21468 = vmatprep.mubr.msk.f32.mxu0 %vm250_vm4, %v25409_v53  ;;  %v30235_v53 = vld [vmem:[#allocation23_spill] sm:$0xff] }
  0xe4   : > { %21246 = vmatmul.mubr.msk.f32.gmra.mrb[30].mxu1 %vm250_vm4, %v30223_v32  ;;  %21469 = vmatmul.mubr.msk.f32.gmra.mrb[12].mxu0 %vm250_vm4, %v30224_v34  ;;  %v30241_v34 = vld [vmem:[#allocation26_spill] sm:$0xff] }
  0xe5   : > { %21250 = vmatprep.mubr.msk.f32.mxu1 %vm250_vm4, %v30225_v35  ;;  %21471 = vmatprep.mubr.msk.f32.mxu0 %vm250_vm4, %v30226_v36  ;;  %v30242_v35 = vld [vmem:[#allocation12_spill] sm:$0xff]  ;;  %v30243_v36 = vld [vmem:[#allocation27_spill] sm:$0xff] }
  0xe8   : > { %21251 = vmatmul.mubr.msk.f32.vlgmr.msra.gmra.mrb[0].mxu1 %vm250_vm4, %v30227_v37  ;;  %21472 = vmatmul.mubr.msk.f32.gmra.mrb[14].mxu0 %vm250_vm4, %v30228_v41  ;;  %v30244_v37 = vld [vmem:[#allocation13_spill] sm:$0xff]  ;;  %v30245_v41 = vld [vmem:[#allocation28_spill] sm:$0xff] }
  0xe9   : > { %21253 = vmatprep.mubr.msk.f32.mxu1 %vm250_vm4, %v30229_v43  ;;  %21474 = vmatprep.mubr.msk.f32.mxu0 %vm250_vm4, %v30230_v48  ;;  %v30246_v43 = vld [vmem:[#allocation14_spill] sm:$0xff] }
  0xea   : > { %23853 = vmatpush3.msk.msra.mxu1 %vm445_vm0, %v25192_v2  ;;  %v30238_v2 = vld [vmem:[#allocation10_spill] sm:$0xff] }
  0xec   : > { %21254 = vmatmul.mubr.msk.f32.gmra.mrb[2].mxu1 %vm250_vm4, %v30231_v49  ;;  %21475 = vmatmul.mubr.msk.f32.gmra.mrb[16].mxu0 %vm250_vm4, %v30232_v50  ;;  %v30247_v49 = vld [vmem:[#allocation29_spill] sm:$0xff] }
  0xed   : > { %21256 = vmatprep.mubr.msk.f32.mxu1 %vm250_vm4, %v30233_v51  ;;  %21477 = vmatprep.mubr.msk.f32.mxu0 %vm250_vm4, %v30234_v52  ;;  %v30248_v51 = vld [vmem:[#allocation15_spill] sm:$0xff] }
  0xf0   : > { %21257 = vmatmul.mubr.msk.f32.gmra.mrb[4].mxu1 %vm250_vm4, %v30235_v53  ;;  %21478 = vmatmul.mubr.msk.f32.gmra.mrb[18].mxu0 %vm250_vm4, %v30236_v0  ;;  %v30249_v53 = vld [vmem:[#allocation16_spill] sm:$0xff] }
  0xf1   : > { %21259 = vmatprep.mubr.msk.f32.mxu1 %vm250_vm4, %v30237_v30  ;;  %21480 = vmatprep.mubr.msk.f32.mxu0 %vm250_vm4, %v30238_v2  ;;  %v25978_v30 = vld [vmem:[#allocation2 + $0x181] sm:$0xff] }
  0xf4   : > { %21260 = vmatmul.mubr.msk.f32.gmra.mrb[6].mxu1 %vm250_vm4, %v30239_v3  ;;  %21481 = vmatmul.mubr.msk.f32.gmra.mrb[20].mxu0 %vm250_vm4, %v30240_v16  ;;  %v30250_v3 = vld [vmem:[#allocation30_spill] sm:$0xff] }
  0xf5   : > { %21262 = vmatprep.mubr.msk.f32.mxu1 %vm250_vm4, %v30241_v34  ;;  %21483 = vmatprep.mubr.msk.f32.mxu0 %vm250_vm4, %v30242_v35  ;;  %v30251_v34 = vld [vmem:[#allocation17_spill] sm:$0xff] }
  0xf8   : > { %21263 = vmatmul.mubr.msk.f32.gmra.mrb[8].mxu1 %vm250_vm4, %v30243_v36  ;;  %21484 = vmatmul.mubr.msk.f32.gmra.mrb[22].mxu0 %vm250_vm4, %v30244_v37  ;;  %v25988_v36 = vld [vmem:[#allocation2 + $0x189] sm:$0xff] }
  0xf9   : > { %21265 = vmatprep.mubr.msk.f32.mxu1 %vm250_vm4, %v30245_v41  ;;  %21486 = vmatprep.mubr.msk.f32.mxu0 %vm250_vm4, %v30246_v43  ;;  %v2975_v41 = vld [vmem:[#allocation2 + $0x1a1] sm:$0xff] }
  0xfc   : > { %21266 = vmatmul.mubr.msk.f32.gmra.mrb[10].mxu1 %vm250_vm4, %v30247_v49  ;;  %21487 = vmatmul.mubr.msk.f32.gmra.mrb[24].mxu0 %vm250_vm4, %v30248_v51 }
  0xfd   : > { %21268 = vmatprep.mubr.msk.f32.mxu1 %vm250_vm4, %v25661_v7  ;;  %21489 = vmatprep.mubr.msk.f32.mxu0 %vm250_vm4, %v30249_v53  ;;  %v2974_v7 = vld [vmem:[#allocation2 + $0x199] sm:$0xff] }
 0x100   : > { %21269 = vmatmul.mubr.msk.f32.gmra.mrb[12].mxu1 %vm250_vm4, %v30250_v3  ;;  %21490 = vmatmul.mubr.msk.f32.gmra.mrb[26].mxu0 %vm250_vm4, %v30251_v34 }
 0x101   : > { %21271 = vmatprep.mubr.msk.f32.mxu1 %vm250_vm4, %v25677_v61  ;;  %21492 = vmatprep.mubr.msk.f32.mxu0 %vm250_vm4, %v25978_v30  ;;  %v3363_v61 = vld [vmem:[#allocation2 + $0x19a] sm:$0xff] }
 0x104   : > { %21272 = vmatmul.mubr.msk.f32.gmra.mrb[14].mxu1 %vm250_vm4, %v25689_v31  ;;  %21493 = vmatmul.mubr.msk.f32.gmra.mrb[28].mxu0 %vm250_vm4, %v25988_v36 }
 0x105   : > { %21274 = vmatprep.mubr.msk.f32.mxu1 %vm250_vm4, %v25693_v28  ;;  %21495 = vmatprep.mubr.msk.f32.mxu0 %vm250_vm4, %v2974_v7 }
 0x108   : > { %21275 = vmatmul.mubr.msk.f32.gmra.mrb[16].mxu1 %vm250_vm4, %v25703_v54  ;;  %21496 = vmatmul.mubr.msk.f32.gmra.mrb[30].mxu0 %vm250_vm4, %v2975_v41  ;;  %v1792_v54 = vld [vmem:[#allocation2 + $0xd9] sm:$0xff] }
 0x109   : > { %21277 = vmatprep.mubr.msk.f32.mxu1 %vm250_vm4, %v25705_v59  ;;  %21500 = vmatprep.mubr.msk.f32.mxu0 %vm250_vm4, %v25443_v62  ;;  %v30252_v59 = vld [vmem:[#allocation32_spill] sm:$0xff]  ;;  %v30253_v62 = vld [vmem:[#allocation33_spill] sm:$0xff] }
 0x10c   : > { %21278 = vmatmul.mubr.msk.f32.gmra.mrb[18].mxu1 %vm250_vm4, %v25720_v56  ;;  %21501 = vmatmul.mubr.msk.f32.vlgmr.msra.gmra.mrb[0].mxu0 %vm250_vm4, %v25460_v1  ;;  %v1793_v56 = vld [vmem:[#allocation2 + $0xe1] sm:$0xff] }
 0x10d   : > { %21280 = vmatprep.mubr.msk.f32.mxu1 %vm250_vm4, %v25724_v38  ;;  %21503 = vmatprep.mubr.msk.f32.mxu0 %vm250_vm4, %v25466_v4  ;;  %v3364_v1 = vld [vmem:[#allocation2 + $0x1a2] sm:$0xff] }
 0x10e   : > { %v3891_v4 = vld [vmem:[%s29873_s1 + $0x48] sm:$0xff] }
 0x110   : > { %21281 = vmatmul.mubr.msk.f32.gmra.mrb[20].mxu1 %vm250_vm4, %v25736_v63  ;;  %21504 = vmatmul.mubr.msk.f32.gmra.mrb[2].mxu0 %vm250_vm4, %v25480_v6 }
 0x111   : > { %21283 = vmatprep.mubr.msk.f32.mxu1 %vm250_vm4, %v25738_v42  ;;  %21506 = vmatprep.mubr.msk.f32.mxu0 %vm250_vm4, %v25484_v9  ;;  %v3893_v9 = vld [vmem:[%s29873_s1 + $0x58] sm:$0xff] }
 0x114   : > { %21284 = vmatmul.mubr.msk.f32.gmra.mrb[22].mxu1 %vm250_vm4, %v25748_v45  ;;  %21507 = vmatmul.mubr.msk.f32.gmra.mrb[4].mxu0 %vm250_vm4, %v25496_v11 }
 0x115   : > { %21286 = vmatprep.mubr.msk.f32.mxu1 %vm250_vm4, %v25750_v8  ;;  %21509 = vmatprep.mubr.msk.f32.mxu0 %vm250_vm4, %v25500_v13  ;;  %v3860_v13 = vld [vmem:[#allocation2 + $0x9] sm:$0xff] }
 0x118   : > { %21287 = vmatmul.mubr.msk.f32.gmra.mrb[24].mxu1 %vm250_vm4, %v25760_v58  ;;  %21510 = vmatmul.mubr.msk.f32.gmra.mrb[6].mxu0 %vm250_vm4, %v25512_v15  ;;  %v3856_v15 = vld [vmem:[%s29873_s1 + $0x30] sm:$0xff] }
 0x119   : > { %21289 = vmatprep.mubr.msk.f32.mxu1 %vm250_vm4, %v25762_v47  ;;  %21512 = vmatprep.mubr.msk.f32.mxu0 %vm250_vm4, %v25516_v17 }
 0x11c   : > { %21290 = vmatmul.mubr.msk.f32.gmra.mrb[26].mxu1 %vm250_vm4, %v25772_v20  ;;  %21513 = vmatmul.mubr.msk.f32.gmra.mrb[8].mxu0 %vm250_vm4, %v25528_v19  ;;  %v3858_v19 = vld [vmem:[%s29873_s1 + $0x40] sm:$0xff] }
 0x11d   : > { %21292 = vmatprep.mubr.msk.f32.mxu1 %vm250_vm4, %v25774_v26  ;;  %21515 = vmatprep.mubr.msk.f32.mxu0 %vm250_vm4, %v25532_v21  ;;  %v4569_v21 = vld [vmem:[%s29873_s1 + $0x68] sm:$0xff] }
 0x120   : > { %21293 = vmatmul.mubr.msk.f32.gmra.mrb[28].mxu1 %vm250_vm4, %v25784_v12  ;;  %21516 = vmatmul.mubr.msk.f32.gmra.mrb[10].mxu0 %vm250_vm4, %v25544_v23  ;;  %v3859_v12 = vld [vmem:[#allocation2 + $0x1] sm:$0xff] }
 0x121   : > { %21295 = vmatprep.mubr.msk.f32.mxu1 %vm250_vm4, %v25844_v55  ;;  %21518 = vmatprep.mubr.msk.f32.mxu0 %vm250_vm4, %v25546_v25 }
 0x124   : > { %21296 = vmatmul.mubr.msk.f32.gmra.mrb[30].mxu1 %vm250_vm4, %v25854_v60  ;;  %21519 = vmatmul.mubr.msk.f32.gmra.mrb[12].mxu0 %vm250_vm4, %v25555_v27 }
 0x125   : > { %21324 = vmatprep.mubr.msk.f32.mxu1 %vm250_vm4, %v1792_v54  ;;  %21521 = vmatprep.mubr.msk.f32.mxu0 %vm250_vm4, %v25559_v29 }
 0x128   : > { %21325 = vmatmul.mubr.msk.f32.vlgmr.msra.gmra.mrb[16].mxu1 %vm250_vm4, %v1793_v56  ;;  %21522 = vmatmul.mubr.msk.f32.gmra.mrb[14].mxu0 %vm250_vm4, %v25575_v33 }
 0x129   : > { %21327 = vmatprep.mubr.msk.f32.mxu1 %vm250_vm4, %v30230_v48  ;;  %21524 = vmatprep.mubr.msk.f32.mxu0 %vm250_vm4, %v25581_v39 }
 0x12c   : > { %21328 = vmatmul.mubr.msk.f32.gmra.mrb[18].mxu1 %vm250_vm4, %v30232_v50  ;;  %21525 = vmatmul.mubr.msk.f32.gmra.mrb[16].mxu0 %vm250_vm4, %v25595_v40 }
 0x12d   : > { %21330 = vmatprep.mubr.msk.f32.mxu1 %vm250_vm4, %v30234_v52  ;;  %21527 = vmatprep.mubr.msk.f32.mxu0 %vm250_vm4, %v25599_v44 }
 0x130   : > { %21331 = vmatmul.mubr.msk.f32.gmra.mrb[20].mxu1 %vm250_vm4, %v30236_v0  ;;  %21528 = vmatmul.mubr.msk.f32.gmra.mrb[18].mxu0 %vm250_vm4, %v25611_v46 }
 0x131   : > { %21333 = vmatprep.mubr.msk.f32.mxu1 %vm250_vm4, %v30238_v2  ;;  %21530 = vmatprep.mubr.msk.f32.mxu0 %vm250_vm4, %v25615_v57 }
 0x134   : > { %21334 = vmatmul.mubr.msk.f32.gmra.mrb[22].mxu1 %vm250_vm4, %v30240_v16  ;;  %21531 = vmatmul.mubr.msk.f32.gmra.mrb[20].mxu0 %vm250_vm4, %v25627_v24  ;;  %v26168_v24 = vld [vmem:[%s29874_s2] ss:$0 sm:$0xff] }
 0x135   : > { %21336 = vmatprep.mubr.msk.f32.mxu1 %vm250_vm4, %v30242_v35  ;;  %21533 = vmatprep.mubr.msk.f32.mxu0 %vm250_vm4, %v25631_v22  ;;  %v4570_v22 = vld [vmem:[%s29873_s1 + $0x70] sm:$0xff] }
 0x136   : > { %v26152_v23 = vpack.c.bf16 %v4570_v22, %v4569_v21 }
 0x138   : > { %21337 = vmatmul.mubr.msk.f32.gmra.mrb[24].mxu1 %vm250_vm4, %v30244_v37  ;;  %21534 = vmatmul.mubr.msk.f32.gmra.mrb[22].mxu0 %vm250_vm4, %v25643_v18  ;;  %v3857_v18 = vld [vmem:[%s29873_s1 + $0x38] sm:$0xff] }
 0x139   : > { %21339 = vmatprep.mubr.msk.f32.mxu1 %vm250_vm4, %v30246_v43  ;;  %21536 = vmatprep.mubr.msk.f32.mxu0 %vm250_vm4, %v25647_v14  ;;  %v3855_v14 = vld [vmem:[%s29873_s1 + $0x28] sm:$0xff]  ;;  %v23576_v20 = vpack.c.bf16 %v3858_v19, %v3857_v18 }
 0x13a   : > { %v23572_v17 = vpack.c.bf16 %v3856_v15, %v3855_v14 }
 0x13c   : > { %21340 = vmatmul.mubr.msk.f32.gmra.mrb[26].mxu1 %vm250_vm4, %v30248_v51  ;;  %21537 = vmatmul.mubr.msk.f32.gmra.mrb[24].mxu0 %vm250_vm4, %v25659_v10  ;;  %v3894_v10 = vld [vmem:[%s29873_s1 + $0x60] sm:$0xff] }
 0x13d   : > { %21342 = vmatprep.mubr.msk.f32.mxu1 %vm250_vm4, %v30249_v53  ;;  %21539 = vmatprep.mubr.msk.f32.mxu0 %vm250_vm4, %v25663_v5  ;;  %v3892_v5 = vld [vmem:[%s29873_s1 + $0x50] sm:$0xff]  ;;  %v23568_v11 = vpack.c.bf16 %v3894_v10, %v3893_v9 }
 0x13e   : > { %v23564_v6 = vpack.c.bf16 %v3892_v5, %v3891_v4 }
 0x140   : > { %21343 = vmatmul.mubr.msk.f32.gmra.mrb[28].mxu1 %vm250_vm4, %v30251_v34  ;;  %21540 = vmatmul.mubr.msk.f32.gmra.mrb[26].mxu0 %vm250_vm4, %v30223_v32 }
 0x141   : > { %21345 = vmatprep.mubr.msk.f32.mxu1 %vm250_vm4, %v25978_v30  ;;  %21542 = vmatprep.mubr.msk.f32.mxu0 %vm250_vm4, %v30252_v59 }
 0x142   : > { %23565 = vmatprep.subr.bf16.mxu1 %v23564_v6 }
 0x143   : > { %23567 = vmatpush3.bf16.msra.mxu1 %v23564_v6 }
 0x144   : > { %21346 = vmatmul.mubr.msk.f32.gmra.mrb[30].mxu1 %vm250_vm4, %v25988_v36  ;;  %21543 = vmatmul.mubr.msk.f32.gmra.mrb[28].mxu0 %vm250_vm4, %v30253_v62 }
 0x145   : > { %21545 = vmatprep.mubr.msk.f32.mxu0 %vm250_vm4, %v3363_v61  ;;  %23569 = vmatprep.subr.bf16.mxu1 %v23568_v11 }
 0x146   : > { %21556 = vmatprep.mubr.msk.f32.mxu1 %vm171_vm1, %v3859_v12 }
 0x147   : > { %23571 = vmatpush3.bf16.msra.mxu1 %v23568_v11 }
 0x148   : > { %21546 = vmatmul.mubr.msk.f32.gmra.mrb[30].mxu0 %vm250_vm4, %v3364_v1  ;;  %23573 = vmatprep.subr.bf16.mxu1 %v23572_v17 }
 0x14a   : > { %21557 = vmatmul.mubr.msk.f32.vlgmr.msra.gmra.mrb[32].mxu1 %vm171_vm1, %v3860_v13 }
 0x14b   : > { %23575 = vmatpush3.bf16.msra.mxu1 %v23572_v17 }
 0x14c   : > { %23577 = vmatprep.subr.bf16.mxu1 %v23576_v20 }
 0x14f   : > { %23579 = vmatpush3.bf16.msra.mxu1 %v23576_v20 }
 0x150   : > { %23581 = vmatprep.subr.bf16.mxu1 %v26152_v23 }
 0x1bb   : > { %v21252_v25 = vpop.f32.mrb[0].mxu1 }
 0x1bc   : > { %v1585_v27 = vpop.f32.mrb[1].mxu1 }
 0x1bf   : > { %v21255_v28 = vpop.f32.mrb[2].mxu1 }
 0x1c0   : > { %v1595_v29 = vpop.f32.mrb[3].mxu1 }
 0x1c3   : > { %v21258_v31 = vpop.f32.mrb[4].mxu1 }
 0x1c4   : > { %v1605_v33 = vpop.f32.mrb[5].mxu1 }
 0x1c7   : > { %v21261_v38 = vpop.f32.mrb[6].mxu1 }
 0x1c8   : > { %v1615_v39 = vpop.f32.mrb[7].mxu1 }
 0x1cb   : > { %v21264_v8 = vpop.f32.mrb[8].mxu1 }
 0x1cc   : > { %v1625_v40 = vpop.f32.mrb[9].mxu1 }
 0x1cf   : > { %v21267_v42 = vpop.f32.mrb[10].mxu1 }
 0x1d0   : > { %v26155_v44 = vpop.f32.mrb[11].mxu1 }
 0x1d3   : > { %v26157_v45 = vpop.f32.mrb[12].mxu1 }
 0x1d4   : > { %v26159_v46 = vpop.f32.mrb[13].mxu1 }
 0x1d7   : > { %v26161_v47 = vpop.f32.mrb[14].mxu1 }
 0x1d8   : > { %v26163_v57 = vpop.f32.mrb[15].mxu1 }
 0x1df   : > { %v21502_v58 = vpop.f32.mrb[0].mxu0 }
 0x1e0   : > { %v23854_v26 = vadd.f32 %v21502_v58, %v21252_v25  ;;  %v3531_v63 = vpop.f32.mrb[1].mxu0 }
 0x1e1   : > { %v23855_v55 = vadd.f32 %v3531_v63, %v1585_v27 }
 0x1e2   : > { %v3728_v60 = vadd.f32 %v23854_v26, %v26168_v24 }
 0x1e3   : > { %v3727_v32 = vadd.f32 %v23855_v55, %v26168_v24  ;;  %v21505_v48 = vpop.f32.mrb[2].mxu0 }
 0x1e4   : > { %v3760_v50 = vmax.f32 %v3728_v60, 0.0  ;;  %v23856_v52 = vadd.f32 %v21505_v48, %v21255_v28  ;;  %v3541_v0 = vpop.f32.mrb[3].mxu0 }
 0x1e5   : > { %v3759_v2 = vmax.f32 %v3727_v32, 0.0  ;;  %v23857_v16 = vadd.f32 %v3541_v0, %v1595_v29 }
 0x1e6   : > { %3792 = vst.msk [vmem:[#allocation2 + $0x21] sm:$0xff] %vm171_vm1, %v3760_v50  ;;  %v3730_v35 = vadd.f32 %v23856_v52, %v26168_v24 }
 0x1e7   : > { %3791 = vst.msk [vmem:[#allocation2 + $0x19] sm:$0xff] %vm171_vm1, %v3759_v2  ;;  %v3729_v37 = vadd.f32 %v23857_v16, %v26168_v24  ;;  %v21508_v43 = vpop.f32.mrb[4].mxu0 }
 0x1e8   : > { %v3762_v49 = vmax.f32 %v3730_v35, 0.0  ;;  %v23858_v51 = vadd.f32 %v21508_v43, %v21258_v31  ;;  %v3551_v53 = vpop.f32.mrb[5].mxu0 }
 0x1e9   : > { %v3761_v30 = vmax.f32 %v3729_v37, 0.0  ;;  %v23859_v3 = vadd.f32 %v3551_v53, %v1605_v33 }
 0x1ea   : > { %3794 = vst.msk [vmem:[#allocation2 + $0x39] sm:$0xff] %vm171_vm1, %v3762_v49  ;;  %v3732_v34 = vadd.f32 %v23858_v51, %v26168_v24 }
 0x1eb   : > { %3793 = vst.msk [vmem:[#allocation2 + $0x31] sm:$0xff] %vm171_vm1, %v3761_v30  ;;  %v3731_v36 = vadd.f32 %v23859_v3, %v26168_v24  ;;  %v21511_v7 = vpop.f32.mrb[6].mxu0 }
 0x1ec   : > { %v3764_v41 = vmax.f32 %v3732_v34, 0.0  ;;  %v23860_v54 = vadd.f32 %v21511_v7, %v21261_v38  ;;  %v3561_v56 = vpop.f32.mrb[7].mxu0 }
 0x1ed   : > { %v3763_v59 = vmax.f32 %v3731_v36, 0.0  ;;  %v23861_v61 = vadd.f32 %v3561_v56, %v1615_v39  ;;  %v26188_v6 = vld [vmem:[#allocation2 + $0x21] sm:$0xff] }
 0x1ee   : > { %3796 = vst.msk [vmem:[#allocation2 + $0x51] sm:$0xff] %vm171_vm1, %v3764_v41  ;;  %v3734_v62 = vadd.f32 %v23860_v54, %v26168_v24  ;;  %v26182_v1 = vld [vmem:[#allocation2 + $0x19] sm:$0xff] }
 0x1ef   : > { %3795 = vst.msk [vmem:[#allocation2 + $0x49] sm:$0xff] %vm171_vm1, %v3763_v59  ;;  %v3733_v4 = vadd.f32 %v23861_v61, %v26168_v24  ;;  %v21514_v5 = vpop.f32.mrb[8].mxu0  ;;  %21559 = vmatprep.mubr.msk.f32.mxu1 %vm171_vm1, %v26182_v1 }
 0x1f0   : > { %v3766_v9 = vmax.f32 %v3734_v62, 0.0  ;;  %v23862_v10 = vadd.f32 %v21514_v5, %v21264_v8  ;;  %v3571_v11 = vpop.f32.mrb[9].mxu0  ;;  %21560 = vmatmul.mubr.msk.f32.gmra.mrb[34].mxu1 %vm171_vm1, %v26188_v6 }
 0x1f1   : > { %v3765_v12 = vmax.f32 %v3733_v4, 0.0  ;;  %v23863_v13 = vadd.f32 %v3571_v11, %v1625_v40  ;;  %v26200_v19 = vld [vmem:[#allocation2 + $0x39] sm:$0xff] }
 0x1f2   : > { %3798 = vst.msk [vmem:[#allocation2 + $0x69] sm:$0xff] %vm171_vm1, %v3766_v9  ;;  %v3736_v14 = vadd.f32 %v23862_v10, %v26168_v24  ;;  %v26194_v15 = vld [vmem:[#allocation2 + $0x31] sm:$0xff] }
 0x1f3   : > { %3797 = vst.msk [vmem:[#allocation2 + $0x61] sm:$0xff] %vm171_vm1, %v3765_v12  ;;  %v3735_v17 = vadd.f32 %v23863_v13, %v26168_v24  ;;  %v21517_v18 = vpop.f32.mrb[10].mxu0  ;;  %21562 = vmatprep.mubr.msk.f32.mxu1 %vm171_vm1, %v26194_v15 }
 0x1f4   : > { %v3768_v20 = vmax.f32 %v3736_v14, 0.0  ;;  %v23864_v21 = vadd.f32 %v21517_v18, %v21267_v42  ;;  %v3581_v22 = vpop.f32.mrb[11].mxu0  ;;  %21563 = vmatmul.mubr.msk.f32.gmra.mrb[36].mxu1 %vm171_vm1, %v26200_v19 }
 0x1f5   : > { %v3767_v25 = vmax.f32 %v3735_v17, 0.0  ;;  %v23865_v27 = vadd.f32 %v3581_v22, %v26155_v44  ;;  %v26213_v38 = vld [vmem:[#allocation2 + $0x51] sm:$0xff] }
 0x1f6   : > { %3800 = vst.msk [vmem:[#allocation2 + $0x81] sm:$0xff] %vm171_vm1, %v3768_v20  ;;  %v3738_v28 = vadd.f32 %v23864_v21, %v26168_v24  ;;  %v26207_v29 = vld [vmem:[#allocation2 + $0x49] sm:$0xff] }
 0x1f7   : > { %3799 = vst.msk [vmem:[#allocation2 + $0x79] sm:$0xff] %vm171_vm1, %v3767_v25  ;;  %v3737_v31 = vadd.f32 %v23865_v27, %v26168_v24  ;;  %v21520_v33 = vpop.f32.mrb[12].mxu0  ;;  %21565 = vmatprep.mubr.msk.f32.mxu1 %vm171_vm1, %v26207_v29 }
 0x1f8   : > { %v3770_v39 = vmax.f32 %v3738_v28, 0.0  ;;  %v23866_v8 = vadd.f32 %v21520_v33, %v26157_v45  ;;  %v3591_v40 = vpop.f32.mrb[13].mxu0  ;;  %21566 = vmatmul.mubr.msk.f32.gmra.mrb[38].mxu1 %vm171_vm1, %v26213_v38 }
 0x1f9   : > { %v3769_v42 = vmax.f32 %v3737_v31, 0.0  ;;  %v23867_v44 = vadd.f32 %v3591_v40, %v26159_v46  ;;  %v26227_v45 = vld [vmem:[#allocation2 + $0x69] sm:$0xff] }
 0x1fa   : > { %3802 = vst.msk [vmem:[#allocation2 + $0x99] sm:$0xff] %vm171_vm1, %v3770_v39  ;;  %v3740_v58 = vadd.f32 %v23866_v8, %v26168_v24  ;;  %v26221_v26 = vld [vmem:[#allocation2 + $0x61] sm:$0xff] }
 0x1fb   : > { %3801 = vst.msk [vmem:[#allocation2 + $0x91] sm:$0xff] %vm171_vm1, %v3769_v42  ;;  %v3739_v63 = vadd.f32 %v23867_v44, %v26168_v24  ;;  %v21326_v55 = vpop.f32.mrb[16].mxu1  ;;  %v21523_v60 = vpop.f32.mrb[14].mxu0  ;;  %21568 = vmatprep.mubr.msk.f32.mxu1 %vm171_vm1, %v26221_v26 }
 0x1fc   : > { %v3772_v32 = vmax.f32 %v3740_v58, 0.0  ;;  %v23868_v46 = vadd.f32 %v21523_v60, %v26161_v47  ;;  %v2054_v48 = vpop.f32.mrb[17].mxu1  ;;  %v3601_v50 = vpop.f32.mrb[15].mxu0  ;;  %21569 = vmatmul.mubr.msk.f32.gmra.mrb[40].mxu1 %vm171_vm1, %v26227_v45 }
 0x1fd   : > { %v3771_v52 = vmax.f32 %v3739_v63, 0.0  ;;  %v23869_v0 = vadd.f32 %v3601_v50, %v26163_v57  ;;  %v26241_v43 = vld [vmem:[#allocation2 + $0x81] sm:$0xff] }
 0x1fe   : > { %3804 = vst.msk [vmem:[#allocation2 + $0xb1] sm:$0xff] %vm171_vm1, %v3772_v32  ;;  %v3742_v2 = vadd.f32 %v23868_v46, %v26168_v24  ;;  %v26235_v16 = vld [vmem:[#allocation2 + $0x79] sm:$0xff] }
 0x1ff   : > { %3803 = vst.msk [vmem:[#allocation2 + $0xa9] sm:$0xff] %vm171_vm1, %v3771_v52  ;;  %v3741_v35 = vadd.f32 %v23869_v0, %v26168_v24  ;;  %v21329_v37 = vpop.f32.mrb[18].mxu1  ;;  %v21526_v47 = vpop.f32.mrb[16].mxu0  ;;  %21571 = vmatprep.mubr.msk.f32.mxu1 %vm171_vm1, %v26235_v16 }
 0x200   : > { %v3774_v49 = vmax.f32 %v3742_v2, 0.0  ;;  %v23870_v51 = vadd.f32 %v21526_v47, %v21326_v55  ;;  %v2064_v57 = vpop.f32.mrb[19].mxu1  ;;  %v3611_v53 = vpop.f32.mrb[17].mxu0  ;;  %21572 = vmatmul.mubr.msk.f32.gmra.mrb[42].mxu1 %vm171_vm1, %v26241_v43 }
 0x201   : > { %v3773_v30 = vmax.f32 %v3741_v35, 0.0  ;;  %v23871_v3 = vadd.f32 %v3611_v53, %v2054_v48  ;;  %v26253_v56 = vld [vmem:[#allocation2 + $0x99] sm:$0xff] }
 0x202   : > { %3806 = vst.msk [vmem:[#allocation2 + $0xc9] sm:$0xff] %vm171_vm1, %v3774_v49  ;;  %v3744_v34 = vadd.f32 %v23870_v51, %v26168_v24  ;;  %v26247_v36 = vld [vmem:[#allocation2 + $0x91] sm:$0xff] }
 0x203   : > { %3805 = vst.msk [vmem:[#allocation2 + $0xc1] sm:$0xff] %vm171_vm1, %v3773_v30  ;;  %v3743_v7 = vadd.f32 %v23871_v3, %v26168_v24  ;;  %v21332_v41 = vpop.f32.mrb[20].mxu1  ;;  %v21529_v54 = vpop.f32.mrb[18].mxu0  ;;  %21574 = vmatprep.mubr.msk.f32.mxu1 %vm171_vm1, %v26247_v36 }
 0x204   : > { %v3776_v59 = vmax.f32 %v3744_v34, 0.0  ;;  %v23872_v61 = vadd.f32 %v21529_v54, %v21329_v37  ;;  %v2074_v62 = vpop.f32.mrb[21].mxu1  ;;  %v3621_v4 = vpop.f32.mrb[19].mxu0  ;;  %21575 = vmatmul.mubr.msk.f32.gmra.mrb[44].mxu1 %vm171_vm1, %v26253_v56 }
 0x205   : > { %v3775_v5 = vmax.f32 %v3743_v7, 0.0  ;;  %v23873_v9 = vadd.f32 %v3621_v4, %v2064_v57  ;;  %v26265_v17 = vld [vmem:[#allocation2 + $0xb1] sm:$0xff] }
 0x206   : > { %3808 = vst.msk [vmem:[#allocation2 + $0xe1] sm:$0xff] %vm171_vm1, %v3776_v59  ;;  %v3746_v10 = vadd.f32 %v23872_v61, %v26168_v24  ;;  %v26259_v11 = vld [vmem:[#allocation2 + $0xa9] sm:$0xff] }
 0x207   : > { %3807 = vst.msk [vmem:[#allocation2 + $0xd9] sm:$0xff] %vm171_vm1, %v3775_v5  ;;  %v3745_v12 = vadd.f32 %v23873_v9, %v26168_v24  ;;  %v21335_v13 = vpop.f32.mrb[22].mxu1  ;;  %v21532_v14 = vpop.f32.mrb[20].mxu0  ;;  %21577 = vmatprep.mubr.msk.f32.mxu1 %vm171_vm1, %v26259_v11 }
 0x208   : > { %v3778_v18 = vmax.f32 %v3746_v10, 0.0  ;;  %v23874_v20 = vadd.f32 %v21532_v14, %v21332_v41  ;;  %v2084_v21 = vpop.f32.mrb[23].mxu1  ;;  %v3631_v22 = vpop.f32.mrb[21].mxu0  ;;  %21578 = vmatmul.mubr.msk.f32.gmra.mrb[46].mxu1 %vm171_vm1, %v26265_v17 }
 0x209   : > { %v3777_v25 = vmax.f32 %v3745_v12, 0.0  ;;  %v23875_v27 = vadd.f32 %v3631_v22, %v2074_v62  ;;  %v26277_v40 = vld [vmem:[#allocation2 + $0xc9] sm:$0xff] }
 0x20a   : > { %3810 = vst.msk [vmem:[#allocation2 + $0xf9] sm:$0xff] %vm171_vm1, %v3778_v18  ;;  %v3748_v28 = vadd.f32 %v23874_v20, %v26168_v24  ;;  %v26271_v31 = vld [vmem:[#allocation2 + $0xc1] sm:$0xff] }
 0x20b   : > { %3809 = vst.msk [vmem:[#allocation2 + $0xf1] sm:$0xff] %vm171_vm1, %v3777_v25  ;;  %v3747_v33 = vadd.f32 %v23875_v27, %v26168_v24  ;;  %v21338_v39 = vpop.f32.mrb[24].mxu1  ;;  %v21535_v8 = vpop.f32.mrb[22].mxu0  ;;  %21580 = vmatprep.mubr.msk.f32.mxu1 %vm171_vm1, %v26271_v31 }
 0x20c   : > { %v3780_v42 = vmax.f32 %v3748_v28, 0.0  ;;  %v23876_v44 = vadd.f32 %v21535_v8, %v21335_v13  ;;  %v2094_v58 = vpop.f32.mrb[25].mxu1  ;;  %v3641_v63 = vpop.f32.mrb[23].mxu0  ;;  %21581 = vmatmul.mubr.msk.f32.gmra.mrb[48].mxu1 %vm171_vm1, %v26277_v40 }
 0x20d   : > { %v3779_v55 = vmax.f32 %v3747_v33, 0.0  ;;  %v23877_v60 = vadd.f32 %v3641_v63, %v2084_v21  ;;  %v26289_v0 = vld [vmem:[#allocation2 + $0xe1] sm:$0xff] }
 0x20e   : > { %3812 = vst.msk [vmem:[#allocation2 + $0x111] sm:$0xff] %vm171_vm1, %v3780_v42  ;;  %v3750_v32 = vadd.f32 %v23876_v44, %v26168_v24  ;;  %v26283_v46 = vld [vmem:[#allocation2 + $0xd9] sm:$0xff] }
 0x20f   : > { %3811 = vst.msk [vmem:[#allocation2 + $0x109] sm:$0xff] %vm171_vm1, %v3779_v55  ;;  %v3749_v48 = vadd.f32 %v23877_v60, %v26168_v24  ;;  %v21341_v50 = vpop.f32.mrb[26].mxu1  ;;  %v21538_v52 = vpop.f32.mrb[24].mxu0  ;;  %21583 = vmatprep.mubr.msk.f32.mxu1 %vm171_vm1, %v26283_v46 }
 0x210   : > { %v3782_v2 = vmax.f32 %v3750_v32, 0.0  ;;  %v23878_v35 = vadd.f32 %v21538_v52, %v21338_v39  ;;  %v2104_v37 = vpop.f32.mrb[27].mxu1  ;;  %v3651_v47 = vpop.f32.mrb[25].mxu0  ;;  %21584 = vmatmul.mubr.msk.f32.gmra.mrb[50].mxu1 %vm171_vm1, %v26289_v0 }
 0x211   : > { %v3781_v49 = vmax.f32 %v3749_v48, 0.0  ;;  %v23879_v51 = vadd.f32 %v3651_v47, %v2094_v58  ;;  %v26301_v7 = vld [vmem:[#allocation2 + $0xf9] sm:$0xff] }
 0x212   : > { %3814 = vst.msk [vmem:[#allocation2 + $0x129] sm:$0xff] %vm171_vm1, %v3782_v2  ;;  %v3752_v57 = vadd.f32 %v23878_v35, %v26168_v24  ;;  %v26295_v53 = vld [vmem:[#allocation2 + $0xf1] sm:$0xff] }
 0x213   : > { %3813 = vst.msk [vmem:[#allocation2 + $0x121] sm:$0xff] %vm171_vm1, %v3781_v49  ;;  %v3751_v30 = vadd.f32 %v23879_v51, %v26168_v24  ;;  %v21344_v3 = vpop.f32.mrb[28].mxu1  ;;  %v21541_v34 = vpop.f32.mrb[26].mxu0  ;;  %21586 = vmatprep.mubr.msk.f32.mxu1 %vm171_vm1, %v26295_v53  ;;  %v3823_v49 = vld [vmem:[#allocation2] sm:$0xff] }
 0x214   : > { %v3784_v41 = vmax.f32 %v3752_v57, 0.0  ;;  %v23880_v54 = vadd.f32 %v21541_v34, %v21341_v50  ;;  %v2114_v59 = vpop.f32.mrb[29].mxu1  ;;  %v3661_v61 = vpop.f32.mrb[27].mxu0  ;;  %21587 = vmatmul.mubr.msk.f32.gmra.mrb[52].mxu1 %vm171_vm1, %v26301_v7  ;;  %v4571_v57 = vld [vmem:[%s29873_s1 + $0x78] sm:$0xff] }
 0x215   : > { %v3783_v62 = vmax.f32 %v3751_v30, 0.0  ;;  %v23881_v4 = vadd.f32 %v3661_v61, %v2104_v37  ;;  %v26313_v14 = vld [vmem:[#allocation2 + $0x111] sm:$0xff]  ;;  %v4572_v30 = vld [vmem:[%s29873_s1 + $0x80] sm:$0xff] }
 0x216   : > { %3816 = vst.msk [vmem:[#allocation2 + $0x141] sm:$0xff] %vm171_vm1, %v3784_v41  ;;  %v3754_v5 = vadd.f32 %v23880_v54, %v26168_v24  ;;  %v26307_v9 = vld [vmem:[#allocation2 + $0x109] sm:$0xff]  ;;  %v23584_v34 = vpack.c.bf16 %v4572_v30, %v4571_v57 }
 0x217   : > { %3815 = vst.msk [vmem:[#allocation2 + $0x139] sm:$0xff] %vm171_vm1, %v3783_v62  ;;  %v3753_v10 = vadd.f32 %v23881_v4, %v26168_v24  ;;  %v21347_v12 = vpop.f32.mrb[30].mxu1  ;;  %v21544_v13 = vpop.f32.mrb[28].mxu0  ;;  %21589 = vmatprep.mubr.msk.f32.mxu1 %vm171_vm1, %v26307_v9  ;;  %v4958_v41 = vld [vmem:[%s29873_s1 + $0x88] sm:$0xff]  ;;  %v4959_v54 = vld [vmem:[%s29873_s1 + $0x90] sm:$0xff]  ;;  %v26380_v62 = vld [vmem:[#allocation2 + $0x20] sm:$0xff] }
 0x218   : > { %v3786_v18 = vmax.f32 %v3754_v5, 0.0  ;;  %v23882_v20 = vadd.f32 %v21544_v13, %v21344_v3  ;;  %v2124_v21 = vpop.f32.mrb[31].mxu1  ;;  %v3671_v22 = vpop.f32.mrb[29].mxu0  ;;  %21590 = vmatmul.mubr.msk.f32.gmra.mrb[54].mxu1 %vm171_vm1, %v26313_v14  ;;  %v3824_v3 = vld [vmem:[#allocation2 + $0x8] sm:$0xff]  ;;  %v26378_v61 = vpack.c.bf16 %v4959_v54, %v4958_v41  ;;  %v26384_v4 = vld [vmem:[#allocation2 + $0x30] sm:$0xff]  ;;  %v4960_v41 = vld [vmem:[%s29873_s1 + $0x98] sm:$0xff] }
 0x219   : > { %v3785_v25 = vmax.f32 %v3753_v10, 0.0  ;;  %v23883_v27 = vadd.f32 %v3671_v22, %v2114_v59  ;;  %v26325_v42 = vld [vmem:[#allocation2 + $0x129] sm:$0xff]  ;;  %v26373_v59 = vld [vmem:[#allocation2 + $0x18] sm:$0xff]  ;;  %v4961_v54 = vld [vmem:[%s29873_s1 + $0xa0] sm:$0xff] }
 0x21a   : > { %3818 = vst.msk [vmem:[#allocation2 + $0x159] sm:$0xff] %vm171_vm1, %v3786_v18  ;;  %v3756_v28 = vadd.f32 %v23882_v20, %v26168_v24  ;;  %v26319_v33 = vld [vmem:[#allocation2 + $0x121] sm:$0xff]  ;;  %v26397_v10 = vld [vmem:[#allocation2 + $0x50] sm:$0xff]  ;;  %v26409_v18 = vld [vmem:[#allocation2 + $0x78] sm:$0xff] }
 0x21b   : > { %3817 = vst.msk [vmem:[#allocation2 + $0x151] sm:$0xff] %vm171_vm1, %v3785_v25  ;;  %v3755_v39 = vadd.f32 %v23883_v27, %v26168_v24  ;;  %v21547_v8 = vpop.f32.mrb[30].mxu0  ;;  %21592 = vmatprep.mubr.msk.f32.mxu1 %vm171_vm1, %v26319_v33  ;;  %v26393_v5 = vld [vmem:[#allocation2 + $0x48] sm:$0xff]  ;;  %v26413_v20 = vld [vmem:[#allocation2 + $0x80] sm:$0xff]  ;;  %v26421_v22 = vld [vmem:[#allocation2 + $0x98] sm:$0xff] }
 0x21c   : > { %v3788_v44 = vmax.f32 %v3756_v28, 0.0  ;;  %v23884_v58 = vadd.f32 %v21547_v8, %v21347_v12  ;;  %v3681_v63 = vpop.f32.mrb[31].mxu0  ;;  %21593 = vmatmul.mubr.msk.f32.gmra.mrb[56].mxu1 %vm171_vm1, %v26325_v42  ;;  %v26401_v12 = vld [vmem:[#allocation2 + $0x60] sm:$0xff]  ;;  %v26405_v13 = vld [vmem:[#allocation2 + $0x68] sm:$0xff]  ;;  %v26429_v27 = vld [vmem:[#allocation2 + $0xb0] sm:$0xff] }
 0x21d   : > { %v3787_v55 = vmax.f32 %v3755_v39, 0.0  ;;  %v23885_v60 = vadd.f32 %v3681_v63, %v2124_v21  ;;  %v26337_v52 = vld [vmem:[#allocation2 + $0x141] sm:$0xff]  ;;  %v26417_v21 = vld [vmem:[#allocation2 + $0x90] sm:$0xff]  ;;  %v26441_v8 = vld [vmem:[#allocation2 + $0xd8] sm:$0xff] }
 0x21e   : > { %3820 = vst.msk [vmem:[#allocation2 + $0x171] sm:$0xff] %vm171_vm1, %v3788_v44  ;;  %v3758_v32 = vadd.f32 %v23884_v58, %v26168_v24  ;;  %v26331_v48 = vld [vmem:[#allocation2 + $0x139] sm:$0xff]  ;;  %30254 = vst [vmem:[#allocation31_spill] sm:$0xff] %v26337_v52  ;;  %v26425_v25 = vld [vmem:[#allocation2 + $0xa8] sm:$0xff] }
 0x21f   : > { %3819 = vst.msk [vmem:[#allocation2 + $0x169] sm:$0xff] %vm171_vm1, %v3787_v55  ;;  %v3757_v50 = vadd.f32 %v23885_v60, %v26168_v24  ;;  %21595 = vmatprep.mubr.msk.f32.mxu1 %vm171_vm1, %v26331_v48  ;;  %v26433_v28 = vld [vmem:[#allocation2 + $0xc0] sm:$0xff]  ;;  %v26437_v39 = vld [vmem:[#allocation2 + $0xc8] sm:$0xff]  ;;  %v26449_v58 = vld [vmem:[#allocation2 + $0xf0] sm:$0xff] }
 0x220   : > { %v3790_v2 = vmax.f32 %v3758_v32, 0.0  ;;  %21596 = vmatmul.mubr.msk.f32.gmra.mrb[58].mxu1 %vm171_vm1, %v26337_v52  ;;  %v26445_v44 = vld [vmem:[#allocation2 + $0xe0] sm:$0xff]  ;;  %v26453_v63 = vld [vmem:[#allocation2 + $0xf8] sm:$0xff]  ;;  %v26457_v55 = vld [vmem:[#allocation2 + $0x108] sm:$0xff] }
 0x221   : > { %v3789_v35 = vmax.f32 %v3757_v50, 0.0  ;;  %v26347_v24 = vld [vmem:[#allocation2 + $0x159] sm:$0xff]  ;;  %v26461_v60 = vld [vmem:[#allocation2 + $0x110] sm:$0xff]  ;;  %v26469_v50 = vld [vmem:[#allocation2 + $0x128] sm:$0xff] }
 0x222   : > { %3822 = vst.msk [vmem:[#allocation2 + $0x189] sm:$0xff] %vm171_vm1, %v3790_v2  ;;  %v26342_v37 = vld [vmem:[#allocation2 + $0x151] sm:$0xff]  ;;  %30256 = vst [vmem:[#allocation18_spill] sm:$0xff] %v26347_v24  ;;  %v26465_v32 = vld [vmem:[#allocation2 + $0x120] sm:$0xff] }
 0x223   : > { %30255 = vst [vmem:[#allocation3_spill] sm:$0xff] %v26342_v37  ;;  %3821 = vst.msk [vmem:[#allocation2 + $0x181] sm:$0xff] %vm171_vm1, %v3789_v35  ;;  %21598 = vmatprep.mubr.msk.f32.mxu1 %vm171_vm1, %v26342_v37  ;;  %v26473_v2 = vld [vmem:[#allocation2 + $0x138] sm:$0xff]  ;;  %v26477_v35 = vld [vmem:[#allocation2 + $0x140] sm:$0xff] }
 0x224   : > { %21599 = vmatmul.mubr.msk.f32.gmra.mrb[60].mxu1 %vm171_vm1, %v26347_v24  ;;  %v26485_v57 = vld [vmem:[#allocation2 + $0x158] sm:$0xff]  ;;  %v5347_v24 = vld [vmem:[%s29873_s1 + $0xa8] sm:$0xff]  ;;  %v5348_v37 = vld [vmem:[%s29873_s1 + $0xb0] sm:$0xff] }
 0x225   : > { %v26355_v51 = vld [vmem:[#allocation2 + $0x171] sm:$0xff]  ;;  %v26511_v52 = vld [vmem:[#allocation2 + $0x1a] sm:$0xff] }
 0x226   : > { %v26351_v47 = vld [vmem:[#allocation2 + $0x169] sm:$0xff]  ;;  %30258 = vst [vmem:[#allocation19_spill] sm:$0xff] %v26355_v51 }
 0x227   : > { %30257 = vst [vmem:[#allocation4_spill] sm:$0xff] %v26351_v47  ;;  %21601 = vmatprep.mubr.msk.f32.mxu1 %vm171_vm1, %v26351_v47  ;;  %v26489_v30 = vld [vmem:[#allocation2 + $0x168] sm:$0xff]  ;;  %v23592_v47 = vpack.c.bf16 %v4961_v54, %v4960_v41  ;;  %v26522_v54 = vld [vmem:[#allocation2 + $0x32] sm:$0xff] }
 0x228   : > { %21602 = vmatmul.mubr.msk.f32.gmra.mrb[62].mxu1 %vm171_vm1, %v26355_v51  ;;  %v4538_v51 = vld [vmem:[#allocation2 + $0xa] sm:$0xff]  ;;  %v26518_v41 = vld [vmem:[#allocation2 + $0x22] sm:$0xff]  ;;  %30259 = vst [vmem:[#allocation5_spill] sm:$0xff] %v26522_v54 }
 0x229   : > { %21612 = vmatprep.mubr.msk.f32.mxu1 %vm171_vm1, %v3823_v49  ;;  %v26481_v49 = vld [vmem:[#allocation2 + $0x150] sm:$0xff] }
 0x22c   : > { %21613 = vmatmul.mubr.msk.f32.vlgmr.msra.gmra.mrb[32].mxu1 %vm171_vm1, %v3824_v3  ;;  %v4537_v3 = vld [vmem:[#allocation2 + $0x2] sm:$0xff] }
 0x22d   : > { %23583 = vmatpush3.bf16.msra.mxu1 %v26152_v23  ;;  %21615 = vmatprep.mubr.msk.f32.mxu1 %vm171_vm1, %v26373_v59  ;;  %v26389_v23 = vld [vmem:[#allocation2 + $0x38] sm:$0xff] }
 0x22e   : > { %23585 = vmatprep.subr.bf16.mxu1 %v23584_v34 }
 0x230   : > { %21616 = vmatmul.mubr.msk.f32.gmra.mrb[34].mxu1 %vm171_vm1, %v26380_v62 }
 0x231   : > { %21618 = vmatprep.mubr.msk.f32.mxu1 %vm171_vm1, %v26384_v4  ;;  %23587 = vmatpush3.bf16.msra.mxu1 %v23584_v34  ;;  %v26493_v34 = vld [vmem:[#allocation2 + $0x170] sm:$0xff] }
 0x232   : > { %23589 = vmatprep.subr.bf16.mxu1 %v26378_v61 }
 0x234   : > { %21619 = vmatmul.mubr.msk.f32.gmra.mrb[36].mxu1 %vm171_vm1, %v26389_v23 }
 0x235   : > { %21621 = vmatprep.mubr.msk.f32.mxu1 %vm171_vm1, %v26393_v5 }
 0x238   : > { %21622 = vmatmul.mubr.msk.f32.gmra.mrb[38].mxu1 %vm171_vm1, %v26397_v10 }
 0x239   : > { %21624 = vmatprep.mubr.msk.f32.mxu1 %vm171_vm1, %v26401_v12 }
 0x23c   : > { %21625 = vmatmul.mubr.msk.f32.gmra.mrb[40].mxu1 %vm171_vm1, %v26405_v13 }
 0x23d   : > { %21627 = vmatprep.mubr.msk.f32.mxu1 %vm171_vm1, %v26409_v18 }
 0x240   : > { %21628 = vmatmul.mubr.msk.f32.gmra.mrb[42].mxu1 %vm171_vm1, %v26413_v20 }
 0x241   : > { %21630 = vmatprep.mubr.msk.f32.mxu1 %vm171_vm1, %v26417_v21 }
 0x244   : > { %21631 = vmatmul.mubr.msk.f32.gmra.mrb[44].mxu1 %vm171_vm1, %v26421_v22 }
 0x245   : > { %21633 = vmatprep.mubr.msk.f32.mxu1 %vm171_vm1, %v26425_v25 }
 0x248   : > { %21634 = vmatmul.mubr.msk.f32.gmra.mrb[46].mxu1 %vm171_vm1, %v26429_v27 }
 0x249   : > { %21636 = vmatprep.mubr.msk.f32.mxu1 %vm171_vm1, %v26433_v28 }
 0x24c   : > { %21637 = vmatmul.mubr.msk.f32.gmra.mrb[48].mxu1 %vm171_vm1, %v26437_v39 }
 0x24d   : > { %21639 = vmatprep.mubr.msk.f32.mxu1 %vm171_vm1, %v26441_v8 }
 0x250   : > { %21640 = vmatmul.mubr.msk.f32.gmra.mrb[50].mxu1 %vm171_vm1, %v26445_v44 }
 0x251   : > { %21642 = vmatprep.mubr.msk.f32.mxu1 %vm171_vm1, %v26449_v58 }
 0x254   : > { %21643 = vmatmul.mubr.msk.f32.gmra.mrb[52].mxu1 %vm171_vm1, %v26453_v63 }
 0x255   : > { %21645 = vmatprep.mubr.msk.f32.mxu1 %vm171_vm1, %v26457_v55 }
 0x258   : > { %21646 = vmatmul.mubr.msk.f32.gmra.mrb[54].mxu1 %vm171_vm1, %v26461_v60 }
 0x259   : > { %21648 = vmatprep.mubr.msk.f32.mxu1 %vm171_vm1, %v26465_v32 }
 0x25c   : > { %21649 = vmatmul.mubr.msk.f32.gmra.mrb[56].mxu1 %vm171_vm1, %v26469_v50 }
 0x25d   : > { %21651 = vmatprep.mubr.msk.f32.mxu1 %vm171_vm1, %v26473_v2 }
 0x260   : > { %21652 = vmatmul.mubr.msk.f32.gmra.mrb[58].mxu1 %vm171_vm1, %v26477_v35 }
 0x261   : > { %21654 = vmatprep.mubr.msk.f32.mxu1 %vm171_vm1, %v26481_v49 }
 0x264   : > { %21655 = vmatmul.mubr.msk.f32.gmra.mrb[60].mxu1 %vm171_vm1, %v26485_v57 }
 0x265   : > { %21657 = vmatprep.mubr.msk.f32.mxu1 %vm171_vm1, %v26489_v30 }
 0x268   : > { %21658 = vmatmul.mubr.msk.f32.gmra.mrb[62].mxu1 %vm171_vm1, %v26493_v34 }
 0x269   : > { %21668 = vmatprep.mubr.msk.f32.mxu1 %vm171_vm1, %v4537_v3  ;;  %v26516_v3 = vpack.c.bf16 %v5348_v37, %v5347_v24  ;;  %v26531_v37 = vld [vmem:[#allocation2 + $0x4a] sm:$0xff]  ;;  %v26535_v24 = vld [vmem:[#allocation2 + $0x52] sm:$0xff] }
 0x26a   : > { %30261 = vst [vmem:[#allocation6_spill] sm:$0xff] %v26531_v37  ;;  %30262 = vst [vmem:[#allocation21_spill] sm:$0xff] %v26535_v24 }
 0x26c   : > { %21669 = vmatmul.mubr.msk.f32.vlgmr.msra.gmra.mrb[32].mxu1 %vm171_vm1, %v4538_v51  ;;  %v26527_v51 = vld [vmem:[#allocation2 + $0x3a] sm:$0xff] }
 0x26d   : > { %23591 = vmatpush3.bf16.msra.mxu1 %v26378_v61  ;;  %21671 = vmatprep.mubr.msk.f32.mxu1 %vm171_vm1, %v26511_v52  ;;  %30260 = vst [vmem:[#allocation20_spill] sm:$0xff] %v26527_v51  ;;  %v26539_v61 = vld [vmem:[#allocation2 + $0x62] sm:$0xff] }
 0x26e   : > { %23593 = vmatprep.subr.bf16.mxu1 %v23592_v47  ;;  %30263 = vst [vmem:[#allocation7_spill] sm:$0xff] %v26539_v61 }
 0x270   : > { %21672 = vmatmul.mubr.msk.f32.gmra.mrb[34].mxu1 %vm171_vm1, %v26518_v41 }
 0x271   : > { %21674 = vmatprep.mubr.msk.f32.mxu1 %vm171_vm1, %v26522_v54  ;;  %23595 = vmatpush3.bf16.msra.mxu1 %v23592_v47  ;;  %v26543_v47 = vld [vmem:[#allocation2 + $0x6a] sm:$0xff] }
 0x272   : > { %23597 = vmatprep.subr.bf16.mxu1 %v26516_v3  ;;  %30264 = vst [vmem:[#allocation22_spill] sm:$0xff] %v26543_v47  ;;  %v5737_v54 = vld [vmem:[%s29873_s1 + $0xd0] sm:$0xff] }
 0x274   : > { %21675 = vmatmul.mubr.msk.f32.gmra.mrb[36].mxu1 %vm171_vm1, %v26527_v51  ;;  %v26547_v51 = vld [vmem:[#allocation2 + $0x7a] sm:$0xff] }
 0x275   : > { %21677 = vmatprep.mubr.msk.f32.mxu1 %vm171_vm1, %v26531_v37  ;;  %30265 = vst [vmem:[#allocation8_spill] sm:$0xff] %v26547_v51  ;;  %v26551_v37 = vld [vmem:[#allocation2 + $0x82] sm:$0xff] }
 0x276   : > { %30266 = vst [vmem:[#allocation23_spill] sm:$0xff] %v26551_v37 }
 0x278   : > { %21678 = vmatmul.mubr.msk.f32.gmra.mrb[38].mxu1 %vm171_vm1, %v26535_v24  ;;  %v26555_v24 = vld [vmem:[#allocation2 + $0x92] sm:$0xff] }
 0x279   : > { %21680 = vmatprep.mubr.msk.f32.mxu1 %vm171_vm1, %v26539_v61  ;;  %30267 = vst [vmem:[#allocation9_spill] sm:$0xff] %v26555_v24  ;;  %v26559_v61 = vld [vmem:[#allocation2 + $0x9a] sm:$0xff] }
 0x27a   : > { %30268 = vst [vmem:[#allocation24_spill] sm:$0xff] %v26559_v61 }
 0x27c   : > { %21681 = vmatmul.mubr.msk.f32.gmra.mrb[40].mxu1 %vm171_vm1, %v26543_v47  ;;  %v26563_v47 = vld [vmem:[#allocation2 + $0xaa] sm:$0xff] }
 0x27d   : > { %21683 = vmatprep.mubr.msk.f32.mxu1 %vm171_vm1, %v26547_v51  ;;  %30269 = vst [vmem:[#allocation10_spill] sm:$0xff] %v26563_v47  ;;  %v26567_v51 = vld [vmem:[#allocation2 + $0xb2] sm:$0xff] }
 0x27e   : > { %30270 = vst [vmem:[#allocation25_spill] sm:$0xff] %v26567_v51 }
 0x280   : > { %21684 = vmatmul.mubr.msk.f32.gmra.mrb[42].mxu1 %vm171_vm1, %v26551_v37  ;;  %v26571_v37 = vld [vmem:[#allocation2 + $0xc2] sm:$0xff] }
 0x281   : > { %21686 = vmatprep.mubr.msk.f32.mxu1 %vm171_vm1, %v26555_v24  ;;  %30271 = vst [vmem:[#allocation11_spill] sm:$0xff] %v26571_v37  ;;  %v26575_v24 = vld [vmem:[#allocation2 + $0xca] sm:$0xff] }
 0x282   : > { %30272 = vst [vmem:[#allocation26_spill] sm:$0xff] %v26575_v24 }
 0x284   : > { %21687 = vmatmul.mubr.msk.f32.gmra.mrb[44].mxu1 %vm171_vm1, %v26559_v61  ;;  %v26579_v61 = vld [vmem:[#allocation2 + $0xda] sm:$0xff] }
 0x285   : > { %21689 = vmatprep.mubr.msk.f32.mxu1 %vm171_vm1, %v26563_v47  ;;  %30273 = vst [vmem:[#allocation12_spill] sm:$0xff] %v26579_v61  ;;  %v26583_v47 = vld [vmem:[#allocation2 + $0xe2] sm:$0xff] }
 0x286   : > { %30274 = vst [vmem:[#allocation27_spill] sm:$0xff] %v26583_v47 }
 0x288   : > { %21690 = vmatmul.mubr.msk.f32.gmra.mrb[46].mxu1 %vm171_vm1, %v26567_v51  ;;  %v26587_v51 = vld [vmem:[#allocation2 + $0xf2] sm:$0xff] }
 0x289   : > { %21692 = vmatprep.mubr.msk.f32.mxu1 %vm171_vm1, %v26571_v37  ;;  %30275 = vst [vmem:[#allocation13_spill] sm:$0xff] %v26587_v51  ;;  %v26591_v37 = vld [vmem:[#allocation2 + $0xfa] sm:$0xff] }
 0x28a   : > { %30276 = vst [vmem:[#allocation28_spill] sm:$0xff] %v26591_v37 }
 0x28c   : > { %21693 = vmatmul.mubr.msk.f32.gmra.mrb[48].mxu1 %vm171_vm1, %v26575_v24  ;;  %v26595_v24 = vld [vmem:[#allocation2 + $0x10a] sm:$0xff] }
 0x28d   : > { %21695 = vmatprep.mubr.msk.f32.mxu1 %vm171_vm1, %v26579_v61  ;;  %30277 = vst [vmem:[#allocation14_spill] sm:$0xff] %v26595_v24  ;;  %v26599_v61 = vld [vmem:[#allocation2 + $0x112] sm:$0xff] }
 0x28e   : > { %30278 = vst [vmem:[#allocation29_spill] sm:$0xff] %v26599_v61 }
 0x290   : > { %21696 = vmatmul.mubr.msk.f32.gmra.mrb[50].mxu1 %vm171_vm1, %v26583_v47  ;;  %v26603_v47 = vld [vmem:[#allocation2 + $0x122] sm:$0xff] }
 0x291   : > { %21698 = vmatprep.mubr.msk.f32.mxu1 %vm171_vm1, %v26587_v51  ;;  %30279 = vst [vmem:[#allocation15_spill] sm:$0xff] %v26603_v47  ;;  %v26607_v51 = vld [vmem:[#allocation2 + $0x12a] sm:$0xff] }
 0x292   : > { %30280 = vst [vmem:[#allocation16_spill] sm:$0xff] %v26607_v51 }
 0x294   : > { %21699 = vmatmul.mubr.msk.f32.gmra.mrb[52].mxu1 %vm171_vm1, %v26591_v37  ;;  %v26611_v37 = vld [vmem:[#allocation2 + $0x13a] sm:$0xff] }
 0x295   : > { %21701 = vmatprep.mubr.msk.f32.mxu1 %vm171_vm1, %v26595_v24  ;;  %30281 = vst [vmem:[#allocation30_spill] sm:$0xff] %v26611_v37  ;;  %v26615_v24 = vld [vmem:[#allocation2 + $0x142] sm:$0xff] }
 0x296   : > { %30282 = vst [vmem:[#allocation17_spill] sm:$0xff] %v26615_v24 }
 0x298   : > { %21702 = vmatmul.mubr.msk.f32.gmra.mrb[54].mxu1 %vm171_vm1, %v26599_v61  ;;  %v26619_v61 = vld [vmem:[#allocation2 + $0x152] sm:$0xff] }
 0x299   : > { %21704 = vmatprep.mubr.msk.f32.mxu1 %vm171_vm1, %v26603_v47  ;;  %30283 = vst [vmem:[#allocation32_spill] sm:$0xff] %v26619_v61  ;;  %v26623_v47 = vld [vmem:[#allocation2 + $0x15a] sm:$0xff] }
 0x29a   : > { %30284 = vst [vmem:[#allocation33_spill] sm:$0xff] %v26623_v47 }
 0x29c   : > { %21705 = vmatmul.mubr.msk.f32.gmra.mrb[56].mxu1 %vm171_vm1, %v26607_v51  ;;  %v26627_v51 = vld [vmem:[#allocation2 + $0x16a] sm:$0xff] }
 0x29d   : > { %21707 = vmatprep.mubr.msk.f32.mxu1 %vm171_vm1, %v26611_v37  ;;  %30285 = vst [vmem:[#allocation34_spill] sm:$0xff] %v26627_v51  ;;  %v26631_v37 = vld [vmem:[#allocation2 + $0x172] sm:$0xff] }
 0x29e   : > { %30286 = vst [vmem:[#allocation35_spill] sm:$0xff] %v26631_v37 }
 0x2a0   : > { %21708 = vmatmul.mubr.msk.f32.gmra.mrb[58].mxu1 %vm171_vm1, %v26615_v24  ;;  %v5349_v24 = vld [vmem:[%s29873_s1 + $0xb8] sm:$0xff] }
 0x2a1   : > { %21710 = vmatprep.mubr.msk.f32.mxu1 %vm171_vm1, %v26619_v61  ;;  %v5350_v61 = vld [vmem:[%s29873_s1 + $0xc0] sm:$0xff] }
 0x2a4   : > { %21711 = vmatmul.mubr.msk.f32.gmra.mrb[60].mxu1 %vm171_vm1, %v26623_v47  ;;  %v23600_v47 = vpack.c.bf16 %v5350_v61, %v5349_v24  ;;  %v6125_v24 = vld [vmem:[%s29873_s1 + $0xe8] sm:$0xff]  ;;  %v6126_v61 = vld [vmem:[%s29873_s1 + $0xf0] sm:$0xff] }
 0x2a5   : > { %21713 = vmatprep.mubr.msk.f32.mxu1 %vm171_vm1, %v26627_v51  ;;  %v5736_v51 = vld [vmem:[%s29873_s1 + $0xc8] sm:$0xff] }
 0x2a8   : > { %21714 = vmatmul.mubr.msk.f32.gmra.mrb[62].mxu1 %vm171_vm1, %v26631_v37  ;;  %v23604_v37 = vpack.c.bf16 %v5737_v54, %v5736_v51  ;;  %v5739_v54 = vld [vmem:[%s29873_s1 + $0xe0] sm:$0xff] }
 0x2a9   : > { %21724 = vmatprep.mubr.msk.f32.mxu1 %vm171_vm1, %v26373_v59  ;;  %v26708_v59 = vld [vmem:[#allocation2 + $0x180] sm:$0xff] }
 0x2ac   : > { %21725 = vmatmul.mubr.msk.f32.vlgmr.msra.gmra.mrb[32].mxu1 %vm171_vm1, %v26380_v62  ;;  %v26712_v62 = vld [vmem:[#allocation2 + $0x188] sm:$0xff] }
 0x2ad   : > { %23599 = vmatpush3.bf16.msra.mxu1 %v26516_v3  ;;  %21727 = vmatprep.mubr.msk.f32.mxu1 %vm171_vm1, %v26384_v4  ;;  %v5738_v3 = vld [vmem:[%s29873_s1 + $0xd8] sm:$0xff] }
 0x2ae   : > { %23601 = vmatprep.subr.bf16.mxu1 %v23600_v47  ;;  %v23608_v51 = vpack.c.bf16 %v5739_v54, %v5738_v3  ;;  %v30305_v3 = vld [vmem:[#allocation26_spill] sm:$0xff]  ;;  %v30306_v54 = vld [vmem:[#allocation12_spill] sm:$0xff] }
 0x2b0   : > { %21728 = vmatmul.mubr.msk.f32.gmra.mrb[34].mxu1 %vm171_vm1, %v26389_v23 }
 0x2b1   : > { %21730 = vmatprep.mubr.msk.f32.mxu1 %vm171_vm1, %v26393_v5  ;;  %23603 = vmatpush3.bf16.msra.mxu1 %v23600_v47  ;;  %v23612_v47 = vpack.c.bf16 %v6126_v61, %v6125_v24  ;;  %v30308_v24 = vld [vmem:[#allocation13_spill] sm:$0xff]  ;;  %v30309_v61 = vld [vmem:[#allocation28_spill] sm:$0xff] }
 0x2b2   : > { %23605 = vmatprep.subr.bf16.mxu1 %v23604_v37 }
 0x2b4   : > { %21731 = vmatmul.mubr.msk.f32.gmra.mrb[36].mxu1 %vm171_vm1, %v26397_v10 }
 0x2b5   : > { %21733 = vmatprep.mubr.msk.f32.mxu1 %vm171_vm1, %v26401_v12 }
 0x2b8   : > { %21734 = vmatmul.mubr.msk.f32.gmra.mrb[38].mxu1 %vm171_vm1, %v26405_v13 }
 0x2b9   : > { %21736 = vmatprep.mubr.msk.f32.mxu1 %vm171_vm1, %v26409_v18 }
 0x2bc   : > { %21737 = vmatmul.mubr.msk.f32.gmra.mrb[40].mxu1 %vm171_vm1, %v26413_v20 }
 0x2bd   : > { %21739 = vmatprep.mubr.msk.f32.mxu1 %vm171_vm1, %v26417_v21 }
 0x2c0   : > { %21740 = vmatmul.mubr.msk.f32.gmra.mrb[42].mxu1 %vm171_vm1, %v26421_v22 }
 0x2c1   : > { %21742 = vmatprep.mubr.msk.f32.mxu1 %vm171_vm1, %v26425_v25 }
 0x2c4   : > { %21743 = vmatmul.mubr.msk.f32.gmra.mrb[44].mxu1 %vm171_vm1, %v26429_v27 }
 0x2c5   : > { %21745 = vmatprep.mubr.msk.f32.mxu1 %vm171_vm1, %v26433_v28 }
 0x2c8   : > { %21746 = vmatmul.mubr.msk.f32.gmra.mrb[46].mxu1 %vm171_vm1, %v26437_v39 }
 0x2c9   : > { %21748 = vmatprep.mubr.msk.f32.mxu1 %vm171_vm1, %v26441_v8 }
 0x2cc   : > { %21749 = vmatmul.mubr.msk.f32.gmra.mrb[48].mxu1 %vm171_vm1, %v26445_v44 }
 0x2cd   : > { %21751 = vmatprep.mubr.msk.f32.mxu1 %vm171_vm1, %v26449_v58 }
 0x2d0   : > { %21752 = vmatmul.mubr.msk.f32.gmra.mrb[50].mxu1 %vm171_vm1, %v26453_v63 }
 0x2d1   : > { %21754 = vmatprep.mubr.msk.f32.mxu1 %vm171_vm1, %v26457_v55 }
 0x2d4   : > { %21755 = vmatmul.mubr.msk.f32.gmra.mrb[52].mxu1 %vm171_vm1, %v26461_v60 }
 0x2d5   : > { %21757 = vmatprep.mubr.msk.f32.mxu1 %vm171_vm1, %v26465_v32 }
 0x2d8   : > { %21758 = vmatmul.mubr.msk.f32.gmra.mrb[54].mxu1 %vm171_vm1, %v26469_v50 }
 0x2d9   : > { %21760 = vmatprep.mubr.msk.f32.mxu1 %vm171_vm1, %v26473_v2 }
 0x2dc   : > { %21761 = vmatmul.mubr.msk.f32.gmra.mrb[56].mxu1 %vm171_vm1, %v26477_v35 }
 0x2dd   : > { %21763 = vmatprep.mubr.msk.f32.mxu1 %vm171_vm1, %v26481_v49 }
 0x2e0   : > { %21764 = vmatmul.mubr.msk.f32.gmra.mrb[58].mxu1 %vm171_vm1, %v26485_v57 }
 0x2e1   : > { %21766 = vmatprep.mubr.msk.f32.mxu1 %vm171_vm1, %v26489_v30 }
 0x2e4   : > { %21767 = vmatmul.mubr.msk.f32.gmra.mrb[60].mxu1 %vm171_vm1, %v26493_v34 }
 0x2e5   : > { %21769 = vmatprep.mubr.msk.f32.mxu1 %vm171_vm1, %v26708_v59 }
 0x2e8   : > { %21770 = vmatmul.mubr.msk.f32.gmra.mrb[62].mxu1 %vm171_vm1, %v26712_v62 }
 0x2e9   : > { %21780 = vmatprep.mubr.msk.f32.mxu1 %vm171_vm1, %v26182_v1  ;;  %v30287_v1 = vld [vmem:[#allocation31_spill] sm:$0xff] }
 0x2ec   : > { %21781 = vmatmul.mubr.msk.f32.vlgmr.msra.gmra.mrb[32].mxu1 %vm171_vm1, %v26188_v6  ;;  %v30288_v6 = vld [vmem:[#allocation3_spill] sm:$0xff] }
 0x2ed   : > { %23607 = vmatpush3.bf16.msra.mxu1 %v23604_v37  ;;  %21783 = vmatprep.mubr.msk.f32.mxu1 %vm171_vm1, %v26194_v15  ;;  %v30289_v15 = vld [vmem:[#allocation18_spill] sm:$0xff]  ;;  %v30304_v37 = vld [vmem:[#allocation11_spill] sm:$0xff] }
 0x2ee   : > { %23609 = vmatprep.subr.bf16.mxu1 %v23608_v51 }
 0x2f0   : > { %21784 = vmatmul.mubr.msk.f32.gmra.mrb[34].mxu1 %vm171_vm1, %v26200_v19  ;;  %v30290_v19 = vld [vmem:[#allocation4_spill] sm:$0xff] }
 0x2f1   : > { %21786 = vmatprep.mubr.msk.f32.mxu1 %vm171_vm1, %v26207_v29  ;;  %23611 = vmatpush3.bf16.msra.mxu1 %v23608_v51  ;;  %v30291_v29 = vld [vmem:[#allocation19_spill] sm:$0xff] }
 0x2f2   : > { %23613 = vmatprep.subr.bf16.mxu1 %v23612_v47  ;;  %v30307_v51 = vld [vmem:[#allocation27_spill] sm:$0xff] }
 0x2f4   : > { %21787 = vmatmul.mubr.msk.f32.gmra.mrb[36].mxu1 %vm171_vm1, %v26213_v38  ;;  %v26788_v38 = vld [vmem:[#allocation2 + $0x181] sm:$0xff] }
 0x2f5   : > { %21789 = vmatprep.mubr.msk.f32.mxu1 %vm171_vm1, %v26221_v26  ;;  %v26792_v26 = vld [vmem:[#allocation2 + $0x189] sm:$0xff] }
 0x2f8   : > { %21790 = vmatmul.mubr.msk.f32.gmra.mrb[38].mxu1 %vm171_vm1, %v26227_v45  ;;  %v6127_v45 = vld [vmem:[%s29873_s1 + $0xf8] sm:$0xff] }
 0x2f9   : > { %21792 = vmatprep.mubr.msk.f32.mxu1 %vm171_vm1, %v26235_v16  ;;  %v6128_v16 = vld [vmem:[%s29873_s1 + $0x100] sm:$0xff] }
 0x2fc   : > { %21793 = vmatmul.mubr.msk.f32.gmra.mrb[40].mxu1 %vm171_vm1, %v26241_v43  ;;  %v23616_v43 = vpack.c.bf16 %v6128_v16, %v6127_v45  ;;  %v30311_v45 = vld [vmem:[#allocation29_spill] sm:$0xff]  ;;  %v30312_v16 = vld [vmem:[#allocation15_spill] sm:$0xff] }
 0x2fd   : > { %21795 = vmatprep.mubr.msk.f32.mxu1 %vm171_vm1, %v26247_v36  ;;  %v6514_v36 = vld [vmem:[%s29873_s1 + $0x108] sm:$0xff] }
 0x300   : > { %21796 = vmatmul.mubr.msk.f32.gmra.mrb[42].mxu1 %vm171_vm1, %v26253_v56  ;;  %v6515_v56 = vld [vmem:[%s29873_s1 + $0x110] sm:$0xff] }
 0x301   : > { %21798 = vmatprep.mubr.msk.f32.mxu1 %vm171_vm1, %v26259_v11  ;;  %v30292_v11 = vld [vmem:[#allocation5_spill] sm:$0xff] }
 0x304   : > { %21799 = vmatmul.mubr.msk.f32.gmra.mrb[44].mxu1 %vm171_vm1, %v26265_v17  ;;  %v23620_v17 = vpack.c.bf16 %v6515_v56, %v6514_v36  ;;  %v30314_v36 = vld [vmem:[#allocation30_spill] sm:$0xff]  ;;  %v30315_v56 = vld [vmem:[#allocation17_spill] sm:$0xff] }
 0x305   : > { %21801 = vmatprep.mubr.msk.f32.mxu1 %vm171_vm1, %v26271_v31  ;;  %v30293_v31 = vld [vmem:[#allocation20_spill] sm:$0xff] }
 0x308   : > { %21802 = vmatmul.mubr.msk.f32.gmra.mrb[46].mxu1 %vm171_vm1, %v26277_v40  ;;  %v30294_v40 = vld [vmem:[#allocation6_spill] sm:$0xff] }
 0x309   : > { %21804 = vmatprep.mubr.msk.f32.mxu1 %vm171_vm1, %v26283_v46  ;;  %v30295_v46 = vld [vmem:[#allocation21_spill] sm:$0xff] }
 0x30c   : > { %21805 = vmatmul.mubr.msk.f32.gmra.mrb[48].mxu1 %vm171_vm1, %v26289_v0  ;;  %v30296_v0 = vld [vmem:[#allocation7_spill] sm:$0xff] }
 0x30d   : > { %21807 = vmatprep.mubr.msk.f32.mxu1 %vm171_vm1, %v26295_v53  ;;  %v30297_v53 = vld [vmem:[#allocation22_spill] sm:$0xff] }
 0x310   : > { %21808 = vmatmul.mubr.msk.f32.gmra.mrb[50].mxu1 %vm171_vm1, %v26301_v7  ;;  %v30298_v7 = vld [vmem:[#allocation8_spill] sm:$0xff] }
 0x311   : > { %21810 = vmatprep.mubr.msk.f32.mxu1 %vm171_vm1, %v26307_v9  ;;  %v30299_v9 = vld [vmem:[#allocation23_spill] sm:$0xff] }
 0x314   : > { %21811 = vmatmul.mubr.msk.f32.gmra.mrb[52].mxu1 %vm171_vm1, %v26313_v14  ;;  %v30300_v14 = vld [vmem:[#allocation9_spill] sm:$0xff] }
 0x315   : > { %21813 = vmatprep.mubr.msk.f32.mxu1 %vm171_vm1, %v26319_v33  ;;  %v30301_v33 = vld [vmem:[#allocation24_spill] sm:$0xff] }
 0x318   : > { %21814 = vmatmul.mubr.msk.f32.gmra.mrb[54].mxu1 %vm171_vm1, %v26325_v42 }
 0x319   : > { %21816 = vmatprep.mubr.msk.f32.mxu1 %vm171_vm1, %v26331_v48 }
 0x31c   : > { %21817 = vmatmul.mubr.msk.f32.gmra.mrb[56].mxu1 %vm171_vm1, %v30287_v1 }
 0x31d   : > { %21819 = vmatprep.mubr.msk.f32.mxu1 %vm171_vm1, %v30288_v6 }
 0x320   : > { %21820 = vmatmul.mubr.msk.f32.gmra.mrb[58].mxu1 %vm171_vm1, %v30289_v15 }
 0x321   : > { %21822 = vmatprep.mubr.msk.f32.mxu1 %vm171_vm1, %v30290_v19 }
 0x324   : > { %21823 = vmatmul.mubr.msk.f32.gmra.mrb[60].mxu1 %vm171_vm1, %v30291_v29 }
 0x325   : > { %21825 = vmatprep.mubr.msk.f32.mxu1 %vm171_vm1, %v26788_v38 }
 0x328   : > { %21826 = vmatmul.mubr.msk.f32.gmra.mrb[62].mxu1 %vm171_vm1, %v26792_v26 }
 0x329   : > { %21836 = vmatprep.mubr.msk.f32.mxu1 %vm171_vm1, %v26511_v52  ;;  %v30302_v52 = vld [vmem:[#allocation10_spill] sm:$0xff] }
 0x32c   : > { %21837 = vmatmul.mubr.msk.f32.vlgmr.msra.gmra.mrb[32].mxu1 %vm171_vm1, %v26518_v41  ;;  %v30303_v41 = vld [vmem:[#allocation25_spill] sm:$0xff] }
 0x32d   : > { %23615 = vmatpush3.bf16.msra.mxu1 %v23612_v47  ;;  %21839 = vmatprep.mubr.msk.f32.mxu1 %vm171_vm1, %v30292_v11  ;;  %v30310_v47 = vld [vmem:[#allocation14_spill] sm:$0xff] }
 0x32e   : > { %23617 = vmatprep.subr.bf16.mxu1 %v23616_v43 }
 0x330   : > { %21840 = vmatmul.mubr.msk.f32.gmra.mrb[34].mxu1 %vm171_vm1, %v30293_v31 }
 0x331   : > { %21842 = vmatprep.mubr.msk.f32.mxu1 %vm171_vm1, %v30294_v40  ;;  %23619 = vmatpush3.bf16.msra.mxu1 %v23616_v43  ;;  %v30313_v43 = vld [vmem:[#allocation16_spill] sm:$0xff] }
 0x332   : > { %23621 = vmatprep.subr.bf16.mxu1 %v23620_v17 }
 0x334   : > { %21843 = vmatmul.mubr.msk.f32.gmra.mrb[36].mxu1 %vm171_vm1, %v30295_v46 }
 0x335   : > { %21845 = vmatprep.mubr.msk.f32.mxu1 %vm171_vm1, %v30296_v0 }
 0x338   : > { %21846 = vmatmul.mubr.msk.f32.gmra.mrb[38].mxu1 %vm171_vm1, %v30297_v53 }
 0x339   : > { %21848 = vmatprep.mubr.msk.f32.mxu1 %vm171_vm1, %v30298_v7 }
 0x33c   : > { %21849 = vmatmul.mubr.msk.f32.gmra.mrb[40].mxu1 %vm171_vm1, %v30299_v9 }
 0x33d   : > { %21851 = vmatprep.mubr.msk.f32.mxu1 %vm171_vm1, %v30300_v14 }
 0x340   : > { %21852 = vmatmul.mubr.msk.f32.gmra.mrb[42].mxu1 %vm171_vm1, %v30301_v33 }
 0x341   : > { %21854 = vmatprep.mubr.msk.f32.mxu1 %vm171_vm1, %v30302_v52 }
 0x344   : > { %21855 = vmatmul.mubr.msk.f32.gmra.mrb[44].mxu1 %vm171_vm1, %v30303_v41 }
 0x345   : > { %21857 = vmatprep.mubr.msk.f32.mxu1 %vm171_vm1, %v30304_v37 }
 0x348   : > { %21858 = vmatmul.mubr.msk.f32.gmra.mrb[46].mxu1 %vm171_vm1, %v30305_v3 }
 0x349   : > { %21860 = vmatprep.mubr.msk.f32.mxu1 %vm171_vm1, %v30306_v54 }
 0x34c   : > { %21861 = vmatmul.mubr.msk.f32.gmra.mrb[48].mxu1 %vm171_vm1, %v30307_v51 }
 0x34d   : > { %21863 = vmatprep.mubr.msk.f32.mxu1 %vm171_vm1, %v30308_v24  ;;  %v30316_v24 = vld [vmem:[#allocation32_spill] sm:$0xff] }
 0x350   : > { %21864 = vmatmul.mubr.msk.f32.gmra.mrb[50].mxu1 %vm171_vm1, %v30309_v61  ;;  %v30317_v61 = vld [vmem:[#allocation33_spill] sm:$0xff] }
 0x351   : > { %21866 = vmatprep.mubr.msk.f32.mxu1 %vm171_vm1, %v30310_v47  ;;  %v30318_v47 = vld [vmem:[#allocation34_spill] sm:$0xff] }
 0x354   : > { %21867 = vmatmul.mubr.msk.f32.gmra.mrb[52].mxu1 %vm171_vm1, %v30311_v45  ;;  %v30319_v45 = vld [vmem:[#allocation35_spill] sm:$0xff] }
 0x355   : > { %21869 = vmatprep.mubr.msk.f32.mxu1 %vm171_vm1, %v30312_v16  ;;  %v26868_v16 = vld [vmem:[#allocation2 + $0x182] sm:$0xff] }
 0x356   : > { %30320 = vst [vmem:[#allocation31_spill] sm:$0xff] %v26868_v16 }
 0x358   : > { %21870 = vmatmul.mubr.msk.f32.gmra.mrb[54].mxu1 %vm171_vm1, %v30313_v43 }
 0x359   : > { %21872 = vmatprep.mubr.msk.f32.mxu1 %vm171_vm1, %v30314_v36  ;;  %v26872_v36 = vld [vmem:[#allocation2 + $0x18a] sm:$0xff] }
 0x35a   : > { %30321 = vst [vmem:[#allocation3_spill] sm:$0xff] %v26872_v36 }
 0x35c   : > { %21873 = vmatmul.mubr.msk.f32.gmra.mrb[56].mxu1 %vm171_vm1, %v30315_v56 }
 0x35d   : > { %21875 = vmatprep.mubr.msk.f32.mxu1 %vm171_vm1, %v30316_v24  ;;  %v6516_v24 = vld [vmem:[%s29873_s1 + $0x118] sm:$0xff] }
 0x360   : > { %21876 = vmatmul.mubr.msk.f32.gmra.mrb[58].mxu1 %vm171_vm1, %v30317_v61  ;;  %v6517_v61 = vld [vmem:[%s29873_s1 + $0x120] sm:$0xff] }
 0x361   : > { %21878 = vmatprep.mubr.msk.f32.mxu1 %vm171_vm1, %v30318_v47  ;;  %v6904_v47 = vld [vmem:[%s29873_s1 + $0x130] sm:$0xff] }
 0x364   : > { %21879 = vmatmul.mubr.msk.f32.gmra.mrb[60].mxu1 %vm171_vm1, %v30319_v45  ;;  %v23624_v45 = vpack.c.bf16 %v6517_v61, %v6516_v24  ;;  %v6502_v24 = vld [vmem:[#allocation2 + $0x121] sm:$0xff]  ;;  %v8108_v61 = vld [vmem:[%s29873_s1 + $0x190] sm:$0xff] }
 0x365   : > { %21881 = vmatprep.mubr.msk.f32.mxu1 %vm171_vm1, %v26868_v16  ;;  %v6903_v16 = vld [vmem:[%s29873_s1 + $0x128] sm:$0xff] }
 0x368   : > { %21882 = vmatmul.mubr.msk.f32.gmra.mrb[62].mxu1 %vm171_vm1, %v26872_v36  ;;  %v23628_v36 = vpack.c.bf16 %v6904_v47, %v6903_v16 }
 0x369   : > { %21892 = vmatprep.mubr.msk.f32.mxu1 %vm171_vm1, %v26384_v4  ;;  %v6123_v4 = vld [vmem:[#allocation2 + $0x198] sm:$0xff] }
 0x36c   : > { %21893 = vmatmul.mubr.msk.f32.vlgmr.msra.gmra.mrb[32].mxu1 %vm171_vm1, %v26389_v23  ;;  %v6124_v23 = vld [vmem:[#allocation2 + $0x1a0] sm:$0xff] }
 0x36d   : > { %23623 = vmatpush3.bf16.msra.mxu1 %v23620_v17  ;;  %21895 = vmatprep.mubr.msk.f32.mxu1 %vm171_vm1, %v26393_v5  ;;  %v6482_v5 = vld [vmem:[#allocation2 + $0x31] sm:$0xff] }
 0x36e   : > { %23625 = vmatprep.subr.bf16.mxu1 %v23624_v45  ;;  %v6501_v17 = vld [vmem:[#allocation2 + $0x111] sm:$0xff] }
 0x370   : > { %21896 = vmatmul.mubr.msk.f32.gmra.mrb[34].mxu1 %vm171_vm1, %v26397_v10  ;;  %v6905_v10 = vld [vmem:[%s29873_s1 + $0x138] sm:$0xff] }
 0x371   : > { %21898 = vmatprep.mubr.msk.f32.mxu1 %vm171_vm1, %v26401_v12  ;;  %23627 = vmatpush3.bf16.msra.mxu1 %v23624_v45  ;;  %v6906_v12 = vld [vmem:[%s29873_s1 + $0x140] sm:$0xff] }
 0x372   : > { %23629 = vmatprep.subr.bf16.mxu1 %v23628_v36  ;;  %v27097_v45 = vld [vmem:[%s29874_s2 + $0x1] ss:$0 sm:$0xff] }
 0x374   : > { %21899 = vmatmul.mubr.msk.f32.gmra.mrb[36].mxu1 %vm171_vm1, %v26405_v13  ;;  %v7429_v13 = vld [vmem:[%s29873_s1 + $0x168] sm:$0xff] }
 0x375   : > { %21901 = vmatprep.mubr.msk.f32.mxu1 %vm171_vm1, %v26409_v18  ;;  %v7430_v18 = vld [vmem:[%s29873_s1 + $0x170] sm:$0xff] }
 0x378   : > { %21902 = vmatmul.mubr.msk.f32.gmra.mrb[38].mxu1 %vm171_vm1, %v26413_v20  ;;  %v7431_v20 = vld [vmem:[%s29873_s1 + $0x178] sm:$0xff] }
 0x379   : > { %21904 = vmatprep.mubr.msk.f32.mxu1 %vm171_vm1, %v26417_v21  ;;  %v23636_v21 = vpack.c.bf16 %v7430_v18, %v7429_v13 }
 0x37b   : > { %23637 = vmatprep.subr.bf16.mxu0 %v23636_v21 }
 0x37c   : > { %21905 = vmatmul.mubr.msk.f32.gmra.mrb[40].mxu1 %vm171_vm1, %v26421_v22  ;;  %v7432_v22 = vld [vmem:[%s29873_s1 + $0x180] sm:$0xff]  ;;  %23639 = vmatpush3.bf16.msra.mxu0 %v23636_v21 }
 0x37d   : > { %21907 = vmatprep.mubr.msk.f32.mxu1 %vm171_vm1, %v26425_v25  ;;  %v23632_v25 = vpack.c.bf16 %v6906_v12, %v6905_v10 }
 0x380   : > { %21908 = vmatmul.mubr.msk.f32.gmra.mrb[42].mxu1 %vm171_vm1, %v26429_v27  ;;  %v23640_v27 = vpack.c.bf16 %v7432_v22, %v7431_v20 }
 0x381   : > { %21910 = vmatprep.mubr.msk.f32.mxu1 %vm171_vm1, %v26433_v28  ;;  %v6483_v28 = vld [vmem:[#allocation2 + $0x39] sm:$0xff] }
 0x382   : > { %23641 = vmatprep.subr.bf16.mxu0 %v23640_v27 }
 0x383   : > { %23643 = vmatpush3.bf16.msra.mxu0 %v23640_v27 }
 0x384   : > { %21911 = vmatmul.mubr.msk.f32.gmra.mrb[44].mxu1 %vm171_vm1, %v26437_v39  ;;  %v6484_v39 = vld [vmem:[#allocation2 + $0x49] sm:$0xff] }
 0x385   : > { %21913 = vmatprep.mubr.msk.f32.mxu1 %vm171_vm1, %v26441_v8  ;;  %v6485_v8 = vld [vmem:[#allocation2 + $0x51] sm:$0xff] }
 0x388   : > { %21914 = vmatmul.mubr.msk.f32.gmra.mrb[46].mxu1 %vm171_vm1, %v26445_v44  ;;  %v6486_v44 = vld [vmem:[#allocation2 + $0x61] sm:$0xff] }
 0x389   : > { %21916 = vmatprep.mubr.msk.f32.mxu1 %vm171_vm1, %v26449_v58  ;;  %v6487_v58 = vld [vmem:[#allocation2 + $0x69] sm:$0xff] }
 0x38c   : > { %21917 = vmatmul.mubr.msk.f32.gmra.mrb[48].mxu1 %vm171_vm1, %v26453_v63  ;;  %v6488_v63 = vld [vmem:[#allocation2 + $0x79] sm:$0xff] }
 0x38d   : > { %21919 = vmatprep.mubr.msk.f32.mxu1 %vm171_vm1, %v26457_v55  ;;  %v6489_v55 = vld [vmem:[#allocation2 + $0x81] sm:$0xff] }
 0x390   : > { %21920 = vmatmul.mubr.msk.f32.gmra.mrb[50].mxu1 %vm171_vm1, %v26461_v60  ;;  %v6490_v60 = vld [vmem:[#allocation2 + $0x91] sm:$0xff] }
 0x391   : > { %21922 = vmatprep.mubr.msk.f32.mxu1 %vm171_vm1, %v26465_v32  ;;  %v6491_v32 = vld [vmem:[#allocation2 + $0x99] sm:$0xff] }
 0x394   : > { %21923 = vmatmul.mubr.msk.f32.gmra.mrb[52].mxu1 %vm171_vm1, %v26469_v50  ;;  %v6492_v50 = vld [vmem:[#allocation2 + $0xa9] sm:$0xff] }
 0x395   : > { %21925 = vmatprep.mubr.msk.f32.mxu1 %vm171_vm1, %v26473_v2  ;;  %v6493_v2 = vld [vmem:[#allocation2 + $0xb1] sm:$0xff] }
 0x398   : > { %21926 = vmatmul.mubr.msk.f32.gmra.mrb[54].mxu1 %vm171_vm1, %v26477_v35  ;;  %v6494_v35 = vld [vmem:[#allocation2 + $0xc1] sm:$0xff] }
 0x399   : > { %21928 = vmatprep.mubr.msk.f32.mxu1 %vm171_vm1, %v26481_v49  ;;  %v6495_v49 = vld [vmem:[#allocation2 + $0xc9] sm:$0xff] }
 0x39c   : > { %21929 = vmatmul.mubr.msk.f32.gmra.mrb[56].mxu1 %vm171_vm1, %v26485_v57  ;;  %v6496_v57 = vld [vmem:[#allocation2 + $0xd9] sm:$0xff] }
 0x39d   : > { %21931 = vmatprep.mubr.msk.f32.mxu1 %vm171_vm1, %v26489_v30  ;;  %v6497_v30 = vld [vmem:[#allocation2 + $0xe1] sm:$0xff] }
 0x3a0   : > { %21932 = vmatmul.mubr.msk.f32.gmra.mrb[58].mxu1 %vm171_vm1, %v26493_v34  ;;  %v6498_v34 = vld [vmem:[#allocation2 + $0xf1] sm:$0xff] }
 0x3a1   : > { %21934 = vmatprep.mubr.msk.f32.mxu1 %vm171_vm1, %v26708_v59  ;;  %v6499_v59 = vld [vmem:[#allocation2 + $0xf9] sm:$0xff] }
 0x3a4   : > { %21935 = vmatmul.mubr.msk.f32.gmra.mrb[60].mxu1 %vm171_vm1, %v26712_v62  ;;  %v6500_v62 = vld [vmem:[#allocation2 + $0x109] sm:$0xff] }
 0x3a5   : > { %21937 = vmatprep.mubr.msk.f32.mxu1 %vm171_vm1, %v6123_v4 }
 0x3a8   : > { %21938 = vmatmul.mubr.msk.f32.gmra.mrb[62].mxu1 %vm171_vm1, %v6124_v23 }
 0x3a9   : > { %21948 = vmatprep.mubr.msk.f32.mxu1 %vm171_vm1, %v6482_v5 }
 0x3ac   : > { %21949 = vmatmul.mubr.msk.f32.vlgmr.msra.gmra.mrb[32].mxu1 %vm171_vm1, %v6483_v28 }
 0x3ad   : > { %23631 = vmatpush3.bf16.msra.mxu1 %v23628_v36  ;;  %21951 = vmatprep.mubr.msk.f32.mxu1 %vm171_vm1, %v6484_v39 }
 0x3ae   : > { %23633 = vmatprep.subr.bf16.mxu1 %v23632_v25 }
 0x3b0   : > { %21952 = vmatmul.mubr.msk.f32.gmra.mrb[34].mxu1 %vm171_vm1, %v6485_v8 }
 0x3b1   : > { %21954 = vmatprep.mubr.msk.f32.mxu1 %vm171_vm1, %v6486_v44  ;;  %23635 = vmatpush3.bf16.msra.mxu1 %v23632_v25 }
 0x3b4   : > { %21955 = vmatmul.mubr.msk.f32.gmra.mrb[36].mxu1 %vm171_vm1, %v6487_v58 }
 0x3b5   : > { %21957 = vmatprep.mubr.msk.f32.mxu1 %vm171_vm1, %v6488_v63 }
 0x3b8   : > { %21958 = vmatmul.mubr.msk.f32.gmra.mrb[38].mxu1 %vm171_vm1, %v6489_v55 }
 0x3b9   : > { %21960 = vmatprep.mubr.msk.f32.mxu1 %vm171_vm1, %v6490_v60 }
 0x3bc   : > { %21961 = vmatmul.mubr.msk.f32.gmra.mrb[40].mxu1 %vm171_vm1, %v6491_v32 }
 0x3bd   : > { %21963 = vmatprep.mubr.msk.f32.mxu1 %vm171_vm1, %v6492_v50 }
 0x3c0   : > { %21964 = vmatmul.mubr.msk.f32.gmra.mrb[42].mxu1 %vm171_vm1, %v6493_v2 }
 0x3c1   : > { %21966 = vmatprep.mubr.msk.f32.mxu1 %vm171_vm1, %v6494_v35 }
 0x3c4   : > { %21967 = vmatmul.mubr.msk.f32.gmra.mrb[44].mxu1 %vm171_vm1, %v6495_v49 }
 0x3c5   : > { %21969 = vmatprep.mubr.msk.f32.mxu1 %vm171_vm1, %v6496_v57 }
 0x3c8   : > { %21970 = vmatmul.mubr.msk.f32.gmra.mrb[46].mxu1 %vm171_vm1, %v6497_v30 }
 0x3c9   : > { %21972 = vmatprep.mubr.msk.f32.mxu1 %vm171_vm1, %v6498_v34 }
 0x3cc   : > { %21973 = vmatmul.mubr.msk.f32.gmra.mrb[48].mxu1 %vm171_vm1, %v6499_v59 }
 0x3cd   : > { %21975 = vmatprep.mubr.msk.f32.mxu1 %vm171_vm1, %v6500_v62 }
 0x3d0   : > { %21976 = vmatmul.mubr.msk.f32.gmra.mrb[50].mxu1 %vm171_vm1, %v6501_v17 }
 0x3d1   : > { %21978 = vmatprep.mubr.msk.f32.mxu1 %vm171_vm1, %v6502_v24 }
 0x3d4   : > { %21979 = vmatmul.mubr.msk.f32.gmra.mrb[52].mxu1 %vm171_vm1, %v26325_v42  ;;  %v6512_v42 = vld [vmem:[#allocation2 + $0x199] sm:$0xff] }
 0x3d5   : > { %21981 = vmatprep.mubr.msk.f32.mxu1 %vm171_vm1, %v26331_v48  ;;  %v6513_v48 = vld [vmem:[#allocation2 + $0x1a1] sm:$0xff] }
 0x3d8   : > { %21982 = vmatmul.mubr.msk.f32.gmra.mrb[54].mxu1 %vm171_vm1, %v30287_v1  ;;  %v30322_v1 = vld [vmem:[#allocation13_spill] sm:$0xff] }
 0x3d9   : > { %21984 = vmatprep.mubr.msk.f32.mxu1 %vm171_vm1, %v30288_v6  ;;  %v30323_v6 = vld [vmem:[#allocation28_spill] sm:$0xff] }
 0x3dc   : > { %21985 = vmatmul.mubr.msk.f32.gmra.mrb[56].mxu1 %vm171_vm1, %v30289_v15  ;;  %v30324_v15 = vld [vmem:[#allocation14_spill] sm:$0xff] }
 0x3dd   : > { %21987 = vmatprep.mubr.msk.f32.mxu1 %vm171_vm1, %v30290_v19  ;;  %v30325_v19 = vld [vmem:[#allocation29_spill] sm:$0xff] }
 0x3e0   : > { %21988 = vmatmul.mubr.msk.f32.gmra.mrb[58].mxu1 %vm171_vm1, %v30291_v29  ;;  %v30326_v29 = vld [vmem:[#allocation15_spill] sm:$0xff] }
 0x3e1   : > { %21990 = vmatprep.mubr.msk.f32.mxu1 %vm171_vm1, %v26788_v38  ;;  %v30327_v38 = vld [vmem:[#allocation30_spill] sm:$0xff] }
 0x3e4   : > { %21991 = vmatmul.mubr.msk.f32.gmra.mrb[60].mxu1 %vm171_vm1, %v26792_v26  ;;  %v30328_v26 = vld [vmem:[#allocation32_spill] sm:$0xff] }
 0x3e5   : > { %21993 = vmatprep.mubr.msk.f32.mxu1 %vm171_vm1, %v6512_v42 }
 0x3e8   : > { %21994 = vmatmul.mubr.msk.f32.gmra.mrb[62].mxu1 %vm171_vm1, %v6513_v48 }
 0x3e9   : > { %22004 = vmatprep.mubr.msk.f32.mxu1 %vm171_vm1, %v30292_v11  ;;  %v30329_v11 = vld [vmem:[#allocation33_spill] sm:$0xff] }
 0x3ec   : > { %22005 = vmatmul.mubr.msk.f32.vlgmr.msra.gmra.mrb[32].mxu1 %vm171_vm1, %v30293_v31  ;;  %v30330_v31 = vld [vmem:[#allocation34_spill] sm:$0xff] }
 0x3ed   : > { %22007 = vmatprep.mubr.msk.f32.mxu1 %vm171_vm1, %v30294_v40  ;;  %v30331_v40 = vld [vmem:[#allocation35_spill] sm:$0xff] }
 0x3f0   : > { %22008 = vmatmul.mubr.msk.f32.gmra.mrb[34].mxu1 %vm171_vm1, %v30295_v46  ;;  %v30332_v46 = vld [vmem:[#allocation31_spill] sm:$0xff] }
 0x3f1   : > { %22010 = vmatprep.mubr.msk.f32.mxu1 %vm171_vm1, %v30296_v0  ;;  %v6901_v0 = vld [vmem:[#allocation2 + $0x19a] sm:$0xff] }
 0x3f4   : > { %22011 = vmatmul.mubr.msk.f32.gmra.mrb[36].mxu1 %vm171_vm1, %v30297_v53  ;;  %v30333_v53 = vld [vmem:[#allocation3_spill] sm:$0xff] }
 0x3f5   : > { %22013 = vmatprep.mubr.msk.f32.mxu1 %vm171_vm1, %v30298_v7  ;;  %v6902_v7 = vld [vmem:[#allocation2 + $0x1a2] sm:$0xff] }
 0x3f8   : > { %22014 = vmatmul.mubr.msk.f32.gmra.mrb[38].mxu1 %vm171_vm1, %v30299_v9  ;;  %v7397_v9 = vld [vmem:[#allocation2 + $0x1] sm:$0xff] }
 0x3f9   : > { %22016 = vmatprep.mubr.msk.f32.mxu1 %vm171_vm1, %v30300_v14  ;;  %22060 = vmatprep.mubr.msk.f32.mxu0 %vm171_vm1, %v7397_v9  ;;  %v7398_v14 = vld [vmem:[#allocation2 + $0x9] sm:$0xff] }
 0x3fa   : > { %22061 = vmatmul.mubr.msk.f32.vlgmr.msra.gmra.mrb[32].mxu0 %vm171_vm1, %v7398_v14 }
 0x3fc   : > { %22017 = vmatmul.mubr.msk.f32.gmra.mrb[40].mxu1 %vm171_vm1, %v30301_v33  ;;  %v7393_v33 = vld [vmem:[%s29873_s1 + $0x148] sm:$0xff] }
 0x3fd   : > { %22019 = vmatprep.mubr.msk.f32.mxu1 %vm171_vm1, %v30302_v52  ;;  %v7394_v52 = vld [vmem:[%s29873_s1 + $0x150] sm:$0xff] }
 0x400   : > { %22020 = vmatmul.mubr.msk.f32.gmra.mrb[42].mxu1 %vm171_vm1, %v30303_v41  ;;  %v23644_v41 = vpack.c.bf16 %v7394_v52, %v7393_v33 }
 0x401   : > { %22022 = vmatprep.mubr.msk.f32.mxu1 %vm171_vm1, %v30304_v37  ;;  %v7395_v37 = vld [vmem:[%s29873_s1 + $0x158] sm:$0xff] }
 0x402   : > { %23645 = vmatprep.subr.bf16.mxu0 %v23644_v41 }
 0x403   : > { %23647 = vmatpush3.bf16.msra.mxu0 %v23644_v41 }
 0x404   : > { %22023 = vmatmul.mubr.msk.f32.gmra.mrb[44].mxu1 %vm171_vm1, %v30305_v3  ;;  %v7396_v3 = vld [vmem:[%s29873_s1 + $0x160] sm:$0xff] }
 0x405   : > { %22025 = vmatprep.mubr.msk.f32.mxu1 %vm171_vm1, %v30306_v54  ;;  %v23648_v54 = vpack.c.bf16 %v7396_v3, %v7395_v37 }
 0x407   : > { %23649 = vmatprep.subr.bf16.mxu0 %v23648_v54 }
 0x408   : > { %22026 = vmatmul.mubr.msk.f32.gmra.mrb[46].mxu1 %vm171_vm1, %v30307_v51  ;;  %23651 = vmatpush3.bf16.msra.mxu0 %v23648_v54  ;;  %v8107_v51 = vld [vmem:[%s29873_s1 + $0x188] sm:$0xff] }
 0x409   : > { %22028 = vmatprep.mubr.msk.f32.mxu1 %vm171_vm1, %v30322_v1  ;;  %v27091_v47 = vpack.c.bf16 %v8108_v61, %v8107_v51 }
 0x40b   : > { %23653 = vmatprep.subr.bf16.mxu0 %v27091_v47 }
 0x40c   : > { %22029 = vmatmul.mubr.msk.f32.gmra.mrb[48].mxu1 %vm171_vm1, %v30323_v6 }
 0x40d   : > { %22031 = vmatprep.mubr.msk.f32.mxu1 %vm171_vm1, %v30324_v15 }
 0x410   : > { %22032 = vmatmul.mubr.msk.f32.gmra.mrb[50].mxu1 %vm171_vm1, %v30325_v19 }
 0x411   : > { %22034 = vmatprep.mubr.msk.f32.mxu1 %vm171_vm1, %v30326_v29 }
 0x414   : > { %22035 = vmatmul.mubr.msk.f32.gmra.mrb[52].mxu1 %vm171_vm1, %v30313_v43 }
 0x415   : > { %22037 = vmatprep.mubr.msk.f32.mxu1 %vm171_vm1, %v30327_v38 }
 0x418   : > { %22038 = vmatmul.mubr.msk.f32.gmra.mrb[54].mxu1 %vm171_vm1, %v30315_v56 }
 0x419   : > { %22040 = vmatprep.mubr.msk.f32.mxu1 %vm171_vm1, %v30328_v26 }
 0x41c   : > { %22041 = vmatmul.mubr.msk.f32.gmra.mrb[56].mxu1 %vm171_vm1, %v30329_v11 }
 0x41d   : > { %22043 = vmatprep.mubr.msk.f32.mxu1 %vm171_vm1, %v30330_v31 }
 0x420   : > { %22044 = vmatmul.mubr.msk.f32.gmra.mrb[58].mxu1 %vm171_vm1, %v30331_v40 }
 0x421   : > { %22046 = vmatprep.mubr.msk.f32.mxu1 %vm171_vm1, %v30332_v46 }
 0x424   : > { %22047 = vmatmul.mubr.msk.f32.gmra.mrb[60].mxu1 %vm171_vm1, %v30333_v53 }
 0x425   : > { %22049 = vmatprep.mubr.msk.f32.mxu1 %vm171_vm1, %v6901_v0 }
 0x428   : > { %22050 = vmatmul.mubr.msk.f32.gmra.mrb[62].mxu1 %vm171_vm1, %v6902_v7 }
 0x4bf   : > { %v22006_v16 = vpop.f32.mrb[32].mxu1 }
 0x4c0   : > { %v7266_v43 = vadd.f32 %v22006_v16, %v27097_v45  ;;  %v7069_v36 = vpop.f32.mrb[33].mxu1 }
 0x4c1   : > { %v7265_v56 = vadd.f32 %v27097_v45, %v7069_v36 }
 0x4c2   : > { %v7298_v4 = vmax.f32 %v7266_v43, 0.0 }
 0x4c3   : > { %v7297_v23 = vmax.f32 %v7265_v56, 0.0  ;;  %v22009_v5 = vpop.f32.mrb[34].mxu1 }
 0x4c4   : > { %7330 = vst.msk [vmem:[#allocation2 + $0x21] sm:$0xff] %vm171_vm1, %v7298_v4  ;;  %v7268_v10 = vadd.f32 %v22009_v5, %v27097_v45  ;;  %v7079_v12 = vpop.f32.mrb[35].mxu1 }
 0x4c5   : > { %7329 = vst.msk [vmem:[#allocation2 + $0x19] sm:$0xff] %vm171_vm1, %v7297_v23  ;;  %v7267_v13 = vadd.f32 %v27097_v45, %v7079_v12 }
 0x4c6   : > { %v7300_v18 = vmax.f32 %v7268_v10, 0.0 }
 0x4c7   : > { %v7299_v20 = vmax.f32 %v7267_v13, 0.0  ;;  %v22012_v21 = vpop.f32.mrb[36].mxu1 }
 0x4c8   : > { %7332 = vst.msk [vmem:[#allocation2 + $0x39] sm:$0xff] %vm171_vm1, %v7300_v18  ;;  %v7270_v22 = vadd.f32 %v22012_v21, %v27097_v45  ;;  %v7089_v25 = vpop.f32.mrb[37].mxu1 }
 0x4c9   : > { %7331 = vst.msk [vmem:[#allocation2 + $0x31] sm:$0xff] %vm171_vm1, %v7299_v20  ;;  %v7269_v27 = vadd.f32 %v27097_v45, %v7089_v25 }
 0x4ca   : > { %v7302_v28 = vmax.f32 %v7270_v22, 0.0 }
 0x4cb   : > { %v7301_v39 = vmax.f32 %v7269_v27, 0.0  ;;  %v22015_v8 = vpop.f32.mrb[38].mxu1  ;;  %v27117_v60 = vld [vmem:[#allocation2 + $0x21] sm:$0xff] }
 0x4cc   : > { %7334 = vst.msk [vmem:[#allocation2 + $0x51] sm:$0xff] %vm171_vm1, %v7302_v28  ;;  %v7272_v44 = vadd.f32 %v22015_v8, %v27097_v45  ;;  %v7099_v58 = vpop.f32.mrb[39].mxu1  ;;  %v27111_v63 = vld [vmem:[#allocation2 + $0x19] sm:$0xff] }
 0x4cd   : > { %7333 = vst.msk [vmem:[#allocation2 + $0x49] sm:$0xff] %vm171_vm1, %v7301_v39  ;;  %v7271_v55 = vadd.f32 %v27097_v45, %v7099_v58  ;;  %22063 = vmatprep.mubr.msk.f32.mxu0 %vm171_vm1, %v27111_v63 }
 0x4ce   : > { %v7304_v32 = vmax.f32 %v7272_v44, 0.0  ;;  %22064 = vmatmul.mubr.msk.f32.gmra.mrb[34].mxu0 %vm171_vm1, %v27117_v60 }
 0x4cf   : > { %v7303_v50 = vmax.f32 %v7271_v55, 0.0  ;;  %v22018_v2 = vpop.f32.mrb[40].mxu1  ;;  %v27129_v34 = vld [vmem:[#allocation2 + $0x39] sm:$0xff] }
 0x4d0   : > { %7336 = vst.msk [vmem:[#allocation2 + $0x69] sm:$0xff] %vm171_vm1, %v7304_v32  ;;  %v7274_v35 = vadd.f32 %v22018_v2, %v27097_v45  ;;  %v7109_v49 = vpop.f32.mrb[41].mxu1  ;;  %v27123_v57 = vld [vmem:[#allocation2 + $0x31] sm:$0xff] }
 0x4d1   : > { %7335 = vst.msk [vmem:[#allocation2 + $0x61] sm:$0xff] %vm171_vm1, %v7303_v50  ;;  %v7273_v30 = vadd.f32 %v27097_v45, %v7109_v49  ;;  %22066 = vmatprep.mubr.msk.f32.mxu0 %vm171_vm1, %v27123_v57 }
 0x4d2   : > { %v7306_v59 = vmax.f32 %v7274_v35, 0.0  ;;  %22067 = vmatmul.mubr.msk.f32.gmra.mrb[36].mxu0 %vm171_vm1, %v27129_v34 }
 0x4d3   : > { %v7305_v62 = vmax.f32 %v7273_v30, 0.0  ;;  %v22021_v17 = vpop.f32.mrb[42].mxu1  ;;  %v27141_v6 = vld [vmem:[#allocation2 + $0x51] sm:$0xff] }
 0x4d4   : > { %7338 = vst.msk [vmem:[#allocation2 + $0x81] sm:$0xff] %vm171_vm1, %v7306_v59  ;;  %v7276_v24 = vadd.f32 %v22021_v17, %v27097_v45  ;;  %v7119_v42 = vpop.f32.mrb[43].mxu1  ;;  %v27135_v48 = vld [vmem:[#allocation2 + $0x49] sm:$0xff] }
 0x4d5   : > { %7337 = vst.msk [vmem:[#allocation2 + $0x79] sm:$0xff] %vm171_vm1, %v7305_v62  ;;  %v7275_v1 = vadd.f32 %v27097_v45, %v7119_v42  ;;  %22069 = vmatprep.mubr.msk.f32.mxu0 %vm171_vm1, %v27135_v48 }
 0x4d6   : > { %v7308_v15 = vmax.f32 %v7276_v24, 0.0  ;;  %22070 = vmatmul.mubr.msk.f32.gmra.mrb[38].mxu0 %vm171_vm1, %v27141_v6 }
 0x4d7   : > { %v7307_v19 = vmax.f32 %v7275_v1, 0.0  ;;  %v22024_v29 = vpop.f32.mrb[44].mxu1  ;;  %v27153_v40 = vld [vmem:[#allocation2 + $0x69] sm:$0xff] }
 0x4d8   : > { %7340 = vst.msk [vmem:[#allocation2 + $0x99] sm:$0xff] %vm171_vm1, %v7308_v15  ;;  %v7278_v38 = vadd.f32 %v22024_v29, %v27097_v45  ;;  %v7129_v26 = vpop.f32.mrb[45].mxu1  ;;  %v27147_v11 = vld [vmem:[#allocation2 + $0x61] sm:$0xff] }
 0x4d9   : > { %7339 = vst.msk [vmem:[#allocation2 + $0x91] sm:$0xff] %vm171_vm1, %v7307_v19  ;;  %v7277_v31 = vadd.f32 %v27097_v45, %v7129_v26  ;;  %22072 = vmatprep.mubr.msk.f32.mxu0 %vm171_vm1, %v27147_v11 }
 0x4da   : > { %v7310_v46 = vmax.f32 %v7278_v38, 0.0  ;;  %22073 = vmatmul.mubr.msk.f32.gmra.mrb[40].mxu0 %vm171_vm1, %v27153_v40 }
 0x4db   : > { %v7309_v0 = vmax.f32 %v7277_v31, 0.0  ;;  %v22027_v53 = vpop.f32.mrb[46].mxu1  ;;  %v27165_v52 = vld [vmem:[#allocation2 + $0x81] sm:$0xff] }
 0x4dc   : > { %7342 = vst.msk [vmem:[#allocation2 + $0xb1] sm:$0xff] %vm171_vm1, %v7310_v46  ;;  %v7280_v7 = vadd.f32 %v22027_v53, %v27097_v45  ;;  %v7139_v9 = vpop.f32.mrb[47].mxu1  ;;  %v27159_v14 = vld [vmem:[#allocation2 + $0x79] sm:$0xff] }
 0x4dd   : > { %7341 = vst.msk [vmem:[#allocation2 + $0xa9] sm:$0xff] %vm171_vm1, %v7309_v0  ;;  %v7279_v33 = vadd.f32 %v27097_v45, %v7139_v9  ;;  %22075 = vmatprep.mubr.msk.f32.mxu0 %vm171_vm1, %v27159_v14 }
 0x4de   : > { %v7312_v41 = vmax.f32 %v7280_v7, 0.0  ;;  %22076 = vmatmul.mubr.msk.f32.gmra.mrb[42].mxu0 %vm171_vm1, %v27165_v52 }
 0x4df   : > { %v7311_v37 = vmax.f32 %v7279_v33, 0.0  ;;  %v22030_v3 = vpop.f32.mrb[48].mxu1  ;;  %v27177_v43 = vld [vmem:[#allocation2 + $0x99] sm:$0xff] }
 0x4e0   : > { %7344 = vst.msk [vmem:[#allocation2 + $0xc9] sm:$0xff] %vm171_vm1, %v7312_v41  ;;  %v7282_v54 = vadd.f32 %v22030_v3, %v27097_v45  ;;  %v7149_v51 = vpop.f32.mrb[49].mxu1  ;;  %v27171_v61 = vld [vmem:[#allocation2 + $0x91] sm:$0xff] }
 0x4e1   : > { %7343 = vst.msk [vmem:[#allocation2 + $0xc1] sm:$0xff] %vm171_vm1, %v7311_v37  ;;  %v7281_v16 = vadd.f32 %v27097_v45, %v7149_v51  ;;  %22078 = vmatprep.mubr.msk.f32.mxu0 %vm171_vm1, %v27171_v61 }
 0x4e2   : > { %v7314_v36 = vmax.f32 %v7282_v54, 0.0  ;;  %22079 = vmatmul.mubr.msk.f32.gmra.mrb[44].mxu0 %vm171_vm1, %v27177_v43 }
 0x4e3   : > { %v7313_v56 = vmax.f32 %v7281_v16, 0.0  ;;  %v22033_v4 = vpop.f32.mrb[50].mxu1  ;;  %v27189_v13 = vld [vmem:[#allocation2 + $0xb1] sm:$0xff] }
 0x4e4   : > { %7346 = vst.msk [vmem:[#allocation2 + $0xe1] sm:$0xff] %vm171_vm1, %v7314_v36  ;;  %v7284_v23 = vadd.f32 %v22033_v4, %v27097_v45  ;;  %v7159_v5 = vpop.f32.mrb[51].mxu1  ;;  %v27183_v10 = vld [vmem:[#allocation2 + $0xa9] sm:$0xff] }
 0x4e5   : > { %7345 = vst.msk [vmem:[#allocation2 + $0xd9] sm:$0xff] %vm171_vm1, %v7313_v56  ;;  %v7283_v12 = vadd.f32 %v27097_v45, %v7159_v5  ;;  %22081 = vmatprep.mubr.msk.f32.mxu0 %vm171_vm1, %v27183_v10 }
 0x4e6   : > { %v7316_v18 = vmax.f32 %v7284_v23, 0.0  ;;  %22082 = vmatmul.mubr.msk.f32.gmra.mrb[46].mxu0 %vm171_vm1, %v27189_v13 }
 0x4e7   : > { %v7315_v20 = vmax.f32 %v7283_v12, 0.0  ;;  %v22036_v21 = vpop.f32.mrb[52].mxu1  ;;  %v27201_v39 = vld [vmem:[#allocation2 + $0xc9] sm:$0xff] }
 0x4e8   : > { %7348 = vst.msk [vmem:[#allocation2 + $0xf9] sm:$0xff] %vm171_vm1, %v7316_v18  ;;  %v7286_v22 = vadd.f32 %v22036_v21, %v27097_v45  ;;  %v7169_v25 = vpop.f32.mrb[53].mxu1  ;;  %v27195_v27 = vld [vmem:[#allocation2 + $0xc1] sm:$0xff] }
 0x4e9   : > { %7347 = vst.msk [vmem:[#allocation2 + $0xf1] sm:$0xff] %vm171_vm1, %v7315_v20  ;;  %v7285_v28 = vadd.f32 %v27097_v45, %v7169_v25  ;;  %22084 = vmatprep.mubr.msk.f32.mxu0 %vm171_vm1, %v27195_v27  ;;  %v7361_v25 = vld [vmem:[#allocation2] sm:$0xff] }
 0x4ea   : > { %v7318_v8 = vmax.f32 %v7286_v22, 0.0  ;;  %22085 = vmatmul.mubr.msk.f32.gmra.mrb[48].mxu0 %vm171_vm1, %v27201_v39 }
 0x4eb   : > { %v7317_v44 = vmax.f32 %v7285_v28, 0.0  ;;  %v22039_v58 = vpop.f32.mrb[54].mxu1  ;;  %v27213_v35 = vld [vmem:[#allocation2 + $0xe1] sm:$0xff] }
 0x4ec   : > { %7350 = vst.msk [vmem:[#allocation2 + $0x111] sm:$0xff] %vm171_vm1, %v7318_v8  ;;  %v7288_v55 = vadd.f32 %v22039_v58, %v27097_v45  ;;  %v7179_v32 = vpop.f32.mrb[55].mxu1  ;;  %v27207_v50 = vld [vmem:[#allocation2 + $0xd9] sm:$0xff]  ;;  %v7362_v58 = vld [vmem:[#allocation2 + $0x8] sm:$0xff] }
 0x4ed   : > { %7349 = vst.msk [vmem:[#allocation2 + $0x109] sm:$0xff] %vm171_vm1, %v7317_v44  ;;  %v7287_v2 = vadd.f32 %v27097_v45, %v7179_v32  ;;  %22087 = vmatprep.mubr.msk.f32.mxu0 %vm171_vm1, %v27207_v50  ;;  %v8109_v8 = vld [vmem:[%s29873_s1 + $0x198] sm:$0xff]  ;;  %v8110_v44 = vld [vmem:[%s29873_s1 + $0x1a0] sm:$0xff]  ;;  %v8496_v32 = vld [vmem:[%s29873_s1 + $0x1a8] sm:$0xff] }
 0x4ee   : > { %v7320_v49 = vmax.f32 %v7288_v55, 0.0  ;;  %22088 = vmatmul.mubr.msk.f32.gmra.mrb[50].mxu0 %vm171_vm1, %v27213_v35  ;;  %v23656_v55 = vpack.c.bf16 %v8110_v44, %v8109_v8 }
 0x4ef   : > { %v7319_v30 = vmax.f32 %v7287_v2, 0.0  ;;  %v22042_v59 = vpop.f32.mrb[56].mxu1  ;;  %v27225_v1 = vld [vmem:[#allocation2 + $0xf9] sm:$0xff]  ;;  %v8497_v2 = vld [vmem:[%s29873_s1 + $0x1b0] sm:$0xff] }
 0x4f0   : > { %7352 = vst.msk [vmem:[#allocation2 + $0x129] sm:$0xff] %vm171_vm1, %v7320_v49  ;;  %v7290_v62 = vadd.f32 %v22042_v59, %v27097_v45  ;;  %v7189_v17 = vpop.f32.mrb[57].mxu1  ;;  %v27219_v24 = vld [vmem:[#allocation2 + $0xf1] sm:$0xff]  ;;  %v27304_v59 = vld [vmem:[#allocation2 + $0x20] sm:$0xff] }
 0x4f1   : > { %7351 = vst.msk [vmem:[#allocation2 + $0x121] sm:$0xff] %vm171_vm1, %v7319_v30  ;;  %v7289_v42 = vadd.f32 %v27097_v45, %v7189_v17  ;;  %22090 = vmatprep.mubr.msk.f32.mxu0 %vm171_vm1, %v27219_v24  ;;  %v27297_v49 = vld [vmem:[#allocation2 + $0x18] sm:$0xff]  ;;  %v27302_v30 = vpack.c.bf16 %v8497_v2, %v8496_v32  ;;  %v27317_v17 = vld [vmem:[#allocation2 + $0x48] sm:$0xff]  ;;  %v8499_v2 = vld [vmem:[%s29873_s1 + $0x1c0] sm:$0xff] }
 0x4f2   : > { %v7322_v15 = vmax.f32 %v7290_v62, 0.0  ;;  %22091 = vmatmul.mubr.msk.f32.gmra.mrb[52].mxu0 %vm171_vm1, %v27225_v1  ;;  %v27308_v62 = vld [vmem:[#allocation2 + $0x30] sm:$0xff]  ;;  %v8498_v32 = vld [vmem:[%s29873_s1 + $0x1b8] sm:$0xff] }
 0x4f3   : > { %v7321_v19 = vmax.f32 %v7289_v42, 0.0  ;;  %v22045_v29 = vpop.f32.mrb[58].mxu1  ;;  %v27237_v0 = vld [vmem:[#allocation2 + $0x111] sm:$0xff] }
 0x4f4   : > { %7354 = vst.msk [vmem:[#allocation2 + $0x141] sm:$0xff] %vm171_vm1, %v7322_v15  ;;  %v7292_v38 = vadd.f32 %v22045_v29, %v27097_v45  ;;  %v7199_v26 = vpop.f32.mrb[59].mxu1  ;;  %v27231_v31 = vld [vmem:[#allocation2 + $0x109] sm:$0xff]  ;;  %v27325_v15 = vld [vmem:[#allocation2 + $0x60] sm:$0xff]  ;;  %v27333_v29 = vld [vmem:[#allocation2 + $0x78] sm:$0xff] }
 0x4f5   : > { %7353 = vst.msk [vmem:[#allocation2 + $0x139] sm:$0xff] %vm171_vm1, %v7321_v19  ;;  %v7291_v46 = vadd.f32 %v27097_v45, %v7199_v26  ;;  %22093 = vmatprep.mubr.msk.f32.mxu0 %vm171_vm1, %v27231_v31  ;;  %v27321_v42 = vld [vmem:[#allocation2 + $0x50] sm:$0xff]  ;;  %v27329_v19 = vld [vmem:[#allocation2 + $0x68] sm:$0xff] }
 0x4f6   : > { %v7324_v53 = vmax.f32 %v7292_v38, 0.0  ;;  %22094 = vmatmul.mubr.msk.f32.gmra.mrb[54].mxu0 %vm171_vm1, %v27237_v0  ;;  %v27337_v38 = vld [vmem:[#allocation2 + $0x80] sm:$0xff]  ;;  %v27341_v26 = vld [vmem:[#allocation2 + $0x90] sm:$0xff] }
 0x4f7   : > { %v7323_v7 = vmax.f32 %v7291_v46, 0.0  ;;  %v22048_v9 = vpop.f32.mrb[60].mxu1  ;;  %v27249_v54 = vld [vmem:[#allocation2 + $0x129] sm:$0xff]  ;;  %v27345_v46 = vld [vmem:[#allocation2 + $0x98] sm:$0xff] }
 0x4f8   : > { %7356 = vst.msk [vmem:[#allocation2 + $0x159] sm:$0xff] %vm171_vm1, %v7324_v53  ;;  %v7294_v33 = vadd.f32 %v22048_v9, %v27097_v45  ;;  %v7209_v41 = vpop.f32.mrb[61].mxu1  ;;  %v27243_v37 = vld [vmem:[#allocation2 + $0x121] sm:$0xff] }
 0x4f9   : > { %7355 = vst.msk [vmem:[#allocation2 + $0x151] sm:$0xff] %vm171_vm1, %v7323_v7  ;;  %v7293_v3 = vadd.f32 %v27097_v45, %v7209_v41  ;;  %22096 = vmatprep.mubr.msk.f32.mxu0 %vm171_vm1, %v27243_v37  ;;  %v27349_v53 = vld [vmem:[#allocation2 + $0xa8] sm:$0xff]  ;;  %v27353_v7 = vld [vmem:[#allocation2 + $0xb0] sm:$0xff]  ;;  %v27357_v9 = vld [vmem:[#allocation2 + $0xc0] sm:$0xff] }
 0x4fa   : > { %v7326_v51 = vmax.f32 %v7294_v33, 0.0  ;;  %22097 = vmatmul.mubr.msk.f32.gmra.mrb[56].mxu0 %vm171_vm1, %v27249_v54  ;;  %v27361_v33 = vld [vmem:[#allocation2 + $0xc8] sm:$0xff]  ;;  %v27365_v41 = vld [vmem:[#allocation2 + $0xd8] sm:$0xff] }
 0x4fb   : > { %v7325_v16 = vmax.f32 %v7293_v3, 0.0  ;;  %v22051_v36 = vpop.f32.mrb[62].mxu1  ;;  %v27261_v12 = vld [vmem:[#allocation2 + $0x141] sm:$0xff] }
 0x4fc   : > { %7358 = vst.msk [vmem:[#allocation2 + $0x171] sm:$0xff] %vm171_vm1, %v7326_v51  ;;  %v7296_v56 = vadd.f32 %v22051_v36, %v27097_v45  ;;  %v7219_v4 = vpop.f32.mrb[63].mxu1  ;;  %v27255_v23 = vld [vmem:[#allocation2 + $0x139] sm:$0xff]  ;;  %30334 = vst [vmem:[#allocation18_spill] sm:$0xff] %v27261_v12  ;;  %v27373_v51 = vld [vmem:[#allocation2 + $0xf0] sm:$0xff] }
 0x4fd   : > { %7357 = vst.msk [vmem:[#allocation2 + $0x169] sm:$0xff] %vm171_vm1, %v7325_v16  ;;  %v7295_v5 = vadd.f32 %v27097_v45, %v7219_v4  ;;  %22099 = vmatprep.mubr.msk.f32.mxu0 %vm171_vm1, %v27255_v23  ;;  %v27369_v3 = vld [vmem:[#allocation2 + $0xe0] sm:$0xff]  ;;  %v27377_v16 = vld [vmem:[#allocation2 + $0xf8] sm:$0xff]  ;;  %v27381_v36 = vld [vmem:[#allocation2 + $0x108] sm:$0xff] }
 0x4fe   : > { %v7328_v18 = vmax.f32 %v7296_v56, 0.0  ;;  %22100 = vmatmul.mubr.msk.f32.gmra.mrb[58].mxu0 %vm171_vm1, %v27261_v12  ;;  %v27385_v56 = vld [vmem:[#allocation2 + $0x110] sm:$0xff]  ;;  %v27389_v4 = vld [vmem:[#allocation2 + $0x120] sm:$0xff] }
 0x4ff   : > { %v7327_v20 = vmax.f32 %v7295_v5, 0.0  ;;  %v27271_v45 = vld [vmem:[#allocation2 + $0x159] sm:$0xff]  ;;  %v27393_v5 = vld [vmem:[#allocation2 + $0x128] sm:$0xff] }
 0x500   : > { %7360 = vst.msk [vmem:[#allocation2 + $0x189] sm:$0xff] %vm171_vm1, %v7328_v18  ;;  %v27266_v21 = vld [vmem:[#allocation2 + $0x151] sm:$0xff]  ;;  %30336 = vst [vmem:[#allocation19_spill] sm:$0xff] %v27271_v45  ;;  %v27435_v12 = vld [vmem:[#allocation2 + $0x1a] sm:$0xff] }
 0x501   : > { %30335 = vst [vmem:[#allocation4_spill] sm:$0xff] %v27266_v21  ;;  %7359 = vst.msk [vmem:[#allocation2 + $0x181] sm:$0xff] %vm171_vm1, %v7327_v20  ;;  %22102 = vmatprep.mubr.msk.f32.mxu0 %vm171_vm1, %v27266_v21  ;;  %v27397_v18 = vld [vmem:[#allocation2 + $0x138] sm:$0xff]  ;;  %v27401_v20 = vld [vmem:[#allocation2 + $0x140] sm:$0xff] }
 0x502   : > { %22103 = vmatmul.mubr.msk.f32.gmra.mrb[60].mxu0 %vm171_vm1, %v27271_v45  ;;  %v27409_v8 = vld [vmem:[#allocation2 + $0x158] sm:$0xff]  ;;  %v8885_v45 = vld [vmem:[%s29873_s1 + $0x1c8] sm:$0xff]  ;;  %v8886_v21 = vld [vmem:[%s29873_s1 + $0x1d0] sm:$0xff] }
 0x503   : > { %v27279_v28 = vld [vmem:[#allocation2 + $0x171] sm:$0xff] }
 0x504   : > { %v27275_v22 = vld [vmem:[#allocation2 + $0x169] sm:$0xff]  ;;  %30338 = vst [vmem:[#allocation20_spill] sm:$0xff] %v27279_v28 }
 0x505   : > { %30337 = vst [vmem:[#allocation5_spill] sm:$0xff] %v27275_v22  ;;  %22105 = vmatprep.mubr.msk.f32.mxu0 %vm171_vm1, %v27275_v22  ;;  %v27413_v44 = vld [vmem:[#allocation2 + $0x168] sm:$0xff]  ;;  %v23664_v22 = vpack.c.bf16 %v8499_v2, %v8498_v32  ;;  %v27446_v2 = vld [vmem:[#allocation2 + $0x32] sm:$0xff] }
 0x506   : > { %22106 = vmatmul.mubr.msk.f32.gmra.mrb[62].mxu0 %vm171_vm1, %v27279_v28  ;;  %v8076_v28 = vld [vmem:[#allocation2 + $0xa] sm:$0xff]  ;;  %v27442_v32 = vld [vmem:[#allocation2 + $0x22] sm:$0xff]  ;;  %30339 = vst [vmem:[#allocation6_spill] sm:$0xff] %v27446_v2 }
 0x507   : > { %22116 = vmatprep.mubr.msk.f32.mxu0 %vm171_vm1, %v7361_v25  ;;  %v27405_v25 = vld [vmem:[#allocation2 + $0x150] sm:$0xff] }
 0x50a   : > { %22117 = vmatmul.mubr.msk.f32.vlgmr.msra.gmra.mrb[32].mxu0 %vm171_vm1, %v7362_v58  ;;  %v8075_v58 = vld [vmem:[#allocation2 + $0x2] sm:$0xff] }
 0x50b   : > { %23655 = vmatpush3.bf16.msra.mxu0 %v27091_v47  ;;  %22119 = vmatprep.mubr.msk.f32.mxu0 %vm171_vm1, %v27297_v49  ;;  %v27313_v47 = vld [vmem:[#allocation2 + $0x38] sm:$0xff] }
 0x50c   : > { %23657 = vmatprep.subr.bf16.mxu0 %v23656_v55 }
 0x50e   : > { %22120 = vmatmul.mubr.msk.f32.gmra.mrb[34].mxu0 %vm171_vm1, %v27304_v59 }
 0x50f   : > { %22122 = vmatprep.mubr.msk.f32.mxu0 %vm171_vm1, %v27308_v62  ;;  %23659 = vmatpush3.bf16.msra.mxu0 %v23656_v55  ;;  %v27417_v55 = vld [vmem:[#allocation2 + $0x170] sm:$0xff] }
 0x510   : > { %23661 = vmatprep.subr.bf16.mxu0 %v27302_v30 }
 0x512   : > { %22123 = vmatmul.mubr.msk.f32.gmra.mrb[36].mxu0 %vm171_vm1, %v27313_v47 }
 0x513   : > { %22125 = vmatprep.mubr.msk.f32.mxu0 %vm171_vm1, %v27317_v17 }
 0x516   : > { %22126 = vmatmul.mubr.msk.f32.gmra.mrb[38].mxu0 %vm171_vm1, %v27321_v42 }
 0x517   : > { %22128 = vmatprep.mubr.msk.f32.mxu0 %vm171_vm1, %v27325_v15 }
 0x51a   : > { %22129 = vmatmul.mubr.msk.f32.gmra.mrb[40].mxu0 %vm171_vm1, %v27329_v19 }
 0x51b   : > { %22131 = vmatprep.mubr.msk.f32.mxu0 %vm171_vm1, %v27333_v29 }
 0x51e   : > { %22132 = vmatmul.mubr.msk.f32.gmra.mrb[42].mxu0 %vm171_vm1, %v27337_v38 }
 0x51f   : > { %22134 = vmatprep.mubr.msk.f32.mxu0 %vm171_vm1, %v27341_v26 }
 0x522   : > { %22135 = vmatmul.mubr.msk.f32.gmra.mrb[44].mxu0 %vm171_vm1, %v27345_v46 }
 0x523   : > { %22137 = vmatprep.mubr.msk.f32.mxu0 %vm171_vm1, %v27349_v53 }
 0x526   : > { %22138 = vmatmul.mubr.msk.f32.gmra.mrb[46].mxu0 %vm171_vm1, %v27353_v7 }
 0x527   : > { %22140 = vmatprep.mubr.msk.f32.mxu0 %vm171_vm1, %v27357_v9 }
 0x52a   : > { %22141 = vmatmul.mubr.msk.f32.gmra.mrb[48].mxu0 %vm171_vm1, %v27361_v33 }
 0x52b   : > { %22143 = vmatprep.mubr.msk.f32.mxu0 %vm171_vm1, %v27365_v41 }
 0x52e   : > { %22144 = vmatmul.mubr.msk.f32.gmra.mrb[50].mxu0 %vm171_vm1, %v27369_v3 }
 0x52f   : > { %22146 = vmatprep.mubr.msk.f32.mxu0 %vm171_vm1, %v27373_v51 }
 0x532   : > { %22147 = vmatmul.mubr.msk.f32.gmra.mrb[52].mxu0 %vm171_vm1, %v27377_v16 }
 0x533   : > { %22149 = vmatprep.mubr.msk.f32.mxu0 %vm171_vm1, %v27381_v36 }
 0x536   : > { %22150 = vmatmul.mubr.msk.f32.gmra.mrb[54].mxu0 %vm171_vm1, %v27385_v56 }
 0x537   : > { %22152 = vmatprep.mubr.msk.f32.mxu0 %vm171_vm1, %v27389_v4 }
 0x53a   : > { %22153 = vmatmul.mubr.msk.f32.gmra.mrb[56].mxu0 %vm171_vm1, %v27393_v5 }
 0x53b   : > { %22155 = vmatprep.mubr.msk.f32.mxu0 %vm171_vm1, %v27397_v18 }
 0x53e   : > { %22156 = vmatmul.mubr.msk.f32.gmra.mrb[58].mxu0 %vm171_vm1, %v27401_v20 }
 0x53f   : > { %22158 = vmatprep.mubr.msk.f32.mxu0 %vm171_vm1, %v27405_v25 }
 0x542   : > { %22159 = vmatmul.mubr.msk.f32.gmra.mrb[60].mxu0 %vm171_vm1, %v27409_v8 }
 0x543   : > { %22161 = vmatprep.mubr.msk.f32.mxu0 %vm171_vm1, %v27413_v44 }
 0x546   : > { %22162 = vmatmul.mubr.msk.f32.gmra.mrb[62].mxu0 %vm171_vm1, %v27417_v55 }
 0x547   : > { %22172 = vmatprep.mubr.msk.f32.mxu0 %vm171_vm1, %v8075_v58  ;;  %v27440_v58 = vpack.c.bf16 %v8886_v21, %v8885_v45  ;;  %v27455_v21 = vld [vmem:[#allocation2 + $0x4a] sm:$0xff]  ;;  %v27459_v45 = vld [vmem:[#allocation2 + $0x52] sm:$0xff] }
 0x548   : > { %30341 = vst [vmem:[#allocation7_spill] sm:$0xff] %v27455_v21  ;;  %30342 = vst [vmem:[#allocation22_spill] sm:$0xff] %v27459_v45 }
 0x54a   : > { %22173 = vmatmul.mubr.msk.f32.vlgmr.msra.gmra.mrb[32].mxu0 %vm171_vm1, %v8076_v28  ;;  %v27451_v28 = vld [vmem:[#allocation2 + $0x3a] sm:$0xff] }
 0x54b   : > { %23663 = vmatpush3.bf16.msra.mxu0 %v27302_v30  ;;  %22175 = vmatprep.mubr.msk.f32.mxu0 %vm171_vm1, %v27435_v12  ;;  %30340 = vst [vmem:[#allocation21_spill] sm:$0xff] %v27451_v28  ;;  %v27463_v30 = vld [vmem:[#allocation2 + $0x62] sm:$0xff] }
 0x54c   : > { %23665 = vmatprep.subr.bf16.mxu0 %v23664_v22  ;;  %30343 = vst [vmem:[#allocation8_spill] sm:$0xff] %v27463_v30 }
 0x54e   : > { %22176 = vmatmul.mubr.msk.f32.gmra.mrb[34].mxu0 %vm171_vm1, %v27442_v32 }
 0x54f   : > { %22178 = vmatprep.mubr.msk.f32.mxu0 %vm171_vm1, %v27446_v2  ;;  %23667 = vmatpush3.bf16.msra.mxu0 %v23664_v22  ;;  %v27467_v22 = vld [vmem:[#allocation2 + $0x6a] sm:$0xff] }
 0x550   : > { %23669 = vmatprep.subr.bf16.mxu0 %v27440_v58  ;;  %30344 = vst [vmem:[#allocation23_spill] sm:$0xff] %v27467_v22  ;;  %v9275_v2 = vld [vmem:[%s29873_s1 + $0x1f0] sm:$0xff] }
 0x552   : > { %22179 = vmatmul.mubr.msk.f32.gmra.mrb[36].mxu0 %vm171_vm1, %v27451_v28  ;;  %v27471_v28 = vld [vmem:[#allocation2 + $0x7a] sm:$0xff] }
 0x553   : > { %22181 = vmatprep.mubr.msk.f32.mxu0 %vm171_vm1, %v27455_v21  ;;  %30345 = vst [vmem:[#allocation9_spill] sm:$0xff] %v27471_v28  ;;  %v27475_v21 = vld [vmem:[#allocation2 + $0x82] sm:$0xff] }
 0x554   : > { %30346 = vst [vmem:[#allocation24_spill] sm:$0xff] %v27475_v21 }
 0x556   : > { %22182 = vmatmul.mubr.msk.f32.gmra.mrb[38].mxu0 %vm171_vm1, %v27459_v45  ;;  %v27479_v45 = vld [vmem:[#allocation2 + $0x92] sm:$0xff] }
 0x557   : > { %22184 = vmatprep.mubr.msk.f32.mxu0 %vm171_vm1, %v27463_v30  ;;  %30347 = vst [vmem:[#allocation10_spill] sm:$0xff] %v27479_v45  ;;  %v27483_v30 = vld [vmem:[#allocation2 + $0x9a] sm:$0xff] }
 0x558   : > { %30348 = vst [vmem:[#allocation25_spill] sm:$0xff] %v27483_v30 }
 0x55a   : > { %22185 = vmatmul.mubr.msk.f32.gmra.mrb[40].mxu0 %vm171_vm1, %v27467_v22  ;;  %v27487_v22 = vld [vmem:[#allocation2 + $0xaa] sm:$0xff] }
 0x55b   : > { %22187 = vmatprep.mubr.msk.f32.mxu0 %vm171_vm1, %v27471_v28  ;;  %30349 = vst [vmem:[#allocation11_spill] sm:$0xff] %v27487_v22  ;;  %v27491_v28 = vld [vmem:[#allocation2 + $0xb2] sm:$0xff] }
 0x55c   : > { %30350 = vst [vmem:[#allocation26_spill] sm:$0xff] %v27491_v28 }
 0x55e   : > { %22188 = vmatmul.mubr.msk.f32.gmra.mrb[42].mxu0 %vm171_vm1, %v27475_v21  ;;  %v27495_v21 = vld [vmem:[#allocation2 + $0xc2] sm:$0xff] }
 0x55f   : > { %22190 = vmatprep.mubr.msk.f32.mxu0 %vm171_vm1, %v27479_v45  ;;  %30351 = vst [vmem:[#allocation12_spill] sm:$0xff] %v27495_v21  ;;  %v27499_v45 = vld [vmem:[#allocation2 + $0xca] sm:$0xff] }
 0x560   : > { %30352 = vst [vmem:[#allocation27_spill] sm:$0xff] %v27499_v45 }
 0x562   : > { %22191 = vmatmul.mubr.msk.f32.gmra.mrb[44].mxu0 %vm171_vm1, %v27483_v30  ;;  %v27503_v30 = vld [vmem:[#allocation2 + $0xda] sm:$0xff] }
 0x563   : > { %22193 = vmatprep.mubr.msk.f32.mxu0 %vm171_vm1, %v27487_v22  ;;  %30353 = vst [vmem:[#allocation16_spill] sm:$0xff] %v27503_v30  ;;  %v27507_v22 = vld [vmem:[#allocation2 + $0xe2] sm:$0xff] }
 0x564   : > { %30354 = vst [vmem:[#allocation17_spill] sm:$0xff] %v27507_v22 }
 0x566   : > { %22194 = vmatmul.mubr.msk.f32.gmra.mrb[46].mxu0 %vm171_vm1, %v27491_v28  ;;  %v27511_v28 = vld [vmem:[#allocation2 + $0xf2] sm:$0xff] }
 0x567   : > { %22196 = vmatprep.mubr.msk.f32.mxu0 %vm171_vm1, %v27495_v21  ;;  %30355 = vst [vmem:[#allocation13_spill] sm:$0xff] %v27511_v28  ;;  %v27515_v21 = vld [vmem:[#allocation2 + $0xfa] sm:$0xff] }
 0x568   : > { %30356 = vst [vmem:[#allocation28_spill] sm:$0xff] %v27515_v21 }
 0x56a   : > { %22197 = vmatmul.mubr.msk.f32.gmra.mrb[48].mxu0 %vm171_vm1, %v27499_v45  ;;  %v27519_v45 = vld [vmem:[#allocation2 + $0x10a] sm:$0xff] }
 0x56b   : > { %22199 = vmatprep.mubr.msk.f32.mxu0 %vm171_vm1, %v27503_v30  ;;  %30357 = vst [vmem:[#allocation14_spill] sm:$0xff] %v27519_v45  ;;  %v27523_v30 = vld [vmem:[#allocation2 + $0x112] sm:$0xff] }
 0x56c   : > { %30358 = vst [vmem:[#allocation29_spill] sm:$0xff] %v27523_v30 }
 0x56e   : > { %22200 = vmatmul.mubr.msk.f32.gmra.mrb[50].mxu0 %vm171_vm1, %v27507_v22  ;;  %v27527_v22 = vld [vmem:[#allocation2 + $0x122] sm:$0xff] }
 0x56f   : > { %22202 = vmatprep.mubr.msk.f32.mxu0 %vm171_vm1, %v27511_v28  ;;  %30359 = vst [vmem:[#allocation15_spill] sm:$0xff] %v27527_v22  ;;  %v27531_v28 = vld [vmem:[#allocation2 + $0x12a] sm:$0xff] }
 0x570   : > { %30360 = vst [vmem:[#allocation30_spill] sm:$0xff] %v27531_v28 }
 0x572   : > { %22203 = vmatmul.mubr.msk.f32.gmra.mrb[52].mxu0 %vm171_vm1, %v27515_v21  ;;  %v27535_v21 = vld [vmem:[#allocation2 + $0x13a] sm:$0xff] }
 0x573   : > { %22205 = vmatprep.mubr.msk.f32.mxu0 %vm171_vm1, %v27519_v45  ;;  %30361 = vst [vmem:[#allocation32_spill] sm:$0xff] %v27535_v21  ;;  %v27539_v45 = vld [vmem:[#allocation2 + $0x142] sm:$0xff] }
 0x574   : > { %30362 = vst [vmem:[#allocation33_spill] sm:$0xff] %v27539_v45 }
 0x576   : > { %22206 = vmatmul.mubr.msk.f32.gmra.mrb[54].mxu0 %vm171_vm1, %v27523_v30  ;;  %v27543_v30 = vld [vmem:[#allocation2 + $0x152] sm:$0xff] }
 0x577   : > { %22208 = vmatprep.mubr.msk.f32.mxu0 %vm171_vm1, %v27527_v22  ;;  %30363 = vst [vmem:[#allocation34_spill] sm:$0xff] %v27543_v30  ;;  %v27547_v22 = vld [vmem:[#allocation2 + $0x15a] sm:$0xff] }
 0x578   : > { %30364 = vst [vmem:[#allocation35_spill] sm:$0xff] %v27547_v22 }
 0x57a   : > { %22209 = vmatmul.mubr.msk.f32.gmra.mrb[56].mxu0 %vm171_vm1, %v27531_v28  ;;  %v27551_v28 = vld [vmem:[#allocation2 + $0x16a] sm:$0xff] }
 0x57b   : > { %22211 = vmatprep.mubr.msk.f32.mxu0 %vm171_vm1, %v27535_v21  ;;  %30365 = vst [vmem:[#allocation31_spill] sm:$0xff] %v27551_v28  ;;  %v27555_v21 = vld [vmem:[#allocation2 + $0x172] sm:$0xff] }
 0x57c   : > { %30366 = vst [vmem:[#allocation3_spill] sm:$0xff] %v27555_v21 }
 0x57e   : > { %22212 = vmatmul.mubr.msk.f32.gmra.mrb[58].mxu0 %vm171_vm1, %v27539_v45  ;;  %v8887_v45 = vld [vmem:[%s29873_s1 + $0x1d8] sm:$0xff] }
 0x57f   : > { %22214 = vmatprep.mubr.msk.f32.mxu0 %vm171_vm1, %v27543_v30  ;;  %v8888_v30 = vld [vmem:[%s29873_s1 + $0x1e0] sm:$0xff] }
 0x582   : > { %22215 = vmatmul.mubr.msk.f32.gmra.mrb[60].mxu0 %vm171_vm1, %v27547_v22  ;;  %v23672_v22 = vpack.c.bf16 %v8888_v30, %v8887_v45  ;;  %v9663_v45 = vld [vmem:[%s29873_s1 + $0x208] sm:$0xff]  ;;  %v9664_v30 = vld [vmem:[%s29873_s1 + $0x210] sm:$0xff] }
 0x583   : > { %22217 = vmatprep.mubr.msk.f32.mxu0 %vm171_vm1, %v27551_v28  ;;  %v9274_v28 = vld [vmem:[%s29873_s1 + $0x1e8] sm:$0xff] }
 0x586   : > { %22218 = vmatmul.mubr.msk.f32.gmra.mrb[62].mxu0 %vm171_vm1, %v27555_v21  ;;  %v23676_v21 = vpack.c.bf16 %v9275_v2, %v9274_v28  ;;  %v9277_v2 = vld [vmem:[%s29873_s1 + $0x200] sm:$0xff] }
 0x587   : > { %22228 = vmatprep.mubr.msk.f32.mxu0 %vm171_vm1, %v27297_v49  ;;  %v27632_v49 = vld [vmem:[#allocation2 + $0x180] sm:$0xff] }
 0x58a   : > { %22229 = vmatmul.mubr.msk.f32.vlgmr.msra.gmra.mrb[32].mxu0 %vm171_vm1, %v27304_v59  ;;  %v27636_v59 = vld [vmem:[#allocation2 + $0x188] sm:$0xff] }
 0x58b   : > { %23671 = vmatpush3.bf16.msra.mxu0 %v27440_v58  ;;  %22231 = vmatprep.mubr.msk.f32.mxu0 %vm171_vm1, %v27308_v62  ;;  %v9276_v58 = vld [vmem:[%s29873_s1 + $0x1f8] sm:$0xff] }
 0x58c   : > { %23673 = vmatprep.subr.bf16.mxu0 %v23672_v22  ;;  %v23680_v28 = vpack.c.bf16 %v9277_v2, %v9276_v58  ;;  %v30386_v58 = vld [vmem:[#allocation16_spill] sm:$0xff]  ;;  %v30387_v2 = vld [vmem:[#allocation17_spill] sm:$0xff] }
 0x58e   : > { %22232 = vmatmul.mubr.msk.f32.gmra.mrb[34].mxu0 %vm171_vm1, %v27313_v47 }
 0x58f   : > { %22234 = vmatprep.mubr.msk.f32.mxu0 %vm171_vm1, %v27317_v17  ;;  %23675 = vmatpush3.bf16.msra.mxu0 %v23672_v22  ;;  %v23684_v22 = vpack.c.bf16 %v9664_v30, %v9663_v45  ;;  %v30389_v45 = vld [vmem:[#allocation28_spill] sm:$0xff]  ;;  %v30390_v30 = vld [vmem:[#allocation14_spill] sm:$0xff] }
 0x590   : > { %23677 = vmatprep.subr.bf16.mxu0 %v23676_v21 }
 0x592   : > { %22235 = vmatmul.mubr.msk.f32.gmra.mrb[36].mxu0 %vm171_vm1, %v27321_v42 }
 0x593   : > { %22237 = vmatprep.mubr.msk.f32.mxu0 %vm171_vm1, %v27325_v15 }
 0x596   : > { %22238 = vmatmul.mubr.msk.f32.gmra.mrb[38].mxu0 %vm171_vm1, %v27329_v19 }
 0x597   : > { %22240 = vmatprep.mubr.msk.f32.mxu0 %vm171_vm1, %v27333_v29 }
 0x59a   : > { %22241 = vmatmul.mubr.msk.f32.gmra.mrb[40].mxu0 %vm171_vm1, %v27337_v38 }
 0x59b   : > { %22243 = vmatprep.mubr.msk.f32.mxu0 %vm171_vm1, %v27341_v26 }
 0x59e   : > { %22244 = vmatmul.mubr.msk.f32.gmra.mrb[42].mxu0 %vm171_vm1, %v27345_v46 }
 0x59f   : > { %22246 = vmatprep.mubr.msk.f32.mxu0 %vm171_vm1, %v27349_v53 }
 0x5a2   : > { %22247 = vmatmul.mubr.msk.f32.gmra.mrb[44].mxu0 %vm171_vm1, %v27353_v7 }
 0x5a3   : > { %22249 = vmatprep.mubr.msk.f32.mxu0 %vm171_vm1, %v27357_v9 }
 0x5a6   : > { %22250 = vmatmul.mubr.msk.f32.gmra.mrb[46].mxu0 %vm171_vm1, %v27361_v33 }
 0x5a7   : > { %22252 = vmatprep.mubr.msk.f32.mxu0 %vm171_vm1, %v27365_v41 }
 0x5aa   : > { %22253 = vmatmul.mubr.msk.f32.gmra.mrb[48].mxu0 %vm171_vm1, %v27369_v3 }
 0x5ab   : > { %22255 = vmatprep.mubr.msk.f32.mxu0 %vm171_vm1, %v27373_v51 }
 0x5ae   : > { %22256 = vmatmul.mubr.msk.f32.gmra.mrb[50].mxu0 %vm171_vm1, %v27377_v16 }
 0x5af   : > { %22258 = vmatprep.mubr.msk.f32.mxu0 %vm171_vm1, %v27381_v36 }
 0x5b2   : > { %22259 = vmatmul.mubr.msk.f32.gmra.mrb[52].mxu0 %vm171_vm1, %v27385_v56 }
 0x5b3   : > { %22261 = vmatprep.mubr.msk.f32.mxu0 %vm171_vm1, %v27389_v4 }
 0x5b6   : > { %22262 = vmatmul.mubr.msk.f32.gmra.mrb[54].mxu0 %vm171_vm1, %v27393_v5 }
 0x5b7   : > { %22264 = vmatprep.mubr.msk.f32.mxu0 %vm171_vm1, %v27397_v18 }
 0x5ba   : > { %22265 = vmatmul.mubr.msk.f32.gmra.mrb[56].mxu0 %vm171_vm1, %v27401_v20 }
 0x5bb   : > { %22267 = vmatprep.mubr.msk.f32.mxu0 %vm171_vm1, %v27405_v25 }
 0x5be   : > { %22268 = vmatmul.mubr.msk.f32.gmra.mrb[58].mxu0 %vm171_vm1, %v27409_v8 }
 0x5bf   : > { %22270 = vmatprep.mubr.msk.f32.mxu0 %vm171_vm1, %v27413_v44 }
 0x5c2   : > { %22271 = vmatmul.mubr.msk.f32.gmra.mrb[60].mxu0 %vm171_vm1, %v27417_v55 }
 0x5c3   : > { %22273 = vmatprep.mubr.msk.f32.mxu0 %vm171_vm1, %v27632_v49 }
 0x5c6   : > { %22274 = vmatmul.mubr.msk.f32.gmra.mrb[62].mxu0 %vm171_vm1, %v27636_v59 }
 0x5c7   : > { %22284 = vmatprep.mubr.msk.f32.mxu0 %vm171_vm1, %v27111_v63  ;;  %v30367_v63 = vld [vmem:[#allocation18_spill] sm:$0xff] }
 0x5ca   : > { %22285 = vmatmul.mubr.msk.f32.vlgmr.msra.gmra.mrb[32].mxu0 %vm171_vm1, %v27117_v60  ;;  %v30368_v60 = vld [vmem:[#allocation4_spill] sm:$0xff] }
 0x5cb   : > { %23679 = vmatpush3.bf16.msra.mxu0 %v23676_v21  ;;  %22287 = vmatprep.mubr.msk.f32.mxu0 %vm171_vm1, %v27123_v57  ;;  %v30369_v57 = vld [vmem:[#allocation19_spill] sm:$0xff] }
 0x5cc   : > { %23681 = vmatprep.subr.bf16.mxu0 %v23680_v28  ;;  %v30385_v21 = vld [vmem:[#allocation27_spill] sm:$0xff] }
 0x5ce   : > { %22288 = vmatmul.mubr.msk.f32.gmra.mrb[34].mxu0 %vm171_vm1, %v27129_v34  ;;  %v30370_v34 = vld [vmem:[#allocation5_spill] sm:$0xff] }
 0x5cf   : > { %22290 = vmatprep.mubr.msk.f32.mxu0 %vm171_vm1, %v27135_v48  ;;  %23683 = vmatpush3.bf16.msra.mxu0 %v23680_v28  ;;  %v30371_v48 = vld [vmem:[#allocation20_spill] sm:$0xff]  ;;  %v30388_v28 = vld [vmem:[#allocation13_spill] sm:$0xff] }
 0x5d0   : > { %23685 = vmatprep.subr.bf16.mxu0 %v23684_v22 }
 0x5d2   : > { %22291 = vmatmul.mubr.msk.f32.gmra.mrb[36].mxu0 %vm171_vm1, %v27141_v6  ;;  %v27712_v6 = vld [vmem:[#allocation2 + $0x181] sm:$0xff] }
 0x5d3   : > { %22293 = vmatprep.mubr.msk.f32.mxu0 %vm171_vm1, %v27147_v11  ;;  %v27716_v11 = vld [vmem:[#allocation2 + $0x189] sm:$0xff] }
 0x5d6   : > { %22294 = vmatmul.mubr.msk.f32.gmra.mrb[38].mxu0 %vm171_vm1, %v27153_v40  ;;  %v9665_v40 = vld [vmem:[%s29873_s1 + $0x218] sm:$0xff] }
 0x5d7   : > { %22296 = vmatprep.mubr.msk.f32.mxu0 %vm171_vm1, %v27159_v14  ;;  %v9666_v14 = vld [vmem:[%s29873_s1 + $0x220] sm:$0xff] }
 0x5da   : > { %22297 = vmatmul.mubr.msk.f32.gmra.mrb[40].mxu0 %vm171_vm1, %v27165_v52  ;;  %v23688_v52 = vpack.c.bf16 %v9666_v14, %v9665_v40  ;;  %v30392_v40 = vld [vmem:[#allocation15_spill] sm:$0xff]  ;;  %v30393_v14 = vld [vmem:[#allocation30_spill] sm:$0xff] }
 0x5db   : > { %22299 = vmatprep.mubr.msk.f32.mxu0 %vm171_vm1, %v27171_v61  ;;  %v10052_v61 = vld [vmem:[%s29873_s1 + $0x228] sm:$0xff] }
 0x5de   : > { %22300 = vmatmul.mubr.msk.f32.gmra.mrb[42].mxu0 %vm171_vm1, %v27177_v43  ;;  %v10053_v43 = vld [vmem:[%s29873_s1 + $0x230] sm:$0xff] }
 0x5df   : > { %22302 = vmatprep.mubr.msk.f32.mxu0 %vm171_vm1, %v27183_v10  ;;  %v30372_v10 = vld [vmem:[#allocation6_spill] sm:$0xff] }
 0x5e2   : > { %22303 = vmatmul.mubr.msk.f32.gmra.mrb[44].mxu0 %vm171_vm1, %v27189_v13  ;;  %v23692_v13 = vpack.c.bf16 %v10053_v43, %v10052_v61  ;;  %v30395_v61 = vld [vmem:[#allocation33_spill] sm:$0xff]  ;;  %v30396_v43 = vld [vmem:[#allocation34_spill] sm:$0xff] }
 0x5e3   : > { %22305 = vmatprep.mubr.msk.f32.mxu0 %vm171_vm1, %v27195_v27  ;;  %v30373_v27 = vld [vmem:[#allocation21_spill] sm:$0xff] }
 0x5e6   : > { %22306 = vmatmul.mubr.msk.f32.gmra.mrb[46].mxu0 %vm171_vm1, %v27201_v39  ;;  %v30374_v39 = vld [vmem:[#allocation7_spill] sm:$0xff] }
 0x5e7   : > { %22308 = vmatprep.mubr.msk.f32.mxu0 %vm171_vm1, %v27207_v50  ;;  %v30375_v50 = vld [vmem:[#allocation22_spill] sm:$0xff] }
 0x5ea   : > { %22309 = vmatmul.mubr.msk.f32.gmra.mrb[48].mxu0 %vm171_vm1, %v27213_v35  ;;  %v30376_v35 = vld [vmem:[#allocation8_spill] sm:$0xff] }
 0x5eb   : > { %22311 = vmatprep.mubr.msk.f32.mxu0 %vm171_vm1, %v27219_v24  ;;  %v30377_v24 = vld [vmem:[#allocation23_spill] sm:$0xff] }
 0x5ee   : > { %22312 = vmatmul.mubr.msk.f32.gmra.mrb[50].mxu0 %vm171_vm1, %v27225_v1  ;;  %v30378_v1 = vld [vmem:[#allocation9_spill] sm:$0xff] }
 0x5ef   : > { %22314 = vmatprep.mubr.msk.f32.mxu0 %vm171_vm1, %v27231_v31  ;;  %v30379_v31 = vld [vmem:[#allocation24_spill] sm:$0xff] }
 0x5f2   : > { %22315 = vmatmul.mubr.msk.f32.gmra.mrb[52].mxu0 %vm171_vm1, %v27237_v0  ;;  %v30380_v0 = vld [vmem:[#allocation10_spill] sm:$0xff] }
 0x5f3   : > { %22317 = vmatprep.mubr.msk.f32.mxu0 %vm171_vm1, %v27243_v37  ;;  %v30381_v37 = vld [vmem:[#allocation25_spill] sm:$0xff] }
 0x5f6   : > { %22318 = vmatmul.mubr.msk.f32.gmra.mrb[54].mxu0 %vm171_vm1, %v27249_v54  ;;  %v30382_v54 = vld [vmem:[#allocation11_spill] sm:$0xff] }
 0x5f7   : > { %22320 = vmatprep.mubr.msk.f32.mxu0 %vm171_vm1, %v27255_v23 }
 0x5fa   : > { %22321 = vmatmul.mubr.msk.f32.gmra.mrb[56].mxu0 %vm171_vm1, %v30367_v63 }
 0x5fb   : > { %22323 = vmatprep.mubr.msk.f32.mxu0 %vm171_vm1, %v30368_v60 }
 0x5fe   : > { %22324 = vmatmul.mubr.msk.f32.gmra.mrb[58].mxu0 %vm171_vm1, %v30369_v57 }
 0x5ff   : > { %22326 = vmatprep.mubr.msk.f32.mxu0 %vm171_vm1, %v30370_v34 }
 0x602   : > { %22327 = vmatmul.mubr.msk.f32.gmra.mrb[60].mxu0 %vm171_vm1, %v30371_v48 }
 0x603   : > { %22329 = vmatprep.mubr.msk.f32.mxu0 %vm171_vm1, %v27712_v6 }
 0x606   : > { %22330 = vmatmul.mubr.msk.f32.gmra.mrb[62].mxu0 %vm171_vm1, %v27716_v11 }
 0x607   : > { %22340 = vmatprep.mubr.msk.f32.mxu0 %vm171_vm1, %v27435_v12  ;;  %v30383_v12 = vld [vmem:[#allocation26_spill] sm:$0xff] }
 0x60a   : > { %22341 = vmatmul.mubr.msk.f32.vlgmr.msra.gmra.mrb[32].mxu0 %vm171_vm1, %v27442_v32  ;;  %v30384_v32 = vld [vmem:[#allocation12_spill] sm:$0xff] }
 0x60b   : > { %23687 = vmatpush3.bf16.msra.mxu0 %v23684_v22  ;;  %22343 = vmatprep.mubr.msk.f32.mxu0 %vm171_vm1, %v30372_v10  ;;  %v30391_v22 = vld [vmem:[#allocation29_spill] sm:$0xff] }
 0x60c   : > { %23689 = vmatprep.subr.bf16.mxu0 %v23688_v52 }
 0x60e   : > { %22344 = vmatmul.mubr.msk.f32.gmra.mrb[34].mxu0 %vm171_vm1, %v30373_v27 }
 0x60f   : > { %22346 = vmatprep.mubr.msk.f32.mxu0 %vm171_vm1, %v30374_v39  ;;  %23691 = vmatpush3.bf16.msra.mxu0 %v23688_v52  ;;  %v30394_v52 = vld [vmem:[#allocation32_spill] sm:$0xff] }
 0x610   : > { %23693 = vmatprep.subr.bf16.mxu0 %v23692_v13 }
 0x612   : > { %22347 = vmatmul.mubr.msk.f32.gmra.mrb[36].mxu0 %vm171_vm1, %v30375_v50 }
 0x613   : > { %22349 = vmatprep.mubr.msk.f32.mxu0 %vm171_vm1, %v30376_v35 }
 0x616   : > { %22350 = vmatmul.mubr.msk.f32.gmra.mrb[38].mxu0 %vm171_vm1, %v30377_v24 }
 0x617   : > { %22352 = vmatprep.mubr.msk.f32.mxu0 %vm171_vm1, %v30378_v1 }
 0x61a   : > { %22353 = vmatmul.mubr.msk.f32.gmra.mrb[40].mxu0 %vm171_vm1, %v30379_v31 }
 0x61b   : > { %22355 = vmatprep.mubr.msk.f32.mxu0 %vm171_vm1, %v30380_v0 }
 0x61e   : > { %22356 = vmatmul.mubr.msk.f32.gmra.mrb[42].mxu0 %vm171_vm1, %v30381_v37 }
 0x61f   : > { %22358 = vmatprep.mubr.msk.f32.mxu0 %vm171_vm1, %v30382_v54 }
 0x622   : > { %22359 = vmatmul.mubr.msk.f32.gmra.mrb[44].mxu0 %vm171_vm1, %v30383_v12 }
 0x623   : > { %22361 = vmatprep.mubr.msk.f32.mxu0 %vm171_vm1, %v30384_v32 }
 0x626   : > { %22362 = vmatmul.mubr.msk.f32.gmra.mrb[46].mxu0 %vm171_vm1, %v30385_v21 }
 0x627   : > { %22364 = vmatprep.mubr.msk.f32.mxu0 %vm171_vm1, %v30386_v58 }
 0x62a   : > { %22365 = vmatmul.mubr.msk.f32.gmra.mrb[48].mxu0 %vm171_vm1, %v30387_v2 }
 0x62b   : > { %22367 = vmatprep.mubr.msk.f32.mxu0 %vm171_vm1, %v30388_v28 }
 0x62e   : > { %22368 = vmatmul.mubr.msk.f32.gmra.mrb[50].mxu0 %vm171_vm1, %v30389_v45  ;;  %v30397_v45 = vld [vmem:[#allocation35_spill] sm:$0xff] }
 0x62f   : > { %22370 = vmatprep.mubr.msk.f32.mxu0 %vm171_vm1, %v30390_v30  ;;  %v30398_v30 = vld [vmem:[#allocation31_spill] sm:$0xff] }
 0x632   : > { %22371 = vmatmul.mubr.msk.f32.gmra.mrb[52].mxu0 %vm171_vm1, %v30391_v22  ;;  %v30399_v22 = vld [vmem:[#allocation3_spill] sm:$0xff] }
 0x633   : > { %22373 = vmatprep.mubr.msk.f32.mxu0 %vm171_vm1, %v30392_v40  ;;  %v27792_v40 = vld [vmem:[#allocation2 + $0x182] sm:$0xff] }
 0x634   : > { %30400 = vst [vmem:[#allocation18_spill] sm:$0xff] %v27792_v40 }
 0x636   : > { %22374 = vmatmul.mubr.msk.f32.gmra.mrb[54].mxu0 %vm171_vm1, %v30393_v14 }
 0x637   : > { %22376 = vmatprep.mubr.msk.f32.mxu0 %vm171_vm1, %v30394_v52  ;;  %v27796_v52 = vld [vmem:[#allocation2 + $0x18a] sm:$0xff] }
 0x638   : > { %30401 = vst [vmem:[#allocation4_spill] sm:$0xff] %v27796_v52 }
 0x63a   : > { %22377 = vmatmul.mubr.msk.f32.gmra.mrb[56].mxu0 %vm171_vm1, %v30395_v61 }
 0x63b   : > { %22379 = vmatprep.mubr.msk.f32.mxu0 %vm171_vm1, %v30396_v43  ;;  %v10054_v43 = vld [vmem:[%s29873_s1 + $0x238] sm:$0xff] }
 0x63e   : > { %22380 = vmatmul.mubr.msk.f32.gmra.mrb[58].mxu0 %vm171_vm1, %v30397_v45  ;;  %v10055_v45 = vld [vmem:[%s29873_s1 + $0x240] sm:$0xff] }
 0x63f   : > { %22382 = vmatprep.mubr.msk.f32.mxu0 %vm171_vm1, %v30398_v30  ;;  %v10442_v30 = vld [vmem:[%s29873_s1 + $0x250] sm:$0xff] }
 0x642   : > { %22383 = vmatmul.mubr.msk.f32.gmra.mrb[60].mxu0 %vm171_vm1, %v30399_v22  ;;  %v23696_v22 = vpack.c.bf16 %v10055_v45, %v10054_v43  ;;  %v10040_v45 = vld [vmem:[#allocation2 + $0x121] sm:$0xff] }
 0x643   : > { %22385 = vmatprep.mubr.msk.f32.mxu0 %vm171_vm1, %v27792_v40  ;;  %v10441_v40 = vld [vmem:[%s29873_s1 + $0x248] sm:$0xff] }
 0x646   : > { %22386 = vmatmul.mubr.msk.f32.gmra.mrb[62].mxu0 %vm171_vm1, %v27796_v52  ;;  %v23700_v52 = vpack.c.bf16 %v10442_v30, %v10441_v40  ;;  %v10041_v30 = vld [vmem:[#allocation2 + $0x129] sm:$0xff]  ;;  %v28020_v40 = vld [vmem:[%s29874_s2 + $0x2] ss:$0 sm:$0xff] }
 0x647   : > { %22396 = vmatprep.mubr.msk.f32.mxu0 %vm171_vm1, %v27308_v62  ;;  %v9661_v62 = vld [vmem:[#allocation2 + $0x198] sm:$0xff] }
 0x64a   : > { %22397 = vmatmul.mubr.msk.f32.vlgmr.msra.gmra.mrb[32].mxu0 %vm171_vm1, %v27313_v47  ;;  %v9662_v47 = vld [vmem:[#allocation2 + $0x1a0] sm:$0xff] }
 0x64b   : > { %23695 = vmatpush3.bf16.msra.mxu0 %v23692_v13  ;;  %22399 = vmatprep.mubr.msk.f32.mxu0 %vm171_vm1, %v27317_v17  ;;  %v10020_v17 = vld [vmem:[#allocation2 + $0x31] sm:$0xff] }
 0x64c   : > { %23697 = vmatprep.subr.bf16.mxu0 %v23696_v22  ;;  %v10039_v13 = vld [vmem:[#allocation2 + $0x111] sm:$0xff] }
 0x64e   : > { %22400 = vmatmul.mubr.msk.f32.gmra.mrb[34].mxu0 %vm171_vm1, %v27321_v42  ;;  %v10443_v42 = vld [vmem:[%s29873_s1 + $0x258] sm:$0xff] }
 0x64f   : > { %22402 = vmatprep.mubr.msk.f32.mxu0 %vm171_vm1, %v27325_v15  ;;  %23699 = vmatpush3.bf16.msra.mxu0 %v23696_v22  ;;  %v10444_v15 = vld [vmem:[%s29873_s1 + $0x260] sm:$0xff] }
 0x650   : > { %23701 = vmatprep.subr.bf16.mxu0 %v23700_v52  ;;  %v10050_v22 = vld [vmem:[#allocation2 + $0x199] sm:$0xff] }
 0x652   : > { %22403 = vmatmul.mubr.msk.f32.gmra.mrb[36].mxu0 %vm171_vm1, %v27329_v19  ;;  %v10967_v19 = vld [vmem:[%s29873_s1 + $0x288] sm:$0xff] }
 0x653   : > { %22405 = vmatprep.mubr.msk.f32.mxu0 %vm171_vm1, %v27333_v29  ;;  %v10968_v29 = vld [vmem:[%s29873_s1 + $0x290] sm:$0xff] }
 0x656   : > { %22406 = vmatmul.mubr.msk.f32.gmra.mrb[38].mxu0 %vm171_vm1, %v27337_v38  ;;  %v10969_v38 = vld [vmem:[%s29873_s1 + $0x298] sm:$0xff] }
 0x657   : > { %22408 = vmatprep.mubr.msk.f32.mxu0 %vm171_vm1, %v27341_v26  ;;  %v23708_v26 = vpack.c.bf16 %v10968_v29, %v10967_v19 }
 0x659   : > { %23709 = vmatprep.subr.bf16.mxu1 %v23708_v26 }
 0x65a   : > { %22409 = vmatmul.mubr.msk.f32.gmra.mrb[40].mxu0 %vm171_vm1, %v27345_v46  ;;  %v10970_v46 = vld [vmem:[%s29873_s1 + $0x2a0] sm:$0xff]  ;;  %23711 = vmatpush3.bf16.msra.mxu1 %v23708_v26 }
 0x65b   : > { %22411 = vmatprep.mubr.msk.f32.mxu0 %vm171_vm1, %v27349_v53  ;;  %v23704_v53 = vpack.c.bf16 %v10444_v15, %v10443_v42 }
 0x65e   : > { %22412 = vmatmul.mubr.msk.f32.gmra.mrb[42].mxu0 %vm171_vm1, %v27353_v7  ;;  %v23712_v7 = vpack.c.bf16 %v10970_v46, %v10969_v38 }
 0x65f   : > { %22414 = vmatprep.mubr.msk.f32.mxu0 %vm171_vm1, %v27357_v9  ;;  %v10021_v9 = vld [vmem:[#allocation2 + $0x39] sm:$0xff] }
 0x660   : > { %23713 = vmatprep.subr.bf16.mxu1 %v23712_v7 }
 0x661   : > { %23715 = vmatpush3.bf16.msra.mxu1 %v23712_v7 }
 0x662   : > { %22415 = vmatmul.mubr.msk.f32.gmra.mrb[44].mxu0 %vm171_vm1, %v27361_v33  ;;  %v10022_v33 = vld [vmem:[#allocation2 + $0x49] sm:$0xff] }
 0x663   : > { %22417 = vmatprep.mubr.msk.f32.mxu0 %vm171_vm1, %v27365_v41  ;;  %v10023_v41 = vld [vmem:[#allocation2 + $0x51] sm:$0xff] }
 0x666   : > { %22418 = vmatmul.mubr.msk.f32.gmra.mrb[46].mxu0 %vm171_vm1, %v27369_v3  ;;  %v10024_v3 = vld [vmem:[#allocation2 + $0x61] sm:$0xff] }
 0x667   : > { %22420 = vmatprep.mubr.msk.f32.mxu0 %vm171_vm1, %v27373_v51  ;;  %v10025_v51 = vld [vmem:[#allocation2 + $0x69] sm:$0xff] }
 0x66a   : > { %22421 = vmatmul.mubr.msk.f32.gmra.mrb[48].mxu0 %vm171_vm1, %v27377_v16  ;;  %v10026_v16 = vld [vmem:[#allocation2 + $0x79] sm:$0xff] }
 0x66b   : > { %22423 = vmatprep.mubr.msk.f32.mxu0 %vm171_vm1, %v27381_v36  ;;  %v10027_v36 = vld [vmem:[#allocation2 + $0x81] sm:$0xff] }
 0x66e   : > { %22424 = vmatmul.mubr.msk.f32.gmra.mrb[50].mxu0 %vm171_vm1, %v27385_v56  ;;  %v10028_v56 = vld [vmem:[#allocation2 + $0x91] sm:$0xff] }
 0x66f   : > { %22426 = vmatprep.mubr.msk.f32.mxu0 %vm171_vm1, %v27389_v4  ;;  %v10029_v4 = vld [vmem:[#allocation2 + $0x99] sm:$0xff] }
 0x672   : > { %22427 = vmatmul.mubr.msk.f32.gmra.mrb[52].mxu0 %vm171_vm1, %v27393_v5  ;;  %v10030_v5 = vld [vmem:[#allocation2 + $0xa9] sm:$0xff] }
 0x673   : > { %22429 = vmatprep.mubr.msk.f32.mxu0 %vm171_vm1, %v27397_v18  ;;  %v10031_v18 = vld [vmem:[#allocation2 + $0xb1] sm:$0xff] }
 0x676   : > { %22430 = vmatmul.mubr.msk.f32.gmra.mrb[54].mxu0 %vm171_vm1, %v27401_v20  ;;  %v10032_v20 = vld [vmem:[#allocation2 + $0xc1] sm:$0xff] }
 0x677   : > { %22432 = vmatprep.mubr.msk.f32.mxu0 %vm171_vm1, %v27405_v25  ;;  %v10033_v25 = vld [vmem:[#allocation2 + $0xc9] sm:$0xff] }
 0x67a   : > { %22433 = vmatmul.mubr.msk.f32.gmra.mrb[56].mxu0 %vm171_vm1, %v27409_v8  ;;  %v10034_v8 = vld [vmem:[#allocation2 + $0xd9] sm:$0xff] }
 0x67b   : > { %22435 = vmatprep.mubr.msk.f32.mxu0 %vm171_vm1, %v27413_v44  ;;  %v10035_v44 = vld [vmem:[#allocation2 + $0xe1] sm:$0xff] }
 0x67e   : > { %22436 = vmatmul.mubr.msk.f32.gmra.mrb[58].mxu0 %vm171_vm1, %v27417_v55  ;;  %v10036_v55 = vld [vmem:[#allocation2 + $0xf1] sm:$0xff] }
 0x67f   : > { %22438 = vmatprep.mubr.msk.f32.mxu0 %vm171_vm1, %v27632_v49  ;;  %v10037_v49 = vld [vmem:[#allocation2 + $0xf9] sm:$0xff] }
 0x682   : > { %22439 = vmatmul.mubr.msk.f32.gmra.mrb[60].mxu0 %vm171_vm1, %v27636_v59  ;;  %v10038_v59 = vld [vmem:[#allocation2 + $0x109] sm:$0xff] }
 0x683   : > { %22441 = vmatprep.mubr.msk.f32.mxu0 %vm171_vm1, %v9661_v62 }
 0x686   : > { %22442 = vmatmul.mubr.msk.f32.gmra.mrb[62].mxu0 %vm171_vm1, %v9662_v47 }
 0x687   : > { %22452 = vmatprep.mubr.msk.f32.mxu0 %vm171_vm1, %v10020_v17 }
 0x68a   : > { %22453 = vmatmul.mubr.msk.f32.vlgmr.msra.gmra.mrb[32].mxu0 %vm171_vm1, %v10021_v9 }
 0x68b   : > { %23703 = vmatpush3.bf16.msra.mxu0 %v23700_v52  ;;  %22455 = vmatprep.mubr.msk.f32.mxu0 %vm171_vm1, %v10022_v33 }
 0x68c   : > { %23705 = vmatprep.subr.bf16.mxu0 %v23704_v53 }
 0x68e   : > { %22456 = vmatmul.mubr.msk.f32.gmra.mrb[34].mxu0 %vm171_vm1, %v10023_v41 }
 0x68f   : > { %22458 = vmatprep.mubr.msk.f32.mxu0 %vm171_vm1, %v10024_v3  ;;  %23707 = vmatpush3.bf16.msra.mxu0 %v23704_v53 }
 0x692   : > { %22459 = vmatmul.mubr.msk.f32.gmra.mrb[36].mxu0 %vm171_vm1, %v10025_v51 }
 0x693   : > { %22461 = vmatprep.mubr.msk.f32.mxu0 %vm171_vm1, %v10026_v16 }
 0x696   : > { %22462 = vmatmul.mubr.msk.f32.gmra.mrb[38].mxu0 %vm171_vm1, %v10027_v36 }
 0x697   : > { %22464 = vmatprep.mubr.msk.f32.mxu0 %vm171_vm1, %v10028_v56 }
 0x69a   : > { %22465 = vmatmul.mubr.msk.f32.gmra.mrb[40].mxu0 %vm171_vm1, %v10029_v4 }
 0x69b   : > { %22467 = vmatprep.mubr.msk.f32.mxu0 %vm171_vm1, %v10030_v5 }
 0x69e   : > { %22468 = vmatmul.mubr.msk.f32.gmra.mrb[42].mxu0 %vm171_vm1, %v10031_v18 }
 0x69f   : > { %22470 = vmatprep.mubr.msk.f32.mxu0 %vm171_vm1, %v10032_v20 }
 0x6a2   : > { %22471 = vmatmul.mubr.msk.f32.gmra.mrb[44].mxu0 %vm171_vm1, %v10033_v25 }
 0x6a3   : > { %22473 = vmatprep.mubr.msk.f32.mxu0 %vm171_vm1, %v10034_v8 }
 0x6a6   : > { %22474 = vmatmul.mubr.msk.f32.gmra.mrb[46].mxu0 %vm171_vm1, %v10035_v44 }
 0x6a7   : > { %22476 = vmatprep.mubr.msk.f32.mxu0 %vm171_vm1, %v10036_v55 }
 0x6aa   : > { %22477 = vmatmul.mubr.msk.f32.gmra.mrb[48].mxu0 %vm171_vm1, %v10037_v49 }
 0x6ab   : > { %22479 = vmatprep.mubr.msk.f32.mxu0 %vm171_vm1, %v10038_v59 }
 0x6ae   : > { %22480 = vmatmul.mubr.msk.f32.gmra.mrb[50].mxu0 %vm171_vm1, %v10039_v13 }
 0x6af   : > { %22482 = vmatprep.mubr.msk.f32.mxu0 %vm171_vm1, %v10040_v45 }
 0x6b2   : > { %22483 = vmatmul.mubr.msk.f32.gmra.mrb[52].mxu0 %vm171_vm1, %v10041_v30 }
 0x6b3   : > { %22485 = vmatprep.mubr.msk.f32.mxu0 %vm171_vm1, %v27255_v23  ;;  %v10051_v23 = vld [vmem:[#allocation2 + $0x1a1] sm:$0xff] }
 0x6b6   : > { %22486 = vmatmul.mubr.msk.f32.gmra.mrb[54].mxu0 %vm171_vm1, %v30367_v63  ;;  %v30402_v63 = vld [vmem:[#allocation28_spill] sm:$0xff] }
 0x6b7   : > { %22488 = vmatprep.mubr.msk.f32.mxu0 %vm171_vm1, %v30368_v60  ;;  %v30403_v60 = vld [vmem:[#allocation14_spill] sm:$0xff] }
 0x6ba   : > { %22489 = vmatmul.mubr.msk.f32.gmra.mrb[56].mxu0 %vm171_vm1, %v30369_v57  ;;  %v30404_v57 = vld [vmem:[#allocation29_spill] sm:$0xff] }
 0x6bb   : > { %22491 = vmatprep.mubr.msk.f32.mxu0 %vm171_vm1, %v30370_v34  ;;  %v30405_v34 = vld [vmem:[#allocation15_spill] sm:$0xff] }
 0x6be   : > { %22492 = vmatmul.mubr.msk.f32.gmra.mrb[58].mxu0 %vm171_vm1, %v30371_v48  ;;  %v30406_v48 = vld [vmem:[#allocation32_spill] sm:$0xff] }
 0x6bf   : > { %22494 = vmatprep.mubr.msk.f32.mxu0 %vm171_vm1, %v27712_v6  ;;  %v30407_v6 = vld [vmem:[#allocation34_spill] sm:$0xff] }
 0x6c2   : > { %22495 = vmatmul.mubr.msk.f32.gmra.mrb[60].mxu0 %vm171_vm1, %v27716_v11  ;;  %v30408_v11 = vld [vmem:[#allocation35_spill] sm:$0xff] }
 0x6c3   : > { %22497 = vmatprep.mubr.msk.f32.mxu0 %vm171_vm1, %v10050_v22 }
 0x6c6   : > { %22498 = vmatmul.mubr.msk.f32.gmra.mrb[62].mxu0 %vm171_vm1, %v10051_v23 }
 0x6c7   : > { %22508 = vmatprep.mubr.msk.f32.mxu0 %vm171_vm1, %v30372_v10  ;;  %v30409_v10 = vld [vmem:[#allocation31_spill] sm:$0xff] }
 0x6ca   : > { %22509 = vmatmul.mubr.msk.f32.vlgmr.msra.gmra.mrb[32].mxu0 %vm171_vm1, %v30373_v27  ;;  %v30410_v27 = vld [vmem:[#allocation3_spill] sm:$0xff] }
 0x6cb   : > { %22511 = vmatprep.mubr.msk.f32.mxu0 %vm171_vm1, %v30374_v39  ;;  %v30411_v39 = vld [vmem:[#allocation18_spill] sm:$0xff] }
 0x6ce   : > { %22512 = vmatmul.mubr.msk.f32.gmra.mrb[34].mxu0 %vm171_vm1, %v30375_v50  ;;  %v10439_v50 = vld [vmem:[#allocation2 + $0x19a] sm:$0xff] }
 0x6cf   : > { %22514 = vmatprep.mubr.msk.f32.mxu0 %vm171_vm1, %v30376_v35  ;;  %v30412_v35 = vld [vmem:[#allocation4_spill] sm:$0xff] }
 0x6d2   : > { %22515 = vmatmul.mubr.msk.f32.gmra.mrb[36].mxu0 %vm171_vm1, %v30377_v24  ;;  %v10440_v24 = vld [vmem:[#allocation2 + $0x1a2] sm:$0xff] }
 0x6d3   : > { %22517 = vmatprep.mubr.msk.f32.mxu0 %vm171_vm1, %v30378_v1  ;;  %v10935_v1 = vld [vmem:[#allocation2 + $0x1] sm:$0xff] }
 0x6d4   : > { %22564 = vmatprep.mubr.msk.f32.mxu1 %vm171_vm1, %v10935_v1 }
 0x6d6   : > { %22518 = vmatmul.mubr.msk.f32.gmra.mrb[38].mxu0 %vm171_vm1, %v30379_v31  ;;  %v10936_v31 = vld [vmem:[#allocation2 + $0x9] sm:$0xff] }
 0x6d7   : > { %22520 = vmatprep.mubr.msk.f32.mxu0 %vm171_vm1, %v30380_v0  ;;  %v10931_v0 = vld [vmem:[%s29873_s1 + $0x268] sm:$0xff]  ;;  %22565 = vmatmul.mubr.msk.f32.vlgmr.msra.gmra.mrb[64].mxu1 %vm171_vm1, %v10936_v31 }
 0x6da   : > { %22521 = vmatmul.mubr.msk.f32.gmra.mrb[40].mxu0 %vm171_vm1, %v30381_v37  ;;  %v10932_v37 = vld [vmem:[%s29873_s1 + $0x270] sm:$0xff] }
 0x6db   : > { %22523 = vmatprep.mubr.msk.f32.mxu0 %vm171_vm1, %v30382_v54  ;;  %v23716_v54 = vpack.c.bf16 %v10932_v37, %v10931_v0 }
 0x6dd   : > { %23717 = vmatprep.subr.bf16.mxu1 %v23716_v54 }
 0x6de   : > { %22524 = vmatmul.mubr.msk.f32.gmra.mrb[42].mxu0 %vm171_vm1, %v30383_v12  ;;  %23719 = vmatpush3.bf16.msra.mxu1 %v23716_v54  ;;  %v10933_v12 = vld [vmem:[%s29873_s1 + $0x278] sm:$0xff] }
 0x6df   : > { %22526 = vmatprep.mubr.msk.f32.mxu0 %vm171_vm1, %v30384_v32  ;;  %v10934_v32 = vld [vmem:[%s29873_s1 + $0x280] sm:$0xff] }
 0x6e2   : > { %22527 = vmatmul.mubr.msk.f32.gmra.mrb[44].mxu0 %vm171_vm1, %v30385_v21  ;;  %v23720_v21 = vpack.c.bf16 %v10934_v32, %v10933_v12 }
 0x6e3   : > { %22529 = vmatprep.mubr.msk.f32.mxu0 %vm171_vm1, %v30386_v58  ;;  %v11645_v58 = vld [vmem:[%s29873_s1 + $0x2a8] sm:$0xff] }
 0x6e4   : > { %23721 = vmatprep.subr.bf16.mxu1 %v23720_v21 }
 0x6e5   : > { %23723 = vmatpush3.bf16.msra.mxu1 %v23720_v21 }
 0x6e6   : > { %22530 = vmatmul.mubr.msk.f32.gmra.mrb[46].mxu0 %vm171_vm1, %v30387_v2  ;;  %v11646_v2 = vld [vmem:[%s29873_s1 + $0x2b0] sm:$0xff] }
 0x6e7   : > { %22532 = vmatprep.mubr.msk.f32.mxu0 %vm171_vm1, %v30388_v28  ;;  %v28014_v28 = vpack.c.bf16 %v11646_v2, %v11645_v58 }
 0x6e9   : > { %23725 = vmatprep.subr.bf16.mxu1 %v28014_v28 }
 0x6ea   : > { %22533 = vmatmul.mubr.msk.f32.gmra.mrb[48].mxu0 %vm171_vm1, %v30402_v63 }
 0x6eb   : > { %22535 = vmatprep.mubr.msk.f32.mxu0 %vm171_vm1, %v30403_v60 }
 0x6ee   : > { %22536 = vmatmul.mubr.msk.f32.gmra.mrb[50].mxu0 %vm171_vm1, %v30404_v57 }
 0x6ef   : > { %22538 = vmatprep.mubr.msk.f32.mxu0 %vm171_vm1, %v30405_v34 }
 0x6f2   : > { %22539 = vmatmul.mubr.msk.f32.gmra.mrb[52].mxu0 %vm171_vm1, %v30393_v14 }
 0x6f3   : > { %22541 = vmatprep.mubr.msk.f32.mxu0 %vm171_vm1, %v30406_v48 }
 0x6f6   : > { %22542 = vmatmul.mubr.msk.f32.gmra.mrb[54].mxu0 %vm171_vm1, %v30395_v61 }
 0x6f7   : > { %22544 = vmatprep.mubr.msk.f32.mxu0 %vm171_vm1, %v30407_v6 }
 0x6fa   : > { %22545 = vmatmul.mubr.msk.f32.gmra.mrb[56].mxu0 %vm171_vm1, %v30408_v11 }
 0x6fb   : > { %22547 = vmatprep.mubr.msk.f32.mxu0 %vm171_vm1, %v30409_v10 }
 0x6fe   : > { %22548 = vmatmul.mubr.msk.f32.gmra.mrb[58].mxu0 %vm171_vm1, %v30410_v27 }
 0x6ff   : > { %22550 = vmatprep.mubr.msk.f32.mxu0 %vm171_vm1, %v30411_v39 }
 0x702   : > { %22551 = vmatmul.mubr.msk.f32.gmra.mrb[60].mxu0 %vm171_vm1, %v30412_v35 }
 0x703   : > { %22553 = vmatprep.mubr.msk.f32.mxu0 %vm171_vm1, %v10439_v50 }
 0x706   : > { %22554 = vmatmul.mubr.msk.f32.gmra.mrb[62].mxu0 %vm171_vm1, %v10440_v24 }
 0x79d   : > { %v22510_v14 = vpop.f32.mrb[32].mxu0 }
 0x79e   : > { %v10804_v52 = vadd.f32 %v22510_v14, %v28020_v40  ;;  %v10607_v61 = vpop.f32.mrb[33].mxu0 }
 0x79f   : > { %v10803_v43 = vadd.f32 %v28020_v40, %v10607_v61 }
 0x7a0   : > { %v10836_v62 = vmax.f32 %v10804_v52, 0.0 }
 0x7a1   : > { %v10835_v47 = vmax.f32 %v10803_v43, 0.0  ;;  %v22513_v17 = vpop.f32.mrb[34].mxu0 }
 0x7a2   : > { %10868 = vst.msk [vmem:[#allocation2 + $0x21] sm:$0xff] %vm171_vm1, %v10836_v62  ;;  %v10806_v42 = vadd.f32 %v22513_v17, %v28020_v40  ;;  %v10617_v15 = vpop.f32.mrb[35].mxu0 }
 0x7a3   : > { %10867 = vst.msk [vmem:[#allocation2 + $0x19] sm:$0xff] %vm171_vm1, %v10835_v47  ;;  %v10805_v19 = vadd.f32 %v28020_v40, %v10617_v15 }
 0x7a4   : > { %v10838_v29 = vmax.f32 %v10806_v42, 0.0 }
 0x7a5   : > { %v10837_v38 = vmax.f32 %v10805_v19, 0.0  ;;  %v22516_v26 = vpop.f32.mrb[36].mxu0 }
 0x7a6   : > { %10870 = vst.msk [vmem:[#allocation2 + $0x39] sm:$0xff] %vm171_vm1, %v10838_v29  ;;  %v10808_v46 = vadd.f32 %v22516_v26, %v28020_v40  ;;  %v10627_v53 = vpop.f32.mrb[37].mxu0 }
 0x7a7   : > { %10869 = vst.msk [vmem:[#allocation2 + $0x31] sm:$0xff] %vm171_vm1, %v10837_v38  ;;  %v10807_v7 = vadd.f32 %v28020_v40, %v10627_v53 }
 0x7a8   : > { %v10840_v9 = vmax.f32 %v10808_v46, 0.0 }
 0x7a9   : > { %v10839_v33 = vmax.f32 %v10807_v7, 0.0  ;;  %v22519_v41 = vpop.f32.mrb[38].mxu0  ;;  %v28040_v56 = vld [vmem:[#allocation2 + $0x21] sm:$0xff] }
 0x7aa   : > { %10872 = vst.msk [vmem:[#allocation2 + $0x51] sm:$0xff] %vm171_vm1, %v10840_v9  ;;  %v10810_v3 = vadd.f32 %v22519_v41, %v28020_v40  ;;  %v10637_v51 = vpop.f32.mrb[39].mxu0  ;;  %v28034_v16 = vld [vmem:[#allocation2 + $0x19] sm:$0xff] }
 0x7ab   : > { %10871 = vst.msk [vmem:[#allocation2 + $0x49] sm:$0xff] %vm171_vm1, %v10839_v33  ;;  %v10809_v36 = vadd.f32 %v28020_v40, %v10637_v51  ;;  %22567 = vmatprep.mubr.msk.f32.mxu1 %vm171_vm1, %v28034_v16 }
 0x7ac   : > { %v10842_v4 = vmax.f32 %v10810_v3, 0.0  ;;  %22568 = vmatmul.mubr.msk.f32.gmra.mrb[66].mxu1 %vm171_vm1, %v28040_v56 }
 0x7ad   : > { %v10841_v5 = vmax.f32 %v10809_v36, 0.0  ;;  %v22522_v18 = vpop.f32.mrb[40].mxu0  ;;  %v28052_v55 = vld [vmem:[#allocation2 + $0x39] sm:$0xff] }
 0x7ae   : > { %10874 = vst.msk [vmem:[#allocation2 + $0x69] sm:$0xff] %vm171_vm1, %v10842_v4  ;;  %v10812_v20 = vadd.f32 %v22522_v18, %v28020_v40  ;;  %v10647_v25 = vpop.f32.mrb[41].mxu0  ;;  %v28046_v8 = vld [vmem:[#allocation2 + $0x31] sm:$0xff] }
 0x7af   : > { %10873 = vst.msk [vmem:[#allocation2 + $0x61] sm:$0xff] %vm171_vm1, %v10841_v5  ;;  %v10811_v44 = vadd.f32 %v28020_v40, %v10647_v25  ;;  %22570 = vmatprep.mubr.msk.f32.mxu1 %vm171_vm1, %v28046_v8 }
 0x7b0   : > { %v10844_v49 = vmax.f32 %v10812_v20, 0.0  ;;  %22571 = vmatmul.mubr.msk.f32.gmra.mrb[68].mxu1 %vm171_vm1, %v28052_v55 }
 0x7b1   : > { %v10843_v59 = vmax.f32 %v10811_v44, 0.0  ;;  %v22525_v13 = vpop.f32.mrb[42].mxu0  ;;  %v28064_v63 = vld [vmem:[#allocation2 + $0x51] sm:$0xff] }
 0x7b2   : > { %10876 = vst.msk [vmem:[#allocation2 + $0x81] sm:$0xff] %vm171_vm1, %v10844_v49  ;;  %v10814_v45 = vadd.f32 %v22525_v13, %v28020_v40  ;;  %v10657_v30 = vpop.f32.mrb[43].mxu0  ;;  %v28058_v22 = vld [vmem:[#allocation2 + $0x49] sm:$0xff] }
 0x7b3   : > { %10875 = vst.msk [vmem:[#allocation2 + $0x79] sm:$0xff] %vm171_vm1, %v10843_v59  ;;  %v10813_v23 = vadd.f32 %v28020_v40, %v10657_v30  ;;  %22573 = vmatprep.mubr.msk.f32.mxu1 %vm171_vm1, %v28058_v22 }
 0x7b4   : > { %v10846_v60 = vmax.f32 %v10814_v45, 0.0  ;;  %22574 = vmatmul.mubr.msk.f32.gmra.mrb[70].mxu1 %vm171_vm1, %v28064_v63 }
 0x7b5   : > { %v10845_v57 = vmax.f32 %v10813_v23, 0.0  ;;  %v22528_v34 = vpop.f32.mrb[44].mxu0  ;;  %v28076_v27 = vld [vmem:[#allocation2 + $0x69] sm:$0xff] }
 0x7b6   : > { %10878 = vst.msk [vmem:[#allocation2 + $0x99] sm:$0xff] %vm171_vm1, %v10846_v60  ;;  %v10816_v48 = vadd.f32 %v22528_v34, %v28020_v40  ;;  %v10667_v6 = vpop.f32.mrb[45].mxu0  ;;  %v28070_v11 = vld [vmem:[#allocation2 + $0x61] sm:$0xff] }
 0x7b7   : > { %10877 = vst.msk [vmem:[#allocation2 + $0x91] sm:$0xff] %vm171_vm1, %v10845_v57  ;;  %v10815_v10 = vadd.f32 %v28020_v40, %v10667_v6  ;;  %22576 = vmatprep.mubr.msk.f32.mxu1 %vm171_vm1, %v28070_v11 }
 0x7b8   : > { %v10848_v39 = vmax.f32 %v10816_v48, 0.0  ;;  %22577 = vmatmul.mubr.msk.f32.gmra.mrb[72].mxu1 %vm171_vm1, %v28076_v27 }
 0x7b9   : > { %v10847_v50 = vmax.f32 %v10815_v10, 0.0  ;;  %v22531_v35 = vpop.f32.mrb[46].mxu0  ;;  %v28088_v37 = vld [vmem:[#allocation2 + $0x81] sm:$0xff] }
 0x7ba   : > { %10880 = vst.msk [vmem:[#allocation2 + $0xb1] sm:$0xff] %vm171_vm1, %v10848_v39  ;;  %v10818_v24 = vadd.f32 %v22531_v35, %v28020_v40  ;;  %v10677_v1 = vpop.f32.mrb[47].mxu0  ;;  %v28082_v31 = vld [vmem:[#allocation2 + $0x79] sm:$0xff] }
 0x7bb   : > { %10879 = vst.msk [vmem:[#allocation2 + $0xa9] sm:$0xff] %vm171_vm1, %v10847_v50  ;;  %v10817_v0 = vadd.f32 %v28020_v40, %v10677_v1  ;;  %22579 = vmatprep.mubr.msk.f32.mxu1 %vm171_vm1, %v28082_v31 }
 0x7bc   : > { %v10850_v54 = vmax.f32 %v10818_v24, 0.0  ;;  %22580 = vmatmul.mubr.msk.f32.gmra.mrb[74].mxu1 %vm171_vm1, %v28088_v37 }
 0x7bd   : > { %v10849_v12 = vmax.f32 %v10817_v0, 0.0  ;;  %v22534_v32 = vpop.f32.mrb[48].mxu0  ;;  %v28100_v52 = vld [vmem:[#allocation2 + $0x99] sm:$0xff] }
 0x7be   : > { %10882 = vst.msk [vmem:[#allocation2 + $0xc9] sm:$0xff] %vm171_vm1, %v10850_v54  ;;  %v10820_v21 = vadd.f32 %v22534_v32, %v28020_v40  ;;  %v10687_v58 = vpop.f32.mrb[49].mxu0  ;;  %v28094_v2 = vld [vmem:[#allocation2 + $0x91] sm:$0xff] }
 0x7bf   : > { %10881 = vst.msk [vmem:[#allocation2 + $0xc1] sm:$0xff] %vm171_vm1, %v10849_v12  ;;  %v10819_v14 = vadd.f32 %v28020_v40, %v10687_v58  ;;  %22582 = vmatprep.mubr.msk.f32.mxu1 %vm171_vm1, %v28094_v2 }
 0x7c0   : > { %v10852_v61 = vmax.f32 %v10820_v21, 0.0  ;;  %22583 = vmatmul.mubr.msk.f32.gmra.mrb[76].mxu1 %vm171_vm1, %v28100_v52 }
 0x7c1   : > { %v10851_v43 = vmax.f32 %v10819_v14, 0.0  ;;  %v22537_v62 = vpop.f32.mrb[50].mxu0  ;;  %v28112_v19 = vld [vmem:[#allocation2 + $0xb1] sm:$0xff] }
 0x7c2   : > { %10884 = vst.msk [vmem:[#allocation2 + $0xe1] sm:$0xff] %vm171_vm1, %v10852_v61  ;;  %v10822_v47 = vadd.f32 %v22537_v62, %v28020_v40  ;;  %v10697_v17 = vpop.f32.mrb[51].mxu0  ;;  %v28106_v42 = vld [vmem:[#allocation2 + $0xa9] sm:$0xff] }
 0x7c3   : > { %10883 = vst.msk [vmem:[#allocation2 + $0xd9] sm:$0xff] %vm171_vm1, %v10851_v43  ;;  %v10821_v15 = vadd.f32 %v28020_v40, %v10697_v17  ;;  %22585 = vmatprep.mubr.msk.f32.mxu1 %vm171_vm1, %v28106_v42 }
 0x7c4   : > { %v10854_v29 = vmax.f32 %v10822_v47, 0.0  ;;  %22586 = vmatmul.mubr.msk.f32.gmra.mrb[78].mxu1 %vm171_vm1, %v28112_v19 }
 0x7c5   : > { %v10853_v38 = vmax.f32 %v10821_v15, 0.0  ;;  %v22540_v26 = vpop.f32.mrb[52].mxu0  ;;  %v28124_v33 = vld [vmem:[#allocation2 + $0xc9] sm:$0xff] }
 0x7c6   : > { %10886 = vst.msk [vmem:[#allocation2 + $0xf9] sm:$0xff] %vm171_vm1, %v10854_v29  ;;  %v10824_v46 = vadd.f32 %v22540_v26, %v28020_v40  ;;  %v10707_v53 = vpop.f32.mrb[53].mxu0  ;;  %v28118_v7 = vld [vmem:[#allocation2 + $0xc1] sm:$0xff] }
 0x7c7   : > { %10885 = vst.msk [vmem:[#allocation2 + $0xf1] sm:$0xff] %vm171_vm1, %v10853_v38  ;;  %v10823_v9 = vadd.f32 %v28020_v40, %v10707_v53  ;;  %22588 = vmatprep.mubr.msk.f32.mxu1 %vm171_vm1, %v28118_v7  ;;  %v10899_v53 = vld [vmem:[#allocation2] sm:$0xff] }
 0x7c8   : > { %v10856_v41 = vmax.f32 %v10824_v46, 0.0  ;;  %22589 = vmatmul.mubr.msk.f32.gmra.mrb[80].mxu1 %vm171_vm1, %v28124_v33 }
 0x7c9   : > { %v10855_v3 = vmax.f32 %v10823_v9, 0.0  ;;  %v22543_v51 = vpop.f32.mrb[54].mxu0  ;;  %v28136_v20 = vld [vmem:[#allocation2 + $0xe1] sm:$0xff] }
 0x7ca   : > { %10888 = vst.msk [vmem:[#allocation2 + $0x111] sm:$0xff] %vm171_vm1, %v10856_v41  ;;  %v10826_v36 = vadd.f32 %v22543_v51, %v28020_v40  ;;  %v10717_v4 = vpop.f32.mrb[55].mxu0  ;;  %v28130_v5 = vld [vmem:[#allocation2 + $0xd9] sm:$0xff]  ;;  %v10900_v51 = vld [vmem:[#allocation2 + $0x8] sm:$0xff] }
 0x7cb   : > { %10887 = vst.msk [vmem:[#allocation2 + $0x109] sm:$0xff] %vm171_vm1, %v10855_v3  ;;  %v10825_v18 = vadd.f32 %v28020_v40, %v10717_v4  ;;  %22591 = vmatprep.mubr.msk.f32.mxu1 %vm171_vm1, %v28130_v5  ;;  %v11647_v41 = vld [vmem:[%s29873_s1 + $0x2b8] sm:$0xff]  ;;  %v11648_v3 = vld [vmem:[%s29873_s1 + $0x2c0] sm:$0xff]  ;;  %v12034_v4 = vld [vmem:[%s29873_s1 + $0x2c8] sm:$0xff] }
 0x7cc   : > { %v10858_v25 = vmax.f32 %v10826_v36, 0.0  ;;  %22592 = vmatmul.mubr.msk.f32.gmra.mrb[82].mxu1 %vm171_vm1, %v28136_v20  ;;  %v23728_v36 = vpack.c.bf16 %v11648_v3, %v11647_v41 }
 0x7cd   : > { %v10857_v44 = vmax.f32 %v10825_v18, 0.0  ;;  %v22546_v49 = vpop.f32.mrb[56].mxu0  ;;  %v28148_v23 = vld [vmem:[#allocation2 + $0xf9] sm:$0xff]  ;;  %v12035_v18 = vld [vmem:[%s29873_s1 + $0x2d0] sm:$0xff] }
 0x7ce   : > { %10890 = vst.msk [vmem:[#allocation2 + $0x129] sm:$0xff] %vm171_vm1, %v10858_v25  ;;  %v10828_v59 = vadd.f32 %v22546_v49, %v28020_v40  ;;  %v10727_v13 = vpop.f32.mrb[57].mxu0  ;;  %v28142_v45 = vld [vmem:[#allocation2 + $0xf1] sm:$0xff]  ;;  %v28227_v49 = vld [vmem:[#allocation2 + $0x20] sm:$0xff] }
 0x7cf   : > { %10889 = vst.msk [vmem:[#allocation2 + $0x121] sm:$0xff] %vm171_vm1, %v10857_v44  ;;  %v10827_v30 = vadd.f32 %v28020_v40, %v10727_v13  ;;  %22594 = vmatprep.mubr.msk.f32.mxu1 %vm171_vm1, %v28142_v45  ;;  %v28220_v25 = vld [vmem:[#allocation2 + $0x18] sm:$0xff]  ;;  %v28225_v44 = vpack.c.bf16 %v12035_v18, %v12034_v4  ;;  %v28240_v13 = vld [vmem:[#allocation2 + $0x48] sm:$0xff]  ;;  %v12037_v18 = vld [vmem:[%s29873_s1 + $0x2e0] sm:$0xff] }
 0x7d0   : > { %v10860_v60 = vmax.f32 %v10828_v59, 0.0  ;;  %22595 = vmatmul.mubr.msk.f32.gmra.mrb[84].mxu1 %vm171_vm1, %v28148_v23  ;;  %v28231_v59 = vld [vmem:[#allocation2 + $0x30] sm:$0xff]  ;;  %v12036_v4 = vld [vmem:[%s29873_s1 + $0x2d8] sm:$0xff] }
 0x7d1   : > { %v10859_v57 = vmax.f32 %v10827_v30, 0.0  ;;  %v22549_v34 = vpop.f32.mrb[58].mxu0  ;;  %v28160_v50 = vld [vmem:[#allocation2 + $0x111] sm:$0xff] }
 0x7d2   : > { %10892 = vst.msk [vmem:[#allocation2 + $0x141] sm:$0xff] %vm171_vm1, %v10860_v60  ;;  %v10830_v48 = vadd.f32 %v22549_v34, %v28020_v40  ;;  %v10737_v6 = vpop.f32.mrb[59].mxu0  ;;  %v28154_v10 = vld [vmem:[#allocation2 + $0x109] sm:$0xff]  ;;  %v28248_v60 = vld [vmem:[#allocation2 + $0x60] sm:$0xff]  ;;  %v28256_v34 = vld [vmem:[#allocation2 + $0x78] sm:$0xff] }
 0x7d3   : > { %10891 = vst.msk [vmem:[#allocation2 + $0x139] sm:$0xff] %vm171_vm1, %v10859_v57  ;;  %v10829_v39 = vadd.f32 %v28020_v40, %v10737_v6  ;;  %22597 = vmatprep.mubr.msk.f32.mxu1 %vm171_vm1, %v28154_v10  ;;  %v28244_v30 = vld [vmem:[#allocation2 + $0x50] sm:$0xff]  ;;  %v28252_v57 = vld [vmem:[#allocation2 + $0x68] sm:$0xff] }
 0x7d4   : > { %v10862_v35 = vmax.f32 %v10830_v48, 0.0  ;;  %22598 = vmatmul.mubr.msk.f32.gmra.mrb[86].mxu1 %vm171_vm1, %v28160_v50  ;;  %v28260_v48 = vld [vmem:[#allocation2 + $0x80] sm:$0xff]  ;;  %v28264_v6 = vld [vmem:[#allocation2 + $0x90] sm:$0xff] }
 0x7d5   : > { %v10861_v24 = vmax.f32 %v10829_v39, 0.0  ;;  %v22552_v1 = vpop.f32.mrb[60].mxu0  ;;  %v28172_v21 = vld [vmem:[#allocation2 + $0x129] sm:$0xff]  ;;  %v28268_v39 = vld [vmem:[#allocation2 + $0x98] sm:$0xff] }
 0x7d6   : > { %10894 = vst.msk [vmem:[#allocation2 + $0x159] sm:$0xff] %vm171_vm1, %v10862_v35  ;;  %v10832_v0 = vadd.f32 %v22552_v1, %v28020_v40  ;;  %v10747_v54 = vpop.f32.mrb[61].mxu0  ;;  %v28166_v12 = vld [vmem:[#allocation2 + $0x121] sm:$0xff] }
 0x7d7   : > { %10893 = vst.msk [vmem:[#allocation2 + $0x151] sm:$0xff] %vm171_vm1, %v10861_v24  ;;  %v10831_v32 = vadd.f32 %v28020_v40, %v10747_v54  ;;  %22600 = vmatprep.mubr.msk.f32.mxu1 %vm171_vm1, %v28166_v12  ;;  %v28272_v35 = vld [vmem:[#allocation2 + $0xa8] sm:$0xff]  ;;  %v28276_v24 = vld [vmem:[#allocation2 + $0xb0] sm:$0xff]  ;;  %v28280_v1 = vld [vmem:[#allocation2 + $0xc0] sm:$0xff] }
 0x7d8   : > { %v10864_v58 = vmax.f32 %v10832_v0, 0.0  ;;  %22601 = vmatmul.mubr.msk.f32.gmra.mrb[88].mxu1 %vm171_vm1, %v28172_v21  ;;  %v28284_v0 = vld [vmem:[#allocation2 + $0xc8] sm:$0xff]  ;;  %v28288_v54 = vld [vmem:[#allocation2 + $0xd8] sm:$0xff] }
 0x7d9   : > { %v10863_v14 = vmax.f32 %v10831_v32, 0.0  ;;  %v22555_v61 = vpop.f32.mrb[62].mxu0  ;;  %v28184_v15 = vld [vmem:[#allocation2 + $0x141] sm:$0xff] }
 0x7da   : > { %10896 = vst.msk [vmem:[#allocation2 + $0x171] sm:$0xff] %vm171_vm1, %v10864_v58  ;;  %v10834_v43 = vadd.f32 %v22555_v61, %v28020_v40  ;;  %v10757_v62 = vpop.f32.mrb[63].mxu0  ;;  %v28178_v47 = vld [vmem:[#allocation2 + $0x139] sm:$0xff]  ;;  %30413 = vst [vmem:[#allocation19_spill] sm:$0xff] %v28184_v15  ;;  %v28296_v58 = vld [vmem:[#allocation2 + $0xf0] sm:$0xff] }
 0x7db   : > { %10895 = vst.msk [vmem:[#allocation2 + $0x169] sm:$0xff] %vm171_vm1, %v10863_v14  ;;  %v10833_v17 = vadd.f32 %v28020_v40, %v10757_v62  ;;  %22603 = vmatprep.mubr.msk.f32.mxu1 %vm171_vm1, %v28178_v47  ;;  %v28292_v32 = vld [vmem:[#allocation2 + $0xe0] sm:$0xff]  ;;  %v28300_v14 = vld [vmem:[#allocation2 + $0xf8] sm:$0xff]  ;;  %v28304_v61 = vld [vmem:[#allocation2 + $0x108] sm:$0xff] }
 0x7dc   : > { %v10866_v29 = vmax.f32 %v10834_v43, 0.0  ;;  %22604 = vmatmul.mubr.msk.f32.gmra.mrb[90].mxu1 %vm171_vm1, %v28184_v15  ;;  %v28308_v43 = vld [vmem:[#allocation2 + $0x110] sm:$0xff]  ;;  %v28312_v62 = vld [vmem:[#allocation2 + $0x120] sm:$0xff] }
 0x7dd   : > { %v10865_v38 = vmax.f32 %v10833_v17, 0.0  ;;  %v28194_v40 = vld [vmem:[#allocation2 + $0x159] sm:$0xff]  ;;  %v28316_v17 = vld [vmem:[#allocation2 + $0x128] sm:$0xff] }
 0x7de   : > { %10898 = vst.msk [vmem:[#allocation2 + $0x189] sm:$0xff] %vm171_vm1, %v10866_v29  ;;  %v28189_v26 = vld [vmem:[#allocation2 + $0x151] sm:$0xff]  ;;  %30415 = vst [vmem:[#allocation20_spill] sm:$0xff] %v28194_v40  ;;  %v28358_v15 = vld [vmem:[#allocation2 + $0x1a] sm:$0xff] }
 0x7df   : > { %30414 = vst [vmem:[#allocation5_spill] sm:$0xff] %v28189_v26  ;;  %10897 = vst.msk [vmem:[#allocation2 + $0x181] sm:$0xff] %vm171_vm1, %v10865_v38  ;;  %22606 = vmatprep.mubr.msk.f32.mxu1 %vm171_vm1, %v28189_v26  ;;  %v28320_v29 = vld [vmem:[#allocation2 + $0x138] sm:$0xff]  ;;  %v28324_v38 = vld [vmem:[#allocation2 + $0x140] sm:$0xff] }
 0x7e0   : > { %22607 = vmatmul.mubr.msk.f32.gmra.mrb[92].mxu1 %vm171_vm1, %v28194_v40  ;;  %v28332_v41 = vld [vmem:[#allocation2 + $0x158] sm:$0xff]  ;;  %v12423_v40 = vld [vmem:[%s29873_s1 + $0x2e8] sm:$0xff]  ;;  %v12424_v26 = vld [vmem:[%s29873_s1 + $0x2f0] sm:$0xff] }
 0x7e1   : > { %v28202_v9 = vld [vmem:[#allocation2 + $0x171] sm:$0xff] }
 0x7e2   : > { %v28198_v46 = vld [vmem:[#allocation2 + $0x169] sm:$0xff]  ;;  %30417 = vst [vmem:[#allocation21_spill] sm:$0xff] %v28202_v9 }
 0x7e3   : > { %30416 = vst [vmem:[#allocation6_spill] sm:$0xff] %v28198_v46  ;;  %22609 = vmatprep.mubr.msk.f32.mxu1 %vm171_vm1, %v28198_v46  ;;  %v28336_v3 = vld [vmem:[#allocation2 + $0x168] sm:$0xff]  ;;  %v23736_v46 = vpack.c.bf16 %v12037_v18, %v12036_v4  ;;  %v28369_v18 = vld [vmem:[#allocation2 + $0x32] sm:$0xff] }
 0x7e4   : > { %22610 = vmatmul.mubr.msk.f32.gmra.mrb[94].mxu1 %vm171_vm1, %v28202_v9  ;;  %v11614_v9 = vld [vmem:[#allocation2 + $0xa] sm:$0xff]  ;;  %v28365_v4 = vld [vmem:[#allocation2 + $0x22] sm:$0xff]  ;;  %30418 = vst [vmem:[#allocation7_spill] sm:$0xff] %v28369_v18 }
 0x7e5   : > { %22620 = vmatprep.mubr.msk.f32.mxu1 %vm171_vm1, %v10899_v53  ;;  %v28328_v53 = vld [vmem:[#allocation2 + $0x150] sm:$0xff] }
 0x7e8   : > { %22621 = vmatmul.mubr.msk.f32.vlgmr.msra.gmra.mrb[64].mxu1 %vm171_vm1, %v10900_v51  ;;  %v11613_v51 = vld [vmem:[#allocation2 + $0x2] sm:$0xff] }
 0x7e9   : > { %23727 = vmatpush3.bf16.msra.mxu1 %v28014_v28  ;;  %22623 = vmatprep.mubr.msk.f32.mxu1 %vm171_vm1, %v28220_v25  ;;  %v28236_v28 = vld [vmem:[#allocation2 + $0x38] sm:$0xff] }
 0x7ea   : > { %23729 = vmatprep.subr.bf16.mxu1 %v23728_v36 }
 0x7ec   : > { %22624 = vmatmul.mubr.msk.f32.gmra.mrb[66].mxu1 %vm171_vm1, %v28227_v49 }
 0x7ed   : > { %22626 = vmatprep.mubr.msk.f32.mxu1 %vm171_vm1, %v28231_v59  ;;  %23731 = vmatpush3.bf16.msra.mxu1 %v23728_v36  ;;  %v28340_v36 = vld [vmem:[#allocation2 + $0x170] sm:$0xff] }
 0x7ee   : > { %23733 = vmatprep.subr.bf16.mxu1 %v28225_v44 }
 0x7f0   : > { %22627 = vmatmul.mubr.msk.f32.gmra.mrb[68].mxu1 %vm171_vm1, %v28236_v28 }
 0x7f1   : > { %22629 = vmatprep.mubr.msk.f32.mxu1 %vm171_vm1, %v28240_v13 }
 0x7f4   : > { %22630 = vmatmul.mubr.msk.f32.gmra.mrb[70].mxu1 %vm171_vm1, %v28244_v30 }
 0x7f5   : > { %22632 = vmatprep.mubr.msk.f32.mxu1 %vm171_vm1, %v28248_v60 }
 0x7f8   : > { %22633 = vmatmul.mubr.msk.f32.gmra.mrb[72].mxu1 %vm171_vm1, %v28252_v57 }
 0x7f9   : > { %22635 = vmatprep.mubr.msk.f32.mxu1 %vm171_vm1, %v28256_v34 }
 0x7fc   : > { %22636 = vmatmul.mubr.msk.f32.gmra.mrb[74].mxu1 %vm171_vm1, %v28260_v48 }
 0x7fd   : > { %22638 = vmatprep.mubr.msk.f32.mxu1 %vm171_vm1, %v28264_v6 }
 0x800   : > { %22639 = vmatmul.mubr.msk.f32.gmra.mrb[76].mxu1 %vm171_vm1, %v28268_v39 }
 0x801   : > { %22641 = vmatprep.mubr.msk.f32.mxu1 %vm171_vm1, %v28272_v35 }
 0x804   : > { %22642 = vmatmul.mubr.msk.f32.gmra.mrb[78].mxu1 %vm171_vm1, %v28276_v24 }
 0x805   : > { %22644 = vmatprep.mubr.msk.f32.mxu1 %vm171_vm1, %v28280_v1 }
 0x808   : > { %22645 = vmatmul.mubr.msk.f32.gmra.mrb[80].mxu1 %vm171_vm1, %v28284_v0 }
 0x809   : > { %22647 = vmatprep.mubr.msk.f32.mxu1 %vm171_vm1, %v28288_v54 }
 0x80c   : > { %22648 = vmatmul.mubr.msk.f32.gmra.mrb[82].mxu1 %vm171_vm1, %v28292_v32 }
 0x80d   : > { %22650 = vmatprep.mubr.msk.f32.mxu1 %vm171_vm1, %v28296_v58 }
 0x810   : > { %22651 = vmatmul.mubr.msk.f32.gmra.mrb[84].mxu1 %vm171_vm1, %v28300_v14 }
 0x811   : > { %22653 = vmatprep.mubr.msk.f32.mxu1 %vm171_vm1, %v28304_v61 }
 0x814   : > { %22654 = vmatmul.mubr.msk.f32.gmra.mrb[86].mxu1 %vm171_vm1, %v28308_v43 }
 0x815   : > { %22656 = vmatprep.mubr.msk.f32.mxu1 %vm171_vm1, %v28312_v62 }
 0x818   : > { %22657 = vmatmul.mubr.msk.f32.gmra.mrb[88].mxu1 %vm171_vm1, %v28316_v17 }
 0x819   : > { %22659 = vmatprep.mubr.msk.f32.mxu1 %vm171_vm1, %v28320_v29 }
 0x81c   : > { %22660 = vmatmul.mubr.msk.f32.gmra.mrb[90].mxu1 %vm171_vm1, %v28324_v38 }
 0x81d   : > { %22662 = vmatprep.mubr.msk.f32.mxu1 %vm171_vm1, %v28328_v53 }
 0x820   : > { %22663 = vmatmul.mubr.msk.f32.gmra.mrb[92].mxu1 %vm171_vm1, %v28332_v41 }
 0x821   : > { %22665 = vmatprep.mubr.msk.f32.mxu1 %vm171_vm1, %v28336_v3 }
 0x824   : > { %22666 = vmatmul.mubr.msk.f32.gmra.mrb[94].mxu1 %vm171_vm1, %v28340_v36 }
 0x825   : > { %22676 = vmatprep.mubr.msk.f32.mxu1 %vm171_vm1, %v11613_v51  ;;  %v28363_v51 = vpack.c.bf16 %v12424_v26, %v12423_v40  ;;  %v28378_v26 = vld [vmem:[#allocation2 + $0x4a] sm:$0xff]  ;;  %v28382_v40 = vld [vmem:[#allocation2 + $0x52] sm:$0xff] }
 0x826   : > { %30420 = vst [vmem:[#allocation8_spill] sm:$0xff] %v28378_v26  ;;  %30421 = vst [vmem:[#allocation23_spill] sm:$0xff] %v28382_v40 }
 0x828   : > { %22677 = vmatmul.mubr.msk.f32.vlgmr.msra.gmra.mrb[64].mxu1 %vm171_vm1, %v11614_v9  ;;  %v28374_v9 = vld [vmem:[#allocation2 + $0x3a] sm:$0xff] }
 0x829   : > { %23735 = vmatpush3.bf16.msra.mxu1 %v28225_v44  ;;  %22679 = vmatprep.mubr.msk.f32.mxu1 %vm171_vm1, %v28358_v15  ;;  %30419 = vst [vmem:[#allocation22_spill] sm:$0xff] %v28374_v9  ;;  %v28386_v44 = vld [vmem:[#allocation2 + $0x62] sm:$0xff] }
 0x82a   : > { %23737 = vmatprep.subr.bf16.mxu1 %v23736_v46  ;;  %30422 = vst [vmem:[#allocation9_spill] sm:$0xff] %v28386_v44 }
 0x82c   : > { %22680 = vmatmul.mubr.msk.f32.gmra.mrb[66].mxu1 %vm171_vm1, %v28365_v4 }
 0x82d   : > { %22682 = vmatprep.mubr.msk.f32.mxu1 %vm171_vm1, %v28369_v18  ;;  %23739 = vmatpush3.bf16.msra.mxu1 %v23736_v46  ;;  %v28390_v46 = vld [vmem:[#allocation2 + $0x6a] sm:$0xff] }
 0x82e   : > { %23741 = vmatprep.subr.bf16.mxu1 %v28363_v51  ;;  %30423 = vst [vmem:[#allocation24_spill] sm:$0xff] %v28390_v46  ;;  %v12813_v18 = vld [vmem:[%s29873_s1 + $0x310] sm:$0xff] }
 0x830   : > { %22683 = vmatmul.mubr.msk.f32.gmra.mrb[68].mxu1 %vm171_vm1, %v28374_v9  ;;  %v28394_v9 = vld [vmem:[#allocation2 + $0x7a] sm:$0xff] }
 0x831   : > { %22685 = vmatprep.mubr.msk.f32.mxu1 %vm171_vm1, %v28378_v26  ;;  %30424 = vst [vmem:[#allocation10_spill] sm:$0xff] %v28394_v9  ;;  %v28398_v26 = vld [vmem:[#allocation2 + $0x82] sm:$0xff] }
 0x832   : > { %30425 = vst [vmem:[#allocation25_spill] sm:$0xff] %v28398_v26 }
 0x834   : > { %22686 = vmatmul.mubr.msk.f32.gmra.mrb[70].mxu1 %vm171_vm1, %v28382_v40  ;;  %v28402_v40 = vld [vmem:[#allocation2 + $0x92] sm:$0xff] }
 0x835   : > { %22688 = vmatprep.mubr.msk.f32.mxu1 %vm171_vm1, %v28386_v44  ;;  %30426 = vst [vmem:[#allocation11_spill] sm:$0xff] %v28402_v40  ;;  %v28406_v44 = vld [vmem:[#allocation2 + $0x9a] sm:$0xff] }
 0x836   : > { %30427 = vst [vmem:[#allocation26_spill] sm:$0xff] %v28406_v44 }
 0x838   : > { %22689 = vmatmul.mubr.msk.f32.gmra.mrb[72].mxu1 %vm171_vm1, %v28390_v46  ;;  %v28410_v46 = vld [vmem:[#allocation2 + $0xaa] sm:$0xff] }
 0x839   : > { %22691 = vmatprep.mubr.msk.f32.mxu1 %vm171_vm1, %v28394_v9  ;;  %30428 = vst [vmem:[#allocation12_spill] sm:$0xff] %v28410_v46  ;;  %v28414_v9 = vld [vmem:[#allocation2 + $0xb2] sm:$0xff] }
 0x83a   : > { %30429 = vst [vmem:[#allocation27_spill] sm:$0xff] %v28414_v9 }
 0x83c   : > { %22692 = vmatmul.mubr.msk.f32.gmra.mrb[74].mxu1 %vm171_vm1, %v28398_v26  ;;  %v28418_v26 = vld [vmem:[#allocation2 + $0xc2] sm:$0xff] }
 0x83d   : > { %22694 = vmatprep.mubr.msk.f32.mxu1 %vm171_vm1, %v28402_v40  ;;  %30430 = vst [vmem:[#allocation16_spill] sm:$0xff] %v28418_v26  ;;  %v28422_v40 = vld [vmem:[#allocation2 + $0xca] sm:$0xff] }
 0x83e   : > { %30431 = vst [vmem:[#allocation17_spill] sm:$0xff] %v28422_v40 }
 0x840   : > { %22695 = vmatmul.mubr.msk.f32.gmra.mrb[76].mxu1 %vm171_vm1, %v28406_v44  ;;  %v28426_v44 = vld [vmem:[#allocation2 + $0xda] sm:$0xff] }
 0x841   : > { %22697 = vmatprep.mubr.msk.f32.mxu1 %vm171_vm1, %v28410_v46  ;;  %30432 = vst [vmem:[#allocation13_spill] sm:$0xff] %v28426_v44  ;;  %v28430_v46 = vld [vmem:[#allocation2 + $0xe2] sm:$0xff] }
 0x842   : > { %30433 = vst [vmem:[#allocation30_spill] sm:$0xff] %v28430_v46 }
 0x844   : > { %22698 = vmatmul.mubr.msk.f32.gmra.mrb[78].mxu1 %vm171_vm1, %v28414_v9  ;;  %v28434_v9 = vld [vmem:[#allocation2 + $0xf2] sm:$0xff] }
 0x845   : > { %22700 = vmatprep.mubr.msk.f32.mxu1 %vm171_vm1, %v28418_v26  ;;  %30434 = vst [vmem:[#allocation33_spill] sm:$0xff] %v28434_v9  ;;  %v28438_v26 = vld [vmem:[#allocation2 + $0xfa] sm:$0xff] }
 0x846   : > { %30435 = vst [vmem:[#allocation28_spill] sm:$0xff] %v28438_v26 }
 0x848   : > { %22701 = vmatmul.mubr.msk.f32.gmra.mrb[80].mxu1 %vm171_vm1, %v28422_v40  ;;  %v28442_v40 = vld [vmem:[#allocation2 + $0x10a] sm:$0xff] }
 0x849   : > { %22703 = vmatprep.mubr.msk.f32.mxu1 %vm171_vm1, %v28426_v44  ;;  %30436 = vst [vmem:[#allocation14_spill] sm:$0xff] %v28442_v40  ;;  %v28446_v44 = vld [vmem:[#allocation2 + $0x112] sm:$0xff] }
 0x84a   : > { %30437 = vst [vmem:[#allocation29_spill] sm:$0xff] %v28446_v44 }
 0x84c   : > { %22704 = vmatmul.mubr.msk.f32.gmra.mrb[82].mxu1 %vm171_vm1, %v28430_v46  ;;  %v28450_v46 = vld [vmem:[#allocation2 + $0x122] sm:$0xff] }
 0x84d   : > { %22706 = vmatprep.mubr.msk.f32.mxu1 %vm171_vm1, %v28434_v9  ;;  %30438 = vst [vmem:[#allocation15_spill] sm:$0xff] %v28450_v46  ;;  %v28454_v9 = vld [vmem:[#allocation2 + $0x12a] sm:$0xff] }
 0x84e   : > { %30439 = vst [vmem:[#allocation32_spill] sm:$0xff] %v28454_v9 }
 0x850   : > { %22707 = vmatmul.mubr.msk.f32.gmra.mrb[84].mxu1 %vm171_vm1, %v28438_v26  ;;  %v28458_v26 = vld [vmem:[#allocation2 + $0x13a] sm:$0xff] }
 0x851   : > { %22709 = vmatprep.mubr.msk.f32.mxu1 %vm171_vm1, %v28442_v40  ;;  %30440 = vst [vmem:[#allocation34_spill] sm:$0xff] %v28458_v26  ;;  %v28462_v40 = vld [vmem:[#allocation2 + $0x142] sm:$0xff] }
 0x852   : > { %30441 = vst [vmem:[#allocation35_spill] sm:$0xff] %v28462_v40 }
 0x854   : > { %22710 = vmatmul.mubr.msk.f32.gmra.mrb[86].mxu1 %vm171_vm1, %v28446_v44  ;;  %v28466_v44 = vld [vmem:[#allocation2 + $0x152] sm:$0xff] }
 0x855   : > { %22712 = vmatprep.mubr.msk.f32.mxu1 %vm171_vm1, %v28450_v46  ;;  %30442 = vst [vmem:[#allocation31_spill] sm:$0xff] %v28466_v44  ;;  %v28470_v46 = vld [vmem:[#allocation2 + $0x15a] sm:$0xff] }
 0x856   : > { %30443 = vst [vmem:[#allocation3_spill] sm:$0xff] %v28470_v46 }
 0x858   : > { %22713 = vmatmul.mubr.msk.f32.gmra.mrb[88].mxu1 %vm171_vm1, %v28454_v9  ;;  %v28474_v9 = vld [vmem:[#allocation2 + $0x16a] sm:$0xff] }
 0x859   : > { %22715 = vmatprep.mubr.msk.f32.mxu1 %vm171_vm1, %v28458_v26  ;;  %30444 = vst [vmem:[#allocation18_spill] sm:$0xff] %v28474_v9  ;;  %v28478_v26 = vld [vmem:[#allocation2 + $0x172] sm:$0xff] }
 0x85a   : > { %30445 = vst [vmem:[#allocation4_spill] sm:$0xff] %v28478_v26 }
 0x85c   : > { %22716 = vmatmul.mubr.msk.f32.gmra.mrb[90].mxu1 %vm171_vm1, %v28462_v40  ;;  %v12425_v40 = vld [vmem:[%s29873_s1 + $0x2f8] sm:$0xff] }
 0x85d   : > { %22718 = vmatprep.mubr.msk.f32.mxu1 %vm171_vm1, %v28466_v44  ;;  %v12426_v44 = vld [vmem:[%s29873_s1 + $0x300] sm:$0xff] }
 0x860   : > { %22719 = vmatmul.mubr.msk.f32.gmra.mrb[92].mxu1 %vm171_vm1, %v28470_v46  ;;  %v23744_v46 = vpack.c.bf16 %v12426_v44, %v12425_v40  ;;  %v13201_v40 = vld [vmem:[%s29873_s1 + $0x328] sm:$0xff]  ;;  %v13202_v44 = vld [vmem:[%s29873_s1 + $0x330] sm:$0xff] }
 0x861   : > { %22721 = vmatprep.mubr.msk.f32.mxu1 %vm171_vm1, %v28474_v9  ;;  %v12812_v9 = vld [vmem:[%s29873_s1 + $0x308] sm:$0xff] }
 0x864   : > { %22722 = vmatmul.mubr.msk.f32.gmra.mrb[94].mxu1 %vm171_vm1, %v28478_v26  ;;  %v23748_v26 = vpack.c.bf16 %v12813_v18, %v12812_v9  ;;  %v12815_v18 = vld [vmem:[%s29873_s1 + $0x320] sm:$0xff] }
 0x865   : > { %22732 = vmatprep.mubr.msk.f32.mxu1 %vm171_vm1, %v28220_v25  ;;  %v28555_v25 = vld [vmem:[#allocation2 + $0x180] sm:$0xff] }
 0x868   : > { %22733 = vmatmul.mubr.msk.f32.vlgmr.msra.gmra.mrb[64].mxu1 %vm171_vm1, %v28227_v49  ;;  %v28559_v49 = vld [vmem:[#allocation2 + $0x188] sm:$0xff] }
 0x869   : > { %23743 = vmatpush3.bf16.msra.mxu1 %v28363_v51  ;;  %22735 = vmatprep.mubr.msk.f32.mxu1 %vm171_vm1, %v28231_v59  ;;  %v12814_v51 = vld [vmem:[%s29873_s1 + $0x318] sm:$0xff] }
 0x86a   : > { %23745 = vmatprep.subr.bf16.mxu1 %v23744_v46  ;;  %v23752_v9 = vpack.c.bf16 %v12815_v18, %v12814_v51  ;;  %v30465_v51 = vld [vmem:[#allocation13_spill] sm:$0xff]  ;;  %v30466_v18 = vld [vmem:[#allocation30_spill] sm:$0xff] }
 0x86c   : > { %22736 = vmatmul.mubr.msk.f32.gmra.mrb[66].mxu1 %vm171_vm1, %v28236_v28 }
 0x86d   : > { %22738 = vmatprep.mubr.msk.f32.mxu1 %vm171_vm1, %v28240_v13  ;;  %23747 = vmatpush3.bf16.msra.mxu1 %v23744_v46  ;;  %v23756_v46 = vpack.c.bf16 %v13202_v44, %v13201_v40  ;;  %v30468_v40 = vld [vmem:[#allocation28_spill] sm:$0xff]  ;;  %v30469_v44 = vld [vmem:[#allocation14_spill] sm:$0xff] }
 0x86e   : > { %23749 = vmatprep.subr.bf16.mxu1 %v23748_v26 }
 0x870   : > { %22739 = vmatmul.mubr.msk.f32.gmra.mrb[68].mxu1 %vm171_vm1, %v28244_v30 }
 0x871   : > { %22741 = vmatprep.mubr.msk.f32.mxu1 %vm171_vm1, %v28248_v60 }
 0x874   : > { %22742 = vmatmul.mubr.msk.f32.gmra.mrb[70].mxu1 %vm171_vm1, %v28252_v57 }
 0x875   : > { %22744 = vmatprep.mubr.msk.f32.mxu1 %vm171_vm1, %v28256_v34 }
 0x878   : > { %22745 = vmatmul.mubr.msk.f32.gmra.mrb[72].mxu1 %vm171_vm1, %v28260_v48 }
 0x879   : > { %22747 = vmatprep.mubr.msk.f32.mxu1 %vm171_vm1, %v28264_v6 }
 0x87c   : > { %22748 = vmatmul.mubr.msk.f32.gmra.mrb[74].mxu1 %vm171_vm1, %v28268_v39 }
 0x87d   : > { %22750 = vmatprep.mubr.msk.f32.mxu1 %vm171_vm1, %v28272_v35 }
 0x880   : > { %22751 = vmatmul.mubr.msk.f32.gmra.mrb[76].mxu1 %vm171_vm1, %v28276_v24 }
 0x881   : > { %22753 = vmatprep.mubr.msk.f32.mxu1 %vm171_vm1, %v28280_v1 }
 0x884   : > { %22754 = vmatmul.mubr.msk.f32.gmra.mrb[78].mxu1 %vm171_vm1, %v28284_v0 }
 0x885   : > { %22756 = vmatprep.mubr.msk.f32.mxu1 %vm171_vm1, %v28288_v54 }
 0x888   : > { %22757 = vmatmul.mubr.msk.f32.gmra.mrb[80].mxu1 %vm171_vm1, %v28292_v32 }
 0x889   : > { %22759 = vmatprep.mubr.msk.f32.mxu1 %vm171_vm1, %v28296_v58 }
 0x88c   : > { %22760 = vmatmul.mubr.msk.f32.gmra.mrb[82].mxu1 %vm171_vm1, %v28300_v14 }
 0x88d   : > { %22762 = vmatprep.mubr.msk.f32.mxu1 %vm171_vm1, %v28304_v61 }
 0x890   : > { %22763 = vmatmul.mubr.msk.f32.gmra.mrb[84].mxu1 %vm171_vm1, %v28308_v43 }
 0x891   : > { %22765 = vmatprep.mubr.msk.f32.mxu1 %vm171_vm1, %v28312_v62 }
 0x894   : > { %22766 = vmatmul.mubr.msk.f32.gmra.mrb[86].mxu1 %vm171_vm1, %v28316_v17 }
 0x895   : > { %22768 = vmatprep.mubr.msk.f32.mxu1 %vm171_vm1, %v28320_v29 }
 0x898   : > { %22769 = vmatmul.mubr.msk.f32.gmra.mrb[88].mxu1 %vm171_vm1, %v28324_v38 }
 0x899   : > { %22771 = vmatprep.mubr.msk.f32.mxu1 %vm171_vm1, %v28328_v53 }
 0x89c   : > { %22772 = vmatmul.mubr.msk.f32.gmra.mrb[90].mxu1 %vm171_vm1, %v28332_v41 }
 0x89d   : > { %22774 = vmatprep.mubr.msk.f32.mxu1 %vm171_vm1, %v28336_v3 }
 0x8a0   : > { %22775 = vmatmul.mubr.msk.f32.gmra.mrb[92].mxu1 %vm171_vm1, %v28340_v36 }
 0x8a1   : > { %22777 = vmatprep.mubr.msk.f32.mxu1 %vm171_vm1, %v28555_v25 }
 0x8a4   : > { %22778 = vmatmul.mubr.msk.f32.gmra.mrb[94].mxu1 %vm171_vm1, %v28559_v49 }
 0x8a5   : > { %22788 = vmatprep.mubr.msk.f32.mxu1 %vm171_vm1, %v28034_v16  ;;  %v30446_v16 = vld [vmem:[#allocation19_spill] sm:$0xff] }
 0x8a8   : > { %22789 = vmatmul.mubr.msk.f32.vlgmr.msra.gmra.mrb[64].mxu1 %vm171_vm1, %v28040_v56  ;;  %v30447_v56 = vld [vmem:[#allocation5_spill] sm:$0xff] }
 0x8a9   : > { %23751 = vmatpush3.bf16.msra.mxu1 %v23748_v26  ;;  %22791 = vmatprep.mubr.msk.f32.mxu1 %vm171_vm1, %v28046_v8  ;;  %v30448_v8 = vld [vmem:[#allocation20_spill] sm:$0xff]  ;;  %v30464_v26 = vld [vmem:[#allocation17_spill] sm:$0xff] }
 0x8aa   : > { %23753 = vmatprep.subr.bf16.mxu1 %v23752_v9 }
 0x8ac   : > { %22792 = vmatmul.mubr.msk.f32.gmra.mrb[66].mxu1 %vm171_vm1, %v28052_v55  ;;  %v30449_v55 = vld [vmem:[#allocation6_spill] sm:$0xff] }
 0x8ad   : > { %22794 = vmatprep.mubr.msk.f32.mxu1 %vm171_vm1, %v28058_v22  ;;  %23755 = vmatpush3.bf16.msra.mxu1 %v23752_v9  ;;  %v30450_v22 = vld [vmem:[#allocation21_spill] sm:$0xff] }
 0x8ae   : > { %23757 = vmatprep.subr.bf16.mxu1 %v23756_v46  ;;  %v30467_v9 = vld [vmem:[#allocation33_spill] sm:$0xff] }
 0x8b0   : > { %22795 = vmatmul.mubr.msk.f32.gmra.mrb[68].mxu1 %vm171_vm1, %v28064_v63  ;;  %v28635_v63 = vld [vmem:[#allocation2 + $0x181] sm:$0xff] }
 0x8b1   : > { %22797 = vmatprep.mubr.msk.f32.mxu1 %vm171_vm1, %v28070_v11  ;;  %v28639_v11 = vld [vmem:[#allocation2 + $0x189] sm:$0xff] }
 0x8b4   : > { %22798 = vmatmul.mubr.msk.f32.gmra.mrb[70].mxu1 %vm171_vm1, %v28076_v27  ;;  %v13203_v27 = vld [vmem:[%s29873_s1 + $0x338] sm:$0xff] }
 0x8b5   : > { %22800 = vmatprep.mubr.msk.f32.mxu1 %vm171_vm1, %v28082_v31  ;;  %v13204_v31 = vld [vmem:[%s29873_s1 + $0x340] sm:$0xff] }
 0x8b8   : > { %22801 = vmatmul.mubr.msk.f32.gmra.mrb[72].mxu1 %vm171_vm1, %v28088_v37  ;;  %v23760_v37 = vpack.c.bf16 %v13204_v31, %v13203_v27  ;;  %v30471_v27 = vld [vmem:[#allocation15_spill] sm:$0xff]  ;;  %v30472_v31 = vld [vmem:[#allocation32_spill] sm:$0xff] }
 0x8b9   : > { %22803 = vmatprep.mubr.msk.f32.mxu1 %vm171_vm1, %v28094_v2  ;;  %v13590_v2 = vld [vmem:[%s29873_s1 + $0x348] sm:$0xff] }
 0x8bc   : > { %22804 = vmatmul.mubr.msk.f32.gmra.mrb[74].mxu1 %vm171_vm1, %v28100_v52  ;;  %v13591_v52 = vld [vmem:[%s29873_s1 + $0x350] sm:$0xff] }
 0x8bd   : > { %22806 = vmatprep.mubr.msk.f32.mxu1 %vm171_vm1, %v28106_v42  ;;  %v30451_v42 = vld [vmem:[#allocation7_spill] sm:$0xff] }
 0x8c0   : > { %22807 = vmatmul.mubr.msk.f32.gmra.mrb[76].mxu1 %vm171_vm1, %v28112_v19  ;;  %v23764_v19 = vpack.c.bf16 %v13591_v52, %v13590_v2  ;;  %v30474_v2 = vld [vmem:[#allocation35_spill] sm:$0xff] }
 0x8c1   : > { %22809 = vmatprep.mubr.msk.f32.mxu1 %vm171_vm1, %v28118_v7  ;;  %v30452_v7 = vld [vmem:[#allocation22_spill] sm:$0xff]  ;;  %v30475_v52 = vld [vmem:[#allocation31_spill] sm:$0xff] }
 0x8c4   : > { %22810 = vmatmul.mubr.msk.f32.gmra.mrb[78].mxu1 %vm171_vm1, %v28124_v33  ;;  %v30453_v33 = vld [vmem:[#allocation8_spill] sm:$0xff] }
 0x8c5   : > { %22812 = vmatprep.mubr.msk.f32.mxu1 %vm171_vm1, %v28130_v5  ;;  %v30454_v5 = vld [vmem:[#allocation23_spill] sm:$0xff] }
 0x8c8   : > { %22813 = vmatmul.mubr.msk.f32.gmra.mrb[80].mxu1 %vm171_vm1, %v28136_v20  ;;  %v30455_v20 = vld [vmem:[#allocation9_spill] sm:$0xff] }
 0x8c9   : > { %22815 = vmatprep.mubr.msk.f32.mxu1 %vm171_vm1, %v28142_v45  ;;  %v30456_v45 = vld [vmem:[#allocation24_spill] sm:$0xff] }
 0x8cc   : > { %22816 = vmatmul.mubr.msk.f32.gmra.mrb[82].mxu1 %vm171_vm1, %v28148_v23  ;;  %v30457_v23 = vld [vmem:[#allocation10_spill] sm:$0xff] }
 0x8cd   : > { %22818 = vmatprep.mubr.msk.f32.mxu1 %vm171_vm1, %v28154_v10  ;;  %v30458_v10 = vld [vmem:[#allocation25_spill] sm:$0xff] }
 0x8d0   : > { %22819 = vmatmul.mubr.msk.f32.gmra.mrb[84].mxu1 %vm171_vm1, %v28160_v50  ;;  %v30459_v50 = vld [vmem:[#allocation11_spill] sm:$0xff] }
 0x8d1   : > { %22821 = vmatprep.mubr.msk.f32.mxu1 %vm171_vm1, %v28166_v12  ;;  %v30460_v12 = vld [vmem:[#allocation26_spill] sm:$0xff] }
 0x8d4   : > { %22822 = vmatmul.mubr.msk.f32.gmra.mrb[86].mxu1 %vm171_vm1, %v28172_v21  ;;  %v30461_v21 = vld [vmem:[#allocation12_spill] sm:$0xff] }
 0x8d5   : > { %22824 = vmatprep.mubr.msk.f32.mxu1 %vm171_vm1, %v28178_v47 }
 0x8d8   : > { %22825 = vmatmul.mubr.msk.f32.gmra.mrb[88].mxu1 %vm171_vm1, %v30446_v16 }
 0x8d9   : > { %22827 = vmatprep.mubr.msk.f32.mxu1 %vm171_vm1, %v30447_v56 }
 0x8dc   : > { %22828 = vmatmul.mubr.msk.f32.gmra.mrb[90].mxu1 %vm171_vm1, %v30448_v8 }
 0x8dd   : > { %22830 = vmatprep.mubr.msk.f32.mxu1 %vm171_vm1, %v30449_v55 }
 0x8e0   : > { %22831 = vmatmul.mubr.msk.f32.gmra.mrb[92].mxu1 %vm171_vm1, %v30450_v22 }
 0x8e1   : > { %22833 = vmatprep.mubr.msk.f32.mxu1 %vm171_vm1, %v28635_v63 }
 0x8e4   : > { %22834 = vmatmul.mubr.msk.f32.gmra.mrb[94].mxu1 %vm171_vm1, %v28639_v11 }
 0x8e5   : > { %22844 = vmatprep.mubr.msk.f32.mxu1 %vm171_vm1, %v28358_v15  ;;  %v30462_v15 = vld [vmem:[#allocation27_spill] sm:$0xff] }
 0x8e8   : > { %22845 = vmatmul.mubr.msk.f32.vlgmr.msra.gmra.mrb[64].mxu1 %vm171_vm1, %v28365_v4  ;;  %v30463_v4 = vld [vmem:[#allocation16_spill] sm:$0xff] }
 0x8e9   : > { %23759 = vmatpush3.bf16.msra.mxu1 %v23756_v46  ;;  %22847 = vmatprep.mubr.msk.f32.mxu1 %vm171_vm1, %v30451_v42  ;;  %v30470_v46 = vld [vmem:[#allocation29_spill] sm:$0xff] }
 0x8ea   : > { %23761 = vmatprep.subr.bf16.mxu1 %v23760_v37 }
 0x8ec   : > { %22848 = vmatmul.mubr.msk.f32.gmra.mrb[66].mxu1 %vm171_vm1, %v30452_v7 }
 0x8ed   : > { %22850 = vmatprep.mubr.msk.f32.mxu1 %vm171_vm1, %v30453_v33  ;;  %23763 = vmatpush3.bf16.msra.mxu1 %v23760_v37  ;;  %v30473_v37 = vld [vmem:[#allocation34_spill] sm:$0xff] }
 0x8ee   : > { %23765 = vmatprep.subr.bf16.mxu1 %v23764_v19 }
 0x8f0   : > { %22851 = vmatmul.mubr.msk.f32.gmra.mrb[68].mxu1 %vm171_vm1, %v30454_v5 }
 0x8f1   : > { %22853 = vmatprep.mubr.msk.f32.mxu1 %vm171_vm1, %v30455_v20 }
 0x8f4   : > { %22854 = vmatmul.mubr.msk.f32.gmra.mrb[70].mxu1 %vm171_vm1, %v30456_v45 }
 0x8f5   : > { %22856 = vmatprep.mubr.msk.f32.mxu1 %vm171_vm1, %v30457_v23 }
 0x8f8   : > { %22857 = vmatmul.mubr.msk.f32.gmra.mrb[72].mxu1 %vm171_vm1, %v30458_v10 }
 0x8f9   : > { %22859 = vmatprep.mubr.msk.f32.mxu1 %vm171_vm1, %v30459_v50 }
 0x8fc   : > { %22860 = vmatmul.mubr.msk.f32.gmra.mrb[74].mxu1 %vm171_vm1, %v30460_v12 }
 0x8fd   : > { %22862 = vmatprep.mubr.msk.f32.mxu1 %vm171_vm1, %v30461_v21 }
 0x900   : > { %22863 = vmatmul.mubr.msk.f32.gmra.mrb[76].mxu1 %vm171_vm1, %v30462_v15 }
 0x901   : > { %22865 = vmatprep.mubr.msk.f32.mxu1 %vm171_vm1, %v30463_v4 }
 0x904   : > { %22866 = vmatmul.mubr.msk.f32.gmra.mrb[78].mxu1 %vm171_vm1, %v30464_v26 }
 0x905   : > { %22868 = vmatprep.mubr.msk.f32.mxu1 %vm171_vm1, %v30465_v51 }
 0x908   : > { %22869 = vmatmul.mubr.msk.f32.gmra.mrb[80].mxu1 %vm171_vm1, %v30466_v18 }
 0x909   : > { %22871 = vmatprep.mubr.msk.f32.mxu1 %vm171_vm1, %v30467_v9 }
 0x90c   : > { %22872 = vmatmul.mubr.msk.f32.gmra.mrb[82].mxu1 %vm171_vm1, %v30468_v40  ;;  %v30476_v40 = vld [vmem:[#allocation3_spill] sm:$0xff] }
 0x90d   : > { %22874 = vmatprep.mubr.msk.f32.mxu1 %vm171_vm1, %v30469_v44  ;;  %v30477_v44 = vld [vmem:[#allocation18_spill] sm:$0xff] }
 0x910   : > { %22875 = vmatmul.mubr.msk.f32.gmra.mrb[84].mxu1 %vm171_vm1, %v30470_v46  ;;  %v30478_v46 = vld [vmem:[#allocation4_spill] sm:$0xff] }
 0x911   : > { %22877 = vmatprep.mubr.msk.f32.mxu1 %vm171_vm1, %v30471_v27  ;;  %v28715_v27 = vld [vmem:[#allocation2 + $0x182] sm:$0xff] }
 0x912   : > { %30479 = vst [vmem:[#allocation19_spill] sm:$0xff] %v28715_v27 }
 0x914   : > { %22878 = vmatmul.mubr.msk.f32.gmra.mrb[86].mxu1 %vm171_vm1, %v30472_v31 }
 0x915   : > { %22880 = vmatprep.mubr.msk.f32.mxu1 %vm171_vm1, %v30473_v37  ;;  %v28719_v37 = vld [vmem:[#allocation2 + $0x18a] sm:$0xff] }
 0x916   : > { %30480 = vst [vmem:[#allocation5_spill] sm:$0xff] %v28719_v37 }
 0x918   : > { %22881 = vmatmul.mubr.msk.f32.gmra.mrb[88].mxu1 %vm171_vm1, %v30474_v2 }
 0x919   : > { %22883 = vmatprep.mubr.msk.f32.mxu1 %vm171_vm1, %v30475_v52  ;;  %v13592_v52 = vld [vmem:[%s29873_s1 + $0x358] sm:$0xff] }
 0x91c   : > { %22884 = vmatmul.mubr.msk.f32.gmra.mrb[90].mxu1 %vm171_vm1, %v30476_v40  ;;  %v13593_v40 = vld [vmem:[%s29873_s1 + $0x360] sm:$0xff] }
 0x91d   : > { %22886 = vmatprep.mubr.msk.f32.mxu1 %vm171_vm1, %v30477_v44  ;;  %v13980_v44 = vld [vmem:[%s29873_s1 + $0x370] sm:$0xff] }
 0x920   : > { %22887 = vmatmul.mubr.msk.f32.gmra.mrb[92].mxu1 %vm171_vm1, %v30478_v46  ;;  %v23768_v46 = vpack.c.bf16 %v13593_v40, %v13592_v52  ;;  %v13578_v40 = vld [vmem:[#allocation2 + $0x121] sm:$0xff] }
 0x921   : > { %22889 = vmatprep.mubr.msk.f32.mxu1 %vm171_vm1, %v28715_v27  ;;  %v13979_v27 = vld [vmem:[%s29873_s1 + $0x368] sm:$0xff] }
 0x924   : > { %22890 = vmatmul.mubr.msk.f32.gmra.mrb[94].mxu1 %vm171_vm1, %v28719_v37  ;;  %v23772_v37 = vpack.c.bf16 %v13980_v44, %v13979_v27  ;;  %v13579_v44 = vld [vmem:[#allocation2 + $0x129] sm:$0xff]  ;;  %v28943_v27 = vld [vmem:[%s29874_s2 + $0x3] ss:$0 sm:$0xff] }
 0x925   : > { %22900 = vmatprep.mubr.msk.f32.mxu1 %vm171_vm1, %v28231_v59  ;;  %v13199_v59 = vld [vmem:[#allocation2 + $0x198] sm:$0xff] }
 0x928   : > { %22901 = vmatmul.mubr.msk.f32.vlgmr.msra.gmra.mrb[64].mxu1 %vm171_vm1, %v28236_v28  ;;  %v13200_v28 = vld [vmem:[#allocation2 + $0x1a0] sm:$0xff] }
 0x929   : > { %23767 = vmatpush3.bf16.msra.mxu1 %v23764_v19  ;;  %22903 = vmatprep.mubr.msk.f32.mxu1 %vm171_vm1, %v28240_v13  ;;  %v13558_v13 = vld [vmem:[#allocation2 + $0x31] sm:$0xff] }
 0x92a   : > { %23769 = vmatprep.subr.bf16.mxu1 %v23768_v46  ;;  %v13577_v19 = vld [vmem:[#allocation2 + $0x111] sm:$0xff] }
 0x92c   : > { %22904 = vmatmul.mubr.msk.f32.gmra.mrb[66].mxu1 %vm171_vm1, %v28244_v30  ;;  %v13981_v30 = vld [vmem:[%s29873_s1 + $0x378] sm:$0xff] }
 0x92d   : > { %22906 = vmatprep.mubr.msk.f32.mxu1 %vm171_vm1, %v28248_v60  ;;  %23771 = vmatpush3.bf16.msra.mxu1 %v23768_v46  ;;  %v13982_v60 = vld [vmem:[%s29873_s1 + $0x380] sm:$0xff] }
 0x92e   : > { %23773 = vmatprep.subr.bf16.mxu1 %v23772_v37  ;;  %v13588_v46 = vld [vmem:[#allocation2 + $0x199] sm:$0xff] }
 0x930   : > { %22907 = vmatmul.mubr.msk.f32.gmra.mrb[68].mxu1 %vm171_vm1, %v28252_v57  ;;  %v14505_v57 = vld [vmem:[%s29873_s1 + $0x3a8] sm:$0xff] }
 0x931   : > { %22909 = vmatprep.mubr.msk.f32.mxu1 %vm171_vm1, %v28256_v34  ;;  %v14506_v34 = vld [vmem:[%s29873_s1 + $0x3b0] sm:$0xff] }
 0x934   : > { %22910 = vmatmul.mubr.msk.f32.gmra.mrb[70].mxu1 %vm171_vm1, %v28260_v48  ;;  %v14507_v48 = vld [vmem:[%s29873_s1 + $0x3b8] sm:$0xff] }
 0x935   : > { %22912 = vmatprep.mubr.msk.f32.mxu1 %vm171_vm1, %v28264_v6  ;;  %v23780_v6 = vpack.c.bf16 %v14506_v34, %v14505_v57 }
 0x937   : > { %23781 = vmatprep.subr.bf16.mxu0 %v23780_v6 }
 0x938   : > { %22913 = vmatmul.mubr.msk.f32.gmra.mrb[72].mxu1 %vm171_vm1, %v28268_v39  ;;  %v14508_v39 = vld [vmem:[%s29873_s1 + $0x3c0] sm:$0xff]  ;;  %23783 = vmatpush3.bf16.msra.mxu0 %v23780_v6 }
 0x939   : > { %22915 = vmatprep.mubr.msk.f32.mxu1 %vm171_vm1, %v28272_v35  ;;  %v23776_v35 = vpack.c.bf16 %v13982_v60, %v13981_v30 }
 0x93c   : > { %22916 = vmatmul.mubr.msk.f32.gmra.mrb[74].mxu1 %vm171_vm1, %v28276_v24  ;;  %v23784_v24 = vpack.c.bf16 %v14508_v39, %v14507_v48 }
 0x93d   : > { %22918 = vmatprep.mubr.msk.f32.mxu1 %vm171_vm1, %v28280_v1  ;;  %v13559_v1 = vld [vmem:[#allocation2 + $0x39] sm:$0xff] }
 0x93e   : > { %23785 = vmatprep.subr.bf16.mxu0 %v23784_v24 }
 0x93f   : > { %23787 = vmatpush3.bf16.msra.mxu0 %v23784_v24 }
 0x940   : > { %22919 = vmatmul.mubr.msk.f32.gmra.mrb[76].mxu1 %vm171_vm1, %v28284_v0  ;;  %v13560_v0 = vld [vmem:[#allocation2 + $0x49] sm:$0xff] }
 0x941   : > { %22921 = vmatprep.mubr.msk.f32.mxu1 %vm171_vm1, %v28288_v54  ;;  %v13561_v54 = vld [vmem:[#allocation2 + $0x51] sm:$0xff] }
 0x944   : > { %22922 = vmatmul.mubr.msk.f32.gmra.mrb[78].mxu1 %vm171_vm1, %v28292_v32  ;;  %v13562_v32 = vld [vmem:[#allocation2 + $0x61] sm:$0xff] }
 0x945   : > { %22924 = vmatprep.mubr.msk.f32.mxu1 %vm171_vm1, %v28296_v58  ;;  %v13563_v58 = vld [vmem:[#allocation2 + $0x69] sm:$0xff] }
 0x948   : > { %22925 = vmatmul.mubr.msk.f32.gmra.mrb[80].mxu1 %vm171_vm1, %v28300_v14  ;;  %v13564_v14 = vld [vmem:[#allocation2 + $0x79] sm:$0xff] }
 0x949   : > { %22927 = vmatprep.mubr.msk.f32.mxu1 %vm171_vm1, %v28304_v61  ;;  %v13565_v61 = vld [vmem:[#allocation2 + $0x81] sm:$0xff] }
 0x94c   : > { %22928 = vmatmul.mubr.msk.f32.gmra.mrb[82].mxu1 %vm171_vm1, %v28308_v43  ;;  %v13566_v43 = vld [vmem:[#allocation2 + $0x91] sm:$0xff] }
 0x94d   : > { %22930 = vmatprep.mubr.msk.f32.mxu1 %vm171_vm1, %v28312_v62  ;;  %v13567_v62 = vld [vmem:[#allocation2 + $0x99] sm:$0xff] }
 0x950   : > { %22931 = vmatmul.mubr.msk.f32.gmra.mrb[84].mxu1 %vm171_vm1, %v28316_v17  ;;  %v13568_v17 = vld [vmem:[#allocation2 + $0xa9] sm:$0xff] }
 0x951   : > { %22933 = vmatprep.mubr.msk.f32.mxu1 %vm171_vm1, %v28320_v29  ;;  %v13569_v29 = vld [vmem:[#allocation2 + $0xb1] sm:$0xff] }
 0x954   : > { %22934 = vmatmul.mubr.msk.f32.gmra.mrb[86].mxu1 %vm171_vm1, %v28324_v38  ;;  %v13570_v38 = vld [vmem:[#allocation2 + $0xc1] sm:$0xff] }
 0x955   : > { %22936 = vmatprep.mubr.msk.f32.mxu1 %vm171_vm1, %v28328_v53  ;;  %v13571_v53 = vld [vmem:[#allocation2 + $0xc9] sm:$0xff] }
 0x958   : > { %22937 = vmatmul.mubr.msk.f32.gmra.mrb[88].mxu1 %vm171_vm1, %v28332_v41  ;;  %v13572_v41 = vld [vmem:[#allocation2 + $0xd9] sm:$0xff] }
 0x959   : > { %22939 = vmatprep.mubr.msk.f32.mxu1 %vm171_vm1, %v28336_v3  ;;  %v13573_v3 = vld [vmem:[#allocation2 + $0xe1] sm:$0xff] }
 0x95c   : > { %22940 = vmatmul.mubr.msk.f32.gmra.mrb[90].mxu1 %vm171_vm1, %v28340_v36  ;;  %v13574_v36 = vld [vmem:[#allocation2 + $0xf1] sm:$0xff] }
 0x95d   : > { %22942 = vmatprep.mubr.msk.f32.mxu1 %vm171_vm1, %v28555_v25  ;;  %v13575_v25 = vld [vmem:[#allocation2 + $0xf9] sm:$0xff] }
 0x960   : > { %22943 = vmatmul.mubr.msk.f32.gmra.mrb[92].mxu1 %vm171_vm1, %v28559_v49  ;;  %v13576_v49 = vld [vmem:[#allocation2 + $0x109] sm:$0xff] }
 0x961   : > { %22945 = vmatprep.mubr.msk.f32.mxu1 %vm171_vm1, %v13199_v59 }
 0x964   : > { %22946 = vmatmul.mubr.msk.f32.gmra.mrb[94].mxu1 %vm171_vm1, %v13200_v28 }
 0x965   : > { %22956 = vmatprep.mubr.msk.f32.mxu1 %vm171_vm1, %v13558_v13 }
 0x968   : > { %22957 = vmatmul.mubr.msk.f32.vlgmr.msra.gmra.mrb[64].mxu1 %vm171_vm1, %v13559_v1 }
 0x969   : > { %23775 = vmatpush3.bf16.msra.mxu1 %v23772_v37  ;;  %22959 = vmatprep.mubr.msk.f32.mxu1 %vm171_vm1, %v13560_v0 }
 0x96a   : > { %23777 = vmatprep.subr.bf16.mxu1 %v23776_v35 }
 0x96c   : > { %22960 = vmatmul.mubr.msk.f32.gmra.mrb[66].mxu1 %vm171_vm1, %v13561_v54 }
 0x96d   : > { %22962 = vmatprep.mubr.msk.f32.mxu1 %vm171_vm1, %v13562_v32  ;;  %23779 = vmatpush3.bf16.msra.mxu1 %v23776_v35 }
 0x970   : > { %22963 = vmatmul.mubr.msk.f32.gmra.mrb[68].mxu1 %vm171_vm1, %v13563_v58 }
 0x971   : > { %22965 = vmatprep.mubr.msk.f32.mxu1 %vm171_vm1, %v13564_v14 }
 0x974   : > { %22966 = vmatmul.mubr.msk.f32.gmra.mrb[70].mxu1 %vm171_vm1, %v13565_v61 }
 0x975   : > { %22968 = vmatprep.mubr.msk.f32.mxu1 %vm171_vm1, %v13566_v43 }
 0x978   : > { %22969 = vmatmul.mubr.msk.f32.gmra.mrb[72].mxu1 %vm171_vm1, %v13567_v62 }
 0x979   : > { %22971 = vmatprep.mubr.msk.f32.mxu1 %vm171_vm1, %v13568_v17 }
 0x97c   : > { %22972 = vmatmul.mubr.msk.f32.gmra.mrb[74].mxu1 %vm171_vm1, %v13569_v29 }
 0x97d   : > { %22974 = vmatprep.mubr.msk.f32.mxu1 %vm171_vm1, %v13570_v38 }
 0x980   : > { %22975 = vmatmul.mubr.msk.f32.gmra.mrb[76].mxu1 %vm171_vm1, %v13571_v53 }
 0x981   : > { %22977 = vmatprep.mubr.msk.f32.mxu1 %vm171_vm1, %v13572_v41 }
 0x984   : > { %22978 = vmatmul.mubr.msk.f32.gmra.mrb[78].mxu1 %vm171_vm1, %v13573_v3 }
 0x985   : > { %22980 = vmatprep.mubr.msk.f32.mxu1 %vm171_vm1, %v13574_v36 }
 0x988   : > { %22981 = vmatmul.mubr.msk.f32.gmra.mrb[80].mxu1 %vm171_vm1, %v13575_v25 }
 0x989   : > { %22983 = vmatprep.mubr.msk.f32.mxu1 %vm171_vm1, %v13576_v49 }
 0x98c   : > { %22984 = vmatmul.mubr.msk.f32.gmra.mrb[82].mxu1 %vm171_vm1, %v13577_v19 }
 0x98d   : > { %22986 = vmatprep.mubr.msk.f32.mxu1 %vm171_vm1, %v13578_v40 }
 0x990   : > { %22987 = vmatmul.mubr.msk.f32.gmra.mrb[84].mxu1 %vm171_vm1, %v13579_v44 }
 0x991   : > { %22989 = vmatprep.mubr.msk.f32.mxu1 %vm171_vm1, %v28178_v47  ;;  %v13589_v47 = vld [vmem:[#allocation2 + $0x1a1] sm:$0xff] }
 0x994   : > { %22990 = vmatmul.mubr.msk.f32.gmra.mrb[86].mxu1 %vm171_vm1, %v30446_v16  ;;  %v30481_v16 = vld [vmem:[#allocation28_spill] sm:$0xff] }
 0x995   : > { %22992 = vmatprep.mubr.msk.f32.mxu1 %vm171_vm1, %v30447_v56  ;;  %v30482_v56 = vld [vmem:[#allocation14_spill] sm:$0xff] }
 0x998   : > { %22993 = vmatmul.mubr.msk.f32.gmra.mrb[88].mxu1 %vm171_vm1, %v30448_v8  ;;  %v30483_v8 = vld [vmem:[#allocation29_spill] sm:$0xff] }
 0x999   : > { %22995 = vmatprep.mubr.msk.f32.mxu1 %vm171_vm1, %v30449_v55  ;;  %v30484_v55 = vld [vmem:[#allocation15_spill] sm:$0xff] }
 0x99c   : > { %22996 = vmatmul.mubr.msk.f32.gmra.mrb[90].mxu1 %vm171_vm1, %v30450_v22  ;;  %v30485_v22 = vld [vmem:[#allocation34_spill] sm:$0xff] }
 0x99d   : > { %22998 = vmatprep.mubr.msk.f32.mxu1 %vm171_vm1, %v28635_v63  ;;  %v30486_v63 = vld [vmem:[#allocation31_spill] sm:$0xff] }
 0x9a0   : > { %22999 = vmatmul.mubr.msk.f32.gmra.mrb[92].mxu1 %vm171_vm1, %v28639_v11  ;;  %v30487_v11 = vld [vmem:[#allocation3_spill] sm:$0xff] }
 0x9a1   : > { %23001 = vmatprep.mubr.msk.f32.mxu1 %vm171_vm1, %v13588_v46 }
 0x9a4   : > { %23002 = vmatmul.mubr.msk.f32.gmra.mrb[94].mxu1 %vm171_vm1, %v13589_v47 }
 0x9a5   : > { %23012 = vmatprep.mubr.msk.f32.mxu1 %vm171_vm1, %v30451_v42  ;;  %v30488_v42 = vld [vmem:[#allocation18_spill] sm:$0xff] }
 0x9a8   : > { %23013 = vmatmul.mubr.msk.f32.vlgmr.msra.gmra.mrb[64].mxu1 %vm171_vm1, %v30452_v7  ;;  %v30489_v7 = vld [vmem:[#allocation4_spill] sm:$0xff] }
 0x9a9   : > { %23015 = vmatprep.mubr.msk.f32.mxu1 %vm171_vm1, %v30453_v33  ;;  %v30490_v33 = vld [vmem:[#allocation19_spill] sm:$0xff] }
 0x9ac   : > { %23016 = vmatmul.mubr.msk.f32.gmra.mrb[66].mxu1 %vm171_vm1, %v30454_v5  ;;  %v13977_v5 = vld [vmem:[#allocation2 + $0x19a] sm:$0xff] }
 0x9ad   : > { %23018 = vmatprep.mubr.msk.f32.mxu1 %vm171_vm1, %v30455_v20  ;;  %v30491_v20 = vld [vmem:[#allocation5_spill] sm:$0xff] }
 0x9b0   : > { %23019 = vmatmul.mubr.msk.f32.gmra.mrb[68].mxu1 %vm171_vm1, %v30456_v45  ;;  %v13978_v45 = vld [vmem:[#allocation2 + $0x1a2] sm:$0xff] }
 0x9b1   : > { %23021 = vmatprep.mubr.msk.f32.mxu1 %vm171_vm1, %v30457_v23  ;;  %v14473_v23 = vld [vmem:[#allocation2 + $0x1] sm:$0xff] }
 0x9b2   : > { %23068 = vmatprep.mubr.msk.f32.mxu0 %vm171_vm1, %v14473_v23 }
 0x9b4   : > { %23022 = vmatmul.mubr.msk.f32.gmra.mrb[70].mxu1 %vm171_vm1, %v30458_v10  ;;  %v14474_v10 = vld [vmem:[#allocation2 + $0x9] sm:$0xff] }
 0x9b5   : > { %23024 = vmatprep.mubr.msk.f32.mxu1 %vm171_vm1, %v30459_v50  ;;  %v14469_v50 = vld [vmem:[%s29873_s1 + $0x388] sm:$0xff]  ;;  %23069 = vmatmul.mubr.msk.f32.vlgmr.msra.gmra.mrb[64].mxu0 %vm171_vm1, %v14474_v10 }
 0x9b8   : > { %23025 = vmatmul.mubr.msk.f32.gmra.mrb[72].mxu1 %vm171_vm1, %v30460_v12  ;;  %v14470_v12 = vld [vmem:[%s29873_s1 + $0x390] sm:$0xff] }
 0x9b9   : > { %23027 = vmatprep.mubr.msk.f32.mxu1 %vm171_vm1, %v30461_v21  ;;  %v23788_v21 = vpack.c.bf16 %v14470_v12, %v14469_v50 }
 0x9bb   : > { %23789 = vmatprep.subr.bf16.mxu0 %v23788_v21 }
 0x9bc   : > { %23028 = vmatmul.mubr.msk.f32.gmra.mrb[74].mxu1 %vm171_vm1, %v30462_v15  ;;  %23791 = vmatpush3.bf16.msra.mxu0 %v23788_v21  ;;  %v14471_v15 = vld [vmem:[%s29873_s1 + $0x398] sm:$0xff] }
 0x9bd   : > { %23030 = vmatprep.mubr.msk.f32.mxu1 %vm171_vm1, %v30463_v4  ;;  %v14472_v4 = vld [vmem:[%s29873_s1 + $0x3a0] sm:$0xff] }
 0x9c0   : > { %23031 = vmatmul.mubr.msk.f32.gmra.mrb[76].mxu1 %vm171_vm1, %v30464_v26  ;;  %v23792_v26 = vpack.c.bf16 %v14472_v4, %v14471_v15 }
 0x9c1   : > { %23033 = vmatprep.mubr.msk.f32.mxu1 %vm171_vm1, %v30465_v51  ;;  %v15183_v51 = vld [vmem:[%s29873_s1 + $0x3c8] sm:$0xff] }
 0x9c2   : > { %23793 = vmatprep.subr.bf16.mxu0 %v23792_v26 }
 0x9c3   : > { %23795 = vmatpush3.bf16.msra.mxu0 %v23792_v26 }
 0x9c4   : > { %23034 = vmatmul.mubr.msk.f32.gmra.mrb[78].mxu1 %vm171_vm1, %v30466_v18  ;;  %v15184_v18 = vld [vmem:[%s29873_s1 + $0x3d0] sm:$0xff] }
 0x9c5   : > { %23036 = vmatprep.mubr.msk.f32.mxu1 %vm171_vm1, %v30467_v9  ;;  %v28937_v9 = vpack.c.bf16 %v15184_v18, %v15183_v51 }
 0x9c7   : > { %23797 = vmatprep.subr.bf16.mxu0 %v28937_v9 }
 0x9c8   : > { %23037 = vmatmul.mubr.msk.f32.gmra.mrb[80].mxu1 %vm171_vm1, %v30481_v16 }
 0x9c9   : > { %23039 = vmatprep.mubr.msk.f32.mxu1 %vm171_vm1, %v30482_v56 }
 0x9cc   : > { %23040 = vmatmul.mubr.msk.f32.gmra.mrb[82].mxu1 %vm171_vm1, %v30483_v8 }
 0x9cd   : > { %23042 = vmatprep.mubr.msk.f32.mxu1 %vm171_vm1, %v30484_v55 }
 0x9d0   : > { %23043 = vmatmul.mubr.msk.f32.gmra.mrb[84].mxu1 %vm171_vm1, %v30472_v31 }
 0x9d1   : > { %23045 = vmatprep.mubr.msk.f32.mxu1 %vm171_vm1, %v30485_v22 }
 0x9d4   : > { %23046 = vmatmul.mubr.msk.f32.gmra.mrb[86].mxu1 %vm171_vm1, %v30474_v2 }
 0x9d5   : > { %23048 = vmatprep.mubr.msk.f32.mxu1 %vm171_vm1, %v30486_v63 }
 0x9d8   : > { %23049 = vmatmul.mubr.msk.f32.gmra.mrb[88].mxu1 %vm171_vm1, %v30487_v11 }
 0x9d9   : > { %23051 = vmatprep.mubr.msk.f32.mxu1 %vm171_vm1, %v30488_v42 }
 0x9dc   : > { %23052 = vmatmul.mubr.msk.f32.gmra.mrb[90].mxu1 %vm171_vm1, %v30489_v7 }
 0x9dd   : > { %23054 = vmatprep.mubr.msk.f32.mxu1 %vm171_vm1, %v30490_v33 }
 0x9e0   : > { %23055 = vmatmul.mubr.msk.f32.gmra.mrb[92].mxu1 %vm171_vm1, %v30491_v20 }
 0x9e1   : > { %23057 = vmatprep.mubr.msk.f32.mxu1 %vm171_vm1, %v13977_v5 }
 0x9e4   : > { %23058 = vmatmul.mubr.msk.f32.gmra.mrb[94].mxu1 %vm171_vm1, %v13978_v45 }
 0xa7b   : > { %v23014_v31 = vpop.f32.mrb[64].mxu1 }
 0xa7c   : > { %v14342_v37 = vadd.f32 %v23014_v31, %v28943_v27  ;;  %v14145_v2 = vpop.f32.mrb[65].mxu1 }
 0xa7d   : > { %v14341_v52 = vadd.f32 %v28943_v27, %v14145_v2 }
 0xa7e   : > { %v14374_v59 = vmax.f32 %v14342_v37, 0.0 }
 0xa7f   : > { %v14373_v28 = vmax.f32 %v14341_v52, 0.0  ;;  %v23017_v13 = vpop.f32.mrb[66].mxu1 }
 0xa80   : > { %14406 = vst.msk [vmem:[#allocation2 + $0x21] sm:$0xff] %vm171_vm1, %v14374_v59  ;;  %v14344_v30 = vadd.f32 %v23017_v13, %v28943_v27  ;;  %v14155_v60 = vpop.f32.mrb[67].mxu1 }
 0xa81   : > { %14405 = vst.msk [vmem:[#allocation2 + $0x19] sm:$0xff] %vm171_vm1, %v14373_v28  ;;  %v14343_v57 = vadd.f32 %v28943_v27, %v14155_v60 }
 0xa82   : > { %v14376_v34 = vmax.f32 %v14344_v30, 0.0 }
 0xa83   : > { %v14375_v48 = vmax.f32 %v14343_v57, 0.0  ;;  %v23020_v6 = vpop.f32.mrb[68].mxu1 }
 0xa84   : > { %14408 = vst.msk [vmem:[#allocation2 + $0x39] sm:$0xff] %vm171_vm1, %v14376_v34  ;;  %v14346_v39 = vadd.f32 %v23020_v6, %v28943_v27  ;;  %v14165_v35 = vpop.f32.mrb[69].mxu1 }
 0xa85   : > { %14407 = vst.msk [vmem:[#allocation2 + $0x31] sm:$0xff] %vm171_vm1, %v14375_v48  ;;  %v14345_v24 = vadd.f32 %v28943_v27, %v14165_v35 }
 0xa86   : > { %v14378_v1 = vmax.f32 %v14346_v39, 0.0 }
 0xa87   : > { %v14377_v0 = vmax.f32 %v14345_v24, 0.0  ;;  %v23023_v54 = vpop.f32.mrb[70].mxu1  ;;  %v28963_v43 = vld [vmem:[#allocation2 + $0x21] sm:$0xff] }
 0xa88   : > { %14410 = vst.msk [vmem:[#allocation2 + $0x51] sm:$0xff] %vm171_vm1, %v14378_v1  ;;  %v14348_v32 = vadd.f32 %v23023_v54, %v28943_v27  ;;  %v14175_v58 = vpop.f32.mrb[71].mxu1  ;;  %v28957_v14 = vld [vmem:[#allocation2 + $0x19] sm:$0xff] }
 0xa89   : > { %14409 = vst.msk [vmem:[#allocation2 + $0x49] sm:$0xff] %vm171_vm1, %v14377_v0  ;;  %v14347_v61 = vadd.f32 %v28943_v27, %v14175_v58  ;;  %23071 = vmatprep.mubr.msk.f32.mxu0 %vm171_vm1, %v28957_v14 }
 0xa8a   : > { %v14380_v62 = vmax.f32 %v14348_v32, 0.0  ;;  %23072 = vmatmul.mubr.msk.f32.gmra.mrb[66].mxu0 %vm171_vm1, %v28963_v43 }
 0xa8b   : > { %v14379_v17 = vmax.f32 %v14347_v61, 0.0  ;;  %v23026_v29 = vpop.f32.mrb[72].mxu1  ;;  %v28975_v36 = vld [vmem:[#allocation2 + $0x39] sm:$0xff] }
 0xa8c   : > { %14412 = vst.msk [vmem:[#allocation2 + $0x69] sm:$0xff] %vm171_vm1, %v14380_v62  ;;  %v14350_v38 = vadd.f32 %v23026_v29, %v28943_v27  ;;  %v14185_v53 = vpop.f32.mrb[73].mxu1  ;;  %v28969_v41 = vld [vmem:[#allocation2 + $0x31] sm:$0xff] }
 0xa8d   : > { %14411 = vst.msk [vmem:[#allocation2 + $0x61] sm:$0xff] %vm171_vm1, %v14379_v17  ;;  %v14349_v3 = vadd.f32 %v28943_v27, %v14185_v53  ;;  %23074 = vmatprep.mubr.msk.f32.mxu0 %vm171_vm1, %v28969_v41 }
 0xa8e   : > { %v14382_v25 = vmax.f32 %v14350_v38, 0.0  ;;  %23075 = vmatmul.mubr.msk.f32.gmra.mrb[68].mxu0 %vm171_vm1, %v28975_v36 }
 0xa8f   : > { %v14381_v49 = vmax.f32 %v14349_v3, 0.0  ;;  %v23029_v19 = vpop.f32.mrb[74].mxu1  ;;  %v28987_v16 = vld [vmem:[#allocation2 + $0x51] sm:$0xff] }
 0xa90   : > { %14414 = vst.msk [vmem:[#allocation2 + $0x81] sm:$0xff] %vm171_vm1, %v14382_v25  ;;  %v14352_v40 = vadd.f32 %v23029_v19, %v28943_v27  ;;  %v14195_v44 = vpop.f32.mrb[75].mxu1  ;;  %v28981_v46 = vld [vmem:[#allocation2 + $0x49] sm:$0xff] }
 0xa91   : > { %14413 = vst.msk [vmem:[#allocation2 + $0x79] sm:$0xff] %vm171_vm1, %v14381_v49  ;;  %v14351_v47 = vadd.f32 %v28943_v27, %v14195_v44  ;;  %23077 = vmatprep.mubr.msk.f32.mxu0 %vm171_vm1, %v28981_v46 }
 0xa92   : > { %v14384_v56 = vmax.f32 %v14352_v40, 0.0  ;;  %23078 = vmatmul.mubr.msk.f32.gmra.mrb[70].mxu0 %vm171_vm1, %v28987_v16 }
 0xa93   : > { %v14383_v8 = vmax.f32 %v14351_v47, 0.0  ;;  %v23032_v55 = vpop.f32.mrb[76].mxu1  ;;  %v28999_v7 = vld [vmem:[#allocation2 + $0x69] sm:$0xff] }
 0xa94   : > { %14416 = vst.msk [vmem:[#allocation2 + $0x99] sm:$0xff] %vm171_vm1, %v14384_v56  ;;  %v14354_v22 = vadd.f32 %v23032_v55, %v28943_v27  ;;  %v14205_v63 = vpop.f32.mrb[77].mxu1  ;;  %v28993_v11 = vld [vmem:[#allocation2 + $0x61] sm:$0xff] }
 0xa95   : > { %14415 = vst.msk [vmem:[#allocation2 + $0x91] sm:$0xff] %vm171_vm1, %v14383_v8  ;;  %v14353_v42 = vadd.f32 %v28943_v27, %v14205_v63  ;;  %23080 = vmatprep.mubr.msk.f32.mxu0 %vm171_vm1, %v28993_v11 }
 0xa96   : > { %v14386_v33 = vmax.f32 %v14354_v22, 0.0  ;;  %23081 = vmatmul.mubr.msk.f32.gmra.mrb[72].mxu0 %vm171_vm1, %v28999_v7 }
 0xa97   : > { %v14385_v5 = vmax.f32 %v14353_v42, 0.0  ;;  %v23035_v20 = vpop.f32.mrb[78].mxu1  ;;  %v29011_v12 = vld [vmem:[#allocation2 + $0x81] sm:$0xff] }
 0xa98   : > { %14418 = vst.msk [vmem:[#allocation2 + $0xb1] sm:$0xff] %vm171_vm1, %v14386_v33  ;;  %v14356_v45 = vadd.f32 %v23035_v20, %v28943_v27  ;;  %v14215_v23 = vpop.f32.mrb[79].mxu1  ;;  %v29005_v10 = vld [vmem:[#allocation2 + $0x79] sm:$0xff] }
 0xa99   : > { %14417 = vst.msk [vmem:[#allocation2 + $0xa9] sm:$0xff] %vm171_vm1, %v14385_v5  ;;  %v14355_v50 = vadd.f32 %v28943_v27, %v14215_v23  ;;  %23083 = vmatprep.mubr.msk.f32.mxu0 %vm171_vm1, %v29005_v10 }
 0xa9a   : > { %v14388_v21 = vmax.f32 %v14356_v45, 0.0  ;;  %23084 = vmatmul.mubr.msk.f32.gmra.mrb[74].mxu0 %vm171_vm1, %v29011_v12 }
 0xa9b   : > { %v14387_v15 = vmax.f32 %v14355_v50, 0.0  ;;  %v23038_v4 = vpop.f32.mrb[80].mxu1  ;;  %v29023_v37 = vld [vmem:[#allocation2 + $0x99] sm:$0xff] }
 0xa9c   : > { %14420 = vst.msk [vmem:[#allocation2 + $0xc9] sm:$0xff] %vm171_vm1, %v14388_v21  ;;  %v14358_v26 = vadd.f32 %v23038_v4, %v28943_v27  ;;  %v14225_v51 = vpop.f32.mrb[81].mxu1  ;;  %v29017_v18 = vld [vmem:[#allocation2 + $0x91] sm:$0xff] }
 0xa9d   : > { %14419 = vst.msk [vmem:[#allocation2 + $0xc1] sm:$0xff] %vm171_vm1, %v14387_v15  ;;  %v14357_v31 = vadd.f32 %v28943_v27, %v14225_v51  ;;  %23086 = vmatprep.mubr.msk.f32.mxu0 %vm171_vm1, %v29017_v18 }
 0xa9e   : > { %v14390_v2 = vmax.f32 %v14358_v26, 0.0  ;;  %23087 = vmatmul.mubr.msk.f32.gmra.mrb[76].mxu0 %vm171_vm1, %v29023_v37 }
 0xa9f   : > { %v14389_v52 = vmax.f32 %v14357_v31, 0.0  ;;  %v23041_v59 = vpop.f32.mrb[82].mxu1  ;;  %v29035_v57 = vld [vmem:[#allocation2 + $0xb1] sm:$0xff] }
 0xaa0   : > { %14422 = vst.msk [vmem:[#allocation2 + $0xe1] sm:$0xff] %vm171_vm1, %v14390_v2  ;;  %v14360_v28 = vadd.f32 %v23041_v59, %v28943_v27  ;;  %v14235_v13 = vpop.f32.mrb[83].mxu1  ;;  %v29029_v30 = vld [vmem:[#allocation2 + $0xa9] sm:$0xff] }
 0xaa1   : > { %14421 = vst.msk [vmem:[#allocation2 + $0xd9] sm:$0xff] %vm171_vm1, %v14389_v52  ;;  %v14359_v60 = vadd.f32 %v28943_v27, %v14235_v13  ;;  %23089 = vmatprep.mubr.msk.f32.mxu0 %vm171_vm1, %v29029_v30 }
 0xaa2   : > { %v14392_v34 = vmax.f32 %v14360_v28, 0.0  ;;  %23090 = vmatmul.mubr.msk.f32.gmra.mrb[78].mxu0 %vm171_vm1, %v29035_v57 }
 0xaa3   : > { %v14391_v48 = vmax.f32 %v14359_v60, 0.0  ;;  %v23044_v6 = vpop.f32.mrb[84].mxu1  ;;  %v29047_v0 = vld [vmem:[#allocation2 + $0xc9] sm:$0xff] }
 0xaa4   : > { %14424 = vst.msk [vmem:[#allocation2 + $0xf9] sm:$0xff] %vm171_vm1, %v14392_v34  ;;  %v14362_v39 = vadd.f32 %v23044_v6, %v28943_v27  ;;  %v14245_v35 = vpop.f32.mrb[85].mxu1  ;;  %v29041_v24 = vld [vmem:[#allocation2 + $0xc1] sm:$0xff] }
 0xaa5   : > { %14423 = vst.msk [vmem:[#allocation2 + $0xf1] sm:$0xff] %vm171_vm1, %v14391_v48  ;;  %v14361_v1 = vadd.f32 %v28943_v27, %v14245_v35  ;;  %23092 = vmatprep.mubr.msk.f32.mxu0 %vm171_vm1, %v29041_v24  ;;  %v14437_v35 = vld [vmem:[#allocation2] sm:$0xff] }
 0xaa6   : > { %v14394_v54 = vmax.f32 %v14362_v39, 0.0  ;;  %23093 = vmatmul.mubr.msk.f32.gmra.mrb[80].mxu0 %vm171_vm1, %v29047_v0 }
 0xaa7   : > { %v14393_v32 = vmax.f32 %v14361_v1, 0.0  ;;  %v23047_v58 = vpop.f32.mrb[86].mxu1  ;;  %v29059_v38 = vld [vmem:[#allocation2 + $0xe1] sm:$0xff] }
 0xaa8   : > { %14426 = vst.msk [vmem:[#allocation2 + $0x111] sm:$0xff] %vm171_vm1, %v14394_v54  ;;  %v14364_v61 = vadd.f32 %v23047_v58, %v28943_v27  ;;  %v14255_v62 = vpop.f32.mrb[87].mxu1  ;;  %v29053_v17 = vld [vmem:[#allocation2 + $0xd9] sm:$0xff]  ;;  %v14438_v58 = vld [vmem:[#allocation2 + $0x8] sm:$0xff] }
 0xaa9   : > { %14425 = vst.msk [vmem:[#allocation2 + $0x109] sm:$0xff] %vm171_vm1, %v14393_v32  ;;  %v14363_v29 = vadd.f32 %v28943_v27, %v14255_v62  ;;  %23095 = vmatprep.mubr.msk.f32.mxu0 %vm171_vm1, %v29053_v17  ;;  %v15185_v54 = vld [vmem:[%s29873_s1 + $0x3d8] sm:$0xff]  ;;  %v15186_v32 = vld [vmem:[%s29873_s1 + $0x3e0] sm:$0xff]  ;;  %v15572_v62 = vld [vmem:[%s29873_s1 + $0x3e8] sm:$0xff] }
 0xaaa   : > { %v14396_v53 = vmax.f32 %v14364_v61, 0.0  ;;  %23096 = vmatmul.mubr.msk.f32.gmra.mrb[82].mxu0 %vm171_vm1, %v29059_v38  ;;  %v23800_v61 = vpack.c.bf16 %v15186_v32, %v15185_v54 }
 0xaab   : > { %v14395_v3 = vmax.f32 %v14363_v29, 0.0  ;;  %v23050_v25 = vpop.f32.mrb[88].mxu1  ;;  %v29071_v47 = vld [vmem:[#allocation2 + $0xf9] sm:$0xff]  ;;  %v15573_v29 = vld [vmem:[%s29873_s1 + $0x3f0] sm:$0xff] }
 0xaac   : > { %14428 = vst.msk [vmem:[#allocation2 + $0x129] sm:$0xff] %vm171_vm1, %v14396_v53  ;;  %v14366_v49 = vadd.f32 %v23050_v25, %v28943_v27  ;;  %v14265_v19 = vpop.f32.mrb[89].mxu1  ;;  %v29065_v40 = vld [vmem:[#allocation2 + $0xf1] sm:$0xff]  ;;  %v29150_v25 = vld [vmem:[#allocation2 + $0x20] sm:$0xff] }
 0xaad   : > { %14427 = vst.msk [vmem:[#allocation2 + $0x121] sm:$0xff] %vm171_vm1, %v14395_v3  ;;  %v14365_v44 = vadd.f32 %v28943_v27, %v14265_v19  ;;  %23098 = vmatprep.mubr.msk.f32.mxu0 %vm171_vm1, %v29065_v40  ;;  %v29143_v53 = vld [vmem:[#allocation2 + $0x18] sm:$0xff]  ;;  %v29148_v3 = vpack.c.bf16 %v15573_v29, %v15572_v62  ;;  %v29163_v19 = vld [vmem:[#allocation2 + $0x48] sm:$0xff]  ;;  %v15575_v29 = vld [vmem:[%s29873_s1 + $0x400] sm:$0xff] }
 0xaae   : > { %v14398_v56 = vmax.f32 %v14366_v49, 0.0  ;;  %23099 = vmatmul.mubr.msk.f32.gmra.mrb[84].mxu0 %vm171_vm1, %v29071_v47  ;;  %v29154_v49 = vld [vmem:[#allocation2 + $0x30] sm:$0xff]  ;;  %v15574_v62 = vld [vmem:[%s29873_s1 + $0x3f8] sm:$0xff] }
 0xaaf   : > { %v14397_v8 = vmax.f32 %v14365_v44, 0.0  ;;  %v23053_v55 = vpop.f32.mrb[90].mxu1  ;;  %v29083_v5 = vld [vmem:[#allocation2 + $0x111] sm:$0xff] }
 0xab0   : > { %14430 = vst.msk [vmem:[#allocation2 + $0x141] sm:$0xff] %vm171_vm1, %v14398_v56  ;;  %v14368_v22 = vadd.f32 %v23053_v55, %v28943_v27  ;;  %v14275_v63 = vpop.f32.mrb[91].mxu1  ;;  %v29077_v42 = vld [vmem:[#allocation2 + $0x109] sm:$0xff]  ;;  %v29171_v56 = vld [vmem:[#allocation2 + $0x60] sm:$0xff]  ;;  %v29179_v55 = vld [vmem:[#allocation2 + $0x78] sm:$0xff] }
 0xab1   : > { %14429 = vst.msk [vmem:[#allocation2 + $0x139] sm:$0xff] %vm171_vm1, %v14397_v8  ;;  %v14367_v33 = vadd.f32 %v28943_v27, %v14275_v63  ;;  %23101 = vmatprep.mubr.msk.f32.mxu0 %vm171_vm1, %v29077_v42  ;;  %v29167_v44 = vld [vmem:[#allocation2 + $0x50] sm:$0xff]  ;;  %v29175_v8 = vld [vmem:[#allocation2 + $0x68] sm:$0xff] }
 0xab2   : > { %v14400_v20 = vmax.f32 %v14368_v22, 0.0  ;;  %23102 = vmatmul.mubr.msk.f32.gmra.mrb[86].mxu0 %vm171_vm1, %v29083_v5  ;;  %v29183_v22 = vld [vmem:[#allocation2 + $0x80] sm:$0xff]  ;;  %v29187_v63 = vld [vmem:[#allocation2 + $0x90] sm:$0xff] }
 0xab3   : > { %v14399_v45 = vmax.f32 %v14367_v33, 0.0  ;;  %v23056_v23 = vpop.f32.mrb[92].mxu1  ;;  %v29095_v26 = vld [vmem:[#allocation2 + $0x129] sm:$0xff]  ;;  %v29191_v33 = vld [vmem:[#allocation2 + $0x98] sm:$0xff] }
 0xab4   : > { %14432 = vst.msk [vmem:[#allocation2 + $0x159] sm:$0xff] %vm171_vm1, %v14400_v20  ;;  %v14370_v50 = vadd.f32 %v23056_v23, %v28943_v27  ;;  %v14285_v21 = vpop.f32.mrb[93].mxu1  ;;  %v29089_v15 = vld [vmem:[#allocation2 + $0x121] sm:$0xff] }
 0xab5   : > { %14431 = vst.msk [vmem:[#allocation2 + $0x151] sm:$0xff] %vm171_vm1, %v14399_v45  ;;  %v14369_v4 = vadd.f32 %v28943_v27, %v14285_v21  ;;  %23104 = vmatprep.mubr.msk.f32.mxu0 %vm171_vm1, %v29089_v15  ;;  %v29195_v20 = vld [vmem:[#allocation2 + $0xa8] sm:$0xff]  ;;  %v29199_v45 = vld [vmem:[#allocation2 + $0xb0] sm:$0xff]  ;;  %v29203_v23 = vld [vmem:[#allocation2 + $0xc0] sm:$0xff] }
 0xab6   : > { %v14402_v51 = vmax.f32 %v14370_v50, 0.0  ;;  %23105 = vmatmul.mubr.msk.f32.gmra.mrb[88].mxu0 %vm171_vm1, %v29095_v26  ;;  %v29207_v50 = vld [vmem:[#allocation2 + $0xc8] sm:$0xff]  ;;  %v29211_v21 = vld [vmem:[#allocation2 + $0xd8] sm:$0xff] }
 0xab7   : > { %v14401_v31 = vmax.f32 %v14369_v4, 0.0  ;;  %v23059_v2 = vpop.f32.mrb[94].mxu1  ;;  %v29107_v60 = vld [vmem:[#allocation2 + $0x141] sm:$0xff] }
 0xab8   : > { %14434 = vst.msk [vmem:[#allocation2 + $0x171] sm:$0xff] %vm171_vm1, %v14402_v51  ;;  %v14372_v52 = vadd.f32 %v23059_v2, %v28943_v27  ;;  %v14295_v59 = vpop.f32.mrb[95].mxu1  ;;  %v29101_v28 = vld [vmem:[#allocation2 + $0x139] sm:$0xff]  ;;  %30492 = vst [vmem:[#allocation20_spill] sm:$0xff] %v29107_v60  ;;  %v29219_v51 = vld [vmem:[#allocation2 + $0xf0] sm:$0xff] }
 0xab9   : > { %14433 = vst.msk [vmem:[#allocation2 + $0x169] sm:$0xff] %vm171_vm1, %v14401_v31  ;;  %v14371_v13 = vadd.f32 %v28943_v27, %v14295_v59  ;;  %23107 = vmatprep.mubr.msk.f32.mxu0 %vm171_vm1, %v29101_v28  ;;  %v29215_v4 = vld [vmem:[#allocation2 + $0xe0] sm:$0xff]  ;;  %v29223_v31 = vld [vmem:[#allocation2 + $0xf8] sm:$0xff]  ;;  %v29227_v2 = vld [vmem:[#allocation2 + $0x108] sm:$0xff] }
 0xaba   : > { %v14404_v34 = vmax.f32 %v14372_v52, 0.0  ;;  %23108 = vmatmul.mubr.msk.f32.gmra.mrb[90].mxu0 %vm171_vm1, %v29107_v60  ;;  %v29231_v52 = vld [vmem:[#allocation2 + $0x110] sm:$0xff]  ;;  %v29235_v59 = vld [vmem:[#allocation2 + $0x120] sm:$0xff] }
 0xabb   : > { %v14403_v48 = vmax.f32 %v14371_v13, 0.0  ;;  %v29117_v27 = vld [vmem:[#allocation2 + $0x159] sm:$0xff]  ;;  %v29239_v13 = vld [vmem:[#allocation2 + $0x128] sm:$0xff] }
 0xabc   : > { %14436 = vst.msk [vmem:[#allocation2 + $0x189] sm:$0xff] %vm171_vm1, %v14404_v34  ;;  %v29112_v6 = vld [vmem:[#allocation2 + $0x151] sm:$0xff]  ;;  %30494 = vst [vmem:[#allocation21_spill] sm:$0xff] %v29117_v27  ;;  %v29281_v60 = vld [vmem:[#allocation2 + $0x1a] sm:$0xff] }
 0xabd   : > { %30493 = vst [vmem:[#allocation6_spill] sm:$0xff] %v29112_v6  ;;  %14435 = vst.msk [vmem:[#allocation2 + $0x181] sm:$0xff] %vm171_vm1, %v14403_v48  ;;  %23110 = vmatprep.mubr.msk.f32.mxu0 %vm171_vm1, %v29112_v6  ;;  %v29243_v34 = vld [vmem:[#allocation2 + $0x138] sm:$0xff]  ;;  %v29247_v48 = vld [vmem:[#allocation2 + $0x140] sm:$0xff] }
 0xabe   : > { %23111 = vmatmul.mubr.msk.f32.gmra.mrb[92].mxu0 %vm171_vm1, %v29117_v27  ;;  %v29255_v54 = vld [vmem:[#allocation2 + $0x158] sm:$0xff]  ;;  %v15961_v27 = vld [vmem:[%s29873_s1 + $0x408] sm:$0xff]  ;;  %v15962_v6 = vld [vmem:[%s29873_s1 + $0x410] sm:$0xff] }
 0xabf   : > { %v29125_v1 = vld [vmem:[#allocation2 + $0x171] sm:$0xff] }
 0xac0   : > { %v29121_v39 = vld [vmem:[#allocation2 + $0x169] sm:$0xff]  ;;  %30496 = vst [vmem:[#allocation22_spill] sm:$0xff] %v29125_v1 }
 0xac1   : > { %30495 = vst [vmem:[#allocation7_spill] sm:$0xff] %v29121_v39  ;;  %23113 = vmatprep.mubr.msk.f32.mxu0 %vm171_vm1, %v29121_v39  ;;  %v29259_v32 = vld [vmem:[#allocation2 + $0x168] sm:$0xff]  ;;  %v23808_v39 = vpack.c.bf16 %v15575_v29, %v15574_v62  ;;  %v29292_v29 = vld [vmem:[#allocation2 + $0x32] sm:$0xff] }
 0xac2   : > { %23114 = vmatmul.mubr.msk.f32.gmra.mrb[94].mxu0 %vm171_vm1, %v29125_v1  ;;  %v15152_v1 = vld [vmem:[#allocation2 + $0xa] sm:$0xff]  ;;  %v29288_v62 = vld [vmem:[#allocation2 + $0x22] sm:$0xff]  ;;  %30497 = vst [vmem:[#allocation8_spill] sm:$0xff] %v29292_v29 }
 0xac3   : > { %23124 = vmatprep.mubr.msk.f32.mxu0 %vm171_vm1, %v14437_v35  ;;  %v29251_v35 = vld [vmem:[#allocation2 + $0x150] sm:$0xff] }
 0xac6   : > { %23125 = vmatmul.mubr.msk.f32.vlgmr.msra.gmra.mrb[64].mxu0 %vm171_vm1, %v14438_v58  ;;  %v15151_v58 = vld [vmem:[#allocation2 + $0x2] sm:$0xff] }
 0xac7   : > { %23799 = vmatpush3.bf16.msra.mxu0 %v28937_v9  ;;  %23127 = vmatprep.mubr.msk.f32.mxu0 %vm171_vm1, %v29143_v53  ;;  %v29159_v9 = vld [vmem:[#allocation2 + $0x38] sm:$0xff] }
 0xac8   : > { %23801 = vmatprep.subr.bf16.mxu0 %v23800_v61 }
 0xaca   : > { %23128 = vmatmul.mubr.msk.f32.gmra.mrb[66].mxu0 %vm171_vm1, %v29150_v25 }
 0xacb   : > { %23130 = vmatprep.mubr.msk.f32.mxu0 %vm171_vm1, %v29154_v49  ;;  %23803 = vmatpush3.bf16.msra.mxu0 %v23800_v61  ;;  %v29263_v61 = vld [vmem:[#allocation2 + $0x170] sm:$0xff] }
 0xacc   : > { %23805 = vmatprep.subr.bf16.mxu0 %v29148_v3 }
 0xace   : > { %23131 = vmatmul.mubr.msk.f32.gmra.mrb[68].mxu0 %vm171_vm1, %v29159_v9 }
 0xacf   : > { %23133 = vmatprep.mubr.msk.f32.mxu0 %vm171_vm1, %v29163_v19 }
 0xad2   : > { %23134 = vmatmul.mubr.msk.f32.gmra.mrb[70].mxu0 %vm171_vm1, %v29167_v44 }
 0xad3   : > { %23136 = vmatprep.mubr.msk.f32.mxu0 %vm171_vm1, %v29171_v56 }
 0xad6   : > { %23137 = vmatmul.mubr.msk.f32.gmra.mrb[72].mxu0 %vm171_vm1, %v29175_v8 }
 0xad7   : > { %23139 = vmatprep.mubr.msk.f32.mxu0 %vm171_vm1, %v29179_v55 }
 0xada   : > { %23140 = vmatmul.mubr.msk.f32.gmra.mrb[74].mxu0 %vm171_vm1, %v29183_v22 }
 0xadb   : > { %23142 = vmatprep.mubr.msk.f32.mxu0 %vm171_vm1, %v29187_v63 }
 0xade   : > { %23143 = vmatmul.mubr.msk.f32.gmra.mrb[76].mxu0 %vm171_vm1, %v29191_v33 }
 0xadf   : > { %23145 = vmatprep.mubr.msk.f32.mxu0 %vm171_vm1, %v29195_v20 }
 0xae2   : > { %23146 = vmatmul.mubr.msk.f32.gmra.mrb[78].mxu0 %vm171_vm1, %v29199_v45 }
 0xae3   : > { %23148 = vmatprep.mubr.msk.f32.mxu0 %vm171_vm1, %v29203_v23 }
 0xae6   : > { %23149 = vmatmul.mubr.msk.f32.gmra.mrb[80].mxu0 %vm171_vm1, %v29207_v50 }
 0xae7   : > { %23151 = vmatprep.mubr.msk.f32.mxu0 %vm171_vm1, %v29211_v21 }
 0xaea   : > { %23152 = vmatmul.mubr.msk.f32.gmra.mrb[82].mxu0 %vm171_vm1, %v29215_v4 }
 0xaeb   : > { %23154 = vmatprep.mubr.msk.f32.mxu0 %vm171_vm1, %v29219_v51 }
 0xaee   : > { %23155 = vmatmul.mubr.msk.f32.gmra.mrb[84].mxu0 %vm171_vm1, %v29223_v31 }
 0xaef   : > { %23157 = vmatprep.mubr.msk.f32.mxu0 %vm171_vm1, %v29227_v2 }
 0xaf2   : > { %23158 = vmatmul.mubr.msk.f32.gmra.mrb[86].mxu0 %vm171_vm1, %v29231_v52 }
 0xaf3   : > { %23160 = vmatprep.mubr.msk.f32.mxu0 %vm171_vm1, %v29235_v59 }
 0xaf6   : > { %23161 = vmatmul.mubr.msk.f32.gmra.mrb[88].mxu0 %vm171_vm1, %v29239_v13 }
 0xaf7   : > { %23163 = vmatprep.mubr.msk.f32.mxu0 %vm171_vm1, %v29243_v34 }
 0xafa   : > { %23164 = vmatmul.mubr.msk.f32.gmra.mrb[90].mxu0 %vm171_vm1, %v29247_v48 }
 0xafb   : > { %23166 = vmatprep.mubr.msk.f32.mxu0 %vm171_vm1, %v29251_v35 }
 0xafe   : > { %23167 = vmatmul.mubr.msk.f32.gmra.mrb[92].mxu0 %vm171_vm1, %v29255_v54 }
 0xaff   : > { %23169 = vmatprep.mubr.msk.f32.mxu0 %vm171_vm1, %v29259_v32 }
 0xb02   : > { %23170 = vmatmul.mubr.msk.f32.gmra.mrb[94].mxu0 %vm171_vm1, %v29263_v61 }
 0xb03   : > { %23180 = vmatprep.mubr.msk.f32.mxu0 %vm171_vm1, %v15151_v58  ;;  %v29286_v58 = vpack.c.bf16 %v15962_v6, %v15961_v27  ;;  %v29301_v6 = vld [vmem:[#allocation2 + $0x4a] sm:$0xff]  ;;  %v29305_v27 = vld [vmem:[#allocation2 + $0x52] sm:$0xff] }
 0xb04   : > { %30499 = vst [vmem:[#allocation9_spill] sm:$0xff] %v29301_v6  ;;  %30500 = vst [vmem:[#allocation24_spill] sm:$0xff] %v29305_v27 }
 0xb06   : > { %23181 = vmatmul.mubr.msk.f32.vlgmr.msra.gmra.mrb[64].mxu0 %vm171_vm1, %v15152_v1  ;;  %v29297_v1 = vld [vmem:[#allocation2 + $0x3a] sm:$0xff] }
 0xb07   : > { %23807 = vmatpush3.bf16.msra.mxu0 %v29148_v3  ;;  %23183 = vmatprep.mubr.msk.f32.mxu0 %vm171_vm1, %v29281_v60  ;;  %30498 = vst [vmem:[#allocation23_spill] sm:$0xff] %v29297_v1  ;;  %v29309_v3 = vld [vmem:[#allocation2 + $0x62] sm:$0xff] }
 0xb08   : > { %23809 = vmatprep.subr.bf16.mxu0 %v23808_v39  ;;  %30501 = vst [vmem:[#allocation10_spill] sm:$0xff] %v29309_v3 }
 0xb0a   : > { %23184 = vmatmul.mubr.msk.f32.gmra.mrb[66].mxu0 %vm171_vm1, %v29288_v62 }
 0xb0b   : > { %23186 = vmatprep.mubr.msk.f32.mxu0 %vm171_vm1, %v29292_v29  ;;  %23811 = vmatpush3.bf16.msra.mxu0 %v23808_v39  ;;  %v29313_v39 = vld [vmem:[#allocation2 + $0x6a] sm:$0xff] }
 0xb0c   : > { %23813 = vmatprep.subr.bf16.mxu0 %v29286_v58  ;;  %30502 = vst [vmem:[#allocation25_spill] sm:$0xff] %v29313_v39  ;;  %v16351_v29 = vld [vmem:[%s29873_s1 + $0x430] sm:$0xff] }
 0xb0e   : > { %23187 = vmatmul.mubr.msk.f32.gmra.mrb[68].mxu0 %vm171_vm1, %v29297_v1  ;;  %v29317_v1 = vld [vmem:[#allocation2 + $0x7a] sm:$0xff] }
 0xb0f   : > { %23189 = vmatprep.mubr.msk.f32.mxu0 %vm171_vm1, %v29301_v6  ;;  %30503 = vst [vmem:[#allocation11_spill] sm:$0xff] %v29317_v1  ;;  %v29321_v6 = vld [vmem:[#allocation2 + $0x82] sm:$0xff] }
 0xb10   : > { %30504 = vst [vmem:[#allocation26_spill] sm:$0xff] %v29321_v6 }
 0xb12   : > { %23190 = vmatmul.mubr.msk.f32.gmra.mrb[70].mxu0 %vm171_vm1, %v29305_v27  ;;  %v29325_v27 = vld [vmem:[#allocation2 + $0x92] sm:$0xff] }
 0xb13   : > { %23192 = vmatprep.mubr.msk.f32.mxu0 %vm171_vm1, %v29309_v3  ;;  %30505 = vst [vmem:[#allocation12_spill] sm:$0xff] %v29325_v27  ;;  %v29329_v3 = vld [vmem:[#allocation2 + $0x9a] sm:$0xff] }
 0xb14   : > { %30506 = vst [vmem:[#allocation27_spill] sm:$0xff] %v29329_v3 }
 0xb16   : > { %23193 = vmatmul.mubr.msk.f32.gmra.mrb[72].mxu0 %vm171_vm1, %v29313_v39  ;;  %v29333_v39 = vld [vmem:[#allocation2 + $0xaa] sm:$0xff] }
 0xb17   : > { %23195 = vmatprep.mubr.msk.f32.mxu0 %vm171_vm1, %v29317_v1  ;;  %30507 = vst [vmem:[#allocation16_spill] sm:$0xff] %v29333_v39  ;;  %v29337_v1 = vld [vmem:[#allocation2 + $0xb2] sm:$0xff] }
 0xb18   : > { %30508 = vst [vmem:[#allocation17_spill] sm:$0xff] %v29337_v1 }
 0xb1a   : > { %23196 = vmatmul.mubr.msk.f32.gmra.mrb[74].mxu0 %vm171_vm1, %v29321_v6  ;;  %v29341_v6 = vld [vmem:[#allocation2 + $0xc2] sm:$0xff] }
 0xb1b   : > { %23198 = vmatprep.mubr.msk.f32.mxu0 %vm171_vm1, %v29325_v27  ;;  %30509 = vst [vmem:[#allocation13_spill] sm:$0xff] %v29341_v6  ;;  %v29345_v27 = vld [vmem:[#allocation2 + $0xca] sm:$0xff] }
 0xb1c   : > { %30510 = vst [vmem:[#allocation30_spill] sm:$0xff] %v29345_v27 }
 0xb1e   : > { %23199 = vmatmul.mubr.msk.f32.gmra.mrb[76].mxu0 %vm171_vm1, %v29329_v3  ;;  %v29349_v3 = vld [vmem:[#allocation2 + $0xda] sm:$0xff] }
 0xb1f   : > { %23201 = vmatprep.mubr.msk.f32.mxu0 %vm171_vm1, %v29333_v39  ;;  %30511 = vst [vmem:[#allocation33_spill] sm:$0xff] %v29349_v3  ;;  %v29353_v39 = vld [vmem:[#allocation2 + $0xe2] sm:$0xff] }
 0xb20   : > { %30512 = vst [vmem:[#allocation32_spill] sm:$0xff] %v29353_v39 }
 0xb22   : > { %23202 = vmatmul.mubr.msk.f32.gmra.mrb[78].mxu0 %vm171_vm1, %v29337_v1  ;;  %v29357_v1 = vld [vmem:[#allocation2 + $0xf2] sm:$0xff] }
 0xb23   : > { %23204 = vmatprep.mubr.msk.f32.mxu0 %vm171_vm1, %v29341_v6  ;;  %30513 = vst [vmem:[#allocation35_spill] sm:$0xff] %v29357_v1  ;;  %v29361_v6 = vld [vmem:[#allocation2 + $0xfa] sm:$0xff] }
 0xb24   : > { %30514 = vst [vmem:[#allocation28_spill] sm:$0xff] %v29361_v6 }
 0xb26   : > { %23205 = vmatmul.mubr.msk.f32.gmra.mrb[80].mxu0 %vm171_vm1, %v29345_v27  ;;  %v29365_v27 = vld [vmem:[#allocation2 + $0x10a] sm:$0xff] }
 0xb27   : > { %23207 = vmatprep.mubr.msk.f32.mxu0 %vm171_vm1, %v29349_v3  ;;  %30515 = vst [vmem:[#allocation14_spill] sm:$0xff] %v29365_v27  ;;  %v29369_v3 = vld [vmem:[#allocation2 + $0x112] sm:$0xff] }
 0xb28   : > { %30516 = vst [vmem:[#allocation29_spill] sm:$0xff] %v29369_v3 }
 0xb2a   : > { %23208 = vmatmul.mubr.msk.f32.gmra.mrb[82].mxu0 %vm171_vm1, %v29353_v39  ;;  %v29373_v39 = vld [vmem:[#allocation2 + $0x122] sm:$0xff] }
 0xb2b   : > { %23210 = vmatprep.mubr.msk.f32.mxu0 %vm171_vm1, %v29357_v1  ;;  %30517 = vst [vmem:[#allocation15_spill] sm:$0xff] %v29373_v39  ;;  %v29377_v1 = vld [vmem:[#allocation2 + $0x12a] sm:$0xff] }
 0xb2c   : > { %30518 = vst [vmem:[#allocation34_spill] sm:$0xff] %v29377_v1 }
 0xb2e   : > { %23211 = vmatmul.mubr.msk.f32.gmra.mrb[84].mxu0 %vm171_vm1, %v29361_v6  ;;  %v29381_v6 = vld [vmem:[#allocation2 + $0x13a] sm:$0xff] }
 0xb2f   : > { %23213 = vmatprep.mubr.msk.f32.mxu0 %vm171_vm1, %v29365_v27  ;;  %30519 = vst [vmem:[#allocation31_spill] sm:$0xff] %v29381_v6  ;;  %v29385_v27 = vld [vmem:[#allocation2 + $0x142] sm:$0xff] }
 0xb30   : > { %30520 = vst [vmem:[#allocation3_spill] sm:$0xff] %v29385_v27 }
 0xb32   : > { %23214 = vmatmul.mubr.msk.f32.gmra.mrb[86].mxu0 %vm171_vm1, %v29369_v3  ;;  %v29389_v3 = vld [vmem:[#allocation2 + $0x152] sm:$0xff] }
 0xb33   : > { %23216 = vmatprep.mubr.msk.f32.mxu0 %vm171_vm1, %v29373_v39  ;;  %30521 = vst [vmem:[#allocation18_spill] sm:$0xff] %v29389_v3  ;;  %v29393_v39 = vld [vmem:[#allocation2 + $0x15a] sm:$0xff] }
 0xb34   : > { %30522 = vst [vmem:[#allocation4_spill] sm:$0xff] %v29393_v39 }
 0xb36   : > { %23217 = vmatmul.mubr.msk.f32.gmra.mrb[88].mxu0 %vm171_vm1, %v29377_v1  ;;  %v29397_v1 = vld [vmem:[#allocation2 + $0x16a] sm:$0xff] }
 0xb37   : > { %23219 = vmatprep.mubr.msk.f32.mxu0 %vm171_vm1, %v29381_v6  ;;  %30523 = vst [vmem:[#allocation19_spill] sm:$0xff] %v29397_v1  ;;  %v29401_v6 = vld [vmem:[#allocation2 + $0x172] sm:$0xff] }
 0xb38   : > { %30524 = vst [vmem:[#allocation5_spill] sm:$0xff] %v29401_v6 }
 0xb3a   : > { %23220 = vmatmul.mubr.msk.f32.gmra.mrb[90].mxu0 %vm171_vm1, %v29385_v27  ;;  %v15963_v27 = vld [vmem:[%s29873_s1 + $0x418] sm:$0xff] }
 0xb3b   : > { %23222 = vmatprep.mubr.msk.f32.mxu0 %vm171_vm1, %v29389_v3  ;;  %v15964_v3 = vld [vmem:[%s29873_s1 + $0x420] sm:$0xff] }
 0xb3e   : > { %23223 = vmatmul.mubr.msk.f32.gmra.mrb[92].mxu0 %vm171_vm1, %v29393_v39  ;;  %v23816_v39 = vpack.c.bf16 %v15964_v3, %v15963_v27  ;;  %v16739_v27 = vld [vmem:[%s29873_s1 + $0x448] sm:$0xff]  ;;  %v16740_v3 = vld [vmem:[%s29873_s1 + $0x450] sm:$0xff] }
 0xb3f   : > { %23225 = vmatprep.mubr.msk.f32.mxu0 %vm171_vm1, %v29397_v1  ;;  %v16350_v1 = vld [vmem:[%s29873_s1 + $0x428] sm:$0xff] }
 0xb42   : > { %23226 = vmatmul.mubr.msk.f32.gmra.mrb[94].mxu0 %vm171_vm1, %v29401_v6  ;;  %v23820_v6 = vpack.c.bf16 %v16351_v29, %v16350_v1  ;;  %v16353_v29 = vld [vmem:[%s29873_s1 + $0x440] sm:$0xff] }
 0xb43   : > { %23236 = vmatprep.mubr.msk.f32.mxu0 %vm171_vm1, %v29143_v53  ;;  %v29478_v53 = vld [vmem:[#allocation2 + $0x180] sm:$0xff] }
 0xb46   : > { %23237 = vmatmul.mubr.msk.f32.vlgmr.msra.gmra.mrb[64].mxu0 %vm171_vm1, %v29150_v25  ;;  %v29482_v25 = vld [vmem:[#allocation2 + $0x188] sm:$0xff] }
 0xb47   : > { %23815 = vmatpush3.bf16.msra.mxu0 %v29286_v58  ;;  %23239 = vmatprep.mubr.msk.f32.mxu0 %vm171_vm1, %v29154_v49  ;;  %v16352_v58 = vld [vmem:[%s29873_s1 + $0x438] sm:$0xff] }
 0xb48   : > { %23817 = vmatprep.subr.bf16.mxu0 %v23816_v39  ;;  %v23824_v1 = vpack.c.bf16 %v16353_v29, %v16352_v58  ;;  %v30544_v58 = vld [vmem:[#allocation33_spill] sm:$0xff]  ;;  %v30545_v29 = vld [vmem:[#allocation32_spill] sm:$0xff] }
 0xb4a   : > { %23240 = vmatmul.mubr.msk.f32.gmra.mrb[66].mxu0 %vm171_vm1, %v29159_v9 }
 0xb4b   : > { %23242 = vmatprep.mubr.msk.f32.mxu0 %vm171_vm1, %v29163_v19  ;;  %23819 = vmatpush3.bf16.msra.mxu0 %v23816_v39  ;;  %v23828_v39 = vpack.c.bf16 %v16740_v3, %v16739_v27  ;;  %v30547_v27 = vld [vmem:[#allocation28_spill] sm:$0xff]  ;;  %v30548_v3 = vld [vmem:[#allocation14_spill] sm:$0xff] }
 0xb4c   : > { %23821 = vmatprep.subr.bf16.mxu0 %v23820_v6 }
 0xb4e   : > { %23243 = vmatmul.mubr.msk.f32.gmra.mrb[68].mxu0 %vm171_vm1, %v29167_v44 }
 0xb4f   : > { %23245 = vmatprep.mubr.msk.f32.mxu0 %vm171_vm1, %v29171_v56 }
 0xb52   : > { %23246 = vmatmul.mubr.msk.f32.gmra.mrb[70].mxu0 %vm171_vm1, %v29175_v8 }
 0xb53   : > { %23248 = vmatprep.mubr.msk.f32.mxu0 %vm171_vm1, %v29179_v55 }
 0xb56   : > { %23249 = vmatmul.mubr.msk.f32.gmra.mrb[72].mxu0 %vm171_vm1, %v29183_v22 }
 0xb57   : > { %23251 = vmatprep.mubr.msk.f32.mxu0 %vm171_vm1, %v29187_v63 }
 0xb5a   : > { %23252 = vmatmul.mubr.msk.f32.gmra.mrb[74].mxu0 %vm171_vm1, %v29191_v33 }
 0xb5b   : > { %23254 = vmatprep.mubr.msk.f32.mxu0 %vm171_vm1, %v29195_v20 }
 0xb5e   : > { %23255 = vmatmul.mubr.msk.f32.gmra.mrb[76].mxu0 %vm171_vm1, %v29199_v45 }
 0xb5f   : > { %23257 = vmatprep.mubr.msk.f32.mxu0 %vm171_vm1, %v29203_v23 }
 0xb62   : > { %23258 = vmatmul.mubr.msk.f32.gmra.mrb[78].mxu0 %vm171_vm1, %v29207_v50 }
 0xb63   : > { %23260 = vmatprep.mubr.msk.f32.mxu0 %vm171_vm1, %v29211_v21 }
 0xb66   : > { %23261 = vmatmul.mubr.msk.f32.gmra.mrb[80].mxu0 %vm171_vm1, %v29215_v4 }
 0xb67   : > { %23263 = vmatprep.mubr.msk.f32.mxu0 %vm171_vm1, %v29219_v51 }
 0xb6a   : > { %23264 = vmatmul.mubr.msk.f32.gmra.mrb[82].mxu0 %vm171_vm1, %v29223_v31 }
 0xb6b   : > { %23266 = vmatprep.mubr.msk.f32.mxu0 %vm171_vm1, %v29227_v2 }
 0xb6e   : > { %23267 = vmatmul.mubr.msk.f32.gmra.mrb[84].mxu0 %vm171_vm1, %v29231_v52 }
 0xb6f   : > { %23269 = vmatprep.mubr.msk.f32.mxu0 %vm171_vm1, %v29235_v59 }
 0xb72   : > { %23270 = vmatmul.mubr.msk.f32.gmra.mrb[86].mxu0 %vm171_vm1, %v29239_v13 }
 0xb73   : > { %23272 = vmatprep.mubr.msk.f32.mxu0 %vm171_vm1, %v29243_v34 }
 0xb76   : > { %23273 = vmatmul.mubr.msk.f32.gmra.mrb[88].mxu0 %vm171_vm1, %v29247_v48 }
 0xb77   : > { %23275 = vmatprep.mubr.msk.f32.mxu0 %vm171_vm1, %v29251_v35 }
 0xb7a   : > { %23276 = vmatmul.mubr.msk.f32.gmra.mrb[90].mxu0 %vm171_vm1, %v29255_v54 }
 0xb7b   : > { %23278 = vmatprep.mubr.msk.f32.mxu0 %vm171_vm1, %v29259_v32 }
 0xb7e   : > { %23279 = vmatmul.mubr.msk.f32.gmra.mrb[92].mxu0 %vm171_vm1, %v29263_v61 }
 0xb7f   : > { %23281 = vmatprep.mubr.msk.f32.mxu0 %vm171_vm1, %v29478_v53 }
 0xb82   : > { %23282 = vmatmul.mubr.msk.f32.gmra.mrb[94].mxu0 %vm171_vm1, %v29482_v25 }
 0xb83   : > { %23292 = vmatprep.mubr.msk.f32.mxu0 %vm171_vm1, %v28957_v14  ;;  %v30525_v14 = vld [vmem:[#allocation20_spill] sm:$0xff] }
 0xb86   : > { %23293 = vmatmul.mubr.msk.f32.vlgmr.msra.gmra.mrb[64].mxu0 %vm171_vm1, %v28963_v43  ;;  %v30526_v43 = vld [vmem:[#allocation6_spill] sm:$0xff] }
 0xb87   : > { %23823 = vmatpush3.bf16.msra.mxu0 %v23820_v6  ;;  %23295 = vmatprep.mubr.msk.f32.mxu0 %vm171_vm1, %v28969_v41  ;;  %v30527_v41 = vld [vmem:[#allocation21_spill] sm:$0xff]  ;;  %v30543_v6 = vld [vmem:[#allocation30_spill] sm:$0xff] }
 0xb88   : > { %23825 = vmatprep.subr.bf16.mxu0 %v23824_v1 }
 0xb8a   : > { %23296 = vmatmul.mubr.msk.f32.gmra.mrb[66].mxu0 %vm171_vm1, %v28975_v36  ;;  %v30528_v36 = vld [vmem:[#allocation7_spill] sm:$0xff] }
 0xb8b   : > { %23298 = vmatprep.mubr.msk.f32.mxu0 %vm171_vm1, %v28981_v46  ;;  %23827 = vmatpush3.bf16.msra.mxu0 %v23824_v1  ;;  %v30529_v46 = vld [vmem:[#allocation22_spill] sm:$0xff]  ;;  %v30546_v1 = vld [vmem:[#allocation35_spill] sm:$0xff] }
 0xb8c   : > { %23829 = vmatprep.subr.bf16.mxu0 %v23828_v39 }
 0xb8e   : > { %23299 = vmatmul.mubr.msk.f32.gmra.mrb[68].mxu0 %vm171_vm1, %v28987_v16  ;;  %v29558_v16 = vld [vmem:[#allocation2 + $0x181] sm:$0xff] }
 0xb8f   : > { %23301 = vmatprep.mubr.msk.f32.mxu0 %vm171_vm1, %v28993_v11  ;;  %v29562_v11 = vld [vmem:[#allocation2 + $0x189] sm:$0xff] }
 0xb92   : > { %23302 = vmatmul.mubr.msk.f32.gmra.mrb[70].mxu0 %vm171_vm1, %v28999_v7  ;;  %v16741_v7 = vld [vmem:[%s29873_s1 + $0x458] sm:$0xff] }
 0xb93   : > { %23304 = vmatprep.mubr.msk.f32.mxu0 %vm171_vm1, %v29005_v10  ;;  %v16742_v10 = vld [vmem:[%s29873_s1 + $0x460] sm:$0xff] }
 0xb96   : > { %23305 = vmatmul.mubr.msk.f32.gmra.mrb[72].mxu0 %vm171_vm1, %v29011_v12  ;;  %v23832_v12 = vpack.c.bf16 %v16742_v10, %v16741_v7  ;;  %v30550_v7 = vld [vmem:[#allocation15_spill] sm:$0xff]  ;;  %v30551_v10 = vld [vmem:[#allocation34_spill] sm:$0xff] }
 0xb97   : > { %23307 = vmatprep.mubr.msk.f32.mxu0 %vm171_vm1, %v29017_v18  ;;  %v17128_v18 = vld [vmem:[%s29873_s1 + $0x468] sm:$0xff] }
 0xb9a   : > { %23308 = vmatmul.mubr.msk.f32.gmra.mrb[74].mxu0 %vm171_vm1, %v29023_v37  ;;  %v17129_v37 = vld [vmem:[%s29873_s1 + $0x470] sm:$0xff] }
 0xb9b   : > { %23310 = vmatprep.mubr.msk.f32.mxu0 %vm171_vm1, %v29029_v30  ;;  %v30530_v30 = vld [vmem:[#allocation8_spill] sm:$0xff] }
 0xb9e   : > { %23311 = vmatmul.mubr.msk.f32.gmra.mrb[76].mxu0 %vm171_vm1, %v29035_v57  ;;  %v23836_v57 = vpack.c.bf16 %v17129_v37, %v17128_v18  ;;  %v30553_v18 = vld [vmem:[#allocation3_spill] sm:$0xff]  ;;  %v30554_v37 = vld [vmem:[#allocation18_spill] sm:$0xff] }
 0xb9f   : > { %23313 = vmatprep.mubr.msk.f32.mxu0 %vm171_vm1, %v29041_v24  ;;  %v30531_v24 = vld [vmem:[#allocation23_spill] sm:$0xff] }
 0xba2   : > { %23314 = vmatmul.mubr.msk.f32.gmra.mrb[78].mxu0 %vm171_vm1, %v29047_v0  ;;  %v30532_v0 = vld [vmem:[#allocation9_spill] sm:$0xff] }
 0xba3   : > { %23316 = vmatprep.mubr.msk.f32.mxu0 %vm171_vm1, %v29053_v17  ;;  %v30533_v17 = vld [vmem:[#allocation24_spill] sm:$0xff] }
 0xba6   : > { %23317 = vmatmul.mubr.msk.f32.gmra.mrb[80].mxu0 %vm171_vm1, %v29059_v38  ;;  %v30534_v38 = vld [vmem:[#allocation10_spill] sm:$0xff] }
 0xba7   : > { %23319 = vmatprep.mubr.msk.f32.mxu0 %vm171_vm1, %v29065_v40  ;;  %v30535_v40 = vld [vmem:[#allocation25_spill] sm:$0xff] }
 0xbaa   : > { %23320 = vmatmul.mubr.msk.f32.gmra.mrb[82].mxu0 %vm171_vm1, %v29071_v47  ;;  %v30536_v47 = vld [vmem:[#allocation11_spill] sm:$0xff] }
 0xbab   : > { %23322 = vmatprep.mubr.msk.f32.mxu0 %vm171_vm1, %v29077_v42  ;;  %v30537_v42 = vld [vmem:[#allocation26_spill] sm:$0xff] }
 0xbae   : > { %23323 = vmatmul.mubr.msk.f32.gmra.mrb[84].mxu0 %vm171_vm1, %v29083_v5  ;;  %v30538_v5 = vld [vmem:[#allocation12_spill] sm:$0xff] }
 0xbaf   : > { %23325 = vmatprep.mubr.msk.f32.mxu0 %vm171_vm1, %v29089_v15  ;;  %v30539_v15 = vld [vmem:[#allocation27_spill] sm:$0xff] }
 0xbb2   : > { %23326 = vmatmul.mubr.msk.f32.gmra.mrb[86].mxu0 %vm171_vm1, %v29095_v26  ;;  %v30540_v26 = vld [vmem:[#allocation16_spill] sm:$0xff] }
 0xbb3   : > { %23328 = vmatprep.mubr.msk.f32.mxu0 %vm171_vm1, %v29101_v28 }
 0xbb6   : > { %23329 = vmatmul.mubr.msk.f32.gmra.mrb[88].mxu0 %vm171_vm1, %v30525_v14 }
 0xbb7   : > { %23331 = vmatprep.mubr.msk.f32.mxu0 %vm171_vm1, %v30526_v43 }
 0xbba   : > { %23332 = vmatmul.mubr.msk.f32.gmra.mrb[90].mxu0 %vm171_vm1, %v30527_v41 }
 0xbbb   : > { %23334 = vmatprep.mubr.msk.f32.mxu0 %vm171_vm1, %v30528_v36 }
 0xbbe   : > { %23335 = vmatmul.mubr.msk.f32.gmra.mrb[92].mxu0 %vm171_vm1, %v30529_v46 }
 0xbbf   : > { %23337 = vmatprep.mubr.msk.f32.mxu0 %vm171_vm1, %v29558_v16 }
 0xbc2   : > { %23338 = vmatmul.mubr.msk.f32.gmra.mrb[94].mxu0 %vm171_vm1, %v29562_v11 }
 0xbc3   : > { %23348 = vmatprep.mubr.msk.f32.mxu0 %vm171_vm1, %v29281_v60  ;;  %v30541_v60 = vld [vmem:[#allocation17_spill] sm:$0xff] }
 0xbc6   : > { %23349 = vmatmul.mubr.msk.f32.vlgmr.msra.gmra.mrb[64].mxu0 %vm171_vm1, %v29288_v62  ;;  %v30542_v62 = vld [vmem:[#allocation13_spill] sm:$0xff] }
 0xbc7   : > { %23831 = vmatpush3.bf16.msra.mxu0 %v23828_v39  ;;  %23351 = vmatprep.mubr.msk.f32.mxu0 %vm171_vm1, %v30530_v30  ;;  %v30549_v39 = vld [vmem:[#allocation29_spill] sm:$0xff] }
 0xbc8   : > { %23833 = vmatprep.subr.bf16.mxu0 %v23832_v12 }
 0xbca   : > { %23352 = vmatmul.mubr.msk.f32.gmra.mrb[66].mxu0 %vm171_vm1, %v30531_v24 }
 0xbcb   : > { %23354 = vmatprep.mubr.msk.f32.mxu0 %vm171_vm1, %v30532_v0  ;;  %23835 = vmatpush3.bf16.msra.mxu0 %v23832_v12  ;;  %v30552_v12 = vld [vmem:[#allocation31_spill] sm:$0xff] }
 0xbcc   : > { %23837 = vmatprep.subr.bf16.mxu0 %v23836_v57 }
 0xbce   : > { %23355 = vmatmul.mubr.msk.f32.gmra.mrb[68].mxu0 %vm171_vm1, %v30533_v17 }
 0xbcf   : > { %23357 = vmatprep.mubr.msk.f32.mxu0 %vm171_vm1, %v30534_v38 }
 0xbd2   : > { %23358 = vmatmul.mubr.msk.f32.gmra.mrb[70].mxu0 %vm171_vm1, %v30535_v40 }
 0xbd3   : > { %23360 = vmatprep.mubr.msk.f32.mxu0 %vm171_vm1, %v30536_v47 }
 0xbd6   : > { %23361 = vmatmul.mubr.msk.f32.gmra.mrb[72].mxu0 %vm171_vm1, %v30537_v42 }
 0xbd7   : > { %23363 = vmatprep.mubr.msk.f32.mxu0 %vm171_vm1, %v30538_v5 }
 0xbda   : > { %23364 = vmatmul.mubr.msk.f32.gmra.mrb[74].mxu0 %vm171_vm1, %v30539_v15 }
 0xbdb   : > { %23366 = vmatprep.mubr.msk.f32.mxu0 %vm171_vm1, %v30540_v26 }
 0xbde   : > { %23367 = vmatmul.mubr.msk.f32.gmra.mrb[76].mxu0 %vm171_vm1, %v30541_v60 }
 0xbdf   : > { %23369 = vmatprep.mubr.msk.f32.mxu0 %vm171_vm1, %v30542_v62 }
 0xbe2   : > { %23370 = vmatmul.mubr.msk.f32.gmra.mrb[78].mxu0 %vm171_vm1, %v30543_v6 }
 0xbe3   : > { %23372 = vmatprep.mubr.msk.f32.mxu0 %vm171_vm1, %v30544_v58 }
 0xbe6   : > { %23373 = vmatmul.mubr.msk.f32.gmra.mrb[80].mxu0 %vm171_vm1, %v30545_v29 }
 0xbe7   : > { %23375 = vmatprep.mubr.msk.f32.mxu0 %vm171_vm1, %v30546_v1 }
 0xbea   : > { %23376 = vmatmul.mubr.msk.f32.gmra.mrb[82].mxu0 %vm171_vm1, %v30547_v27  ;;  %v30555_v27 = vld [vmem:[#allocation4_spill] sm:$0xff] }
 0xbeb   : > { %23378 = vmatprep.mubr.msk.f32.mxu0 %vm171_vm1, %v30548_v3  ;;  %v30556_v3 = vld [vmem:[#allocation19_spill] sm:$0xff] }
 0xbee   : > { %23379 = vmatmul.mubr.msk.f32.gmra.mrb[84].mxu0 %vm171_vm1, %v30549_v39  ;;  %v30557_v39 = vld [vmem:[#allocation5_spill] sm:$0xff] }
 0xbef   : > { %23381 = vmatprep.mubr.msk.f32.mxu0 %vm171_vm1, %v30550_v7  ;;  %v29638_v7 = vld [vmem:[#allocation2 + $0x182] sm:$0xff] }
 0xbf0   : > { %30558 = vst [vmem:[#allocation20_spill] sm:$0xff] %v29638_v7 }
 0xbf2   : > { %23382 = vmatmul.mubr.msk.f32.gmra.mrb[86].mxu0 %vm171_vm1, %v30551_v10 }
 0xbf3   : > { %23384 = vmatprep.mubr.msk.f32.mxu0 %vm171_vm1, %v30552_v12  ;;  %v29642_v12 = vld [vmem:[#allocation2 + $0x18a] sm:$0xff] }
 0xbf4   : > { %30559 = vst [vmem:[#allocation6_spill] sm:$0xff] %v29642_v12 }
 0xbf6   : > { %23385 = vmatmul.mubr.msk.f32.gmra.mrb[88].mxu0 %vm171_vm1, %v30553_v18 }
 0xbf7   : > { %23387 = vmatprep.mubr.msk.f32.mxu0 %vm171_vm1, %v30554_v37  ;;  %v17130_v37 = vld [vmem:[%s29873_s1 + $0x478] sm:$0xff] }
 0xbfa   : > { %23388 = vmatmul.mubr.msk.f32.gmra.mrb[90].mxu0 %vm171_vm1, %v30555_v27  ;;  %v17131_v27 = vld [vmem:[%s29873_s1 + $0x480] sm:$0xff] }
 0xbfb   : > { %23390 = vmatprep.mubr.msk.f32.mxu0 %vm171_vm1, %v30556_v3  ;;  %v17518_v3 = vld [vmem:[%s29873_s1 + $0x490] sm:$0xff] }
 0xbfe   : > { %23391 = vmatmul.mubr.msk.f32.gmra.mrb[92].mxu0 %vm171_vm1, %v30557_v39  ;;  %v23840_v39 = vpack.c.bf16 %v17131_v27, %v17130_v37 }
 0xbff   : > { %23393 = vmatprep.mubr.msk.f32.mxu0 %vm171_vm1, %v29638_v7  ;;  %v17517_v7 = vld [vmem:[%s29873_s1 + $0x488] sm:$0xff] }
 0xc02   : > { %23394 = vmatmul.mubr.msk.f32.gmra.mrb[94].mxu0 %vm171_vm1, %v29642_v12  ;;  %v23844_v12 = vpack.c.bf16 %v17518_v3, %v17517_v7 }
 0xc03   : > { %23404 = vmatprep.mubr.msk.f32.mxu0 %vm171_vm1, %v29154_v49  ;;  %v16737_v49 = vld [vmem:[#allocation2 + $0x198] sm:$0xff] }
 0xc06   : > { %23405 = vmatmul.mubr.msk.f32.vlgmr.msra.gmra.mrb[64].mxu0 %vm171_vm1, %v29159_v9  ;;  %v16738_v9 = vld [vmem:[#allocation2 + $0x1a0] sm:$0xff] }
 0xc07   : > { %23839 = vmatpush3.bf16.msra.mxu0 %v23836_v57  ;;  %23407 = vmatprep.mubr.msk.f32.mxu0 %vm171_vm1, %v29163_v19  ;;  %v17519_v19 = vld [vmem:[%s29873_s1 + $0x498] sm:$0xff] }
 0xc08   : > { %23841 = vmatprep.subr.bf16.mxu0 %v23840_v39  ;;  %v17515_v57 = vld [vmem:[#allocation2 + $0x19a] sm:$0xff] }
 0xc0a   : > { %23408 = vmatmul.mubr.msk.f32.gmra.mrb[66].mxu0 %vm171_vm1, %v29167_v44  ;;  %v17520_v44 = vld [vmem:[%s29873_s1 + $0x4a0] sm:$0xff] }
 0xc0b   : > { %23410 = vmatprep.mubr.msk.f32.mxu0 %vm171_vm1, %v29171_v56  ;;  %23843 = vmatpush3.bf16.msra.mxu0 %v23840_v39  ;;  %v17096_v56 = vld [vmem:[#allocation2 + $0x31] sm:$0xff] }
 0xc0c   : > { %23845 = vmatprep.subr.bf16.mxu0 %v23844_v12 }
 0xc0e   : > { %23411 = vmatmul.mubr.msk.f32.gmra.mrb[68].mxu0 %vm171_vm1, %v29175_v8  ;;  %v23848_v8 = vpack.c.bf16 %v17520_v44, %v17519_v19 }
 0xc0f   : > { %23413 = vmatprep.mubr.msk.f32.mxu0 %vm171_vm1, %v29179_v55  ;;  %v17097_v55 = vld [vmem:[#allocation2 + $0x39] sm:$0xff] }
 0xc12   : > { %23414 = vmatmul.mubr.msk.f32.gmra.mrb[70].mxu0 %vm171_vm1, %v29183_v22  ;;  %v17098_v22 = vld [vmem:[#allocation2 + $0x49] sm:$0xff] }
 0xc13   : > { %23416 = vmatprep.mubr.msk.f32.mxu0 %vm171_vm1, %v29187_v63  ;;  %v17099_v63 = vld [vmem:[#allocation2 + $0x51] sm:$0xff] }
 0xc16   : > { %23417 = vmatmul.mubr.msk.f32.gmra.mrb[72].mxu0 %vm171_vm1, %v29191_v33  ;;  %v17100_v33 = vld [vmem:[#allocation2 + $0x61] sm:$0xff] }
 0xc17   : > { %23419 = vmatprep.mubr.msk.f32.mxu0 %vm171_vm1, %v29195_v20  ;;  %v17101_v20 = vld [vmem:[#allocation2 + $0x69] sm:$0xff] }
 0xc1a   : > { %23420 = vmatmul.mubr.msk.f32.gmra.mrb[74].mxu0 %vm171_vm1, %v29199_v45  ;;  %v17102_v45 = vld [vmem:[#allocation2 + $0x79] sm:$0xff] }
 0xc1b   : > { %23422 = vmatprep.mubr.msk.f32.mxu0 %vm171_vm1, %v29203_v23  ;;  %v17103_v23 = vld [vmem:[#allocation2 + $0x81] sm:$0xff] }
 0xc1e   : > { %23423 = vmatmul.mubr.msk.f32.gmra.mrb[76].mxu0 %vm171_vm1, %v29207_v50  ;;  %v17104_v50 = vld [vmem:[#allocation2 + $0x91] sm:$0xff] }
 0xc1f   : > { %23425 = vmatprep.mubr.msk.f32.mxu0 %vm171_vm1, %v29211_v21  ;;  %v17105_v21 = vld [vmem:[#allocation2 + $0x99] sm:$0xff] }
 0xc22   : > { %23426 = vmatmul.mubr.msk.f32.gmra.mrb[78].mxu0 %vm171_vm1, %v29215_v4  ;;  %v17106_v4 = vld [vmem:[#allocation2 + $0xa9] sm:$0xff] }
 0xc23   : > { %23428 = vmatprep.mubr.msk.f32.mxu0 %vm171_vm1, %v29219_v51  ;;  %v17107_v51 = vld [vmem:[#allocation2 + $0xb1] sm:$0xff] }
 0xc26   : > { %23429 = vmatmul.mubr.msk.f32.gmra.mrb[80].mxu0 %vm171_vm1, %v29223_v31  ;;  %v17108_v31 = vld [vmem:[#allocation2 + $0xc1] sm:$0xff] }
 0xc27   : > { %23431 = vmatprep.mubr.msk.f32.mxu0 %vm171_vm1, %v29227_v2  ;;  %v17109_v2 = vld [vmem:[#allocation2 + $0xc9] sm:$0xff] }
 0xc2a   : > { %23432 = vmatmul.mubr.msk.f32.gmra.mrb[82].mxu0 %vm171_vm1, %v29231_v52  ;;  %v17110_v52 = vld [vmem:[#allocation2 + $0xd9] sm:$0xff] }
 0xc2b   : > { %23434 = vmatprep.mubr.msk.f32.mxu0 %vm171_vm1, %v29235_v59  ;;  %v17111_v59 = vld [vmem:[#allocation2 + $0xe1] sm:$0xff] }
 0xc2e   : > { %23435 = vmatmul.mubr.msk.f32.gmra.mrb[84].mxu0 %vm171_vm1, %v29239_v13  ;;  %v17112_v13 = vld [vmem:[#allocation2 + $0xf1] sm:$0xff] }
 0xc2f   : > { %23437 = vmatprep.mubr.msk.f32.mxu0 %vm171_vm1, %v29243_v34  ;;  %v17113_v34 = vld [vmem:[#allocation2 + $0xf9] sm:$0xff] }
 0xc32   : > { %23438 = vmatmul.mubr.msk.f32.gmra.mrb[86].mxu0 %vm171_vm1, %v29247_v48  ;;  %v17114_v48 = vld [vmem:[#allocation2 + $0x109] sm:$0xff] }
 0xc33   : > { %23440 = vmatprep.mubr.msk.f32.mxu0 %vm171_vm1, %v29251_v35  ;;  %v17115_v35 = vld [vmem:[#allocation2 + $0x111] sm:$0xff] }
 0xc36   : > { %23441 = vmatmul.mubr.msk.f32.gmra.mrb[88].mxu0 %vm171_vm1, %v29255_v54  ;;  %v17116_v54 = vld [vmem:[#allocation2 + $0x121] sm:$0xff] }
 0xc37   : > { %23443 = vmatprep.mubr.msk.f32.mxu0 %vm171_vm1, %v29259_v32  ;;  %v17117_v32 = vld [vmem:[#allocation2 + $0x129] sm:$0xff] }
 0xc3a   : > { %23444 = vmatmul.mubr.msk.f32.gmra.mrb[90].mxu0 %vm171_vm1, %v29263_v61  ;;  %v17126_v61 = vld [vmem:[#allocation2 + $0x199] sm:$0xff] }
 0xc3b   : > { %23446 = vmatprep.mubr.msk.f32.mxu0 %vm171_vm1, %v29478_v53  ;;  %v30560_v53 = vld [vmem:[#allocation28_spill] sm:$0xff] }
 0xc3e   : > { %23447 = vmatmul.mubr.msk.f32.gmra.mrb[92].mxu0 %vm171_vm1, %v29482_v25  ;;  %v30561_v25 = vld [vmem:[#allocation14_spill] sm:$0xff] }
 0xc3f   : > { %23449 = vmatprep.mubr.msk.f32.mxu0 %vm171_vm1, %v16737_v49 }
 0xc42   : > { %23450 = vmatmul.mubr.msk.f32.gmra.mrb[94].mxu0 %vm171_vm1, %v16738_v9 }
 0xc43   : > { %23460 = vmatprep.mubr.msk.f32.mxu0 %vm171_vm1, %v17096_v56 }
 0xc46   : > { %23461 = vmatmul.mubr.msk.f32.vlgmr.msra.gmra.mrb[64].mxu0 %vm171_vm1, %v17097_v55 }
 0xc47   : > { %23847 = vmatpush3.bf16.msra.mxu0 %v23844_v12  ;;  %23463 = vmatprep.mubr.msk.f32.mxu0 %vm171_vm1, %v17098_v22 }
 0xc48   : > { %23849 = vmatprep.subr.bf16.mxu0 %v23848_v8 }
 0xc4a   : > { %23464 = vmatmul.mubr.msk.f32.gmra.mrb[66].mxu0 %vm171_vm1, %v17099_v63 }
 0xc4b   : > { %23466 = vmatprep.mubr.msk.f32.mxu0 %vm171_vm1, %v17100_v33  ;;  %23851 = vmatpush3.bf16.msra.mxu0 %v23848_v8 }
 0xc4e   : > { %23467 = vmatmul.mubr.msk.f32.gmra.mrb[68].mxu0 %vm171_vm1, %v17101_v20 }
 0xc4f   : > { %23469 = vmatprep.mubr.msk.f32.mxu0 %vm171_vm1, %v17102_v45 }
 0xc52   : > { %23470 = vmatmul.mubr.msk.f32.gmra.mrb[70].mxu0 %vm171_vm1, %v17103_v23 }
 0xc53   : > { %23472 = vmatprep.mubr.msk.f32.mxu0 %vm171_vm1, %v17104_v50 }
 0xc56   : > { %23473 = vmatmul.mubr.msk.f32.gmra.mrb[72].mxu0 %vm171_vm1, %v17105_v21 }
 0xc57   : > { %23475 = vmatprep.mubr.msk.f32.mxu0 %vm171_vm1, %v17106_v4 }
 0xc5a   : > { %23476 = vmatmul.mubr.msk.f32.gmra.mrb[74].mxu0 %vm171_vm1, %v17107_v51 }
 0xc5b   : > { %23478 = vmatprep.mubr.msk.f32.mxu0 %vm171_vm1, %v17108_v31 }
 0xc5e   : > { %23479 = vmatmul.mubr.msk.f32.gmra.mrb[76].mxu0 %vm171_vm1, %v17109_v2 }
 0xc5f   : > { %23481 = vmatprep.mubr.msk.f32.mxu0 %vm171_vm1, %v17110_v52 }
 0xc62   : > { %23482 = vmatmul.mubr.msk.f32.gmra.mrb[78].mxu0 %vm171_vm1, %v17111_v59 }
 0xc63   : > { %23484 = vmatprep.mubr.msk.f32.mxu0 %vm171_vm1, %v17112_v13 }
 0xc66   : > { %23485 = vmatmul.mubr.msk.f32.gmra.mrb[80].mxu0 %vm171_vm1, %v17113_v34 }
 0xc67   : > { %23487 = vmatprep.mubr.msk.f32.mxu0 %vm171_vm1, %v17114_v48 }
 0xc6a   : > { %23488 = vmatmul.mubr.msk.f32.gmra.mrb[82].mxu0 %vm171_vm1, %v17115_v35 }
 0xc6b   : > { %23490 = vmatprep.mubr.msk.f32.mxu0 %vm171_vm1, %v17116_v54 }
 0xc6e   : > { %23491 = vmatmul.mubr.msk.f32.gmra.mrb[84].mxu0 %vm171_vm1, %v17117_v32 }
 0xc6f   : > { %23493 = vmatprep.mubr.msk.f32.mxu0 %vm171_vm1, %v29101_v28  ;;  %v17127_v28 = vld [vmem:[#allocation2 + $0x1a1] sm:$0xff] }
 0xc72   : > { %23494 = vmatmul.mubr.msk.f32.gmra.mrb[86].mxu0 %vm171_vm1, %v30525_v14  ;;  %v30562_v14 = vld [vmem:[#allocation29_spill] sm:$0xff] }
 0xc73   : > { %23496 = vmatprep.mubr.msk.f32.mxu0 %vm171_vm1, %v30526_v43  ;;  %v30563_v43 = vld [vmem:[#allocation15_spill] sm:$0xff] }
 0xc76   : > { %23497 = vmatmul.mubr.msk.f32.gmra.mrb[88].mxu0 %vm171_vm1, %v30527_v41  ;;  %v30564_v41 = vld [vmem:[#allocation31_spill] sm:$0xff] }
 0xc77   : > { %23499 = vmatprep.mubr.msk.f32.mxu0 %vm171_vm1, %v30528_v36  ;;  %v30565_v36 = vld [vmem:[#allocation18_spill] sm:$0xff] }
 0xc7a   : > { %23500 = vmatmul.mubr.msk.f32.gmra.mrb[90].mxu0 %vm171_vm1, %v30529_v46  ;;  %v30566_v46 = vld [vmem:[#allocation4_spill] sm:$0xff] }
 0xc7b   : > { %23502 = vmatprep.mubr.msk.f32.mxu0 %vm171_vm1, %v29558_v16  ;;  %v30567_v16 = vld [vmem:[#allocation19_spill] sm:$0xff] }
 0xc7e   : > { %23503 = vmatmul.mubr.msk.f32.gmra.mrb[92].mxu0 %vm171_vm1, %v29562_v11  ;;  %v30568_v11 = vld [vmem:[#allocation5_spill] sm:$0xff] }
 0xc7f   : > { %23505 = vmatprep.mubr.msk.f32.mxu0 %vm171_vm1, %v17126_v61 }
 0xc82   : > { %23506 = vmatmul.mubr.msk.f32.gmra.mrb[94].mxu0 %vm171_vm1, %v17127_v28 }
 0xc83   : > { %23516 = vmatprep.mubr.msk.f32.mxu0 %vm171_vm1, %v30530_v30  ;;  %v30569_v30 = vld [vmem:[#allocation20_spill] sm:$0xff] }
 0xc86   : > { %23517 = vmatmul.mubr.msk.f32.vlgmr.msra.gmra.mrb[64].mxu0 %vm171_vm1, %v30531_v24  ;;  %v30570_v24 = vld [vmem:[#allocation6_spill] sm:$0xff] }
 0xc87   : > { %23519 = vmatprep.mubr.msk.f32.mxu0 %vm171_vm1, %v30532_v0  ;;  %v17516_v0 = vld [vmem:[#allocation2 + $0x1a2] sm:$0xff] }
 0xc8a   : > { %23520 = vmatmul.mubr.msk.f32.gmra.mrb[66].mxu0 %vm171_vm1, %v30533_v17  ;;  %v29831_v17 = vld [vmem:[%s29874_s2 + $0x4] ss:$0 sm:$0xff] }
 0xc8b   : > { %23522 = vmatprep.mubr.msk.f32.mxu0 %vm171_vm1, %v30534_v38 }
 0xc8e   : > { %23523 = vmatmul.mubr.msk.f32.gmra.mrb[68].mxu0 %vm171_vm1, %v30535_v40 }
 0xc8f   : > { %23525 = vmatprep.mubr.msk.f32.mxu0 %vm171_vm1, %v30536_v47 }
 0xc92   : > { %23526 = vmatmul.mubr.msk.f32.gmra.mrb[70].mxu0 %vm171_vm1, %v30537_v42 }
 0xc93   : > { %23528 = vmatprep.mubr.msk.f32.mxu0 %vm171_vm1, %v30538_v5 }
 0xc96   : > { %23529 = vmatmul.mubr.msk.f32.gmra.mrb[72].mxu0 %vm171_vm1, %v30539_v15 }
 0xc97   : > { %23531 = vmatprep.mubr.msk.f32.mxu0 %vm171_vm1, %v30540_v26 }
 0xc9a   : > { %23532 = vmatmul.mubr.msk.f32.gmra.mrb[74].mxu0 %vm171_vm1, %v30541_v60 }
 0xc9b   : > { %23534 = vmatprep.mubr.msk.f32.mxu0 %vm171_vm1, %v30542_v62 }
 0xc9e   : > { %23535 = vmatmul.mubr.msk.f32.gmra.mrb[76].mxu0 %vm171_vm1, %v30543_v6 }
 0xc9f   : > { %23537 = vmatprep.mubr.msk.f32.mxu0 %vm171_vm1, %v30544_v58 }
 0xca2   : > { %23538 = vmatmul.mubr.msk.f32.gmra.mrb[78].mxu0 %vm171_vm1, %v30545_v29 }
 0xca3   : > { %23540 = vmatprep.mubr.msk.f32.mxu0 %vm171_vm1, %v30546_v1 }
 0xca6   : > { %23541 = vmatmul.mubr.msk.f32.gmra.mrb[80].mxu0 %vm171_vm1, %v30560_v53 }
 0xca7   : > { %23543 = vmatprep.mubr.msk.f32.mxu0 %vm171_vm1, %v30561_v25 }
 0xcaa   : > { %23544 = vmatmul.mubr.msk.f32.gmra.mrb[82].mxu0 %vm171_vm1, %v30562_v14 }
 0xcab   : > { %23546 = vmatprep.mubr.msk.f32.mxu0 %vm171_vm1, %v30563_v43 }
 0xcae   : > { %23547 = vmatmul.mubr.msk.f32.gmra.mrb[84].mxu0 %vm171_vm1, %v30551_v10 }
 0xcaf   : > { %23549 = vmatprep.mubr.msk.f32.mxu0 %vm171_vm1, %v30564_v41 }
 0xcb2   : > { %23550 = vmatmul.mubr.msk.f32.gmra.mrb[86].mxu0 %vm171_vm1, %v30553_v18 }
 0xcb3   : > { %23552 = vmatprep.mubr.msk.f32.mxu0 %vm171_vm1, %v30565_v36 }
 0xcb6   : > { %23553 = vmatmul.mubr.msk.f32.gmra.mrb[88].mxu0 %vm171_vm1, %v30566_v46 }
 0xcb7   : > { %23555 = vmatprep.mubr.msk.f32.mxu0 %vm171_vm1, %v30567_v16 }
 0xcba   : > { %23556 = vmatmul.mubr.msk.f32.gmra.mrb[90].mxu0 %vm171_vm1, %v30568_v11 }
 0xcbb   : > { %23558 = vmatprep.mubr.msk.f32.mxu0 %vm171_vm1, %v30569_v30 }
 0xcbe   : > { %23559 = vmatmul.mubr.msk.f32.gmra.mrb[92].mxu0 %vm171_vm1, %v30570_v24 }
 0xcbf   : > { %23561 = vmatprep.mubr.msk.f32.mxu0 %vm171_vm1, %v17515_v57 }
 0xcc2   : > { %23562 = vmatmul.mubr.msk.f32.gmra.mrb[94].mxu0 %vm171_vm1, %v17516_v0 }
 0xd59   : > { %v23518_v38 = vpop.f32.mrb[64].mxu0 }
 0xd5a   : > { %v17683_v40 = vpop.f32.mrb[65].mxu0  ;;  %v17880_v15 = vadd.f32 %v23518_v38, %v29831_v17 }
 0xd5b   : > { %v17879_v47 = vadd.f32 %v29831_v17, %v17683_v40 }
 0xd5d   : > { %17911 = vxpose.xlu0.b32.start [1/16] (narrow) %v17879_v47, 40  ;;  %v23521_v42 = vpop.f32.mrb[66].mxu0 }
 0xd5e   : > { %v17693_v5 = vpop.f32.mrb[67].mxu0  ;;  %v17882_v29 = vadd.f32 %v23521_v42, %v29831_v17 }
 0xd5f   : > { %v17881_v62 = vadd.f32 %v29831_v17, %v17693_v5 }
 0xd61   : > { %17912 = vxpose.xlu0.b32.cont [2/16] (narrow) %v17880_v15, 40  ;;  %v23524_v26 = vpop.f32.mrb[68].mxu0 }
 0xd62   : > { %v17703_v60 = vpop.f32.mrb[69].mxu0  ;;  %v17884_v10 = vadd.f32 %v23524_v26, %v29831_v17 }
 0xd63   : > { %v17883_v3 = vadd.f32 %v29831_v17, %v17703_v60 }
 0xd65   : > { %17913 = vxpose.xlu0.b32.cont [3/16] (narrow) %v17881_v62, 40  ;;  %v23527_v6 = vpop.f32.mrb[70].mxu0 }
 0xd66   : > { %v17713_v58 = vpop.f32.mrb[71].mxu0  ;;  %v17886_v19 = vadd.f32 %v23527_v6, %v29831_v17 }
 0xd67   : > { %v17885_v37 = vadd.f32 %v29831_v17, %v17713_v58 }
 0xd69   : > { %17914 = vxpose.xlu0.b32.cont [4/16] (narrow) %v17882_v29, 40  ;;  %v23530_v1 = vpop.f32.mrb[72].mxu0 }
 0xd6a   : > { %v17723_v27 = vpop.f32.mrb[73].mxu0  ;;  %v17888_v33 = vadd.f32 %v23530_v1, %v29831_v17 }
 0xd6b   : > { %v17887_v8 = vadd.f32 %v29831_v17, %v17723_v27 }
 0xd6d   : > { %17915 = vxpose.xlu0.b32.cont [5/16] (narrow) %v17883_v3, 40  ;;  %v23533_v39 = vpop.f32.mrb[74].mxu0 }
 0xd6e   : > { %v17733_v7 = vpop.f32.mrb[75].mxu0  ;;  %v17890_v31 = vadd.f32 %v23533_v39, %v29831_v17 }
 0xd6f   : > { %v17889_v50 = vadd.f32 %v29831_v17, %v17733_v7 }
 0xd71   : > { %17916 = vxpose.xlu0.b32.cont [6/16] (narrow) %v17884_v10, 40  ;;  %v23536_v12 = vpop.f32.mrb[76].mxu0 }
 0xd72   : > { %v17743_v18 = vpop.f32.mrb[77].mxu0  ;;  %v17892_v28 = vadd.f32 %v23536_v12, %v29831_v17 }
 0xd73   : > { %v17891_v34 = vadd.f32 %v29831_v17, %v17743_v18 }
 0xd75   : > { %17917 = vxpose.xlu0.b32.cont [7/16] (narrow) %v17885_v37, 40  ;;  %v23539_v49 = vpop.f32.mrb[78].mxu0 }
 0xd76   : > { %v17753_v9 = vpop.f32.mrb[79].mxu0  ;;  %v17894_v24 = vadd.f32 %v23539_v49, %v29831_v17 }
 0xd77   : > { %v17893_v36 = vadd.f32 %v29831_v17, %v17753_v9 }
 0xd79   : > { %17918 = vxpose.xlu0.b32.cont [8/16] (narrow) %v17886_v19, 40  ;;  %v23542_v44 = vpop.f32.mrb[80].mxu0 }
 0xd7a   : > { %v17763_v56 = vpop.f32.mrb[81].mxu0  ;;  %v17896_v20 = vadd.f32 %v23542_v44, %v29831_v17 }
 0xd7b   : > { %v17895_v55 = vadd.f32 %v29831_v17, %v17763_v56 }
 0xd7d   : > { %17919 = vxpose.xlu0.b32.cont [9/16] (narrow) %v17887_v8, 40  ;;  %17943 = vxpose.xlu1.b32.start [1/16] (narrow) %v17895_v55, 40  ;;  %v23545_v22 = vpop.f32.mrb[82].mxu0 }
 0xd7e   : > { %v17773_v63 = vpop.f32.mrb[83].mxu0  ;;  %v17898_v2 = vadd.f32 %v23545_v22, %v29831_v17 }
 0xd7f   : > { %v17897_v21 = vadd.f32 %v29831_v17, %v17773_v63 }
 0xd81   : > { %17920 = vxpose.xlu0.b32.cont [10/16] (narrow) %v17888_v33, 40  ;;  %17944 = vxpose.xlu1.b32.cont [2/16] (narrow) %v17896_v20, 40  ;;  %v23548_v45 = vpop.f32.mrb[84].mxu0 }
 0xd82   : > { %v17783_v23 = vpop.f32.mrb[85].mxu0  ;;  %v17900_v53 = vadd.f32 %v23548_v45, %v29831_v17 }
 0xd83   : > { %v17899_v48 = vadd.f32 %v29831_v17, %v17783_v23 }
 0xd85   : > { %17921 = vxpose.xlu0.b32.cont [11/16] (narrow) %v17889_v50, 40  ;;  %17945 = vxpose.xlu1.b32.cont [3/16] (narrow) %v17897_v21, 40  ;;  %v23551_v4 = vpop.f32.mrb[86].mxu0 }
 0xd86   : > { %v17793_v51 = vpop.f32.mrb[87].mxu0  ;;  %v17902_v0 = vadd.f32 %v23551_v4, %v29831_v17 }
 0xd87   : > { %v17901_v46 = vadd.f32 %v29831_v17, %v17793_v51 }
 0xd89   : > { %17922 = vxpose.xlu0.b32.cont [12/16] (narrow) %v17890_v31, 40  ;;  %17946 = vxpose.xlu1.b32.cont [4/16] (narrow) %v17898_v2, 40  ;;  %v23554_v52 = vpop.f32.mrb[88].mxu0 }
 0xd8a   : > { %v17904_v59 = vadd.f32 %v23554_v52, %v29831_v17  ;;  %v17803_v13 = vpop.f32.mrb[89].mxu0 }
 0xd8b   : > { %v17903_v35 = vadd.f32 %v29831_v17, %v17803_v13 }
 0xd8d   : > { %17923 = vxpose.xlu0.b32.cont [13/16] (narrow) %v17891_v34, 40  ;;  %17947 = vxpose.xlu1.b32.cont [5/16] (narrow) %v17899_v48, 40  ;;  %v23557_v54 = vpop.f32.mrb[90].mxu0 }
 0xd8e   : > { %v17906_v32 = vadd.f32 %v23557_v54, %v29831_v17  ;;  %v17813_v61 = vpop.f32.mrb[91].mxu0 }
 0xd8f   : > { %v17905_v25 = vadd.f32 %v29831_v17, %v17813_v61 }
 0xd91   : > { %17924 = vxpose.xlu0.b32.cont [14/16] (narrow) %v17892_v28, 40  ;;  %17948 = vxpose.xlu1.b32.cont [6/16] (narrow) %v17900_v53, 40  ;;  %v23560_v14 = vpop.f32.mrb[92].mxu0 }
 0xd92   : > { %v17908_v43 = vadd.f32 %v23560_v14, %v29831_v17  ;;  %v17823_v41 = vpop.f32.mrb[93].mxu0 }
 0xd93   : > { %v17907_v16 = vadd.f32 %v29831_v17, %v17823_v41 }
 0xd95   : > { %17925 = vxpose.xlu0.b32.cont [15/16] (narrow) %v17893_v36, 40  ;;  %17949 = vxpose.xlu1.b32.cont [7/16] (narrow) %v17901_v46, 40  ;;  %v23563_v11 = vpop.f32.mrb[94].mxu0 }
 0xd96   : > { %v17910_v30 = vadd.f32 %v23563_v11, %v29831_v17  ;;  %v17833_v57 = vpop.f32.mrb[95].mxu0 }
 0xd97   : > { %v17909_v38 = vadd.f32 %v29831_v17, %v17833_v57 }
 0xd99   : > { %17926 = vxpose.xlu0.b32.end [16/16] (narrow) %v17894_v24, 40  ;;  %17950 = vxpose.xlu1.b32.cont [8/16] (narrow) %v17902_v0, 40 }
 0xd9d   : > { %17951 = vxpose.xlu1.b32.cont [9/16] (narrow) %v17903_v35, 40 }
 0xda1   : > { %17952 = vxpose.xlu1.b32.cont [10/16] (narrow) %v17904_v59, 40 }
 0xda5   : > { %17953 = vxpose.xlu1.b32.cont [11/16] (narrow) %v17905_v25, 40 }
 0xda9   : > { %17954 = vxpose.xlu1.b32.cont [12/16] (narrow) %v17906_v32, 40 }
 0xdad   : > { %17955 = vxpose.xlu1.b32.cont [13/16] (narrow) %v17907_v16, 40 }
 0xdb1   : > { %17956 = vxpose.xlu1.b32.cont [14/16] (narrow) %v17908_v43, 40 }
 0xdb5   : > { %17957 = vxpose.xlu1.b32.cont [15/16] (narrow) %v17909_v38, 40 }
 0xdb9   : > { %17958 = vxpose.xlu1.b32.end [16/16] (narrow) %v17910_v30, 40 }
 0xddd   : > { %v17927_v40 = vpop.trf.xlu0 }
 0xdde   : > { %17975 = vst [vmem:[%s170_s10] sm:$0xff] %v17927_v40 }
 0xde1   : > { %v17928_v47 = vpop.trf.xlu0 }
 0xde2   : > { %17977 = vst [vmem:[%s170_s10 + $0x10] sm:$0xff] %v17928_v47 }
 0xde5   : > { %v17929_v17 = vpop.trf.xlu0 }
 0xde6   : > { %17979 = vst [vmem:[%s170_s10 + $0x20] sm:$0xff] %v17929_v17 }
 0xde9   : > { %v17930_v42 = vpop.trf.xlu0 }
 0xdea   : > { %17981 = vst [vmem:[%s170_s10 + $0x30] sm:$0xff] %v17930_v42 }
 0xded   : > { %v17931_v5 = vpop.trf.xlu0 }
 0xdee   : > { %17983 = vst [vmem:[%s170_s10 + $0x40] sm:$0xf] %v17931_v5 }
 0xdfd   : > { %v17959_v15 = vpop.trf.xlu1 }
 0xdfe   : > { %17976 = vst [vmem:[%s170_s10 + $0x8] sm:$0xff] %v17959_v15 }
 0xe01   : > { %v17960_v26 = vpop.trf.xlu1 }
 0xe02   : > { %17978 = vst [vmem:[%s170_s10 + $0x18] sm:$0xff] %v17960_v26 }
 0xe05   : > { %v17961_v60 = vpop.trf.xlu1 }
 0xe06   : > { %17980 = vst [vmem:[%s170_s10 + $0x28] sm:$0xff] %v17961_v60 }
 0xe09   : > { %v17962_v62 = vpop.trf.xlu1 }
 0xe0a   : > { %17982 = vst [vmem:[%s170_s10 + $0x38] sm:$0xff] %v17962_v62 }
 0xe0d   : > { %v17963_v6 = vpop.trf.xlu1 }
 0xe0e   : > { %17984 = vst [vmem:[%s170_s10 + $0x48] sm:$0xf] %v17963_v6 }
 0xe0f PF: > { %s13_s12 = sadd.s32 1, %s25150_s12  }
 0xe10   : > { %p10_p4 = scmp.ge.s32.totalorder %s13_s12, 4  }
 0xe12   :  { %12 = sbr.rel (!%p10_p4) target bundleno = 1 (0x1), region = 65 }

</bundles_post_ra>
